<compile_context>
chip_gen: v7x
topology: tpu7x:2x2x1
jax: 0.10.0
libtpu: 0.0.40
codegen_flags: <defaults>
</compile_context>

<pallas_src>
import functools

import jax
import jax.numpy as jnp
from jax import lax
from jax.experimental import pallas as pl
from jax.experimental.pallas import tpu as pltpu

NEG_SLOPE = 0.01   # nn.LeakyReLU default negative_slope
BN_EPS = 1e-5      # nn.BatchNorm2d default eps


# ---------------------------------------------------------------------------
# Helpers
# ---------------------------------------------------------------------------
def _rup(v, m):
    return ((v + m - 1) // m) * m


def _pick_spatial_tile(mp, target=2048):
    """Largest 128-multiple divisor of mp (mp itself a multiple of 128) that is <= target."""
    t = min(target, mp)
    t -= t % 128
    while mp % t:
        t -= 128
    return t


def _vmem_cap_bytes():
    """Physical VMEM budget with headroom; never exceeds the smallest (v7x, 64 MiB) gen."""
    try:
        cap = int(pltpu.get_tpu_info().vmem_capacity_bytes)
    except Exception:
        cap = 64 << 20
    return (cap * 7) // 8


# ---------------------------------------------------------------------------
# Stage 1: 1x1 upsample conv (channels-first, batch folded onto the lane axis)
# ---------------------------------------------------------------------------
def _upsample_conv1x1_kernel(x_ref, wt_ref, b_ref, o_ref):
    # x_ref: (Cin, TS), wt_ref: (Cup, Cin), b_ref: (Cup, 1) -> o_ref: (Cup, TS)
    acc = jnp.dot(wt_ref[...], x_ref[...], preferred_element_type=jnp.float32)
    o_ref[...] = (acc + b_ref[...]).astype(o_ref.dtype)


# ---------------------------------------------------------------------------
# Stage 2: fused 3x3 conv + LeakyReLU + BN + 1x1 conv + LeakyReLU + BN
# ---------------------------------------------------------------------------
def _make_fused_conv_kernel(Cc_main, Csk, OUT, H2, W2, SUB=8, WSUB=512):
    Cc = Cc_main + Csk
    Hp, Wp = H2 + 2, W2 + 2
    nfull, rem = divmod(H2, SUB)
    w_chunks = [(w0, min(WSUB, W2 - w0)) for w0 in range(0, W2, WSUB)]

    def impl(x_ref, skip_ref, w3_ref, w1_ref, p_ref, o_ref, xpad):
        # x_ref   : (1, Cc_main, H2, W2) VMEM block (unpadded)
        # skip_ref: (1, Csk, H2, W2) or None
        # w3_ref  : (9*Cc*OUT,) SMEM scalars, layout [dy, dx, cin, cout]
        # w1_ref  : (OUT*OUT,)  SMEM scalars, layout [cin, cout]
        # p_ref   : (6*OUT,)    SMEM: [b3 | bn1_scale | bn1_shift | b1 | bn2_scale | bn2_shift]
        # o_ref   : (1, OUT, H2, W2) NCHW output block
        # xpad    : (Cc, Hp, Wp) VMEM scratch: halo-padded image built in-kernel.

        # ---- build the halo-padded image in VMEM (no wrapper-side pad / concat) ----
        zrow = jnp.zeros((1, Wp), jnp.float32)
        zcol = jnp.zeros((Hp, 1), jnp.float32)

        def fill(dst_c, src_ref, src_c):
            xpad[dst_c, 0:1, :] = zrow
            xpad[dst_c, Hp - 1:Hp, :] = zrow
            xpad[dst_c, :, 0:1] = zcol
            xpad[dst_c, :, Wp - 1:Wp] = zcol
            xpad[dst_c, 1:H2 + 1, 1:W2 + 1] = src_ref[0, src_c]

        for c in range(Cc_main):
            fill(c, x_ref, c)
        for c in range(Csk):
            fill(Cc_main + c, skip_ref, c)

        # ---- register-tiled fused conv over (SUB x <=WSUB) output sub-tiles --------
        def compute_tile(r0, nrows, w0, ncols):
            # Accumulators / intermediates are (nrows, ncols) -> vreg-resident.
            accs = [jnp.zeros((nrows, ncols), jnp.float32) + p_ref[o]   # conv3x3 bias
                    for o in range(OUT)]
            for c in range(Cc):
                # One load per (sub-tile, channel); all 9 taps are in-vreg slices of it
                # (lane/sublane selects -> XLU slot, which is idle here).
                win = xpad[c, pl.ds(r0, nrows + 2), w0:w0 + ncols + 2]
                for dy in range(3):
                    for dx in range(3):
                        tap = win[dy:dy + nrows, dx:dx + ncols]
                        base = ((dy * 3 + dx) * Cc + c) * OUT
                        for o in range(OUT):
                            accs[o] = accs[o] + w3_ref[base + o] * tap
            hs = []
            for o in range(OUT):
                h = accs[o]
                h = jnp.where(h > 0, h, NEG_SLOPE * h)                  # LeakyReLU
                hs.append(h * p_ref[OUT + o] + p_ref[2 * OUT + o])      # BN1 (folded)
            for oc in range(OUT):
                a = jnp.zeros((nrows, ncols), jnp.float32) + p_ref[3 * OUT + oc]
                for ic in range(OUT):
                    a = a + w1_ref[ic * OUT + oc] * hs[ic]              # 1x1 conv (VPU)
                a = jnp.where(a > 0, a, NEG_SLOPE * a)                  # LeakyReLU
                a = a * p_ref[4 * OUT + oc] + p_ref[5 * OUT + oc]       # BN2 (folded)
                o_ref[0, oc, pl.ds(r0, nrows), w0:w0 + ncols] = a.astype(o_ref.dtype)

        def row_chunk(r0, nrows):
            for (w0, ncols) in w_chunks:
                compute_tile(r0, nrows, w0, ncols)

        if nfull > 0:
            if nfull <= 8:
                # Short row loop: fully unroll (gives the LLO scheduler visibility).
                for r in range(nfull):
                    row_chunk(r * SUB, SUB)
            else:
                # Long row loop: rolled fori_loop bounds vreg live ranges / compile time.
                def fori_body(r, carry):
                    row_chunk(pl.multiple_of(r * SUB, SUB), SUB)
                    return carry
                lax.fori_loop(0, nfull, fori_body, 0)
        if rem:
            row_chunk(nfull * SUB, rem)

    if Csk > 0:
        return impl

    def kernel(x_ref, w3_ref, w1_ref, p_ref, o_ref, xpad):
        return impl(x_ref, None, w3_ref, w1_ref, p_ref, o_ref, xpad)
    return kernel


# ---------------------------------------------------------------------------
# Wrapper
# ---------------------------------------------------------------------------
def upconv_block_forward(x_nchw, params, scale_factor, skip_nchw=None):
    s0, s1 = scale_factor
    wu, bu = params["wu"], params["bu"]              # (Cin, Cup), (Cup,)
    w3, b3 = params["w3"], params["b3"]              # (3,3,Cc,OUT) HWIO, (OUT,)
    w1, b1 = params["w1"], params["b1"]              # (OUT,OUT) in,out ; (OUT,)
    g1, be1, m1, v1 = params["bn1"]
    g2, be2, m2, v2 = params["bn2"]

    N, Cin, H, W = x_nchw.shape
    Cup = wu.shape[1]
    out_f = Cup // (s0 * s1)
    H2, W2 = H * s0, W * s1

    # ---- Stage 1: 1x1 upsample conv ------------------------------------------------
    # Fold batch onto the spatial axis and pad to a 128 multiple -> every tile and every
    # store is lane-dense regardless of HW.
    M = N * H * W
    Mp = _rup(M, 128)
    x_cf = jnp.transpose(x_nchw, (1, 0, 2, 3)).reshape(Cin, M)
    if Mp != M:
        x_cf = jnp.pad(x_cf, ((0, 0), (0, Mp - M)))
    TS = _pick_spatial_tile(Mp)
    wu_t = jnp.transpose(wu)                         # (Cup, Cin)

    y = pl.pallas_call(
        _upsample_conv1x1_kernel,
        out_shape=jax.ShapeDtypeStruct((Cup, Mp), jnp.float32),
        grid=(Mp // TS,),
        in_specs=[
            pl.BlockSpec((Cin, TS), lambda s: (0, s)),
            pl.BlockSpec((Cup, Cin), lambda s: (0, 0)),
            pl.BlockSpec((Cup, 1), lambda s: (0, 0)),
        ],
        out_specs=pl.BlockSpec((Cup, TS), lambda s: (0, s)),
        compiler_params=pltpu.CompilerParams(dimension_semantics=("parallel",)),
    )(x_cf, wu_t, bu.reshape(Cup, 1))

    # ---- pixel shuffle 'b (c s0 s1) h w -> b c (h s0) (w s1)' -----------------------
    # The lane interleave of the rearrange has no cheap in-kernel form; under jit XLA
    # fuses slice/reshape/transpose into one pass over this out_f-channel array.
    y = y[:, :M].reshape(out_f, s0, s1, N, H, W)
    x_up = jnp.transpose(y, (3, 0, 4, 1, 5, 2)).reshape(N, out_f, H2, W2)

    Cc_main = out_f
    Csk = 0 if skip_nchw is None else skip_nchw.shape[1]
    Cc = Cc_main + Csk
    OUT = out_f
    Hp, Wp = H2 + 2, W2 + 2

    # ---- fold inference BN into per-channel scale/shift; pack scalars for SMEM -----
    scale1 = g1 / jnp.sqrt(v1 + BN_EPS)
    shift1 = be1 - m1 * scale1
    scale2 = g2 / jnp.sqrt(v2 + BN_EPS)
    shift2 = be2 - m2 * scale2
    pvec = jnp.concatenate([b3, scale1, shift1, b1, scale2, shift2])   # (6*OUT,)
    w3_flat = w3.reshape(-1)                                           # (9*Cc*OUT,)
    w1_flat = w1.reshape(-1)                                           # (OUT*OUT,)

    # ---- VMEM budget: actual (padded) block + scratch footprint, clamped to physical -
    img = _rup(H2, 8) * _rup(W2, 128) * 4
    scratch_b = Cc * _rup(Hp, 8) * _rup(Wp, 128) * 4
    need = 2 * (Cc * img + OUT * img) + scratch_b + (4 << 20)
    vmem_limit = int(min(_vmem_cap_bytes(), max(need, 32 << 20)))

    # ---- Stage 2: fused conv3x3 + LeakyReLU + BN + conv1x1 + LeakyReLU + BN --------
    kernel2 = _make_fused_conv_kernel(Cc_main, Csk, OUT, H2, W2)

    in_specs = [pl.BlockSpec((1, Cc_main, H2, W2), lambda n: (n, 0, 0, 0))]
    args = [x_up]
    if Csk > 0:
        in_specs.append(pl.BlockSpec((1, Csk, H2, W2), lambda n: (n, 0, 0, 0)))
        args.append(skip_nchw)
    in_specs += [pl.BlockSpec(memory_space=pltpu.MemorySpace.SMEM)] * 3
    args += [w3_flat, w1_flat, pvec]

    out = pl.pallas_call(
        kernel2,
        out_shape=jax.ShapeDtypeStruct((N, OUT, H2, W2), jnp.float32),
        grid=(N,),
        in_specs=in_specs,
        out_specs=pl.BlockSpec((1, OUT, H2, W2), lambda n: (n, 0, 0, 0)),
        scratch_shapes=[pltpu.VMEM((Cc, Hp, Wp), jnp.float32)],
        compiler_params=pltpu.CompilerParams(
            dimension_semantics=("parallel",),
            vmem_limit_bytes=vmem_limit),
    )(*args)

    return out   # NCHW


# ---------------------------------------------------------------------------
# Pure-JAX NCHW reference (mirrors the PyTorch module, inference-mode BN)
# ---------------------------------------------------------------------------
def upconv_block_reference(x_nchw, params, scale_factor, skip_nchw=None):
    s0, s1 = scale_factor
    dn = ("NCHW", "OIHW", "NCHW")

    def leaky(v):
        return jnp.where(v > 0, v, NEG_SLOPE * v)

    def bn(v, g, b, m, var):
        inv = 1.0 / jnp.sqrt(var + BN_EPS)
        return (v - m[None, :, None, None]) * inv[None, :, None, None] * \
            g[None, :, None, None] + b[None, :, None, None]

    wu_oihw = jnp.transpose(params["wu"])[:, :, None, None]
    y = lax.conv_general_dilated(x_nchw, wu_oihw, (1, 1), "VALID", dimension_numbers=dn)
    y = y + params["bu"][None, :, None, None]

    N, Cup, H, W = y.shape
    out_f = Cup // (s0 * s1)
    y = y.reshape(N, out_f, s0, s1, H, W)
    x_up = jnp.transpose(y, (0, 1, 4, 2, 5, 3)).reshape(N, out_f, H * s0, W * s1)
    if skip_nchw is not None:
        x_up = jnp.concatenate([x_up, skip_nchw], axis=1)

    w3_oihw = jnp.transpose(params["w3"], (3, 2, 0, 1))
    h = lax.conv_general_dilated(x_up, w3_oihw, (1, 1), ((1, 1), (1, 1)),
                                 dimension_numbers=dn)
    h = h + params["b3"][None, :, None, None]
    g1, be1, m1, v1 = params["bn1"]
    h = bn(leaky(h), g1, be1, m1, v1)

    w1_oihw = jnp.transpose(params["w1"])[:, :, None, None]
    o = lax.conv_general_dilated(h, w1_oihw, (1, 1), "VALID", dimension_numbers=dn)
    o = o + params["b1"][None, :, None, None]
    g2, be2, m2, v2 = params["bn2"]
    return bn(leaky(o), g2, be2, m2, v2)


# ---------------------------------------------------------------------------
if __name__ == "__main__":
    in_filters, out_filters = 8, 4
    scale_factor = (2, 8)          # default UpConvBlock scale factor
    skip_filters = 0               # default: no skip connection
    N, H, W = 2, 8, 8

    key = jax.random.PRNGKey(0)
    ks = jax.random.split(key, 16)
    Cup = out_filters * scale_factor[0] * scale_factor[1]
    Cc = out_filters + skip_filters

    params = dict(
        wu=jax.random.normal(ks[0], (in_filters, Cup), jnp.float32) * 0.1,
        bu=jax.random.normal(ks[1], (Cup,), jnp.float32) * 0.1,
        w3=jax.random.normal(ks[2], (3, 3, Cc, out_filters), jnp.float32) * 0.1,
        b3=jax.random.normal(ks[3], (out_filters,), jnp.float32) * 0.1,
        bn1=(jax.random.normal(ks[4], (out_filters,), jnp.float32) * 0.1 + 1.0,
             jax.random.normal(ks[5], (out_filters,), jnp.float32) * 0.1,
             jax.random.normal(ks[6], (out_filters,), jnp.float32) * 0.1,
             jnp.abs(jax.random.normal(ks[7], (out_filters,), jnp.float32)) * 0.1 + 0.5),
        w1=jax.random.normal(ks[8], (out_filters, out_filters), jnp.float32) * 0.1,
        b1=jax.random.normal(ks[9], (out_filters,), jnp.float32) * 0.1,
        bn2=(jax.random.normal(ks[10], (out_filters,), jnp.float32) * 0.1 + 1.0,
             jax.random.normal(ks[11], (out_filters,), jnp.float32) * 0.1,
             jax.random.normal(ks[12], (out_filters,), jnp.float32) * 0.1,
             jnp.abs(jax.random.normal(ks[13], (out_filters,), jnp.float32)) * 0.1 + 0.5),
    )
    x = jax.random.normal(ks[14], (N, in_filters, H, W), jnp.float32)

    fwd = jax.jit(functools.partial(upconv_block_forward, scale_factor=scale_factor))
    out = jax.block_until_ready(fwd(x, params))

    assert out.shape == (N, out_filters, H * scale_factor[0], W * scale_factor[1]), out.shape

    ref = upconv_block_reference(x, params, scale_factor)
    max_err = float(jnp.max(jnp.abs(out - ref)))
    assert max_err < 1e-2, f"mismatch vs pure-JAX reference: {max_err}"

    print("KERNEL_OK")
</pallas_src>

<mosaic_0001>
module attributes {stable_mosaic.version = 11 : i64} {
  func.func @_upsample_conv1x1_kernel(%arg0: i32, %arg1: memref<8x128xf32, #tpu.memory_space<vmem>>, %arg2: memref<64x8xf32, #tpu.memory_space<vmem>>, %arg3: memref<64x1xf32, #tpu.memory_space<vmem>>, %arg4: memref<64x128xf32, #tpu.memory_space<vmem>>) attributes {dimension_semantics = [#tpu.dimension_semantics<parallel>], iteration_bounds = array<i64: 1>, scalar_prefetch = 0 : i64, scratch_operands = 0 : i64, tpu.core_type = #tpu.core_type<tc>, window_params = [{transform_indices = @transform_0, window_bounds = array<i64: 8, 128>}, {pipeline_mode = #tpu.pipeline_mode<synchronous>, transform_indices = @transform_1, window_bounds = array<i64: 64, 8>}, {pipeline_mode = #tpu.pipeline_mode<synchronous>, transform_indices = @transform_2, window_bounds = array<i64: 64, 1>}, {transform_indices = @transform_3, window_bounds = array<i64: 64, 128>}]} {
    %c0 = arith.constant 0 : index
    %c0_0 = arith.constant 0 : index
    %0 = vector.load %arg2[%c0, %c0_0] : memref<64x8xf32, #tpu.memory_space<vmem>>, vector<64x8xf32>
    %c0_1 = arith.constant 0 : index
    %c0_2 = arith.constant 0 : index
    %1 = vector.load %arg1[%c0_1, %c0_2] : memref<8x128xf32, #tpu.memory_space<vmem>>, vector<8x128xf32>
    %cst = arith.constant dense<0.000000e+00> : vector<64x128xf32>
    %2 = tpu.matmul %0, %1, %cst {dimension_numbers = #tpu.dot_dimension_numbers<[1], [0], [0], [1], [0, 0, 1, 1], [], []>} : vector<64x8xf32>, vector<8x128xf32>, vector<64x128xf32> -> vector<64x128xf32>
    %c0_3 = arith.constant 0 : index
    %c0_4 = arith.constant 0 : index
    %3 = vector.load %arg3[%c0_3, %c0_4] : memref<64x1xf32, #tpu.memory_space<vmem>>, vector<64x1xf32>
    %4 = vector.broadcast %3 : vector<64x1xf32> to vector<64x128xf32>
    %5 = arith.addf %2, %4 : vector<64x128xf32>
    %c0_5 = arith.constant 0 : index
    %c0_6 = arith.constant 0 : index
    %6 = vector.load %arg4[%c0_5, %c0_6] : memref<64x128xf32, #tpu.memory_space<vmem>>, vector<64x128xf32>
    tpu.vector_store %arg4[%c0_5, %c0_6], %5 {strides = array<i32>} : memref<64x128xf32, #tpu.memory_space<vmem>>, vector<64x128xf32>,
    return
  }
  func.func @transform_0(%arg0: i32) -> (i32, i32) {
    %c0_i32 = arith.constant 0 : i32
    %c0_i32_0 = arith.constant 0 : i32
    return %c0_i32, %arg0 : i32, i32
  }
  func.func @transform_1(%arg0: i32) -> (i32, i32) {
    %c0_i32 = arith.constant 0 : i32
    %c0_i32_0 = arith.constant 0 : i32
    %c0_i32_1 = arith.constant 0 : i32
    return %c0_i32, %c0_i32_0 : i32, i32
  }
  func.func @transform_2(%arg0: i32) -> (i32, i32) {
    %c0_i32 = arith.constant 0 : i32
    %c0_i32_0 = arith.constant 0 : i32
    %c0_i32_1 = arith.constant 0 : i32
    return %c0_i32, %c0_i32_0 : i32, i32
  }
  func.func @transform_3(%arg0: i32) -> (i32, i32) {
    %c0_i32 = arith.constant 0 : i32
    %c0_i32_0 = arith.constant 0 : i32
    return %c0_i32, %arg0 : i32, i32
  }
}

module attributes {stable_mosaic.version = 11 : i64} {
  func.func @kernel(%arg0: i32, %arg1: memref<1x4x16x64xf32, #tpu.memory_space<vmem>>, %arg2: memref<144xf32, #tpu.memory_space<smem>>, %arg3: memref<16xf32, #tpu.memory_space<smem>>, %arg4: memref<24xf32, #tpu.memory_space<smem>>, %arg5: memref<1x4x16x64xf32, #tpu.memory_space<vmem>>, %arg6: memref<4x18x66xf32, #tpu.memory_space<vmem>>) attributes {dimension_semantics = [#tpu.dimension_semantics<parallel>], iteration_bounds = array<i64: 2>, scalar_prefetch = 0 : i64, scratch_operands = 1 : i64, tpu.core_type = #tpu.core_type<tc>, window_params = [{transform_indices = @transform_0, window_bounds = array<i64: 1, 4, 16, 64>}, {transform_indices = @transform_1, window_bounds = array<i64: 144>}, {transform_indices = @transform_2, window_bounds = array<i64: 16>}, {transform_indices = @transform_3, window_bounds = array<i64: 24>}, {transform_indices = @transform_4, window_bounds = array<i64: 1, 4, 16, 64>}]} {
    %cst = arith.constant 0.000000e+00 : f32
    %0 = vector.broadcast %cst : f32 to vector<1x66xf32>
    %cst_0 = arith.constant 0.000000e+00 : f32
    %1 = vector.broadcast %cst_0 : f32 to vector<18x1xf32>
    %c0 = arith.constant 0 : index
    %c0_1 = arith.constant 0 : index
    %c0_2 = arith.constant 0 : index
    %2 = vector.load %arg6[%c0, %c0_1, %c0_2] : memref<4x18x66xf32, #tpu.memory_space<vmem>>, vector<1x1x66xf32>
    %3 = vector.shape_cast %2 : vector<1x1x66xf32> to vector<1x66xf32>
    %4 = vector.shape_cast %0 : vector<1x66xf32> to vector<1x1x66xf32>
    tpu.vector_store %arg6[%c0, %c0_1, %c0_2], %4 {strides = array<i32>} : memref<4x18x66xf32, #tpu.memory_space<vmem>>, vector<1x1x66xf32>,
    %c0_3 = arith.constant 0 : index
    %c17 = arith.constant 17 : index
    %c0_4 = arith.constant 0 : index
    %5 = vector.load %arg6[%c0_3, %c17, %c0_4] : memref<4x18x66xf32, #tpu.memory_space<vmem>>, vector<1x1x66xf32>
    %6 = vector.shape_cast %5 : vector<1x1x66xf32> to vector<1x66xf32>
    %7 = vector.shape_cast %0 : vector<1x66xf32> to vector<1x1x66xf32>
    tpu.vector_store %arg6[%c0_3, %c17, %c0_4], %7 {strides = array<i32>} : memref<4x18x66xf32, #tpu.memory_space<vmem>>, vector<1x1x66xf32>,
    %c0_5 = arith.constant 0 : index
    %c0_6 = arith.constant 0 : index
    %c0_7 = arith.constant 0 : index
    %8 = vector.load %arg6[%c0_5, %c0_6, %c0_7] : memref<4x18x66xf32, #tpu.memory_space<vmem>>, vector<1x18x1xf32>
    %9 = vector.shape_cast %8 : vector<1x18x1xf32> to vector<18x1xf32>
    %10 = vector.shape_cast %1 : vector<18x1xf32> to vector<1x18x1xf32>
    tpu.vector_store %arg6[%c0_5, %c0_6, %c0_7], %10 {strides = array<i32>} : memref<4x18x66xf32, #tpu.memory_space<vmem>>, vector<1x18x1xf32>,
    %c0_8 = arith.constant 0 : index
    %c0_9 = arith.constant 0 : index
    %c65 = arith.constant 65 : index
    %11 = vector.load %arg6[%c0_8, %c0_9, %c65] : memref<4x18x66xf32, #tpu.memory_space<vmem>>, vector<1x18x1xf32>
    %12 = vector.shape_cast %11 : vector<1x18x1xf32> to vector<18x1xf32>
    %13 = vector.shape_cast %1 : vector<18x1xf32> to vector<1x18x1xf32>
    tpu.vector_store %arg6[%c0_8, %c0_9, %c65], %13 {strides = array<i32>} : memref<4x18x66xf32, #tpu.memory_space<vmem>>, vector<1x18x1xf32>,
    %c0_10 = arith.constant 0 : index
    %c0_11 = arith.constant 0 : index
    %c0_12 = arith.constant 0 : index
    %c0_13 = arith.constant 0 : index
    %14 = vector.load %arg1[%c0_10, %c0_11, %c0_12, %c0_13] : memref<1x4x16x64xf32, #tpu.memory_space<vmem>>, vector<1x1x16x64xf32>
    %15 = vector.shape_cast %14 : vector<1x1x16x64xf32> to vector<16x64xf32>
    %c0_14 = arith.constant 0 : index
    %c1 = arith.constant 1 : index
    %c1_15 = arith.constant 1 : index
    %16 = vector.load %arg6[%c0_14, %c1, %c1_15] : memref<4x18x66xf32, #tpu.memory_space<vmem>>, vector<1x16x64xf32>
    %17 = vector.shape_cast %16 : vector<1x16x64xf32> to vector<16x64xf32>
    %18 = vector.shape_cast %15 : vector<16x64xf32> to vector<1x16x64xf32>
    tpu.vector_store %arg6[%c0_14, %c1, %c1_15], %18 {strides = array<i32>} : memref<4x18x66xf32, #tpu.memory_space<vmem>>, vector<1x16x64xf32>,
    %c1_16 = arith.constant 1 : index
    %c0_17 = arith.constant 0 : index
    %c0_18 = arith.constant 0 : index
    %19 = vector.load %arg6[%c1_16, %c0_17, %c0_18] : memref<4x18x66xf32, #tpu.memory_space<vmem>>, vector<1x1x66xf32>
    %20 = vector.shape_cast %19 : vector<1x1x66xf32> to vector<1x66xf32>
    %21 = vector.shape_cast %0 : vector<1x66xf32> to vector<1x1x66xf32>
    tpu.vector_store %arg6[%c1_16, %c0_17, %c0_18], %21 {strides = array<i32>} : memref<4x18x66xf32, #tpu.memory_space<vmem>>, vector<1x1x66xf32>,
    %c1_19 = arith.constant 1 : index
    %c17_20 = arith.constant 17 : index
    %c0_21 = arith.constant 0 : index
    %22 = vector.load %arg6[%c1_19, %c17_20, %c0_21] : memref<4x18x66xf32, #tpu.memory_space<vmem>>, vector<1x1x66xf32>
    %23 = vector.shape_cast %22 : vector<1x1x66xf32> to vector<1x66xf32>
    %24 = vector.shape_cast %0 : vector<1x66xf32> to vector<1x1x66xf32>
    tpu.vector_store %arg6[%c1_19, %c17_20, %c0_21], %24 {strides = array<i32>} : memref<4x18x66xf32, #tpu.memory_space<vmem>>, vector<1x1x66xf32>,
    %c1_22 = arith.constant 1 : index
    %c0_23 = arith.constant 0 : index
    %c0_24 = arith.constant 0 : index
    %25 = vector.load %arg6[%c1_22, %c0_23, %c0_24] : memref<4x18x66xf32, #tpu.memory_space<vmem>>, vector<1x18x1xf32>
    %26 = vector.shape_cast %25 : vector<1x18x1xf32> to vector<18x1xf32>
    %27 = vector.shape_cast %1 : vector<18x1xf32> to vector<1x18x1xf32>
    tpu.vector_store %arg6[%c1_22, %c0_23, %c0_24], %27 {strides = array<i32>} : memref<4x18x66xf32, #tpu.memory_space<vmem>>, vector<1x18x1xf32>,
    %c1_25 = arith.constant 1 : index
    %c0_26 = arith.constant 0 : index
    %c65_27 = arith.constant 65 : index
    %28 = vector.load %arg6[%c1_25, %c0_26, %c65_27] : memref<4x18x66xf32, #tpu.memory_space<vmem>>, vector<1x18x1xf32>
    %29 = vector.shape_cast %28 : vector<1x18x1xf32> to vector<18x1xf32>
    %30 = vector.shape_cast %1 : vector<18x1xf32> to vector<1x18x1xf32>
    tpu.vector_store %arg6[%c1_25, %c0_26, %c65_27], %30 {strides = array<i32>} : memref<4x18x66xf32, #tpu.memory_space<vmem>>, vector<1x18x1xf32>,
    %c0_28 = arith.constant 0 : index
    %c1_29 = arith.constant 1 : index
    %c0_30 = arith.constant 0 : index
    %c0_31 = arith.constant 0 : index
    %31 = vector.load %arg1[%c0_28, %c1_29, %c0_30, %c0_31] : memref<1x4x16x64xf32, #tpu.memory_space<vmem>>, vector<1x1x16x64xf32>
    %32 = vector.shape_cast %31 : vector<1x1x16x64xf32> to vector<16x64xf32>
    %c1_32 = arith.constant 1 : index
    %c1_33 = arith.constant 1 : index
    %c1_34 = arith.constant 1 : index
    %33 = vector.load %arg6[%c1_32, %c1_33, %c1_34] : memref<4x18x66xf32, #tpu.memory_space<vmem>>, vector<1x16x64xf32>
    %34 = vector.shape_cast %33 : vector<1x16x64xf32> to vector<16x64xf32>
    %35 = vector.shape_cast %32 : vector<16x64xf32> to vector<1x16x64xf32>
    tpu.vector_store %arg6[%c1_32, %c1_33, %c1_34], %35 {strides = array<i32>} : memref<4x18x66xf32, #tpu.memory_space<vmem>>, vector<1x16x64xf32>,
    %c2 = arith.constant 2 : index
    %c0_35 = arith.constant 0 : index
    %c0_36 = arith.constant 0 : index
    %36 = vector.load %arg6[%c2, %c0_35, %c0_36] : memref<4x18x66xf32, #tpu.memory_space<vmem>>, vector<1x1x66xf32>
    %37 = vector.shape_cast %36 : vector<1x1x66xf32> to vector<1x66xf32>
    %38 = vector.shape_cast %0 : vector<1x66xf32> to vector<1x1x66xf32>
    tpu.vector_store %arg6[%c2, %c0_35, %c0_36], %38 {strides = array<i32>} : memref<4x18x66xf32, #tpu.memory_space<vmem>>, vector<1x1x66xf32>,
    %c2_37 = arith.constant 2 : index
    %c17_38 = arith.constant 17 : index
    %c0_39 = arith.constant 0 : index
    %39 = vector.load %arg6[%c2_37, %c17_38, %c0_39] : memref<4x18x66xf32, #tpu.memory_space<vmem>>, vector<1x1x66xf32>
    %40 = vector.shape_cast %39 : vector<1x1x66xf32> to vector<1x66xf32>
    %41 = vector.shape_cast %0 : vector<1x66xf32> to vector<1x1x66xf32>
    tpu.vector_store %arg6[%c2_37, %c17_38, %c0_39], %41 {strides = array<i32>} : memref<4x18x66xf32, #tpu.memory_space<vmem>>, vector<1x1x66xf32>,
    %c2_40 = arith.constant 2 : index
    %c0_41 = arith.constant 0 : index
    %c0_42 = arith.constant 0 : index
    %42 = vector.load %arg6[%c2_40, %c0_41, %c0_42] : memref<4x18x66xf32, #tpu.memory_space<vmem>>, vector<1x18x1xf32>
    %43 = vector.shape_cast %42 : vector<1x18x1xf32> to vector<18x1xf32>
    %44 = vector.shape_cast %1 : vector<18x1xf32> to vector<1x18x1xf32>
    tpu.vector_store %arg6[%c2_40, %c0_41, %c0_42], %44 {strides = array<i32>} : memref<4x18x66xf32, #tpu.memory_space<vmem>>, vector<1x18x1xf32>,
    %c2_43 = arith.constant 2 : index
    %c0_44 = arith.constant 0 : index
    %c65_45 = arith.constant 65 : index
    %45 = vector.load %arg6[%c2_43, %c0_44, %c65_45] : memref<4x18x66xf32, #tpu.memory_space<vmem>>, vector<1x18x1xf32>
    %46 = vector.shape_cast %45 : vector<1x18x1xf32> to vector<18x1xf32>
    %47 = vector.shape_cast %1 : vector<18x1xf32> to vector<1x18x1xf32>
    tpu.vector_store %arg6[%c2_43, %c0_44, %c65_45], %47 {strides = array<i32>} : memref<4x18x66xf32, #tpu.memory_space<vmem>>, vector<1x18x1xf32>,
    %c0_46 = arith.constant 0 : index
    %c2_47 = arith.constant 2 : index
    %c0_48 = arith.constant 0 : index
    %c0_49 = arith.constant 0 : index
    %48 = vector.load %arg1[%c0_46, %c2_47, %c0_48, %c0_49] : memref<1x4x16x64xf32, #tpu.memory_space<vmem>>, vector<1x1x16x64xf32>
    %49 = vector.shape_cast %48 : vector<1x1x16x64xf32> to vector<16x64xf32>
    %c2_50 = arith.constant 2 : index
    %c1_51 = arith.constant 1 : index
    %c1_52 = arith.constant 1 : index
    %50 = vector.load %arg6[%c2_50, %c1_51, %c1_52] : memref<4x18x66xf32, #tpu.memory_space<vmem>>, vector<1x16x64xf32>
    %51 = vector.shape_cast %50 : vector<1x16x64xf32> to vector<16x64xf32>
    %52 = vector.shape_cast %49 : vector<16x64xf32> to vector<1x16x64xf32>
    tpu.vector_store %arg6[%c2_50, %c1_51, %c1_52], %52 {strides = array<i32>} : memref<4x18x66xf32, #tpu.memory_space<vmem>>, vector<1x16x64xf32>,
    %c3 = arith.constant 3 : index
    %c0_53 = arith.constant 0 : index
    %c0_54 = arith.constant 0 : index
    %53 = vector.load %arg6[%c3, %c0_53, %c0_54] : memref<4x18x66xf32, #tpu.memory_space<vmem>>, vector<1x1x66xf32>
    %54 = vector.shape_cast %53 : vector<1x1x66xf32> to vector<1x66xf32>
    %55 = vector.shape_cast %0 : vector<1x66xf32> to vector<1x1x66xf32>
    tpu.vector_store %arg6[%c3, %c0_53, %c0_54], %55 {strides = array<i32>} : memref<4x18x66xf32, #tpu.memory_space<vmem>>, vector<1x1x66xf32>,
    %c3_55 = arith.constant 3 : index
    %c17_56 = arith.constant 17 : index
    %c0_57 = arith.constant 0 : index
    %56 = vector.load %arg6[%c3_55, %c17_56, %c0_57] : memref<4x18x66xf32, #tpu.memory_space<vmem>>, vector<1x1x66xf32>
    %57 = vector.shape_cast %56 : vector<1x1x66xf32> to vector<1x66xf32>
    %58 = vector.shape_cast %0 : vector<1x66xf32> to vector<1x1x66xf32>
    tpu.vector_store %arg6[%c3_55, %c17_56, %c0_57], %58 {strides = array<i32>} : memref<4x18x66xf32, #tpu.memory_space<vmem>>, vector<1x1x66xf32>,
    %c3_58 = arith.constant 3 : index
    %c0_59 = arith.constant 0 : index
    %c0_60 = arith.constant 0 : index
    %59 = vector.load %arg6[%c3_58, %c0_59, %c0_60] : memref<4x18x66xf32, #tpu.memory_space<vmem>>, vector<1x18x1xf32>
    %60 = vector.shape_cast %59 : vector<1x18x1xf32> to vector<18x1xf32>
    %61 = vector.shape_cast %1 : vector<18x1xf32> to vector<1x18x1xf32>
    tpu.vector_store %arg6[%c3_58, %c0_59, %c0_60], %61 {strides = array<i32>} : memref<4x18x66xf32, #tpu.memory_space<vmem>>, vector<1x18x1xf32>,
    %c3_61 = arith.constant 3 : index
    %c0_62 = arith.constant 0 : index
    %c65_63 = arith.constant 65 : index
    %62 = vector.load %arg6[%c3_61, %c0_62, %c65_63] : memref<4x18x66xf32, #tpu.memory_space<vmem>>, vector<1x18x1xf32>
    %63 = vector.shape_cast %62 : vector<1x18x1xf32> to vector<18x1xf32>
    %64 = vector.shape_cast %1 : vector<18x1xf32> to vector<1x18x1xf32>
    tpu.vector_store %arg6[%c3_61, %c0_62, %c65_63], %64 {strides = array<i32>} : memref<4x18x66xf32, #tpu.memory_space<vmem>>, vector<1x18x1xf32>,
    %c0_64 = arith.constant 0 : index
    %c3_65 = arith.constant 3 : index
    %c0_66 = arith.constant 0 : index
    %c0_67 = arith.constant 0 : index
    %65 = vector.load %arg1[%c0_64, %c3_65, %c0_66, %c0_67] : memref<1x4x16x64xf32, #tpu.memory_space<vmem>>, vector<1x1x16x64xf32>
    %66 = vector.shape_cast %65 : vector<1x1x16x64xf32> to vector<16x64xf32>
    %c3_68 = arith.constant 3 : index
    %c1_69 = arith.constant 1 : index
    %c1_70 = arith.constant 1 : index
    %67 = vector.load %arg6[%c3_68, %c1_69, %c1_70] : memref<4x18x66xf32, #tpu.memory_space<vmem>>, vector<1x16x64xf32>
    %68 = vector.shape_cast %67 : vector<1x16x64xf32> to vector<16x64xf32>
    %69 = vector.shape_cast %66 : vector<16x64xf32> to vector<1x16x64xf32>
    tpu.vector_store %arg6[%c3_68, %c1_69, %c1_70], %69 {strides = array<i32>} : memref<4x18x66xf32, #tpu.memory_space<vmem>>, vector<1x16x64xf32>,
    %cst_71 = arith.constant 0.000000e+00 : f32
    %70 = vector.broadcast %cst_71 : f32 to vector<8x64xf32>
    %c0_72 = arith.constant 0 : index
    %71 = memref.load %arg4[%c0_72] : memref<24xf32, #tpu.memory_space<smem>>
    %72 = vector.broadcast %71 : f32 to vector<8x64xf32>
    %73 = arith.addf %70, %72 : vector<8x64xf32>
    %cst_73 = arith.constant 0.000000e+00 : f32
    %74 = vector.broadcast %cst_73 : f32 to vector<8x64xf32>
    %c1_74 = arith.constant 1 : index
    %75 = memref.load %arg4[%c1_74] : memref<24xf32, #tpu.memory_space<smem>>
    %76 = vector.broadcast %75 : f32 to vector<8x64xf32>
    %77 = arith.addf %74, %76 : vector<8x64xf32>
    %cst_75 = arith.constant 0.000000e+00 : f32
    %78 = vector.broadcast %cst_75 : f32 to vector<8x64xf32>
    %c2_76 = arith.constant 2 : index
    %79 = memref.load %arg4[%c2_76] : memref<24xf32, #tpu.memory_space<smem>>
    %80 = vector.broadcast %79 : f32 to vector<8x64xf32>
    %81 = arith.addf %78, %80 : vector<8x64xf32>
    %cst_77 = arith.constant 0.000000e+00 : f32
    %82 = vector.broadcast %cst_77 : f32 to vector<8x64xf32>
    %c3_78 = arith.constant 3 : index
    %83 = memref.load %arg4[%c3_78] : memref<24xf32, #tpu.memory_space<smem>>
    %84 = vector.broadcast %83 : f32 to vector<8x64xf32>
    %85 = arith.addf %82, %84 : vector<8x64xf32>
    %c0_79 = arith.constant 0 : index
    %c0_80 = arith.constant 0 : index
    %c0_81 = arith.constant 0 : index
    %86 = vector.load %arg6[%c0_79, %c0_80, %c0_81] : memref<4x18x66xf32, #tpu.memory_space<vmem>>, vector<1x10x66xf32>
    %87 = vector.shape_cast %86 : vector<1x10x66xf32> to vector<10x66xf32>
    %88 = vector.extract_strided_slice %87 {offsets = [0, 0], sizes = [8, 64], strides = [1, 1]} : vector<10x66xf32> to vector<8x64xf32>
    %c0_82 = arith.constant 0 : index
    %89 = memref.load %arg2[%c0_82] : memref<144xf32, #tpu.memory_space<smem>>
    %90 = vector.broadcast %89 : f32 to vector<8x64xf32>
    %91 = arith.mulf %90, %88 : vector<8x64xf32>
    %92 = arith.addf %73, %91 : vector<8x64xf32>
    %c1_83 = arith.constant 1 : index
    %93 = memref.load %arg2[%c1_83] : memref<144xf32, #tpu.memory_space<smem>>
    %94 = vector.broadcast %93 : f32 to vector<8x64xf32>
    %95 = arith.mulf %94, %88 : vector<8x64xf32>
    %96 = arith.addf %77, %95 : vector<8x64xf32>
    %c2_84 = arith.constant 2 : index
    %97 = memref.load %arg2[%c2_84] : memref<144xf32, #tpu.memory_space<smem>>
    %98 = vector.broadcast %97 : f32 to vector<8x64xf32>
    %99 = arith.mulf %98, %88 : vector<8x64xf32>
    %100 = arith.addf %81, %99 : vector<8x64xf32>
    %c3_85 = arith.constant 3 : index
    %101 = memref.load %arg2[%c3_85] : memref<144xf32, #tpu.memory_space<smem>>
    %102 = vector.broadcast %101 : f32 to vector<8x64xf32>
    %103 = arith.mulf %102, %88 : vector<8x64xf32>
    %104 = arith.addf %85, %103 : vector<8x64xf32>
    %105 = vector.extract_strided_slice %87 {offsets = [0, 1], sizes = [8, 64], strides = [1, 1]} : vector<10x66xf32> to vector<8x64xf32>
    %c16 = arith.constant 16 : index
    %106 = memref.load %arg2[%c16] : memref<144xf32, #tpu.memory_space<smem>>
    %107 = vector.broadcast %106 : f32 to vector<8x64xf32>
    %108 = arith.mulf %107, %105 : vector<8x64xf32>
    %109 = arith.addf %92, %108 : vector<8x64xf32>
    %c17_86 = arith.constant 17 : index
    %110 = memref.load %arg2[%c17_86] : memref<144xf32, #tpu.memory_space<smem>>
    %111 = vector.broadcast %110 : f32 to vector<8x64xf32>
    %112 = arith.mulf %111, %105 : vector<8x64xf32>
    %113 = arith.addf %96, %112 : vector<8x64xf32>
    %c18 = arith.constant 18 : index
    %114 = memref.load %arg2[%c18] : memref<144xf32, #tpu.memory_space<smem>>
    %115 = vector.broadcast %114 : f32 to vector<8x64xf32>
    %116 = arith.mulf %115, %105 : vector<8x64xf32>
    %117 = arith.addf %100, %116 : vector<8x64xf32>
    %c19 = arith.constant 19 : index
    %118 = memref.load %arg2[%c19] : memref<144xf32, #tpu.memory_space<smem>>
    %119 = vector.broadcast %118 : f32 to vector<8x64xf32>
    %120 = arith.mulf %119, %105 : vector<8x64xf32>
    %121 = arith.addf %104, %120 : vector<8x64xf32>
    %122 = vector.extract_strided_slice %87 {offsets = [0, 2], sizes = [8, 64], strides = [1, 1]} : vector<10x66xf32> to vector<8x64xf32>
    %c32 = arith.constant 32 : index
    %123 = memref.load %arg2[%c32] : memref<144xf32, #tpu.memory_space<smem>>
    %124 = vector.broadcast %123 : f32 to vector<8x64xf32>
    %125 = arith.mulf %124, %122 : vector<8x64xf32>
    %126 = arith.addf %109, %125 : vector<8x64xf32>
    %c33 = arith.constant 33 : index
    %127 = memref.load %arg2[%c33] : memref<144xf32, #tpu.memory_space<smem>>
    %128 = vector.broadcast %127 : f32 to vector<8x64xf32>
    %129 = arith.mulf %128, %122 : vector<8x64xf32>
    %130 = arith.addf %113, %129 : vector<8x64xf32>
    %c34 = arith.constant 34 : index
    %131 = memref.load %arg2[%c34] : memref<144xf32, #tpu.memory_space<smem>>
    %132 = vector.broadcast %131 : f32 to vector<8x64xf32>
    %133 = arith.mulf %132, %122 : vector<8x64xf32>
    %134 = arith.addf %117, %133 : vector<8x64xf32>
    %c35 = arith.constant 35 : index
    %135 = memref.load %arg2[%c35] : memref<144xf32, #tpu.memory_space<smem>>
    %136 = vector.broadcast %135 : f32 to vector<8x64xf32>
    %137 = arith.mulf %136, %122 : vector<8x64xf32>
    %138 = arith.addf %121, %137 : vector<8x64xf32>
    %139 = vector.extract_strided_slice %87 {offsets = [1, 0], sizes = [8, 64], strides = [1, 1]} : vector<10x66xf32> to vector<8x64xf32>
    %c48 = arith.constant 48 : index
    %140 = memref.load %arg2[%c48] : memref<144xf32, #tpu.memory_space<smem>>
    %141 = vector.broadcast %140 : f32 to vector<8x64xf32>
    %142 = arith.mulf %141, %139 : vector<8x64xf32>
    %143 = arith.addf %126, %142 : vector<8x64xf32>
    %c49 = arith.constant 49 : index
    %144 = memref.load %arg2[%c49] : memref<144xf32, #tpu.memory_space<smem>>
    %145 = vector.broadcast %144 : f32 to vector<8x64xf32>
    %146 = arith.mulf %145, %139 : vector<8x64xf32>
    %147 = arith.addf %130, %146 : vector<8x64xf32>
    %c50 = arith.constant 50 : index
    %148 = memref.load %arg2[%c50] : memref<144xf32, #tpu.memory_space<smem>>
    %149 = vector.broadcast %148 : f32 to vector<8x64xf32>
    %150 = arith.mulf %149, %139 : vector<8x64xf32>
    %151 = arith.addf %134, %150 : vector<8x64xf32>
    %c51 = arith.constant 51 : index
    %152 = memref.load %arg2[%c51] : memref<144xf32, #tpu.memory_space<smem>>
    %153 = vector.broadcast %152 : f32 to vector<8x64xf32>
    %154 = arith.mulf %153, %139 : vector<8x64xf32>
    %155 = arith.addf %138, %154 : vector<8x64xf32>
    %156 = vector.extract_strided_slice %87 {offsets = [1, 1], sizes = [8, 64], strides = [1, 1]} : vector<10x66xf32> to vector<8x64xf32>
    %c64 = arith.constant 64 : index
    %157 = memref.load %arg2[%c64] : memref<144xf32, #tpu.memory_space<smem>>
    %158 = vector.broadcast %157 : f32 to vector<8x64xf32>
    %159 = arith.mulf %158, %156 : vector<8x64xf32>
    %160 = arith.addf %143, %159 : vector<8x64xf32>
    %c65_87 = arith.constant 65 : index
    %161 = memref.load %arg2[%c65_87] : memref<144xf32, #tpu.memory_space<smem>>
    %162 = vector.broadcast %161 : f32 to vector<8x64xf32>
    %163 = arith.mulf %162, %156 : vector<8x64xf32>
    %164 = arith.addf %147, %163 : vector<8x64xf32>
    %c66 = arith.constant 66 : index
    %165 = memref.load %arg2[%c66] : memref<144xf32, #tpu.memory_space<smem>>
    %166 = vector.broadcast %165 : f32 to vector<8x64xf32>
    %167 = arith.mulf %166, %156 : vector<8x64xf32>
    %168 = arith.addf %151, %167 : vector<8x64xf32>
    %c67 = arith.constant 67 : index
    %169 = memref.load %arg2[%c67] : memref<144xf32, #tpu.memory_space<smem>>
    %170 = vector.broadcast %169 : f32 to vector<8x64xf32>
    %171 = arith.mulf %170, %156 : vector<8x64xf32>
    %172 = arith.addf %155, %171 : vector<8x64xf32>
    %173 = vector.extract_strided_slice %87 {offsets = [1, 2], sizes = [8, 64], strides = [1, 1]} : vector<10x66xf32> to vector<8x64xf32>
    %c80 = arith.constant 80 : index
    %174 = memref.load %arg2[%c80] : memref<144xf32, #tpu.memory_space<smem>>
    %175 = vector.broadcast %174 : f32 to vector<8x64xf32>
    %176 = arith.mulf %175, %173 : vector<8x64xf32>
    %177 = arith.addf %160, %176 : vector<8x64xf32>
    %c81 = arith.constant 81 : index
    %178 = memref.load %arg2[%c81] : memref<144xf32, #tpu.memory_space<smem>>
    %179 = vector.broadcast %178 : f32 to vector<8x64xf32>
    %180 = arith.mulf %179, %173 : vector<8x64xf32>
    %181 = arith.addf %164, %180 : vector<8x64xf32>
    %c82 = arith.constant 82 : index
    %182 = memref.load %arg2[%c82] : memref<144xf32, #tpu.memory_space<smem>>
    %183 = vector.broadcast %182 : f32 to vector<8x64xf32>
    %184 = arith.mulf %183, %173 : vector<8x64xf32>
    %185 = arith.addf %168, %184 : vector<8x64xf32>
    %c83 = arith.constant 83 : index
    %186 = memref.load %arg2[%c83] : memref<144xf32, #tpu.memory_space<smem>>
    %187 = vector.broadcast %186 : f32 to vector<8x64xf32>
    %188 = arith.mulf %187, %173 : vector<8x64xf32>
    %189 = arith.addf %172, %188 : vector<8x64xf32>
    %190 = vector.extract_strided_slice %87 {offsets = [2, 0], sizes = [8, 64], strides = [1, 1]} : vector<10x66xf32> to vector<8x64xf32>
    %c96 = arith.constant 96 : index
    %191 = memref.load %arg2[%c96] : memref<144xf32, #tpu.memory_space<smem>>
    %192 = vector.broadcast %191 : f32 to vector<8x64xf32>
    %193 = arith.mulf %192, %190 : vector<8x64xf32>
    %194 = arith.addf %177, %193 : vector<8x64xf32>
    %c97 = arith.constant 97 : index
    %195 = memref.load %arg2[%c97] : memref<144xf32, #tpu.memory_space<smem>>
    %196 = vector.broadcast %195 : f32 to vector<8x64xf32>
    %197 = arith.mulf %196, %190 : vector<8x64xf32>
    %198 = arith.addf %181, %197 : vector<8x64xf32>
    %c98 = arith.constant 98 : index
    %199 = memref.load %arg2[%c98] : memref<144xf32, #tpu.memory_space<smem>>
    %200 = vector.broadcast %199 : f32 to vector<8x64xf32>
    %201 = arith.mulf %200, %190 : vector<8x64xf32>
    %202 = arith.addf %185, %201 : vector<8x64xf32>
    %c99 = arith.constant 99 : index
    %203 = memref.load %arg2[%c99] : memref<144xf32, #tpu.memory_space<smem>>
    %204 = vector.broadcast %203 : f32 to vector<8x64xf32>
    %205 = arith.mulf %204, %190 : vector<8x64xf32>
    %206 = arith.addf %189, %205 : vector<8x64xf32>
    %207 = vector.extract_strided_slice %87 {offsets = [2, 1], sizes = [8, 64], strides = [1, 1]} : vector<10x66xf32> to vector<8x64xf32>
    %c112 = arith.constant 112 : index
    %208 = memref.load %arg2[%c112] : memref<144xf32, #tpu.memory_space<smem>>
    %209 = vector.broadcast %208 : f32 to vector<8x64xf32>
    %210 = arith.mulf %209, %207 : vector<8x64xf32>
    %211 = arith.addf %194, %210 : vector<8x64xf32>
    %c113 = arith.constant 113 : index
    %212 = memref.load %arg2[%c113] : memref<144xf32, #tpu.memory_space<smem>>
    %213 = vector.broadcast %212 : f32 to vector<8x64xf32>
    %214 = arith.mulf %213, %207 : vector<8x64xf32>
    %215 = arith.addf %198, %214 : vector<8x64xf32>
    %c114 = arith.constant 114 : index
    %216 = memref.load %arg2[%c114] : memref<144xf32, #tpu.memory_space<smem>>
    %217 = vector.broadcast %216 : f32 to vector<8x64xf32>
    %218 = arith.mulf %217, %207 : vector<8x64xf32>
    %219 = arith.addf %202, %218 : vector<8x64xf32>
    %c115 = arith.constant 115 : index
    %220 = memref.load %arg2[%c115] : memref<144xf32, #tpu.memory_space<smem>>
    %221 = vector.broadcast %220 : f32 to vector<8x64xf32>
    %222 = arith.mulf %221, %207 : vector<8x64xf32>
    %223 = arith.addf %206, %222 : vector<8x64xf32>
    %224 = vector.extract_strided_slice %87 {offsets = [2, 2], sizes = [8, 64], strides = [1, 1]} : vector<10x66xf32> to vector<8x64xf32>
    %c128 = arith.constant 128 : index
    %225 = memref.load %arg2[%c128] : memref<144xf32, #tpu.memory_space<smem>>
    %226 = vector.broadcast %225 : f32 to vector<8x64xf32>
    %227 = arith.mulf %226, %224 : vector<8x64xf32>
    %228 = arith.addf %211, %227 : vector<8x64xf32>
    %c129 = arith.constant 129 : index
    %229 = memref.load %arg2[%c129] : memref<144xf32, #tpu.memory_space<smem>>
    %230 = vector.broadcast %229 : f32 to vector<8x64xf32>
    %231 = arith.mulf %230, %224 : vector<8x64xf32>
    %232 = arith.addf %215, %231 : vector<8x64xf32>
    %c130 = arith.constant 130 : index
    %233 = memref.load %arg2[%c130] : memref<144xf32, #tpu.memory_space<smem>>
    %234 = vector.broadcast %233 : f32 to vector<8x64xf32>
    %235 = arith.mulf %234, %224 : vector<8x64xf32>
    %236 = arith.addf %219, %235 : vector<8x64xf32>
    %c131 = arith.constant 131 : index
    %237 = memref.load %arg2[%c131] : memref<144xf32, #tpu.memory_space<smem>>
    %238 = vector.broadcast %237 : f32 to vector<8x64xf32>
    %239 = arith.mulf %238, %224 : vector<8x64xf32>
    %240 = arith.addf %223, %239 : vector<8x64xf32>
    %c1_88 = arith.constant 1 : index
    %c0_89 = arith.constant 0 : index
    %c0_90 = arith.constant 0 : index
    %241 = vector.load %arg6[%c1_88, %c0_89, %c0_90] : memref<4x18x66xf32, #tpu.memory_space<vmem>>, vector<1x10x66xf32>
    %242 = vector.shape_cast %241 : vector<1x10x66xf32> to vector<10x66xf32>
    %243 = vector.extract_strided_slice %242 {offsets = [0, 0], sizes = [8, 64], strides = [1, 1]} : vector<10x66xf32> to vector<8x64xf32>
    %c4 = arith.constant 4 : index
    %244 = memref.load %arg2[%c4] : memref<144xf32, #tpu.memory_space<smem>>
    %245 = vector.broadcast %244 : f32 to vector<8x64xf32>
    %246 = arith.mulf %245, %243 : vector<8x64xf32>
    %247 = arith.addf %228, %246 : vector<8x64xf32>
    %c5 = arith.constant 5 : index
    %248 = memref.load %arg2[%c5] : memref<144xf32, #tpu.memory_space<smem>>
    %249 = vector.broadcast %248 : f32 to vector<8x64xf32>
    %250 = arith.mulf %249, %243 : vector<8x64xf32>
    %251 = arith.addf %232, %250 : vector<8x64xf32>
    %c6 = arith.constant 6 : index
    %252 = memref.load %arg2[%c6] : memref<144xf32, #tpu.memory_space<smem>>
    %253 = vector.broadcast %252 : f32 to vector<8x64xf32>
    %254 = arith.mulf %253, %243 : vector<8x64xf32>
    %255 = arith.addf %236, %254 : vector<8x64xf32>
    %c7 = arith.constant 7 : index
    %256 = memref.load %arg2[%c7] : memref<144xf32, #tpu.memory_space<smem>>
    %257 = vector.broadcast %256 : f32 to vector<8x64xf32>
    %258 = arith.mulf %257, %243 : vector<8x64xf32>
    %259 = arith.addf %240, %258 : vector<8x64xf32>
    %260 = vector.extract_strided_slice %242 {offsets = [0, 1], sizes = [8, 64], strides = [1, 1]} : vector<10x66xf32> to vector<8x64xf32>
    %c20 = arith.constant 20 : index
    %261 = memref.load %arg2[%c20] : memref<144xf32, #tpu.memory_space<smem>>
    %262 = vector.broadcast %261 : f32 to vector<8x64xf32>
    %263 = arith.mulf %262, %260 : vector<8x64xf32>
    %264 = arith.addf %247, %263 : vector<8x64xf32>
    %c21 = arith.constant 21 : index
    %265 = memref.load %arg2[%c21] : memref<144xf32, #tpu.memory_space<smem>>
    %266 = vector.broadcast %265 : f32 to vector<8x64xf32>
    %267 = arith.mulf %266, %260 : vector<8x64xf32>
    %268 = arith.addf %251, %267 : vector<8x64xf32>
    %c22 = arith.constant 22 : index
    %269 = memref.load %arg2[%c22] : memref<144xf32, #tpu.memory_space<smem>>
    %270 = vector.broadcast %269 : f32 to vector<8x64xf32>
    %271 = arith.mulf %270, %260 : vector<8x64xf32>
    %272 = arith.addf %255, %271 : vector<8x64xf32>
    %c23 = arith.constant 23 : index
    %273 = memref.load %arg2[%c23] : memref<144xf32, #tpu.memory_space<smem>>
    %274 = vector.broadcast %273 : f32 to vector<8x64xf32>
    %275 = arith.mulf %274, %260 : vector<8x64xf32>
    %276 = arith.addf %259, %275 : vector<8x64xf32>
    %277 = vector.extract_strided_slice %242 {offsets = [0, 2], sizes = [8, 64], strides = [1, 1]} : vector<10x66xf32> to vector<8x64xf32>
    %c36 = arith.constant 36 : index
    %278 = memref.load %arg2[%c36] : memref<144xf32, #tpu.memory_space<smem>>
    %279 = vector.broadcast %278 : f32 to vector<8x64xf32>
    %280 = arith.mulf %279, %277 : vector<8x64xf32>
    %281 = arith.addf %264, %280 : vector<8x64xf32>
    %c37 = arith.constant 37 : index
    %282 = memref.load %arg2[%c37] : memref<144xf32, #tpu.memory_space<smem>>
    %283 = vector.broadcast %282 : f32 to vector<8x64xf32>
    %284 = arith.mulf %283, %277 : vector<8x64xf32>
    %285 = arith.addf %268, %284 : vector<8x64xf32>
    %c38 = arith.constant 38 : index
    %286 = memref.load %arg2[%c38] : memref<144xf32, #tpu.memory_space<smem>>
    %287 = vector.broadcast %286 : f32 to vector<8x64xf32>
    %288 = arith.mulf %287, %277 : vector<8x64xf32>
    %289 = arith.addf %272, %288 : vector<8x64xf32>
    %c39 = arith.constant 39 : index
    %290 = memref.load %arg2[%c39] : memref<144xf32, #tpu.memory_space<smem>>
    %291 = vector.broadcast %290 : f32 to vector<8x64xf32>
    %292 = arith.mulf %291, %277 : vector<8x64xf32>
    %293 = arith.addf %276, %292 : vector<8x64xf32>
    %294 = vector.extract_strided_slice %242 {offsets = [1, 0], sizes = [8, 64], strides = [1, 1]} : vector<10x66xf32> to vector<8x64xf32>
    %c52 = arith.constant 52 : index
    %295 = memref.load %arg2[%c52] : memref<144xf32, #tpu.memory_space<smem>>
    %296 = vector.broadcast %295 : f32 to vector<8x64xf32>
    %297 = arith.mulf %296, %294 : vector<8x64xf32>
    %298 = arith.addf %281, %297 : vector<8x64xf32>
    %c53 = arith.constant 53 : index
    %299 = memref.load %arg2[%c53] : memref<144xf32, #tpu.memory_space<smem>>
    %300 = vector.broadcast %299 : f32 to vector<8x64xf32>
    %301 = arith.mulf %300, %294 : vector<8x64xf32>
    %302 = arith.addf %285, %301 : vector<8x64xf32>
    %c54 = arith.constant 54 : index
    %303 = memref.load %arg2[%c54] : memref<144xf32, #tpu.memory_space<smem>>
    %304 = vector.broadcast %303 : f32 to vector<8x64xf32>
    %305 = arith.mulf %304, %294 : vector<8x64xf32>
    %306 = arith.addf %289, %305 : vector<8x64xf32>
    %c55 = arith.constant 55 : index
    %307 = memref.load %arg2[%c55] : memref<144xf32, #tpu.memory_space<smem>>
    %308 = vector.broadcast %307 : f32 to vector<8x64xf32>
    %309 = arith.mulf %308, %294 : vector<8x64xf32>
    %310 = arith.addf %293, %309 : vector<8x64xf32>
    %311 = vector.extract_strided_slice %242 {offsets = [1, 1], sizes = [8, 64], strides = [1, 1]} : vector<10x66xf32> to vector<8x64xf32>
    %c68 = arith.constant 68 : index
    %312 = memref.load %arg2[%c68] : memref<144xf32, #tpu.memory_space<smem>>
    %313 = vector.broadcast %312 : f32 to vector<8x64xf32>
    %314 = arith.mulf %313, %311 : vector<8x64xf32>
    %315 = arith.addf %298, %314 : vector<8x64xf32>
    %c69 = arith.constant 69 : index
    %316 = memref.load %arg2[%c69] : memref<144xf32, #tpu.memory_space<smem>>
    %317 = vector.broadcast %316 : f32 to vector<8x64xf32>
    %318 = arith.mulf %317, %311 : vector<8x64xf32>
    %319 = arith.addf %302, %318 : vector<8x64xf32>
    %c70 = arith.constant 70 : index
    %320 = memref.load %arg2[%c70] : memref<144xf32, #tpu.memory_space<smem>>
    %321 = vector.broadcast %320 : f32 to vector<8x64xf32>
    %322 = arith.mulf %321, %311 : vector<8x64xf32>
    %323 = arith.addf %306, %322 : vector<8x64xf32>
    %c71 = arith.constant 71 : index
    %324 = memref.load %arg2[%c71] : memref<144xf32, #tpu.memory_space<smem>>
    %325 = vector.broadcast %324 : f32 to vector<8x64xf32>
    %326 = arith.mulf %325, %311 : vector<8x64xf32>
    %327 = arith.addf %310, %326 : vector<8x64xf32>
    %328 = vector.extract_strided_slice %242 {offsets = [1, 2], sizes = [8, 64], strides = [1, 1]} : vector<10x66xf32> to vector<8x64xf32>
    %c84 = arith.constant 84 : index
    %329 = memref.load %arg2[%c84] : memref<144xf32, #tpu.memory_space<smem>>
    %330 = vector.broadcast %329 : f32 to vector<8x64xf32>
    %331 = arith.mulf %330, %328 : vector<8x64xf32>
    %332 = arith.addf %315, %331 : vector<8x64xf32>
    %c85 = arith.constant 85 : index
    %333 = memref.load %arg2[%c85] : memref<144xf32, #tpu.memory_space<smem>>
    %334 = vector.broadcast %333 : f32 to vector<8x64xf32>
    %335 = arith.mulf %334, %328 : vector<8x64xf32>
    %336 = arith.addf %319, %335 : vector<8x64xf32>
    %c86 = arith.constant 86 : index
    %337 = memref.load %arg2[%c86] : memref<144xf32, #tpu.memory_space<smem>>
    %338 = vector.broadcast %337 : f32 to vector<8x64xf32>
    %339 = arith.mulf %338, %328 : vector<8x64xf32>
    %340 = arith.addf %323, %339 : vector<8x64xf32>
    %c87 = arith.constant 87 : index
    %341 = memref.load %arg2[%c87] : memref<144xf32, #tpu.memory_space<smem>>
    %342 = vector.broadcast %341 : f32 to vector<8x64xf32>
    %343 = arith.mulf %342, %328 : vector<8x64xf32>
    %344 = arith.addf %327, %343 : vector<8x64xf32>
    %345 = vector.extract_strided_slice %242 {offsets = [2, 0], sizes = [8, 64], strides = [1, 1]} : vector<10x66xf32> to vector<8x64xf32>
    %c100 = arith.constant 100 : index
    %346 = memref.load %arg2[%c100] : memref<144xf32, #tpu.memory_space<smem>>
    %347 = vector.broadcast %346 : f32 to vector<8x64xf32>
    %348 = arith.mulf %347, %345 : vector<8x64xf32>
    %349 = arith.addf %332, %348 : vector<8x64xf32>
    %c101 = arith.constant 101 : index
    %350 = memref.load %arg2[%c101] : memref<144xf32, #tpu.memory_space<smem>>
    %351 = vector.broadcast %350 : f32 to vector<8x64xf32>
    %352 = arith.mulf %351, %345 : vector<8x64xf32>
    %353 = arith.addf %336, %352 : vector<8x64xf32>
    %c102 = arith.constant 102 : index
    %354 = memref.load %arg2[%c102] : memref<144xf32, #tpu.memory_space<smem>>
    %355 = vector.broadcast %354 : f32 to vector<8x64xf32>
    %356 = arith.mulf %355, %345 : vector<8x64xf32>
    %357 = arith.addf %340, %356 : vector<8x64xf32>
    %c103 = arith.constant 103 : index
    %358 = memref.load %arg2[%c103] : memref<144xf32, #tpu.memory_space<smem>>
    %359 = vector.broadcast %358 : f32 to vector<8x64xf32>
    %360 = arith.mulf %359, %345 : vector<8x64xf32>
    %361 = arith.addf %344, %360 : vector<8x64xf32>
    %362 = vector.extract_strided_slice %242 {offsets = [2, 1], sizes = [8, 64], strides = [1, 1]} : vector<10x66xf32> to vector<8x64xf32>
    %c116 = arith.constant 116 : index
    %363 = memref.load %arg2[%c116] : memref<144xf32, #tpu.memory_space<smem>>
    %364 = vector.broadcast %363 : f32 to vector<8x64xf32>
    %365 = arith.mulf %364, %362 : vector<8x64xf32>
    %366 = arith.addf %349, %365 : vector<8x64xf32>
    %c117 = arith.constant 117 : index
    %367 = memref.load %arg2[%c117] : memref<144xf32, #tpu.memory_space<smem>>
    %368 = vector.broadcast %367 : f32 to vector<8x64xf32>
    %369 = arith.mulf %368, %362 : vector<8x64xf32>
    %370 = arith.addf %353, %369 : vector<8x64xf32>
    %c118 = arith.constant 118 : index
    %371 = memref.load %arg2[%c118] : memref<144xf32, #tpu.memory_space<smem>>
    %372 = vector.broadcast %371 : f32 to vector<8x64xf32>
    %373 = arith.mulf %372, %362 : vector<8x64xf32>
    %374 = arith.addf %357, %373 : vector<8x64xf32>
    %c119 = arith.constant 119 : index
    %375 = memref.load %arg2[%c119] : memref<144xf32, #tpu.memory_space<smem>>
    %376 = vector.broadcast %375 : f32 to vector<8x64xf32>
    %377 = arith.mulf %376, %362 : vector<8x64xf32>
    %378 = arith.addf %361, %377 : vector<8x64xf32>
    %379 = vector.extract_strided_slice %242 {offsets = [2, 2], sizes = [8, 64], strides = [1, 1]} : vector<10x66xf32> to vector<8x64xf32>
    %c132 = arith.constant 132 : index
    %380 = memref.load %arg2[%c132] : memref<144xf32, #tpu.memory_space<smem>>
    %381 = vector.broadcast %380 : f32 to vector<8x64xf32>
    %382 = arith.mulf %381, %379 : vector<8x64xf32>
    %383 = arith.addf %366, %382 : vector<8x64xf32>
    %c133 = arith.constant 133 : index
    %384 = memref.load %arg2[%c133] : memref<144xf32, #tpu.memory_space<smem>>
    %385 = vector.broadcast %384 : f32 to vector<8x64xf32>
    %386 = arith.mulf %385, %379 : vector<8x64xf32>
    %387 = arith.addf %370, %386 : vector<8x64xf32>
    %c134 = arith.constant 134 : index
    %388 = memref.load %arg2[%c134] : memref<144xf32, #tpu.memory_space<smem>>
    %389 = vector.broadcast %388 : f32 to vector<8x64xf32>
    %390 = arith.mulf %389, %379 : vector<8x64xf32>
    %391 = arith.addf %374, %390 : vector<8x64xf32>
    %c135 = arith.constant 135 : index
    %392 = memref.load %arg2[%c135] : memref<144xf32, #tpu.memory_space<smem>>
    %393 = vector.broadcast %392 : f32 to vector<8x64xf32>
    %394 = arith.mulf %393, %379 : vector<8x64xf32>
    %395 = arith.addf %378, %394 : vector<8x64xf32>
    %c2_91 = arith.constant 2 : index
    %c0_92 = arith.constant 0 : index
    %c0_93 = arith.constant 0 : index
    %396 = vector.load %arg6[%c2_91, %c0_92, %c0_93] : memref<4x18x66xf32, #tpu.memory_space<vmem>>, vector<1x10x66xf32>
    %397 = vector.shape_cast %396 : vector<1x10x66xf32> to vector<10x66xf32>
    %398 = vector.extract_strided_slice %397 {offsets = [0, 0], sizes = [8, 64], strides = [1, 1]} : vector<10x66xf32> to vector<8x64xf32>
    %c8 = arith.constant 8 : index
    %399 = memref.load %arg2[%c8] : memref<144xf32, #tpu.memory_space<smem>>
    %400 = vector.broadcast %399 : f32 to vector<8x64xf32>
    %401 = arith.mulf %400, %398 : vector<8x64xf32>
    %402 = arith.addf %383, %401 : vector<8x64xf32>
    %c9 = arith.constant 9 : index
    %403 = memref.load %arg2[%c9] : memref<144xf32, #tpu.memory_space<smem>>
    %404 = vector.broadcast %403 : f32 to vector<8x64xf32>
    %405 = arith.mulf %404, %398 : vector<8x64xf32>
    %406 = arith.addf %387, %405 : vector<8x64xf32>
    %c10 = arith.constant 10 : index
    %407 = memref.load %arg2[%c10] : memref<144xf32, #tpu.memory_space<smem>>
    %408 = vector.broadcast %407 : f32 to vector<8x64xf32>
    %409 = arith.mulf %408, %398 : vector<8x64xf32>
    %410 = arith.addf %391, %409 : vector<8x64xf32>
    %c11 = arith.constant 11 : index
    %411 = memref.load %arg2[%c11] : memref<144xf32, #tpu.memory_space<smem>>
    %412 = vector.broadcast %411 : f32 to vector<8x64xf32>
    %413 = arith.mulf %412, %398 : vector<8x64xf32>
    %414 = arith.addf %395, %413 : vector<8x64xf32>
    %415 = vector.extract_strided_slice %397 {offsets = [0, 1], sizes = [8, 64], strides = [1, 1]} : vector<10x66xf32> to vector<8x64xf32>
    %c24 = arith.constant 24 : index
    %416 = memref.load %arg2[%c24] : memref<144xf32, #tpu.memory_space<smem>>
    %417 = vector.broadcast %416 : f32 to vector<8x64xf32>
    %418 = arith.mulf %417, %415 : vector<8x64xf32>
    %419 = arith.addf %402, %418 : vector<8x64xf32>
    %c25 = arith.constant 25 : index
    %420 = memref.load %arg2[%c25] : memref<144xf32, #tpu.memory_space<smem>>
    %421 = vector.broadcast %420 : f32 to vector<8x64xf32>
    %422 = arith.mulf %421, %415 : vector<8x64xf32>
    %423 = arith.addf %406, %422 : vector<8x64xf32>
    %c26 = arith.constant 26 : index
    %424 = memref.load %arg2[%c26] : memref<144xf32, #tpu.memory_space<smem>>
    %425 = vector.broadcast %424 : f32 to vector<8x64xf32>
    %426 = arith.mulf %425, %415 : vector<8x64xf32>
    %427 = arith.addf %410, %426 : vector<8x64xf32>
    %c27 = arith.constant 27 : index
    %428 = memref.load %arg2[%c27] : memref<144xf32, #tpu.memory_space<smem>>
    %429 = vector.broadcast %428 : f32 to vector<8x64xf32>
    %430 = arith.mulf %429, %415 : vector<8x64xf32>
    %431 = arith.addf %414, %430 : vector<8x64xf32>
    %432 = vector.extract_strided_slice %397 {offsets = [0, 2], sizes = [8, 64], strides = [1, 1]} : vector<10x66xf32> to vector<8x64xf32>
    %c40 = arith.constant 40 : index
    %433 = memref.load %arg2[%c40] : memref<144xf32, #tpu.memory_space<smem>>
    %434 = vector.broadcast %433 : f32 to vector<8x64xf32>
    %435 = arith.mulf %434, %432 : vector<8x64xf32>
    %436 = arith.addf %419, %435 : vector<8x64xf32>
    %c41 = arith.constant 41 : index
    %437 = memref.load %arg2[%c41] : memref<144xf32, #tpu.memory_space<smem>>
    %438 = vector.broadcast %437 : f32 to vector<8x64xf32>
    %439 = arith.mulf %438, %432 : vector<8x64xf32>
    %440 = arith.addf %423, %439 : vector<8x64xf32>
    %c42 = arith.constant 42 : index
    %441 = memref.load %arg2[%c42] : memref<144xf32, #tpu.memory_space<smem>>
    %442 = vector.broadcast %441 : f32 to vector<8x64xf32>
    %443 = arith.mulf %442, %432 : vector<8x64xf32>
    %444 = arith.addf %427, %443 : vector<8x64xf32>
    %c43 = arith.constant 43 : index
    %445 = memref.load %arg2[%c43] : memref<144xf32, #tpu.memory_space<smem>>
    %446 = vector.broadcast %445 : f32 to vector<8x64xf32>
    %447 = arith.mulf %446, %432 : vector<8x64xf32>
    %448 = arith.addf %431, %447 : vector<8x64xf32>
    %449 = vector.extract_strided_slice %397 {offsets = [1, 0], sizes = [8, 64], strides = [1, 1]} : vector<10x66xf32> to vector<8x64xf32>
    %c56 = arith.constant 56 : index
    %450 = memref.load %arg2[%c56] : memref<144xf32, #tpu.memory_space<smem>>
    %451 = vector.broadcast %450 : f32 to vector<8x64xf32>
    %452 = arith.mulf %451, %449 : vector<8x64xf32>
    %453 = arith.addf %436, %452 : vector<8x64xf32>
    %c57 = arith.constant 57 : index
    %454 = memref.load %arg2[%c57] : memref<144xf32, #tpu.memory_space<smem>>
    %455 = vector.broadcast %454 : f32 to vector<8x64xf32>
    %456 = arith.mulf %455, %449 : vector<8x64xf32>
    %457 = arith.addf %440, %456 : vector<8x64xf32>
    %c58 = arith.constant 58 : index
    %458 = memref.load %arg2[%c58] : memref<144xf32, #tpu.memory_space<smem>>
    %459 = vector.broadcast %458 : f32 to vector<8x64xf32>
    %460 = arith.mulf %459, %449 : vector<8x64xf32>
    %461 = arith.addf %444, %460 : vector<8x64xf32>
    %c59 = arith.constant 59 : index
    %462 = memref.load %arg2[%c59] : memref<144xf32, #tpu.memory_space<smem>>
    %463 = vector.broadcast %462 : f32 to vector<8x64xf32>
    %464 = arith.mulf %463, %449 : vector<8x64xf32>
    %465 = arith.addf %448, %464 : vector<8x64xf32>
    %466 = vector.extract_strided_slice %397 {offsets = [1, 1], sizes = [8, 64], strides = [1, 1]} : vector<10x66xf32> to vector<8x64xf32>
    %c72 = arith.constant 72 : index
    %467 = memref.load %arg2[%c72] : memref<144xf32, #tpu.memory_space<smem>>
    %468 = vector.broadcast %467 : f32 to vector<8x64xf32>
    %469 = arith.mulf %468, %466 : vector<8x64xf32>
    %470 = arith.addf %453, %469 : vector<8x64xf32>
    %c73 = arith.constant 73 : index
    %471 = memref.load %arg2[%c73] : memref<144xf32, #tpu.memory_space<smem>>
    %472 = vector.broadcast %471 : f32 to vector<8x64xf32>
    %473 = arith.mulf %472, %466 : vector<8x64xf32>
    %474 = arith.addf %457, %473 : vector<8x64xf32>
    %c74 = arith.constant 74 : index
    %475 = memref.load %arg2[%c74] : memref<144xf32, #tpu.memory_space<smem>>
    %476 = vector.broadcast %475 : f32 to vector<8x64xf32>
    %477 = arith.mulf %476, %466 : vector<8x64xf32>
    %478 = arith.addf %461, %477 : vector<8x64xf32>
    %c75 = arith.constant 75 : index
    %479 = memref.load %arg2[%c75] : memref<144xf32, #tpu.memory_space<smem>>
    %480 = vector.broadcast %479 : f32 to vector<8x64xf32>
    %481 = arith.mulf %480, %466 : vector<8x64xf32>
    %482 = arith.addf %465, %481 : vector<8x64xf32>
    %483 = vector.extract_strided_slice %397 {offsets = [1, 2], sizes = [8, 64], strides = [1, 1]} : vector<10x66xf32> to vector<8x64xf32>
    %c88 = arith.constant 88 : index
    %484 = memref.load %arg2[%c88] : memref<144xf32, #tpu.memory_space<smem>>
    %485 = vector.broadcast %484 : f32 to vector<8x64xf32>
    %486 = arith.mulf %485, %483 : vector<8x64xf32>
    %487 = arith.addf %470, %486 : vector<8x64xf32>
    %c89 = arith.constant 89 : index
    %488 = memref.load %arg2[%c89] : memref<144xf32, #tpu.memory_space<smem>>
    %489 = vector.broadcast %488 : f32 to vector<8x64xf32>
    %490 = arith.mulf %489, %483 : vector<8x64xf32>
    %491 = arith.addf %474, %490 : vector<8x64xf32>
    %c90 = arith.constant 90 : index
    %492 = memref.load %arg2[%c90] : memref<144xf32, #tpu.memory_space<smem>>
    %493 = vector.broadcast %492 : f32 to vector<8x64xf32>
    %494 = arith.mulf %493, %483 : vector<8x64xf32>
    %495 = arith.addf %478, %494 : vector<8x64xf32>
    %c91 = arith.constant 91 : index
    %496 = memref.load %arg2[%c91] : memref<144xf32, #tpu.memory_space<smem>>
    %497 = vector.broadcast %496 : f32 to vector<8x64xf32>
    %498 = arith.mulf %497, %483 : vector<8x64xf32>
    %499 = arith.addf %482, %498 : vector<8x64xf32>
    %500 = vector.extract_strided_slice %397 {offsets = [2, 0], sizes = [8, 64], strides = [1, 1]} : vector<10x66xf32> to vector<8x64xf32>
    %c104 = arith.constant 104 : index
    %501 = memref.load %arg2[%c104] : memref<144xf32, #tpu.memory_space<smem>>
    %502 = vector.broadcast %501 : f32 to vector<8x64xf32>
    %503 = arith.mulf %502, %500 : vector<8x64xf32>
    %504 = arith.addf %487, %503 : vector<8x64xf32>
    %c105 = arith.constant 105 : index
    %505 = memref.load %arg2[%c105] : memref<144xf32, #tpu.memory_space<smem>>
    %506 = vector.broadcast %505 : f32 to vector<8x64xf32>
    %507 = arith.mulf %506, %500 : vector<8x64xf32>
    %508 = arith.addf %491, %507 : vector<8x64xf32>
    %c106 = arith.constant 106 : index
    %509 = memref.load %arg2[%c106] : memref<144xf32, #tpu.memory_space<smem>>
    %510 = vector.broadcast %509 : f32 to vector<8x64xf32>
    %511 = arith.mulf %510, %500 : vector<8x64xf32>
    %512 = arith.addf %495, %511 : vector<8x64xf32>
    %c107 = arith.constant 107 : index
    %513 = memref.load %arg2[%c107] : memref<144xf32, #tpu.memory_space<smem>>
    %514 = vector.broadcast %513 : f32 to vector<8x64xf32>
    %515 = arith.mulf %514, %500 : vector<8x64xf32>
    %516 = arith.addf %499, %515 : vector<8x64xf32>
    %517 = vector.extract_strided_slice %397 {offsets = [2, 1], sizes = [8, 64], strides = [1, 1]} : vector<10x66xf32> to vector<8x64xf32>
    %c120 = arith.constant 120 : index
    %518 = memref.load %arg2[%c120] : memref<144xf32, #tpu.memory_space<smem>>
    %519 = vector.broadcast %518 : f32 to vector<8x64xf32>
    %520 = arith.mulf %519, %517 : vector<8x64xf32>
    %521 = arith.addf %504, %520 : vector<8x64xf32>
    %c121 = arith.constant 121 : index
    %522 = memref.load %arg2[%c121] : memref<144xf32, #tpu.memory_space<smem>>
    %523 = vector.broadcast %522 : f32 to vector<8x64xf32>
    %524 = arith.mulf %523, %517 : vector<8x64xf32>
    %525 = arith.addf %508, %524 : vector<8x64xf32>
    %c122 = arith.constant 122 : index
    %526 = memref.load %arg2[%c122] : memref<144xf32, #tpu.memory_space<smem>>
    %527 = vector.broadcast %526 : f32 to vector<8x64xf32>
    %528 = arith.mulf %527, %517 : vector<8x64xf32>
    %529 = arith.addf %512, %528 : vector<8x64xf32>
    %c123 = arith.constant 123 : index
    %530 = memref.load %arg2[%c123] : memref<144xf32, #tpu.memory_space<smem>>
    %531 = vector.broadcast %530 : f32 to vector<8x64xf32>
    %532 = arith.mulf %531, %517 : vector<8x64xf32>
    %533 = arith.addf %516, %532 : vector<8x64xf32>
    %534 = vector.extract_strided_slice %397 {offsets = [2, 2], sizes = [8, 64], strides = [1, 1]} : vector<10x66xf32> to vector<8x64xf32>
    %c136 = arith.constant 136 : index
    %535 = memref.load %arg2[%c136] : memref<144xf32, #tpu.memory_space<smem>>
    %536 = vector.broadcast %535 : f32 to vector<8x64xf32>
    %537 = arith.mulf %536, %534 : vector<8x64xf32>
    %538 = arith.addf %521, %537 : vector<8x64xf32>
    %c137 = arith.constant 137 : index
    %539 = memref.load %arg2[%c137] : memref<144xf32, #tpu.memory_space<smem>>
    %540 = vector.broadcast %539 : f32 to vector<8x64xf32>
    %541 = arith.mulf %540, %534 : vector<8x64xf32>
    %542 = arith.addf %525, %541 : vector<8x64xf32>
    %c138 = arith.constant 138 : index
    %543 = memref.load %arg2[%c138] : memref<144xf32, #tpu.memory_space<smem>>
    %544 = vector.broadcast %543 : f32 to vector<8x64xf32>
    %545 = arith.mulf %544, %534 : vector<8x64xf32>
    %546 = arith.addf %529, %545 : vector<8x64xf32>
    %c139 = arith.constant 139 : index
    %547 = memref.load %arg2[%c139] : memref<144xf32, #tpu.memory_space<smem>>
    %548 = vector.broadcast %547 : f32 to vector<8x64xf32>
    %549 = arith.mulf %548, %534 : vector<8x64xf32>
    %550 = arith.addf %533, %549 : vector<8x64xf32>
    %c3_94 = arith.constant 3 : index
    %c0_95 = arith.constant 0 : index
    %c0_96 = arith.constant 0 : index
    %551 = vector.load %arg6[%c3_94, %c0_95, %c0_96] : memref<4x18x66xf32, #tpu.memory_space<vmem>>, vector<1x10x66xf32>
    %552 = vector.shape_cast %551 : vector<1x10x66xf32> to vector<10x66xf32>
    %553 = vector.extract_strided_slice %552 {offsets = [0, 0], sizes = [8, 64], strides = [1, 1]} : vector<10x66xf32> to vector<8x64xf32>
    %c12 = arith.constant 12 : index
    %554 = memref.load %arg2[%c12] : memref<144xf32, #tpu.memory_space<smem>>
    %555 = vector.broadcast %554 : f32 to vector<8x64xf32>
    %556 = arith.mulf %555, %553 : vector<8x64xf32>
    %557 = arith.addf %538, %556 : vector<8x64xf32>
    %c13 = arith.constant 13 : index
    %558 = memref.load %arg2[%c13] : memref<144xf32, #tpu.memory_space<smem>>
    %559 = vector.broadcast %558 : f32 to vector<8x64xf32>
    %560 = arith.mulf %559, %553 : vector<8x64xf32>
    %561 = arith.addf %542, %560 : vector<8x64xf32>
    %c14 = arith.constant 14 : index
    %562 = memref.load %arg2[%c14] : memref<144xf32, #tpu.memory_space<smem>>
    %563 = vector.broadcast %562 : f32 to vector<8x64xf32>
    %564 = arith.mulf %563, %553 : vector<8x64xf32>
    %565 = arith.addf %546, %564 : vector<8x64xf32>
    %c15 = arith.constant 15 : index
    %566 = memref.load %arg2[%c15] : memref<144xf32, #tpu.memory_space<smem>>
    %567 = vector.broadcast %566 : f32 to vector<8x64xf32>
    %568 = arith.mulf %567, %553 : vector<8x64xf32>
    %569 = arith.addf %550, %568 : vector<8x64xf32>
    %570 = vector.extract_strided_slice %552 {offsets = [0, 1], sizes = [8, 64], strides = [1, 1]} : vector<10x66xf32> to vector<8x64xf32>
    %c28 = arith.constant 28 : index
    %571 = memref.load %arg2[%c28] : memref<144xf32, #tpu.memory_space<smem>>
    %572 = vector.broadcast %571 : f32 to vector<8x64xf32>
    %573 = arith.mulf %572, %570 : vector<8x64xf32>
    %574 = arith.addf %557, %573 : vector<8x64xf32>
    %c29 = arith.constant 29 : index
    %575 = memref.load %arg2[%c29] : memref<144xf32, #tpu.memory_space<smem>>
    %576 = vector.broadcast %575 : f32 to vector<8x64xf32>
    %577 = arith.mulf %576, %570 : vector<8x64xf32>
    %578 = arith.addf %561, %577 : vector<8x64xf32>
    %c30 = arith.constant 30 : index
    %579 = memref.load %arg2[%c30] : memref<144xf32, #tpu.memory_space<smem>>
    %580 = vector.broadcast %579 : f32 to vector<8x64xf32>
    %581 = arith.mulf %580, %570 : vector<8x64xf32>
    %582 = arith.addf %565, %581 : vector<8x64xf32>
    %c31 = arith.constant 31 : index
    %583 = memref.load %arg2[%c31] : memref<144xf32, #tpu.memory_space<smem>>
    %584 = vector.broadcast %583 : f32 to vector<8x64xf32>
    %585 = arith.mulf %584, %570 : vector<8x64xf32>
    %586 = arith.addf %569, %585 : vector<8x64xf32>
    %587 = vector.extract_strided_slice %552 {offsets = [0, 2], sizes = [8, 64], strides = [1, 1]} : vector<10x66xf32> to vector<8x64xf32>
    %c44 = arith.constant 44 : index
    %588 = memref.load %arg2[%c44] : memref<144xf32, #tpu.memory_space<smem>>
    %589 = vector.broadcast %588 : f32 to vector<8x64xf32>
    %590 = arith.mulf %589, %587 : vector<8x64xf32>
    %591 = arith.addf %574, %590 : vector<8x64xf32>
    %c45 = arith.constant 45 : index
    %592 = memref.load %arg2[%c45] : memref<144xf32, #tpu.memory_space<smem>>
    %593 = vector.broadcast %592 : f32 to vector<8x64xf32>
    %594 = arith.mulf %593, %587 : vector<8x64xf32>
    %595 = arith.addf %578, %594 : vector<8x64xf32>
    %c46 = arith.constant 46 : index
    %596 = memref.load %arg2[%c46] : memref<144xf32, #tpu.memory_space<smem>>
    %597 = vector.broadcast %596 : f32 to vector<8x64xf32>
    %598 = arith.mulf %597, %587 : vector<8x64xf32>
    %599 = arith.addf %582, %598 : vector<8x64xf32>
    %c47 = arith.constant 47 : index
    %600 = memref.load %arg2[%c47] : memref<144xf32, #tpu.memory_space<smem>>
    %601 = vector.broadcast %600 : f32 to vector<8x64xf32>
    %602 = arith.mulf %601, %587 : vector<8x64xf32>
    %603 = arith.addf %586, %602 : vector<8x64xf32>
    %604 = vector.extract_strided_slice %552 {offsets = [1, 0], sizes = [8, 64], strides = [1, 1]} : vector<10x66xf32> to vector<8x64xf32>
    %c60 = arith.constant 60 : index
    %605 = memref.load %arg2[%c60] : memref<144xf32, #tpu.memory_space<smem>>
    %606 = vector.broadcast %605 : f32 to vector<8x64xf32>
    %607 = arith.mulf %606, %604 : vector<8x64xf32>
    %608 = arith.addf %591, %607 : vector<8x64xf32>
    %c61 = arith.constant 61 : index
    %609 = memref.load %arg2[%c61] : memref<144xf32, #tpu.memory_space<smem>>
    %610 = vector.broadcast %609 : f32 to vector<8x64xf32>
    %611 = arith.mulf %610, %604 : vector<8x64xf32>
    %612 = arith.addf %595, %611 : vector<8x64xf32>
    %c62 = arith.constant 62 : index
    %613 = memref.load %arg2[%c62] : memref<144xf32, #tpu.memory_space<smem>>
    %614 = vector.broadcast %613 : f32 to vector<8x64xf32>
    %615 = arith.mulf %614, %604 : vector<8x64xf32>
    %616 = arith.addf %599, %615 : vector<8x64xf32>
    %c63 = arith.constant 63 : index
    %617 = memref.load %arg2[%c63] : memref<144xf32, #tpu.memory_space<smem>>
    %618 = vector.broadcast %617 : f32 to vector<8x64xf32>
    %619 = arith.mulf %618, %604 : vector<8x64xf32>
    %620 = arith.addf %603, %619 : vector<8x64xf32>
    %621 = vector.extract_strided_slice %552 {offsets = [1, 1], sizes = [8, 64], strides = [1, 1]} : vector<10x66xf32> to vector<8x64xf32>
    %c76 = arith.constant 76 : index
    %622 = memref.load %arg2[%c76] : memref<144xf32, #tpu.memory_space<smem>>
    %623 = vector.broadcast %622 : f32 to vector<8x64xf32>
    %624 = arith.mulf %623, %621 : vector<8x64xf32>
    %625 = arith.addf %608, %624 : vector<8x64xf32>
    %c77 = arith.constant 77 : index
    %626 = memref.load %arg2[%c77] : memref<144xf32, #tpu.memory_space<smem>>
    %627 = vector.broadcast %626 : f32 to vector<8x64xf32>
    %628 = arith.mulf %627, %621 : vector<8x64xf32>
    %629 = arith.addf %612, %628 : vector<8x64xf32>
    %c78 = arith.constant 78 : index
    %630 = memref.load %arg2[%c78] : memref<144xf32, #tpu.memory_space<smem>>
    %631 = vector.broadcast %630 : f32 to vector<8x64xf32>
    %632 = arith.mulf %631, %621 : vector<8x64xf32>
    %633 = arith.addf %616, %632 : vector<8x64xf32>
    %c79 = arith.constant 79 : index
    %634 = memref.load %arg2[%c79] : memref<144xf32, #tpu.memory_space<smem>>
    %635 = vector.broadcast %634 : f32 to vector<8x64xf32>
    %636 = arith.mulf %635, %621 : vector<8x64xf32>
    %637 = arith.addf %620, %636 : vector<8x64xf32>
    %638 = vector.extract_strided_slice %552 {offsets = [1, 2], sizes = [8, 64], strides = [1, 1]} : vector<10x66xf32> to vector<8x64xf32>
    %c92 = arith.constant 92 : index
    %639 = memref.load %arg2[%c92] : memref<144xf32, #tpu.memory_space<smem>>
    %640 = vector.broadcast %639 : f32 to vector<8x64xf32>
    %641 = arith.mulf %640, %638 : vector<8x64xf32>
    %642 = arith.addf %625, %641 : vector<8x64xf32>
    %c93 = arith.constant 93 : index
    %643 = memref.load %arg2[%c93] : memref<144xf32, #tpu.memory_space<smem>>
    %644 = vector.broadcast %643 : f32 to vector<8x64xf32>
    %645 = arith.mulf %644, %638 : vector<8x64xf32>
    %646 = arith.addf %629, %645 : vector<8x64xf32>
    %c94 = arith.constant 94 : index
    %647 = memref.load %arg2[%c94] : memref<144xf32, #tpu.memory_space<smem>>
    %648 = vector.broadcast %647 : f32 to vector<8x64xf32>
    %649 = arith.mulf %648, %638 : vector<8x64xf32>
    %650 = arith.addf %633, %649 : vector<8x64xf32>
    %c95 = arith.constant 95 : index
    %651 = memref.load %arg2[%c95] : memref<144xf32, #tpu.memory_space<smem>>
    %652 = vector.broadcast %651 : f32 to vector<8x64xf32>
    %653 = arith.mulf %652, %638 : vector<8x64xf32>
    %654 = arith.addf %637, %653 : vector<8x64xf32>
    %655 = vector.extract_strided_slice %552 {offsets = [2, 0], sizes = [8, 64], strides = [1, 1]} : vector<10x66xf32> to vector<8x64xf32>
    %c108 = arith.constant 108 : index
    %656 = memref.load %arg2[%c108] : memref<144xf32, #tpu.memory_space<smem>>
    %657 = vector.broadcast %656 : f32 to vector<8x64xf32>
    %658 = arith.mulf %657, %655 : vector<8x64xf32>
    %659 = arith.addf %642, %658 : vector<8x64xf32>
    %c109 = arith.constant 109 : index
    %660 = memref.load %arg2[%c109] : memref<144xf32, #tpu.memory_space<smem>>
    %661 = vector.broadcast %660 : f32 to vector<8x64xf32>
    %662 = arith.mulf %661, %655 : vector<8x64xf32>
    %663 = arith.addf %646, %662 : vector<8x64xf32>
    %c110 = arith.constant 110 : index
    %664 = memref.load %arg2[%c110] : memref<144xf32, #tpu.memory_space<smem>>
    %665 = vector.broadcast %664 : f32 to vector<8x64xf32>
    %666 = arith.mulf %665, %655 : vector<8x64xf32>
    %667 = arith.addf %650, %666 : vector<8x64xf32>
    %c111 = arith.constant 111 : index
    %668 = memref.load %arg2[%c111] : memref<144xf32, #tpu.memory_space<smem>>
    %669 = vector.broadcast %668 : f32 to vector<8x64xf32>
    %670 = arith.mulf %669, %655 : vector<8x64xf32>
    %671 = arith.addf %654, %670 : vector<8x64xf32>
    %672 = vector.extract_strided_slice %552 {offsets = [2, 1], sizes = [8, 64], strides = [1, 1]} : vector<10x66xf32> to vector<8x64xf32>
    %c124 = arith.constant 124 : index
    %673 = memref.load %arg2[%c124] : memref<144xf32, #tpu.memory_space<smem>>
    %674 = vector.broadcast %673 : f32 to vector<8x64xf32>
    %675 = arith.mulf %674, %672 : vector<8x64xf32>
    %676 = arith.addf %659, %675 : vector<8x64xf32>
    %c125 = arith.constant 125 : index
    %677 = memref.load %arg2[%c125] : memref<144xf32, #tpu.memory_space<smem>>
    %678 = vector.broadcast %677 : f32 to vector<8x64xf32>
    %679 = arith.mulf %678, %672 : vector<8x64xf32>
    %680 = arith.addf %663, %679 : vector<8x64xf32>
    %c126 = arith.constant 126 : index
    %681 = memref.load %arg2[%c126] : memref<144xf32, #tpu.memory_space<smem>>
    %682 = vector.broadcast %681 : f32 to vector<8x64xf32>
    %683 = arith.mulf %682, %672 : vector<8x64xf32>
    %684 = arith.addf %667, %683 : vector<8x64xf32>
    %c127 = arith.constant 127 : index
    %685 = memref.load %arg2[%c127] : memref<144xf32, #tpu.memory_space<smem>>
    %686 = vector.broadcast %685 : f32 to vector<8x64xf32>
    %687 = arith.mulf %686, %672 : vector<8x64xf32>
    %688 = arith.addf %671, %687 : vector<8x64xf32>
    %689 = vector.extract_strided_slice %552 {offsets = [2, 2], sizes = [8, 64], strides = [1, 1]} : vector<10x66xf32> to vector<8x64xf32>
    %c140 = arith.constant 140 : index
    %690 = memref.load %arg2[%c140] : memref<144xf32, #tpu.memory_space<smem>>
    %691 = vector.broadcast %690 : f32 to vector<8x64xf32>
    %692 = arith.mulf %691, %689 : vector<8x64xf32>
    %693 = arith.addf %676, %692 : vector<8x64xf32>
    %c141 = arith.constant 141 : index
    %694 = memref.load %arg2[%c141] : memref<144xf32, #tpu.memory_space<smem>>
    %695 = vector.broadcast %694 : f32 to vector<8x64xf32>
    %696 = arith.mulf %695, %689 : vector<8x64xf32>
    %697 = arith.addf %680, %696 : vector<8x64xf32>
    %c142 = arith.constant 142 : index
    %698 = memref.load %arg2[%c142] : memref<144xf32, #tpu.memory_space<smem>>
    %699 = vector.broadcast %698 : f32 to vector<8x64xf32>
    %700 = arith.mulf %699, %689 : vector<8x64xf32>
    %701 = arith.addf %684, %700 : vector<8x64xf32>
    %c143 = arith.constant 143 : index
    %702 = memref.load %arg2[%c143] : memref<144xf32, #tpu.memory_space<smem>>
    %703 = vector.broadcast %702 : f32 to vector<8x64xf32>
    %704 = arith.mulf %703, %689 : vector<8x64xf32>
    %705 = arith.addf %688, %704 : vector<8x64xf32>
    %cst_97 = arith.constant 0.000000e+00 : f32
    %706 = vector.broadcast %cst_97 : f32 to vector<8x64xf32>
    %707 = arith.cmpf ogt, %693, %706 : vector<8x64xf32>
    %cst_98 = arith.constant 0.00999999977 : f32
    %708 = vector.broadcast %cst_98 : f32 to vector<8x64xf32>
    %709 = arith.mulf %708, %693 : vector<8x64xf32>
    %710 = arith.select %707, %693, %709 : vector<8x64xi1>, vector<8x64xf32>
    %c4_99 = arith.constant 4 : index
    %711 = memref.load %arg4[%c4_99] : memref<24xf32, #tpu.memory_space<smem>>
    %712 = vector.broadcast %711 : f32 to vector<8x64xf32>
    %713 = arith.mulf %710, %712 : vector<8x64xf32>
    %c8_100 = arith.constant 8 : index
    %714 = memref.load %arg4[%c8_100] : memref<24xf32, #tpu.memory_space<smem>>
    %715 = vector.broadcast %714 : f32 to vector<8x64xf32>
    %716 = arith.addf %713, %715 : vector<8x64xf32>
    %cst_101 = arith.constant 0.000000e+00 : f32
    %717 = vector.broadcast %cst_101 : f32 to vector<8x64xf32>
    %718 = arith.cmpf ogt, %697, %717 : vector<8x64xf32>
    %cst_102 = arith.constant 0.00999999977 : f32
    %719 = vector.broadcast %cst_102 : f32 to vector<8x64xf32>
    %720 = arith.mulf %719, %697 : vector<8x64xf32>
    %721 = arith.select %718, %697, %720 : vector<8x64xi1>, vector<8x64xf32>
    %c5_103 = arith.constant 5 : index
    %722 = memref.load %arg4[%c5_103] : memref<24xf32, #tpu.memory_space<smem>>
    %723 = vector.broadcast %722 : f32 to vector<8x64xf32>
    %724 = arith.mulf %721, %723 : vector<8x64xf32>
    %c9_104 = arith.constant 9 : index
    %725 = memref.load %arg4[%c9_104] : memref<24xf32, #tpu.memory_space<smem>>
    %726 = vector.broadcast %725 : f32 to vector<8x64xf32>
    %727 = arith.addf %724, %726 : vector<8x64xf32>
    %cst_105 = arith.constant 0.000000e+00 : f32
    %728 = vector.broadcast %cst_105 : f32 to vector<8x64xf32>
    %729 = arith.cmpf ogt, %701, %728 : vector<8x64xf32>
    %cst_106 = arith.constant 0.00999999977 : f32
    %730 = vector.broadcast %cst_106 : f32 to vector<8x64xf32>
    %731 = arith.mulf %730, %701 : vector<8x64xf32>
    %732 = arith.select %729, %701, %731 : vector<8x64xi1>, vector<8x64xf32>
    %c6_107 = arith.constant 6 : index
    %733 = memref.load %arg4[%c6_107] : memref<24xf32, #tpu.memory_space<smem>>
    %734 = vector.broadcast %733 : f32 to vector<8x64xf32>
    %735 = arith.mulf %732, %734 : vector<8x64xf32>
    %c10_108 = arith.constant 10 : index
    %736 = memref.load %arg4[%c10_108] : memref<24xf32, #tpu.memory_space<smem>>
    %737 = vector.broadcast %736 : f32 to vector<8x64xf32>
    %738 = arith.addf %735, %737 : vector<8x64xf32>
    %cst_109 = arith.constant 0.000000e+00 : f32
    %739 = vector.broadcast %cst_109 : f32 to vector<8x64xf32>
    %740 = arith.cmpf ogt, %705, %739 : vector<8x64xf32>
    %cst_110 = arith.constant 0.00999999977 : f32
    %741 = vector.broadcast %cst_110 : f32 to vector<8x64xf32>
    %742 = arith.mulf %741, %705 : vector<8x64xf32>
    %743 = arith.select %740, %705, %742 : vector<8x64xi1>, vector<8x64xf32>
    %c7_111 = arith.constant 7 : index
    %744 = memref.load %arg4[%c7_111] : memref<24xf32, #tpu.memory_space<smem>>
    %745 = vector.broadcast %744 : f32 to vector<8x64xf32>
    %746 = arith.mulf %743, %745 : vector<8x64xf32>
    %c11_112 = arith.constant 11 : index
    %747 = memref.load %arg4[%c11_112] : memref<24xf32, #tpu.memory_space<smem>>
    %748 = vector.broadcast %747 : f32 to vector<8x64xf32>
    %749 = arith.addf %746, %748 : vector<8x64xf32>
    %cst_113 = arith.constant 0.000000e+00 : f32
    %750 = vector.broadcast %cst_113 : f32 to vector<8x64xf32>
    %c12_114 = arith.constant 12 : index
    %751 = memref.load %arg4[%c12_114] : memref<24xf32, #tpu.memory_space<smem>>
    %752 = vector.broadcast %751 : f32 to vector<8x64xf32>
    %753 = arith.addf %750, %752 : vector<8x64xf32>
    %c0_115 = arith.constant 0 : index
    %754 = memref.load %arg3[%c0_115] : memref<16xf32, #tpu.memory_space<smem>>
    %755 = vector.broadcast %754 : f32 to vector<8x64xf32>
    %756 = arith.mulf %755, %716 : vector<8x64xf32>
    %757 = arith.addf %753, %756 : vector<8x64xf32>
    %c4_116 = arith.constant 4 : index
    %758 = memref.load %arg3[%c4_116] : memref<16xf32, #tpu.memory_space<smem>>
    %759 = vector.broadcast %758 : f32 to vector<8x64xf32>
    %760 = arith.mulf %759, %727 : vector<8x64xf32>
    %761 = arith.addf %757, %760 : vector<8x64xf32>
    %c8_117 = arith.constant 8 : index
    %762 = memref.load %arg3[%c8_117] : memref<16xf32, #tpu.memory_space<smem>>
    %763 = vector.broadcast %762 : f32 to vector<8x64xf32>
    %764 = arith.mulf %763, %738 : vector<8x64xf32>
    %765 = arith.addf %761, %764 : vector<8x64xf32>
    %c12_118 = arith.constant 12 : index
    %766 = memref.load %arg3[%c12_118] : memref<16xf32, #tpu.memory_space<smem>>
    %767 = vector.broadcast %766 : f32 to vector<8x64xf32>
    %768 = arith.mulf %767, %749 : vector<8x64xf32>
    %769 = arith.addf %765, %768 : vector<8x64xf32>
    %cst_119 = arith.constant 0.000000e+00 : f32
    %770 = vector.broadcast %cst_119 : f32 to vector<8x64xf32>
    %771 = arith.cmpf ogt, %769, %770 : vector<8x64xf32>
    %cst_120 = arith.constant 0.00999999977 : f32
    %772 = vector.broadcast %cst_120 : f32 to vector<8x64xf32>
    %773 = arith.mulf %772, %769 : vector<8x64xf32>
    %774 = arith.select %771, %769, %773 : vector<8x64xi1>, vector<8x64xf32>
    %c16_121 = arith.constant 16 : index
    %775 = memref.load %arg4[%c16_121] : memref<24xf32, #tpu.memory_space<smem>>
    %776 = vector.broadcast %775 : f32 to vector<8x64xf32>
    %777 = arith.mulf %774, %776 : vector<8x64xf32>
    %c20_122 = arith.constant 20 : index
    %778 = memref.load %arg4[%c20_122] : memref<24xf32, #tpu.memory_space<smem>>
    %779 = vector.broadcast %778 : f32 to vector<8x64xf32>
    %780 = arith.addf %777, %779 : vector<8x64xf32>
    %c0_123 = arith.constant 0 : index
    %c0_124 = arith.constant 0 : index
    %c0_125 = arith.constant 0 : index
    %c0_126 = arith.constant 0 : index
    %781 = vector.load %arg5[%c0_123, %c0_124, %c0_125, %c0_126] : memref<1x4x16x64xf32, #tpu.memory_space<vmem>>, vector<1x1x8x64xf32>
    %782 = vector.shape_cast %781 : vector<1x1x8x64xf32> to vector<8x64xf32>
    %783 = vector.shape_cast %780 : vector<8x64xf32> to vector<1x1x8x64xf32>
    tpu.vector_store %arg5[%c0_123, %c0_124, %c0_125, %c0_126], %783 {strides = array<i32>} : memref<1x4x16x64xf32, #tpu.memory_space<vmem>>, vector<1x1x8x64xf32>,
    %cst_127 = arith.constant 0.000000e+00 : f32
    %784 = vector.broadcast %cst_127 : f32 to vector<8x64xf32>
    %c13_128 = arith.constant 13 : index
    %785 = memref.load %arg4[%c13_128] : memref<24xf32, #tpu.memory_space<smem>>
    %786 = vector.broadcast %785 : f32 to vector<8x64xf32>
    %787 = arith.addf %784, %786 : vector<8x64xf32>
    %c1_129 = arith.constant 1 : index
    %788 = memref.load %arg3[%c1_129] : memref<16xf32, #tpu.memory_space<smem>>
    %789 = vector.broadcast %788 : f32 to vector<8x64xf32>
    %790 = arith.mulf %789, %716 : vector<8x64xf32>
    %791 = arith.addf %787, %790 : vector<8x64xf32>
    %c5_130 = arith.constant 5 : index
    %792 = memref.load %arg3[%c5_130] : memref<16xf32, #tpu.memory_space<smem>>
    %793 = vector.broadcast %792 : f32 to vector<8x64xf32>
    %794 = arith.mulf %793, %727 : vector<8x64xf32>
    %795 = arith.addf %791, %794 : vector<8x64xf32>
    %c9_131 = arith.constant 9 : index
    %796 = memref.load %arg3[%c9_131] : memref<16xf32, #tpu.memory_space<smem>>
    %797 = vector.broadcast %796 : f32 to vector<8x64xf32>
    %798 = arith.mulf %797, %738 : vector<8x64xf32>
    %799 = arith.addf %795, %798 : vector<8x64xf32>
    %c13_132 = arith.constant 13 : index
    %800 = memref.load %arg3[%c13_132] : memref<16xf32, #tpu.memory_space<smem>>
    %801 = vector.broadcast %800 : f32 to vector<8x64xf32>
    %802 = arith.mulf %801, %749 : vector<8x64xf32>
    %803 = arith.addf %799, %802 : vector<8x64xf32>
    %cst_133 = arith.constant 0.000000e+00 : f32
    %804 = vector.broadcast %cst_133 : f32 to vector<8x64xf32>
    %805 = arith.cmpf ogt, %803, %804 : vector<8x64xf32>
    %cst_134 = arith.constant 0.00999999977 : f32
    %806 = vector.broadcast %cst_134 : f32 to vector<8x64xf32>
    %807 = arith.mulf %806, %803 : vector<8x64xf32>
    %808 = arith.select %805, %803, %807 : vector<8x64xi1>, vector<8x64xf32>
    %c17_135 = arith.constant 17 : index
    %809 = memref.load %arg4[%c17_135] : memref<24xf32, #tpu.memory_space<smem>>
    %810 = vector.broadcast %809 : f32 to vector<8x64xf32>
    %811 = arith.mulf %808, %810 : vector<8x64xf32>
    %c21_136 = arith.constant 21 : index
    %812 = memref.load %arg4[%c21_136] : memref<24xf32, #tpu.memory_space<smem>>
    %813 = vector.broadcast %812 : f32 to vector<8x64xf32>
    %814 = arith.addf %811, %813 : vector<8x64xf32>
    %c0_137 = arith.constant 0 : index
    %c1_138 = arith.constant 1 : index
    %c0_139 = arith.constant 0 : index
    %c0_140 = arith.constant 0 : index
    %815 = vector.load %arg5[%c0_137, %c1_138, %c0_139, %c0_140] : memref<1x4x16x64xf32, #tpu.memory_space<vmem>>, vector<1x1x8x64xf32>
    %816 = vector.shape_cast %815 : vector<1x1x8x64xf32> to vector<8x64xf32>
    %817 = vector.shape_cast %814 : vector<8x64xf32> to vector<1x1x8x64xf32>
    tpu.vector_store %arg5[%c0_137, %c1_138, %c0_139, %c0_140], %817 {strides = array<i32>} : memref<1x4x16x64xf32, #tpu.memory_space<vmem>>, vector<1x1x8x64xf32>,
    %cst_141 = arith.constant 0.000000e+00 : f32
    %818 = vector.broadcast %cst_141 : f32 to vector<8x64xf32>
    %c14_142 = arith.constant 14 : index
    %819 = memref.load %arg4[%c14_142] : memref<24xf32, #tpu.memory_space<smem>>
    %820 = vector.broadcast %819 : f32 to vector<8x64xf32>
    %821 = arith.addf %818, %820 : vector<8x64xf32>
    %c2_143 = arith.constant 2 : index
    %822 = memref.load %arg3[%c2_143] : memref<16xf32, #tpu.memory_space<smem>>
    %823 = vector.broadcast %822 : f32 to vector<8x64xf32>
    %824 = arith.mulf %823, %716 : vector<8x64xf32>
    %825 = arith.addf %821, %824 : vector<8x64xf32>
    %c6_144 = arith.constant 6 : index
    %826 = memref.load %arg3[%c6_144] : memref<16xf32, #tpu.memory_space<smem>>
    %827 = vector.broadcast %826 : f32 to vector<8x64xf32>
    %828 = arith.mulf %827, %727 : vector<8x64xf32>
    %829 = arith.addf %825, %828 : vector<8x64xf32>
    %c10_145 = arith.constant 10 : index
    %830 = memref.load %arg3[%c10_145] : memref<16xf32, #tpu.memory_space<smem>>
    %831 = vector.broadcast %830 : f32 to vector<8x64xf32>
    %832 = arith.mulf %831, %738 : vector<8x64xf32>
    %833 = arith.addf %829, %832 : vector<8x64xf32>
    %c14_146 = arith.constant 14 : index
    %834 = memref.load %arg3[%c14_146] : memref<16xf32, #tpu.memory_space<smem>>
    %835 = vector.broadcast %834 : f32 to vector<8x64xf32>
    %836 = arith.mulf %835, %749 : vector<8x64xf32>
    %837 = arith.addf %833, %836 : vector<8x64xf32>
    %cst_147 = arith.constant 0.000000e+00 : f32
    %838 = vector.broadcast %cst_147 : f32 to vector<8x64xf32>
    %839 = arith.cmpf ogt, %837, %838 : vector<8x64xf32>
    %cst_148 = arith.constant 0.00999999977 : f32
    %840 = vector.broadcast %cst_148 : f32 to vector<8x64xf32>
    %841 = arith.mulf %840, %837 : vector<8x64xf32>
    %842 = arith.select %839, %837, %841 : vector<8x64xi1>, vector<8x64xf32>
    %c18_149 = arith.constant 18 : index
    %843 = memref.load %arg4[%c18_149] : memref<24xf32, #tpu.memory_space<smem>>
    %844 = vector.broadcast %843 : f32 to vector<8x64xf32>
    %845 = arith.mulf %842, %844 : vector<8x64xf32>
    %c22_150 = arith.constant 22 : index
    %846 = memref.load %arg4[%c22_150] : memref<24xf32, #tpu.memory_space<smem>>
    %847 = vector.broadcast %846 : f32 to vector<8x64xf32>
    %848 = arith.addf %845, %847 : vector<8x64xf32>
    %c0_151 = arith.constant 0 : index
    %c2_152 = arith.constant 2 : index
    %c0_153 = arith.constant 0 : index
    %c0_154 = arith.constant 0 : index
    %849 = vector.load %arg5[%c0_151, %c2_152, %c0_153, %c0_154] : memref<1x4x16x64xf32, #tpu.memory_space<vmem>>, vector<1x1x8x64xf32>
    %850 = vector.shape_cast %849 : vector<1x1x8x64xf32> to vector<8x64xf32>
    %851 = vector.shape_cast %848 : vector<8x64xf32> to vector<1x1x8x64xf32>
    tpu.vector_store %arg5[%c0_151, %c2_152, %c0_153, %c0_154], %851 {strides = array<i32>} : memref<1x4x16x64xf32, #tpu.memory_space<vmem>>, vector<1x1x8x64xf32>,
    %cst_155 = arith.constant 0.000000e+00 : f32
    %852 = vector.broadcast %cst_155 : f32 to vector<8x64xf32>
    %c15_156 = arith.constant 15 : index
    %853 = memref.load %arg4[%c15_156] : memref<24xf32, #tpu.memory_space<smem>>
    %854 = vector.broadcast %853 : f32 to vector<8x64xf32>
    %855 = arith.addf %852, %854 : vector<8x64xf32>
    %c3_157 = arith.constant 3 : index
    %856 = memref.load %arg3[%c3_157] : memref<16xf32, #tpu.memory_space<smem>>
    %857 = vector.broadcast %856 : f32 to vector<8x64xf32>
    %858 = arith.mulf %857, %716 : vector<8x64xf32>
    %859 = arith.addf %855, %858 : vector<8x64xf32>
    %c7_158 = arith.constant 7 : index
    %860 = memref.load %arg3[%c7_158] : memref<16xf32, #tpu.memory_space<smem>>
    %861 = vector.broadcast %860 : f32 to vector<8x64xf32>
    %862 = arith.mulf %861, %727 : vector<8x64xf32>
    %863 = arith.addf %859, %862 : vector<8x64xf32>
    %c11_159 = arith.constant 11 : index
    %864 = memref.load %arg3[%c11_159] : memref<16xf32, #tpu.memory_space<smem>>
    %865 = vector.broadcast %864 : f32 to vector<8x64xf32>
    %866 = arith.mulf %865, %738 : vector<8x64xf32>
    %867 = arith.addf %863, %866 : vector<8x64xf32>
    %c15_160 = arith.constant 15 : index
    %868 = memref.load %arg3[%c15_160] : memref<16xf32, #tpu.memory_space<smem>>
    %869 = vector.broadcast %868 : f32 to vector<8x64xf32>
    %870 = arith.mulf %869, %749 : vector<8x64xf32>
    %871 = arith.addf %867, %870 : vector<8x64xf32>
    %cst_161 = arith.constant 0.000000e+00 : f32
    %872 = vector.broadcast %cst_161 : f32 to vector<8x64xf32>
    %873 = arith.cmpf ogt, %871, %872 : vector<8x64xf32>
    %cst_162 = arith.constant 0.00999999977 : f32
    %874 = vector.broadcast %cst_162 : f32 to vector<8x64xf32>
    %875 = arith.mulf %874, %871 : vector<8x64xf32>
    %876 = arith.select %873, %871, %875 : vector<8x64xi1>, vector<8x64xf32>
    %c19_163 = arith.constant 19 : index
    %877 = memref.load %arg4[%c19_163] : memref<24xf32, #tpu.memory_space<smem>>
    %878 = vector.broadcast %877 : f32 to vector<8x64xf32>
    %879 = arith.mulf %876, %878 : vector<8x64xf32>
    %c23_164 = arith.constant 23 : index
    %880 = memref.load %arg4[%c23_164] : memref<24xf32, #tpu.memory_space<smem>>
    %881 = vector.broadcast %880 : f32 to vector<8x64xf32>
    %882 = arith.addf %879, %881 : vector<8x64xf32>
    %c0_165 = arith.constant 0 : index
    %c3_166 = arith.constant 3 : index
    %c0_167 = arith.constant 0 : index
    %c0_168 = arith.constant 0 : index
    %883 = vector.load %arg5[%c0_165, %c3_166, %c0_167, %c0_168] : memref<1x4x16x64xf32, #tpu.memory_space<vmem>>, vector<1x1x8x64xf32>
    %884 = vector.shape_cast %883 : vector<1x1x8x64xf32> to vector<8x64xf32>
    %885 = vector.shape_cast %882 : vector<8x64xf32> to vector<1x1x8x64xf32>
    tpu.vector_store %arg5[%c0_165, %c3_166, %c0_167, %c0_168], %885 {strides = array<i32>} : memref<1x4x16x64xf32, #tpu.memory_space<vmem>>, vector<1x1x8x64xf32>,
    %cst_169 = arith.constant 0.000000e+00 : f32
    %886 = vector.broadcast %cst_169 : f32 to vector<8x64xf32>
    %c0_170 = arith.constant 0 : index
    %887 = memref.load %arg4[%c0_170] : memref<24xf32, #tpu.memory_space<smem>>
    %888 = vector.broadcast %887 : f32 to vector<8x64xf32>
    %889 = arith.addf %886, %888 : vector<8x64xf32>
    %cst_171 = arith.constant 0.000000e+00 : f32
    %890 = vector.broadcast %cst_171 : f32 to vector<8x64xf32>
    %c1_172 = arith.constant 1 : index
    %891 = memref.load %arg4[%c1_172] : memref<24xf32, #tpu.memory_space<smem>>
    %892 = vector.broadcast %891 : f32 to vector<8x64xf32>
    %893 = arith.addf %890, %892 : vector<8x64xf32>
    %cst_173 = arith.constant 0.000000e+00 : f32
    %894 = vector.broadcast %cst_173 : f32 to vector<8x64xf32>
    %c2_174 = arith.constant 2 : index
    %895 = memref.load %arg4[%c2_174] : memref<24xf32, #tpu.memory_space<smem>>
    %896 = vector.broadcast %895 : f32 to vector<8x64xf32>
    %897 = arith.addf %894, %896 : vector<8x64xf32>
    %cst_175 = arith.constant 0.000000e+00 : f32
    %898 = vector.broadcast %cst_175 : f32 to vector<8x64xf32>
    %c3_176 = arith.constant 3 : index
    %899 = memref.load %arg4[%c3_176] : memref<24xf32, #tpu.memory_space<smem>>
    %900 = vector.broadcast %899 : f32 to vector<8x64xf32>
    %901 = arith.addf %898, %900 : vector<8x64xf32>
    %c0_177 = arith.constant 0 : index
    %c8_178 = arith.constant 8 : index
    %c0_179 = arith.constant 0 : index
    %902 = vector.load %arg6[%c0_177, %c8_178, %c0_179] : memref<4x18x66xf32, #tpu.memory_space<vmem>>, vector<1x10x66xf32>
    %903 = vector.shape_cast %902 : vector<1x10x66xf32> to vector<10x66xf32>
    %904 = vector.extract_strided_slice %903 {offsets = [0, 0], sizes = [8, 64], strides = [1, 1]} : vector<10x66xf32> to vector<8x64xf32>
    %c0_180 = arith.constant 0 : index
    %905 = memref.load %arg2[%c0_180] : memref<144xf32, #tpu.memory_space<smem>>
    %906 = vector.broadcast %905 : f32 to vector<8x64xf32>
    %907 = arith.mulf %906, %904 : vector<8x64xf32>
    %908 = arith.addf %889, %907 : vector<8x64xf32>
    %c1_181 = arith.constant 1 : index
    %909 = memref.load %arg2[%c1_181] : memref<144xf32, #tpu.memory_space<smem>>
    %910 = vector.broadcast %909 : f32 to vector<8x64xf32>
    %911 = arith.mulf %910, %904 : vector<8x64xf32>
    %912 = arith.addf %893, %911 : vector<8x64xf32>
    %c2_182 = arith.constant 2 : index
    %913 = memref.load %arg2[%c2_182] : memref<144xf32, #tpu.memory_space<smem>>
    %914 = vector.broadcast %913 : f32 to vector<8x64xf32>
    %915 = arith.mulf %914, %904 : vector<8x64xf32>
    %916 = arith.addf %897, %915 : vector<8x64xf32>
    %c3_183 = arith.constant 3 : index
    %917 = memref.load %arg2[%c3_183] : memref<144xf32, #tpu.memory_space<smem>>
    %918 = vector.broadcast %917 : f32 to vector<8x64xf32>
    %919 = arith.mulf %918, %904 : vector<8x64xf32>
    %920 = arith.addf %901, %919 : vector<8x64xf32>
    %921 = vector.extract_strided_slice %903 {offsets = [0, 1], sizes = [8, 64], strides = [1, 1]} : vector<10x66xf32> to vector<8x64xf32>
    %c16_184 = arith.constant 16 : index
    %922 = memref.load %arg2[%c16_184] : memref<144xf32, #tpu.memory_space<smem>>
    %923 = vector.broadcast %922 : f32 to vector<8x64xf32>
    %924 = arith.mulf %923, %921 : vector<8x64xf32>
    %925 = arith.addf %908, %924 : vector<8x64xf32>
    %c17_185 = arith.constant 17 : index
    %926 = memref.load %arg2[%c17_185] : memref<144xf32, #tpu.memory_space<smem>>
    %927 = vector.broadcast %926 : f32 to vector<8x64xf32>
    %928 = arith.mulf %927, %921 : vector<8x64xf32>
    %929 = arith.addf %912, %928 : vector<8x64xf32>
    %c18_186 = arith.constant 18 : index
    %930 = memref.load %arg2[%c18_186] : memref<144xf32, #tpu.memory_space<smem>>
    %931 = vector.broadcast %930 : f32 to vector<8x64xf32>
    %932 = arith.mulf %931, %921 : vector<8x64xf32>
    %933 = arith.addf %916, %932 : vector<8x64xf32>
    %c19_187 = arith.constant 19 : index
    %934 = memref.load %arg2[%c19_187] : memref<144xf32, #tpu.memory_space<smem>>
    %935 = vector.broadcast %934 : f32 to vector<8x64xf32>
    %936 = arith.mulf %935, %921 : vector<8x64xf32>
    %937 = arith.addf %920, %936 : vector<8x64xf32>
    %938 = vector.extract_strided_slice %903 {offsets = [0, 2], sizes = [8, 64], strides = [1, 1]} : vector<10x66xf32> to vector<8x64xf32>
    %c32_188 = arith.constant 32 : index
    %939 = memref.load %arg2[%c32_188] : memref<144xf32, #tpu.memory_space<smem>>
    %940 = vector.broadcast %939 : f32 to vector<8x64xf32>
    %941 = arith.mulf %940, %938 : vector<8x64xf32>
    %942 = arith.addf %925, %941 : vector<8x64xf32>
    %c33_189 = arith.constant 33 : index
    %943 = memref.load %arg2[%c33_189] : memref<144xf32, #tpu.memory_space<smem>>
    %944 = vector.broadcast %943 : f32 to vector<8x64xf32>
    %945 = arith.mulf %944, %938 : vector<8x64xf32>
    %946 = arith.addf %929, %945 : vector<8x64xf32>
    %c34_190 = arith.constant 34 : index
    %947 = memref.load %arg2[%c34_190] : memref<144xf32, #tpu.memory_space<smem>>
    %948 = vector.broadcast %947 : f32 to vector<8x64xf32>
    %949 = arith.mulf %948, %938 : vector<8x64xf32>
    %950 = arith.addf %933, %949 : vector<8x64xf32>
    %c35_191 = arith.constant 35 : index
    %951 = memref.load %arg2[%c35_191] : memref<144xf32, #tpu.memory_space<smem>>
    %952 = vector.broadcast %951 : f32 to vector<8x64xf32>
    %953 = arith.mulf %952, %938 : vector<8x64xf32>
    %954 = arith.addf %937, %953 : vector<8x64xf32>
    %955 = vector.extract_strided_slice %903 {offsets = [1, 0], sizes = [8, 64], strides = [1, 1]} : vector<10x66xf32> to vector<8x64xf32>
    %c48_192 = arith.constant 48 : index
    %956 = memref.load %arg2[%c48_192] : memref<144xf32, #tpu.memory_space<smem>>
    %957 = vector.broadcast %956 : f32 to vector<8x64xf32>
    %958 = arith.mulf %957, %955 : vector<8x64xf32>
    %959 = arith.addf %942, %958 : vector<8x64xf32>
    %c49_193 = arith.constant 49 : index
    %960 = memref.load %arg2[%c49_193] : memref<144xf32, #tpu.memory_space<smem>>
    %961 = vector.broadcast %960 : f32 to vector<8x64xf32>
    %962 = arith.mulf %961, %955 : vector<8x64xf32>
    %963 = arith.addf %946, %962 : vector<8x64xf32>
    %c50_194 = arith.constant 50 : index
    %964 = memref.load %arg2[%c50_194] : memref<144xf32, #tpu.memory_space<smem>>
    %965 = vector.broadcast %964 : f32 to vector<8x64xf32>
    %966 = arith.mulf %965, %955 : vector<8x64xf32>
    %967 = arith.addf %950, %966 : vector<8x64xf32>
    %c51_195 = arith.constant 51 : index
    %968 = memref.load %arg2[%c51_195] : memref<144xf32, #tpu.memory_space<smem>>
    %969 = vector.broadcast %968 : f32 to vector<8x64xf32>
    %970 = arith.mulf %969, %955 : vector<8x64xf32>
    %971 = arith.addf %954, %970 : vector<8x64xf32>
    %972 = vector.extract_strided_slice %903 {offsets = [1, 1], sizes = [8, 64], strides = [1, 1]} : vector<10x66xf32> to vector<8x64xf32>
    %c64_196 = arith.constant 64 : index
    %973 = memref.load %arg2[%c64_196] : memref<144xf32, #tpu.memory_space<smem>>
    %974 = vector.broadcast %973 : f32 to vector<8x64xf32>
    %975 = arith.mulf %974, %972 : vector<8x64xf32>
    %976 = arith.addf %959, %975 : vector<8x64xf32>
    %c65_197 = arith.constant 65 : index
    %977 = memref.load %arg2[%c65_197] : memref<144xf32, #tpu.memory_space<smem>>
    %978 = vector.broadcast %977 : f32 to vector<8x64xf32>
    %979 = arith.mulf %978, %972 : vector<8x64xf32>
    %980 = arith.addf %963, %979 : vector<8x64xf32>
    %c66_198 = arith.constant 66 : index
    %981 = memref.load %arg2[%c66_198] : memref<144xf32, #tpu.memory_space<smem>>
    %982 = vector.broadcast %981 : f32 to vector<8x64xf32>
    %983 = arith.mulf %982, %972 : vector<8x64xf32>
    %984 = arith.addf %967, %983 : vector<8x64xf32>
    %c67_199 = arith.constant 67 : index
    %985 = memref.load %arg2[%c67_199] : memref<144xf32, #tpu.memory_space<smem>>
    %986 = vector.broadcast %985 : f32 to vector<8x64xf32>
    %987 = arith.mulf %986, %972 : vector<8x64xf32>
    %988 = arith.addf %971, %987 : vector<8x64xf32>
    %989 = vector.extract_strided_slice %903 {offsets = [1, 2], sizes = [8, 64], strides = [1, 1]} : vector<10x66xf32> to vector<8x64xf32>
    %c80_200 = arith.constant 80 : index
    %990 = memref.load %arg2[%c80_200] : memref<144xf32, #tpu.memory_space<smem>>
    %991 = vector.broadcast %990 : f32 to vector<8x64xf32>
    %992 = arith.mulf %991, %989 : vector<8x64xf32>
    %993 = arith.addf %976, %992 : vector<8x64xf32>
    %c81_201 = arith.constant 81 : index
    %994 = memref.load %arg2[%c81_201] : memref<144xf32, #tpu.memory_space<smem>>
    %995 = vector.broadcast %994 : f32 to vector<8x64xf32>
    %996 = arith.mulf %995, %989 : vector<8x64xf32>
    %997 = arith.addf %980, %996 : vector<8x64xf32>
    %c82_202 = arith.constant 82 : index
    %998 = memref.load %arg2[%c82_202] : memref<144xf32, #tpu.memory_space<smem>>
    %999 = vector.broadcast %998 : f32 to vector<8x64xf32>
    %1000 = arith.mulf %999, %989 : vector<8x64xf32>
    %1001 = arith.addf %984, %1000 : vector<8x64xf32>
    %c83_203 = arith.constant 83 : index
    %1002 = memref.load %arg2[%c83_203] : memref<144xf32, #tpu.memory_space<smem>>
    %1003 = vector.broadcast %1002 : f32 to vector<8x64xf32>
    %1004 = arith.mulf %1003, %989 : vector<8x64xf32>
    %1005 = arith.addf %988, %1004 : vector<8x64xf32>
    %1006 = vector.extract_strided_slice %903 {offsets = [2, 0], sizes = [8, 64], strides = [1, 1]} : vector<10x66xf32> to vector<8x64xf32>
    %c96_204 = arith.constant 96 : index
    %1007 = memref.load %arg2[%c96_204] : memref<144xf32, #tpu.memory_space<smem>>
    %1008 = vector.broadcast %1007 : f32 to vector<8x64xf32>
    %1009 = arith.mulf %1008, %1006 : vector<8x64xf32>
    %1010 = arith.addf %993, %1009 : vector<8x64xf32>
    %c97_205 = arith.constant 97 : index
    %1011 = memref.load %arg2[%c97_205] : memref<144xf32, #tpu.memory_space<smem>>
    %1012 = vector.broadcast %1011 : f32 to vector<8x64xf32>
    %1013 = arith.mulf %1012, %1006 : vector<8x64xf32>
    %1014 = arith.addf %997, %1013 : vector<8x64xf32>
    %c98_206 = arith.constant 98 : index
    %1015 = memref.load %arg2[%c98_206] : memref<144xf32, #tpu.memory_space<smem>>
    %1016 = vector.broadcast %1015 : f32 to vector<8x64xf32>
    %1017 = arith.mulf %1016, %1006 : vector<8x64xf32>
    %1018 = arith.addf %1001, %1017 : vector<8x64xf32>
    %c99_207 = arith.constant 99 : index
    %1019 = memref.load %arg2[%c99_207] : memref<144xf32, #tpu.memory_space<smem>>
    %1020 = vector.broadcast %1019 : f32 to vector<8x64xf32>
    %1021 = arith.mulf %1020, %1006 : vector<8x64xf32>
    %1022 = arith.addf %1005, %1021 : vector<8x64xf32>
    %1023 = vector.extract_strided_slice %903 {offsets = [2, 1], sizes = [8, 64], strides = [1, 1]} : vector<10x66xf32> to vector<8x64xf32>
    %c112_208 = arith.constant 112 : index
    %1024 = memref.load %arg2[%c112_208] : memref<144xf32, #tpu.memory_space<smem>>
    %1025 = vector.broadcast %1024 : f32 to vector<8x64xf32>
    %1026 = arith.mulf %1025, %1023 : vector<8x64xf32>
    %1027 = arith.addf %1010, %1026 : vector<8x64xf32>
    %c113_209 = arith.constant 113 : index
    %1028 = memref.load %arg2[%c113_209] : memref<144xf32, #tpu.memory_space<smem>>
    %1029 = vector.broadcast %1028 : f32 to vector<8x64xf32>
    %1030 = arith.mulf %1029, %1023 : vector<8x64xf32>
    %1031 = arith.addf %1014, %1030 : vector<8x64xf32>
    %c114_210 = arith.constant 114 : index
    %1032 = memref.load %arg2[%c114_210] : memref<144xf32, #tpu.memory_space<smem>>
    %1033 = vector.broadcast %1032 : f32 to vector<8x64xf32>
    %1034 = arith.mulf %1033, %1023 : vector<8x64xf32>
    %1035 = arith.addf %1018, %1034 : vector<8x64xf32>
    %c115_211 = arith.constant 115 : index
    %1036 = memref.load %arg2[%c115_211] : memref<144xf32, #tpu.memory_space<smem>>
    %1037 = vector.broadcast %1036 : f32 to vector<8x64xf32>
    %1038 = arith.mulf %1037, %1023 : vector<8x64xf32>
    %1039 = arith.addf %1022, %1038 : vector<8x64xf32>
    %1040 = vector.extract_strided_slice %903 {offsets = [2, 2], sizes = [8, 64], strides = [1, 1]} : vector<10x66xf32> to vector<8x64xf32>
    %c128_212 = arith.constant 128 : index
    %1041 = memref.load %arg2[%c128_212] : memref<144xf32, #tpu.memory_space<smem>>
    %1042 = vector.broadcast %1041 : f32 to vector<8x64xf32>
    %1043 = arith.mulf %1042, %1040 : vector<8x64xf32>
    %1044 = arith.addf %1027, %1043 : vector<8x64xf32>
    %c129_213 = arith.constant 129 : index
    %1045 = memref.load %arg2[%c129_213] : memref<144xf32, #tpu.memory_space<smem>>
    %1046 = vector.broadcast %1045 : f32 to vector<8x64xf32>
    %1047 = arith.mulf %1046, %1040 : vector<8x64xf32>
    %1048 = arith.addf %1031, %1047 : vector<8x64xf32>
    %c130_214 = arith.constant 130 : index
    %1049 = memref.load %arg2[%c130_214] : memref<144xf32, #tpu.memory_space<smem>>
    %1050 = vector.broadcast %1049 : f32 to vector<8x64xf32>
    %1051 = arith.mulf %1050, %1040 : vector<8x64xf32>
    %1052 = arith.addf %1035, %1051 : vector<8x64xf32>
    %c131_215 = arith.constant 131 : index
    %1053 = memref.load %arg2[%c131_215] : memref<144xf32, #tpu.memory_space<smem>>
    %1054 = vector.broadcast %1053 : f32 to vector<8x64xf32>
    %1055 = arith.mulf %1054, %1040 : vector<8x64xf32>
    %1056 = arith.addf %1039, %1055 : vector<8x64xf32>
    %c1_216 = arith.constant 1 : index
    %c8_217 = arith.constant 8 : index
    %c0_218 = arith.constant 0 : index
    %1057 = vector.load %arg6[%c1_216, %c8_217, %c0_218] : memref<4x18x66xf32, #tpu.memory_space<vmem>>, vector<1x10x66xf32>
    %1058 = vector.shape_cast %1057 : vector<1x10x66xf32> to vector<10x66xf32>
    %1059 = vector.extract_strided_slice %1058 {offsets = [0, 0], sizes = [8, 64], strides = [1, 1]} : vector<10x66xf32> to vector<8x64xf32>
    %c4_219 = arith.constant 4 : index
    %1060 = memref.load %arg2[%c4_219] : memref<144xf32, #tpu.memory_space<smem>>
    %1061 = vector.broadcast %1060 : f32 to vector<8x64xf32>
    %1062 = arith.mulf %1061, %1059 : vector<8x64xf32>
    %1063 = arith.addf %1044, %1062 : vector<8x64xf32>
    %c5_220 = arith.constant 5 : index
    %1064 = memref.load %arg2[%c5_220] : memref<144xf32, #tpu.memory_space<smem>>
    %1065 = vector.broadcast %1064 : f32 to vector<8x64xf32>
    %1066 = arith.mulf %1065, %1059 : vector<8x64xf32>
    %1067 = arith.addf %1048, %1066 : vector<8x64xf32>
    %c6_221 = arith.constant 6 : index
    %1068 = memref.load %arg2[%c6_221] : memref<144xf32, #tpu.memory_space<smem>>
    %1069 = vector.broadcast %1068 : f32 to vector<8x64xf32>
    %1070 = arith.mulf %1069, %1059 : vector<8x64xf32>
    %1071 = arith.addf %1052, %1070 : vector<8x64xf32>
    %c7_222 = arith.constant 7 : index
    %1072 = memref.load %arg2[%c7_222] : memref<144xf32, #tpu.memory_space<smem>>
    %1073 = vector.broadcast %1072 : f32 to vector<8x64xf32>
    %1074 = arith.mulf %1073, %1059 : vector<8x64xf32>
    %1075 = arith.addf %1056, %1074 : vector<8x64xf32>
    %1076 = vector.extract_strided_slice %1058 {offsets = [0, 1], sizes = [8, 64], strides = [1, 1]} : vector<10x66xf32> to vector<8x64xf32>
    %c20_223 = arith.constant 20 : index
    %1077 = memref.load %arg2[%c20_223] : memref<144xf32, #tpu.memory_space<smem>>
    %1078 = vector.broadcast %1077 : f32 to vector<8x64xf32>
    %1079 = arith.mulf %1078, %1076 : vector<8x64xf32>
    %1080 = arith.addf %1063, %1079 : vector<8x64xf32>
    %c21_224 = arith.constant 21 : index
    %1081 = memref.load %arg2[%c21_224] : memref<144xf32, #tpu.memory_space<smem>>
    %1082 = vector.broadcast %1081 : f32 to vector<8x64xf32>
    %1083 = arith.mulf %1082, %1076 : vector<8x64xf32>
    %1084 = arith.addf %1067, %1083 : vector<8x64xf32>
    %c22_225 = arith.constant 22 : index
    %1085 = memref.load %arg2[%c22_225] : memref<144xf32, #tpu.memory_space<smem>>
    %1086 = vector.broadcast %1085 : f32 to vector<8x64xf32>
    %1087 = arith.mulf %1086, %1076 : vector<8x64xf32>
    %1088 = arith.addf %1071, %1087 : vector<8x64xf32>
    %c23_226 = arith.constant 23 : index
    %1089 = memref.load %arg2[%c23_226] : memref<144xf32, #tpu.memory_space<smem>>
    %1090 = vector.broadcast %1089 : f32 to vector<8x64xf32>
    %1091 = arith.mulf %1090, %1076 : vector<8x64xf32>
    %1092 = arith.addf %1075, %1091 : vector<8x64xf32>
    %1093 = vector.extract_strided_slice %1058 {offsets = [0, 2], sizes = [8, 64], strides = [1, 1]} : vector<10x66xf32> to vector<8x64xf32>
    %c36_227 = arith.constant 36 : index
    %1094 = memref.load %arg2[%c36_227] : memref<144xf32, #tpu.memory_space<smem>>
    %1095 = vector.broadcast %1094 : f32 to vector<8x64xf32>
    %1096 = arith.mulf %1095, %1093 : vector<8x64xf32>
    %1097 = arith.addf %1080, %1096 : vector<8x64xf32>
    %c37_228 = arith.constant 37 : index
    %1098 = memref.load %arg2[%c37_228] : memref<144xf32, #tpu.memory_space<smem>>
    %1099 = vector.broadcast %1098 : f32 to vector<8x64xf32>
    %1100 = arith.mulf %1099, %1093 : vector<8x64xf32>
    %1101 = arith.addf %1084, %1100 : vector<8x64xf32>
    %c38_229 = arith.constant 38 : index
    %1102 = memref.load %arg2[%c38_229] : memref<144xf32, #tpu.memory_space<smem>>
    %1103 = vector.broadcast %1102 : f32 to vector<8x64xf32>
    %1104 = arith.mulf %1103, %1093 : vector<8x64xf32>
    %1105 = arith.addf %1088, %1104 : vector<8x64xf32>
    %c39_230 = arith.constant 39 : index
    %1106 = memref.load %arg2[%c39_230] : memref<144xf32, #tpu.memory_space<smem>>
    %1107 = vector.broadcast %1106 : f32 to vector<8x64xf32>
    %1108 = arith.mulf %1107, %1093 : vector<8x64xf32>
    %1109 = arith.addf %1092, %1108 : vector<8x64xf32>
    %1110 = vector.extract_strided_slice %1058 {offsets = [1, 0], sizes = [8, 64], strides = [1, 1]} : vector<10x66xf32> to vector<8x64xf32>
    %c52_231 = arith.constant 52 : index
    %1111 = memref.load %arg2[%c52_231] : memref<144xf32, #tpu.memory_space<smem>>
    %1112 = vector.broadcast %1111 : f32 to vector<8x64xf32>
    %1113 = arith.mulf %1112, %1110 : vector<8x64xf32>
    %1114 = arith.addf %1097, %1113 : vector<8x64xf32>
    %c53_232 = arith.constant 53 : index
    %1115 = memref.load %arg2[%c53_232] : memref<144xf32, #tpu.memory_space<smem>>
    %1116 = vector.broadcast %1115 : f32 to vector<8x64xf32>
    %1117 = arith.mulf %1116, %1110 : vector<8x64xf32>
    %1118 = arith.addf %1101, %1117 : vector<8x64xf32>
    %c54_233 = arith.constant 54 : index
    %1119 = memref.load %arg2[%c54_233] : memref<144xf32, #tpu.memory_space<smem>>
    %1120 = vector.broadcast %1119 : f32 to vector<8x64xf32>
    %1121 = arith.mulf %1120, %1110 : vector<8x64xf32>
    %1122 = arith.addf %1105, %1121 : vector<8x64xf32>
    %c55_234 = arith.constant 55 : index
    %1123 = memref.load %arg2[%c55_234] : memref<144xf32, #tpu.memory_space<smem>>
    %1124 = vector.broadcast %1123 : f32 to vector<8x64xf32>
    %1125 = arith.mulf %1124, %1110 : vector<8x64xf32>
    %1126 = arith.addf %1109, %1125 : vector<8x64xf32>
    %1127 = vector.extract_strided_slice %1058 {offsets = [1, 1], sizes = [8, 64], strides = [1, 1]} : vector<10x66xf32> to vector<8x64xf32>
    %c68_235 = arith.constant 68 : index
    %1128 = memref.load %arg2[%c68_235] : memref<144xf32, #tpu.memory_space<smem>>
    %1129 = vector.broadcast %1128 : f32 to vector<8x64xf32>
    %1130 = arith.mulf %1129, %1127 : vector<8x64xf32>
    %1131 = arith.addf %1114, %1130 : vector<8x64xf32>
    %c69_236 = arith.constant 69 : index
    %1132 = memref.load %arg2[%c69_236] : memref<144xf32, #tpu.memory_space<smem>>
    %1133 = vector.broadcast %1132 : f32 to vector<8x64xf32>
    %1134 = arith.mulf %1133, %1127 : vector<8x64xf32>
    %1135 = arith.addf %1118, %1134 : vector<8x64xf32>
    %c70_237 = arith.constant 70 : index
    %1136 = memref.load %arg2[%c70_237] : memref<144xf32, #tpu.memory_space<smem>>
    %1137 = vector.broadcast %1136 : f32 to vector<8x64xf32>
    %1138 = arith.mulf %1137, %1127 : vector<8x64xf32>
    %1139 = arith.addf %1122, %1138 : vector<8x64xf32>
    %c71_238 = arith.constant 71 : index
    %1140 = memref.load %arg2[%c71_238] : memref<144xf32, #tpu.memory_space<smem>>
    %1141 = vector.broadcast %1140 : f32 to vector<8x64xf32>
    %1142 = arith.mulf %1141, %1127 : vector<8x64xf32>
    %1143 = arith.addf %1126, %1142 : vector<8x64xf32>
    %1144 = vector.extract_strided_slice %1058 {offsets = [1, 2], sizes = [8, 64], strides = [1, 1]} : vector<10x66xf32> to vector<8x64xf32>
    %c84_239 = arith.constant 84 : index
    %1145 = memref.load %arg2[%c84_239] : memref<144xf32, #tpu.memory_space<smem>>
    %1146 = vector.broadcast %1145 : f32 to vector<8x64xf32>
    %1147 = arith.mulf %1146, %1144 : vector<8x64xf32>
    %1148 = arith.addf %1131, %1147 : vector<8x64xf32>
    %c85_240 = arith.constant 85 : index
    %1149 = memref.load %arg2[%c85_240] : memref<144xf32, #tpu.memory_space<smem>>
    %1150 = vector.broadcast %1149 : f32 to vector<8x64xf32>
    %1151 = arith.mulf %1150, %1144 : vector<8x64xf32>
    %1152 = arith.addf %1135, %1151 : vector<8x64xf32>
    %c86_241 = arith.constant 86 : index
    %1153 = memref.load %arg2[%c86_241] : memref<144xf32, #tpu.memory_space<smem>>
    %1154 = vector.broadcast %1153 : f32 to vector<8x64xf32>
    %1155 = arith.mulf %1154, %1144 : vector<8x64xf32>
    %1156 = arith.addf %1139, %1155 : vector<8x64xf32>
    %c87_242 = arith.constant 87 : index
    %1157 = memref.load %arg2[%c87_242] : memref<144xf32, #tpu.memory_space<smem>>
    %1158 = vector.broadcast %1157 : f32 to vector<8x64xf32>
    %1159 = arith.mulf %1158, %1144 : vector<8x64xf32>
    %1160 = arith.addf %1143, %1159 : vector<8x64xf32>
    %1161 = vector.extract_strided_slice %1058 {offsets = [2, 0], sizes = [8, 64], strides = [1, 1]} : vector<10x66xf32> to vector<8x64xf32>
    %c100_243 = arith.constant 100 : index
    %1162 = memref.load %arg2[%c100_243] : memref<144xf32, #tpu.memory_space<smem>>
    %1163 = vector.broadcast %1162 : f32 to vector<8x64xf32>
    %1164 = arith.mulf %1163, %1161 : vector<8x64xf32>
    %1165 = arith.addf %1148, %1164 : vector<8x64xf32>
    %c101_244 = arith.constant 101 : index
    %1166 = memref.load %arg2[%c101_244] : memref<144xf32, #tpu.memory_space<smem>>
    %1167 = vector.broadcast %1166 : f32 to vector<8x64xf32>
    %1168 = arith.mulf %1167, %1161 : vector<8x64xf32>
    %1169 = arith.addf %1152, %1168 : vector<8x64xf32>
    %c102_245 = arith.constant 102 : index
    %1170 = memref.load %arg2[%c102_245] : memref<144xf32, #tpu.memory_space<smem>>
    %1171 = vector.broadcast %1170 : f32 to vector<8x64xf32>
    %1172 = arith.mulf %1171, %1161 : vector<8x64xf32>
    %1173 = arith.addf %1156, %1172 : vector<8x64xf32>
    %c103_246 = arith.constant 103 : index
    %1174 = memref.load %arg2[%c103_246] : memref<144xf32, #tpu.memory_space<smem>>
    %1175 = vector.broadcast %1174 : f32 to vector<8x64xf32>
    %1176 = arith.mulf %1175, %1161 : vector<8x64xf32>
    %1177 = arith.addf %1160, %1176 : vector<8x64xf32>
    %1178 = vector.extract_strided_slice %1058 {offsets = [2, 1], sizes = [8, 64], strides = [1, 1]} : vector<10x66xf32> to vector<8x64xf32>
    %c116_247 = arith.constant 116 : index
    %1179 = memref.load %arg2[%c116_247] : memref<144xf32, #tpu.memory_space<smem>>
    %1180 = vector.broadcast %1179 : f32 to vector<8x64xf32>
    %1181 = arith.mulf %1180, %1178 : vector<8x64xf32>
    %1182 = arith.addf %1165, %1181 : vector<8x64xf32>
    %c117_248 = arith.constant 117 : index
    %1183 = memref.load %arg2[%c117_248] : memref<144xf32, #tpu.memory_space<smem>>
    %1184 = vector.broadcast %1183 : f32 to vector<8x64xf32>
    %1185 = arith.mulf %1184, %1178 : vector<8x64xf32>
    %1186 = arith.addf %1169, %1185 : vector<8x64xf32>
    %c118_249 = arith.constant 118 : index
    %1187 = memref.load %arg2[%c118_249] : memref<144xf32, #tpu.memory_space<smem>>
    %1188 = vector.broadcast %1187 : f32 to vector<8x64xf32>
    %1189 = arith.mulf %1188, %1178 : vector<8x64xf32>
    %1190 = arith.addf %1173, %1189 : vector<8x64xf32>
    %c119_250 = arith.constant 119 : index
    %1191 = memref.load %arg2[%c119_250] : memref<144xf32, #tpu.memory_space<smem>>
    %1192 = vector.broadcast %1191 : f32 to vector<8x64xf32>
    %1193 = arith.mulf %1192, %1178 : vector<8x64xf32>
    %1194 = arith.addf %1177, %1193 : vector<8x64xf32>
    %1195 = vector.extract_strided_slice %1058 {offsets = [2, 2], sizes = [8, 64], strides = [1, 1]} : vector<10x66xf32> to vector<8x64xf32>
    %c132_251 = arith.constant 132 : index
    %1196 = memref.load %arg2[%c132_251] : memref<144xf32, #tpu.memory_space<smem>>
    %1197 = vector.broadcast %1196 : f32 to vector<8x64xf32>
    %1198 = arith.mulf %1197, %1195 : vector<8x64xf32>
    %1199 = arith.addf %1182, %1198 : vector<8x64xf32>
    %c133_252 = arith.constant 133 : index
    %1200 = memref.load %arg2[%c133_252] : memref<144xf32, #tpu.memory_space<smem>>
    %1201 = vector.broadcast %1200 : f32 to vector<8x64xf32>
    %1202 = arith.mulf %1201, %1195 : vector<8x64xf32>
    %1203 = arith.addf %1186, %1202 : vector<8x64xf32>
    %c134_253 = arith.constant 134 : index
    %1204 = memref.load %arg2[%c134_253] : memref<144xf32, #tpu.memory_space<smem>>
    %1205 = vector.broadcast %1204 : f32 to vector<8x64xf32>
    %1206 = arith.mulf %1205, %1195 : vector<8x64xf32>
    %1207 = arith.addf %1190, %1206 : vector<8x64xf32>
    %c135_254 = arith.constant 135 : index
    %1208 = memref.load %arg2[%c135_254] : memref<144xf32, #tpu.memory_space<smem>>
    %1209 = vector.broadcast %1208 : f32 to vector<8x64xf32>
    %1210 = arith.mulf %1209, %1195 : vector<8x64xf32>
    %1211 = arith.addf %1194, %1210 : vector<8x64xf32>
    %c2_255 = arith.constant 2 : index
    %c8_256 = arith.constant 8 : index
    %c0_257 = arith.constant 0 : index
    %1212 = vector.load %arg6[%c2_255, %c8_256, %c0_257] : memref<4x18x66xf32, #tpu.memory_space<vmem>>, vector<1x10x66xf32>
    %1213 = vector.shape_cast %1212 : vector<1x10x66xf32> to vector<10x66xf32>
    %1214 = vector.extract_strided_slice %1213 {offsets = [0, 0], sizes = [8, 64], strides = [1, 1]} : vector<10x66xf32> to vector<8x64xf32>
    %c8_258 = arith.constant 8 : index
    %1215 = memref.load %arg2[%c8_258] : memref<144xf32, #tpu.memory_space<smem>>
    %1216 = vector.broadcast %1215 : f32 to vector<8x64xf32>
    %1217 = arith.mulf %1216, %1214 : vector<8x64xf32>
    %1218 = arith.addf %1199, %1217 : vector<8x64xf32>
    %c9_259 = arith.constant 9 : index
    %1219 = memref.load %arg2[%c9_259] : memref<144xf32, #tpu.memory_space<smem>>
    %1220 = vector.broadcast %1219 : f32 to vector<8x64xf32>
    %1221 = arith.mulf %1220, %1214 : vector<8x64xf32>
    %1222 = arith.addf %1203, %1221 : vector<8x64xf32>
    %c10_260 = arith.constant 10 : index
    %1223 = memref.load %arg2[%c10_260] : memref<144xf32, #tpu.memory_space<smem>>
    %1224 = vector.broadcast %1223 : f32 to vector<8x64xf32>
    %1225 = arith.mulf %1224, %1214 : vector<8x64xf32>
    %1226 = arith.addf %1207, %1225 : vector<8x64xf32>
    %c11_261 = arith.constant 11 : index
    %1227 = memref.load %arg2[%c11_261] : memref<144xf32, #tpu.memory_space<smem>>
    %1228 = vector.broadcast %1227 : f32 to vector<8x64xf32>
    %1229 = arith.mulf %1228, %1214 : vector<8x64xf32>
    %1230 = arith.addf %1211, %1229 : vector<8x64xf32>
    %1231 = vector.extract_strided_slice %1213 {offsets = [0, 1], sizes = [8, 64], strides = [1, 1]} : vector<10x66xf32> to vector<8x64xf32>
    %c24_262 = arith.constant 24 : index
    %1232 = memref.load %arg2[%c24_262] : memref<144xf32, #tpu.memory_space<smem>>
    %1233 = vector.broadcast %1232 : f32 to vector<8x64xf32>
    %1234 = arith.mulf %1233, %1231 : vector<8x64xf32>
    %1235 = arith.addf %1218, %1234 : vector<8x64xf32>
    %c25_263 = arith.constant 25 : index
    %1236 = memref.load %arg2[%c25_263] : memref<144xf32, #tpu.memory_space<smem>>
    %1237 = vector.broadcast %1236 : f32 to vector<8x64xf32>
    %1238 = arith.mulf %1237, %1231 : vector<8x64xf32>
    %1239 = arith.addf %1222, %1238 : vector<8x64xf32>
    %c26_264 = arith.constant 26 : index
    %1240 = memref.load %arg2[%c26_264] : memref<144xf32, #tpu.memory_space<smem>>
    %1241 = vector.broadcast %1240 : f32 to vector<8x64xf32>
    %1242 = arith.mulf %1241, %1231 : vector<8x64xf32>
    %1243 = arith.addf %1226, %1242 : vector<8x64xf32>
    %c27_265 = arith.constant 27 : index
    %1244 = memref.load %arg2[%c27_265] : memref<144xf32, #tpu.memory_space<smem>>
    %1245 = vector.broadcast %1244 : f32 to vector<8x64xf32>
    %1246 = arith.mulf %1245, %1231 : vector<8x64xf32>
    %1247 = arith.addf %1230, %1246 : vector<8x64xf32>
    %1248 = vector.extract_strided_slice %1213 {offsets = [0, 2], sizes = [8, 64], strides = [1, 1]} : vector<10x66xf32> to vector<8x64xf32>
    %c40_266 = arith.constant 40 : index
    %1249 = memref.load %arg2[%c40_266] : memref<144xf32, #tpu.memory_space<smem>>
    %1250 = vector.broadcast %1249 : f32 to vector<8x64xf32>
    %1251 = arith.mulf %1250, %1248 : vector<8x64xf32>
    %1252 = arith.addf %1235, %1251 : vector<8x64xf32>
    %c41_267 = arith.constant 41 : index
    %1253 = memref.load %arg2[%c41_267] : memref<144xf32, #tpu.memory_space<smem>>
    %1254 = vector.broadcast %1253 : f32 to vector<8x64xf32>
    %1255 = arith.mulf %1254, %1248 : vector<8x64xf32>
    %1256 = arith.addf %1239, %1255 : vector<8x64xf32>
    %c42_268 = arith.constant 42 : index
    %1257 = memref.load %arg2[%c42_268] : memref<144xf32, #tpu.memory_space<smem>>
    %1258 = vector.broadcast %1257 : f32 to vector<8x64xf32>
    %1259 = arith.mulf %1258, %1248 : vector<8x64xf32>
    %1260 = arith.addf %1243, %1259 : vector<8x64xf32>
    %c43_269 = arith.constant 43 : index
    %1261 = memref.load %arg2[%c43_269] : memref<144xf32, #tpu.memory_space<smem>>
    %1262 = vector.broadcast %1261 : f32 to vector<8x64xf32>
    %1263 = arith.mulf %1262, %1248 : vector<8x64xf32>
    %1264 = arith.addf %1247, %1263 : vector<8x64xf32>
    %1265 = vector.extract_strided_slice %1213 {offsets = [1, 0], sizes = [8, 64], strides = [1, 1]} : vector<10x66xf32> to vector<8x64xf32>
    %c56_270 = arith.constant 56 : index
    %1266 = memref.load %arg2[%c56_270] : memref<144xf32, #tpu.memory_space<smem>>
    %1267 = vector.broadcast %1266 : f32 to vector<8x64xf32>
    %1268 = arith.mulf %1267, %1265 : vector<8x64xf32>
    %1269 = arith.addf %1252, %1268 : vector<8x64xf32>
    %c57_271 = arith.constant 57 : index
    %1270 = memref.load %arg2[%c57_271] : memref<144xf32, #tpu.memory_space<smem>>
    %1271 = vector.broadcast %1270 : f32 to vector<8x64xf32>
    %1272 = arith.mulf %1271, %1265 : vector<8x64xf32>
    %1273 = arith.addf %1256, %1272 : vector<8x64xf32>
    %c58_272 = arith.constant 58 : index
    %1274 = memref.load %arg2[%c58_272] : memref<144xf32, #tpu.memory_space<smem>>
    %1275 = vector.broadcast %1274 : f32 to vector<8x64xf32>
    %1276 = arith.mulf %1275, %1265 : vector<8x64xf32>
    %1277 = arith.addf %1260, %1276 : vector<8x64xf32>
    %c59_273 = arith.constant 59 : index
    %1278 = memref.load %arg2[%c59_273] : memref<144xf32, #tpu.memory_space<smem>>
    %1279 = vector.broadcast %1278 : f32 to vector<8x64xf32>
    %1280 = arith.mulf %1279, %1265 : vector<8x64xf32>
    %1281 = arith.addf %1264, %1280 : vector<8x64xf32>
    %1282 = vector.extract_strided_slice %1213 {offsets = [1, 1], sizes = [8, 64], strides = [1, 1]} : vector<10x66xf32> to vector<8x64xf32>
    %c72_274 = arith.constant 72 : index
    %1283 = memref.load %arg2[%c72_274] : memref<144xf32, #tpu.memory_space<smem>>
    %1284 = vector.broadcast %1283 : f32 to vector<8x64xf32>
    %1285 = arith.mulf %1284, %1282 : vector<8x64xf32>
    %1286 = arith.addf %1269, %1285 : vector<8x64xf32>
    %c73_275 = arith.constant 73 : index
    %1287 = memref.load %arg2[%c73_275] : memref<144xf32, #tpu.memory_space<smem>>
    %1288 = vector.broadcast %1287 : f32 to vector<8x64xf32>
    %1289 = arith.mulf %1288, %1282 : vector<8x64xf32>
    %1290 = arith.addf %1273, %1289 : vector<8x64xf32>
    %c74_276 = arith.constant 74 : index
    %1291 = memref.load %arg2[%c74_276] : memref<144xf32, #tpu.memory_space<smem>>
    %1292 = vector.broadcast %1291 : f32 to vector<8x64xf32>
    %1293 = arith.mulf %1292, %1282 : vector<8x64xf32>
    %1294 = arith.addf %1277, %1293 : vector<8x64xf32>
    %c75_277 = arith.constant 75 : index
    %1295 = memref.load %arg2[%c75_277] : memref<144xf32, #tpu.memory_space<smem>>
    %1296 = vector.broadcast %1295 : f32 to vector<8x64xf32>
    %1297 = arith.mulf %1296, %1282 : vector<8x64xf32>
    %1298 = arith.addf %1281, %1297 : vector<8x64xf32>
    %1299 = vector.extract_strided_slice %1213 {offsets = [1, 2], sizes = [8, 64], strides = [1, 1]} : vector<10x66xf32> to vector<8x64xf32>
    %c88_278 = arith.constant 88 : index
    %1300 = memref.load %arg2[%c88_278] : memref<144xf32, #tpu.memory_space<smem>>
    %1301 = vector.broadcast %1300 : f32 to vector<8x64xf32>
    %1302 = arith.mulf %1301, %1299 : vector<8x64xf32>
    %1303 = arith.addf %1286, %1302 : vector<8x64xf32>
    %c89_279 = arith.constant 89 : index
    %1304 = memref.load %arg2[%c89_279] : memref<144xf32, #tpu.memory_space<smem>>
    %1305 = vector.broadcast %1304 : f32 to vector<8x64xf32>
    %1306 = arith.mulf %1305, %1299 : vector<8x64xf32>
    %1307 = arith.addf %1290, %1306 : vector<8x64xf32>
    %c90_280 = arith.constant 90 : index
    %1308 = memref.load %arg2[%c90_280] : memref<144xf32, #tpu.memory_space<smem>>
    %1309 = vector.broadcast %1308 : f32 to vector<8x64xf32>
    %1310 = arith.mulf %1309, %1299 : vector<8x64xf32>
    %1311 = arith.addf %1294, %1310 : vector<8x64xf32>
    %c91_281 = arith.constant 91 : index
    %1312 = memref.load %arg2[%c91_281] : memref<144xf32, #tpu.memory_space<smem>>
    %1313 = vector.broadcast %1312 : f32 to vector<8x64xf32>
    %1314 = arith.mulf %1313, %1299 : vector<8x64xf32>
    %1315 = arith.addf %1298, %1314 : vector<8x64xf32>
    %1316 = vector.extract_strided_slice %1213 {offsets = [2, 0], sizes = [8, 64], strides = [1, 1]} : vector<10x66xf32> to vector<8x64xf32>
    %c104_282 = arith.constant 104 : index
    %1317 = memref.load %arg2[%c104_282] : memref<144xf32, #tpu.memory_space<smem>>
    %1318 = vector.broadcast %1317 : f32 to vector<8x64xf32>
    %1319 = arith.mulf %1318, %1316 : vector<8x64xf32>
    %1320 = arith.addf %1303, %1319 : vector<8x64xf32>
    %c105_283 = arith.constant 105 : index
    %1321 = memref.load %arg2[%c105_283] : memref<144xf32, #tpu.memory_space<smem>>
    %1322 = vector.broadcast %1321 : f32 to vector<8x64xf32>
    %1323 = arith.mulf %1322, %1316 : vector<8x64xf32>
    %1324 = arith.addf %1307, %1323 : vector<8x64xf32>
    %c106_284 = arith.constant 106 : index
    %1325 = memref.load %arg2[%c106_284] : memref<144xf32, #tpu.memory_space<smem>>
    %1326 = vector.broadcast %1325 : f32 to vector<8x64xf32>
    %1327 = arith.mulf %1326, %1316 : vector<8x64xf32>
    %1328 = arith.addf %1311, %1327 : vector<8x64xf32>
    %c107_285 = arith.constant 107 : index
    %1329 = memref.load %arg2[%c107_285] : memref<144xf32, #tpu.memory_space<smem>>
    %1330 = vector.broadcast %1329 : f32 to vector<8x64xf32>
    %1331 = arith.mulf %1330, %1316 : vector<8x64xf32>
    %1332 = arith.addf %1315, %1331 : vector<8x64xf32>
    %1333 = vector.extract_strided_slice %1213 {offsets = [2, 1], sizes = [8, 64], strides = [1, 1]} : vector<10x66xf32> to vector<8x64xf32>
    %c120_286 = arith.constant 120 : index
    %1334 = memref.load %arg2[%c120_286] : memref<144xf32, #tpu.memory_space<smem>>
    %1335 = vector.broadcast %1334 : f32 to vector<8x64xf32>
    %1336 = arith.mulf %1335, %1333 : vector<8x64xf32>
    %1337 = arith.addf %1320, %1336 : vector<8x64xf32>
    %c121_287 = arith.constant 121 : index
    %1338 = memref.load %arg2[%c121_287] : memref<144xf32, #tpu.memory_space<smem>>
    %1339 = vector.broadcast %1338 : f32 to vector<8x64xf32>
    %1340 = arith.mulf %1339, %1333 : vector<8x64xf32>
    %1341 = arith.addf %1324, %1340 : vector<8x64xf32>
    %c122_288 = arith.constant 122 : index
    %1342 = memref.load %arg2[%c122_288] : memref<144xf32, #tpu.memory_space<smem>>
    %1343 = vector.broadcast %1342 : f32 to vector<8x64xf32>
    %1344 = arith.mulf %1343, %1333 : vector<8x64xf32>
    %1345 = arith.addf %1328, %1344 : vector<8x64xf32>
    %c123_289 = arith.constant 123 : index
    %1346 = memref.load %arg2[%c123_289] : memref<144xf32, #tpu.memory_space<smem>>
    %1347 = vector.broadcast %1346 : f32 to vector<8x64xf32>
    %1348 = arith.mulf %1347, %1333 : vector<8x64xf32>
    %1349 = arith.addf %1332, %1348 : vector<8x64xf32>
    %1350 = vector.extract_strided_slice %1213 {offsets = [2, 2], sizes = [8, 64], strides = [1, 1]} : vector<10x66xf32> to vector<8x64xf32>
    %c136_290 = arith.constant 136 : index
    %1351 = memref.load %arg2[%c136_290] : memref<144xf32, #tpu.memory_space<smem>>
    %1352 = vector.broadcast %1351 : f32 to vector<8x64xf32>
    %1353 = arith.mulf %1352, %1350 : vector<8x64xf32>
    %1354 = arith.addf %1337, %1353 : vector<8x64xf32>
    %c137_291 = arith.constant 137 : index
    %1355 = memref.load %arg2[%c137_291] : memref<144xf32, #tpu.memory_space<smem>>
    %1356 = vector.broadcast %1355 : f32 to vector<8x64xf32>
    %1357 = arith.mulf %1356, %1350 : vector<8x64xf32>
    %1358 = arith.addf %1341, %1357 : vector<8x64xf32>
    %c138_292 = arith.constant 138 : index
    %1359 = memref.load %arg2[%c138_292] : memref<144xf32, #tpu.memory_space<smem>>
    %1360 = vector.broadcast %1359 : f32 to vector<8x64xf32>
    %1361 = arith.mulf %1360, %1350 : vector<8x64xf32>
    %1362 = arith.addf %1345, %1361 : vector<8x64xf32>
    %c139_293 = arith.constant 139 : index
    %1363 = memref.load %arg2[%c139_293] : memref<144xf32, #tpu.memory_space<smem>>
    %1364 = vector.broadcast %1363 : f32 to vector<8x64xf32>
    %1365 = arith.mulf %1364, %1350 : vector<8x64xf32>
    %1366 = arith.addf %1349, %1365 : vector<8x64xf32>
    %c3_294 = arith.constant 3 : index
    %c8_295 = arith.constant 8 : index
    %c0_296 = arith.constant 0 : index
    %1367 = vector.load %arg6[%c3_294, %c8_295, %c0_296] : memref<4x18x66xf32, #tpu.memory_space<vmem>>, vector<1x10x66xf32>
    %1368 = vector.shape_cast %1367 : vector<1x10x66xf32> to vector<10x66xf32>
    %1369 = vector.extract_strided_slice %1368 {offsets = [0, 0], sizes = [8, 64], strides = [1, 1]} : vector<10x66xf32> to vector<8x64xf32>
    %c12_297 = arith.constant 12 : index
    %1370 = memref.load %arg2[%c12_297] : memref<144xf32, #tpu.memory_space<smem>>
    %1371 = vector.broadcast %1370 : f32 to vector<8x64xf32>
    %1372 = arith.mulf %1371, %1369 : vector<8x64xf32>
    %1373 = arith.addf %1354, %1372 : vector<8x64xf32>
    %c13_298 = arith.constant 13 : index
    %1374 = memref.load %arg2[%c13_298] : memref<144xf32, #tpu.memory_space<smem>>
    %1375 = vector.broadcast %1374 : f32 to vector<8x64xf32>
    %1376 = arith.mulf %1375, %1369 : vector<8x64xf32>
    %1377 = arith.addf %1358, %1376 : vector<8x64xf32>
    %c14_299 = arith.constant 14 : index
    %1378 = memref.load %arg2[%c14_299] : memref<144xf32, #tpu.memory_space<smem>>
    %1379 = vector.broadcast %1378 : f32 to vector<8x64xf32>
    %1380 = arith.mulf %1379, %1369 : vector<8x64xf32>
    %1381 = arith.addf %1362, %1380 : vector<8x64xf32>
    %c15_300 = arith.constant 15 : index
    %1382 = memref.load %arg2[%c15_300] : memref<144xf32, #tpu.memory_space<smem>>
    %1383 = vector.broadcast %1382 : f32 to vector<8x64xf32>
    %1384 = arith.mulf %1383, %1369 : vector<8x64xf32>
    %1385 = arith.addf %1366, %1384 : vector<8x64xf32>
    %1386 = vector.extract_strided_slice %1368 {offsets = [0, 1], sizes = [8, 64], strides = [1, 1]} : vector<10x66xf32> to vector<8x64xf32>
    %c28_301 = arith.constant 28 : index
    %1387 = memref.load %arg2[%c28_301] : memref<144xf32, #tpu.memory_space<smem>>
    %1388 = vector.broadcast %1387 : f32 to vector<8x64xf32>
    %1389 = arith.mulf %1388, %1386 : vector<8x64xf32>
    %1390 = arith.addf %1373, %1389 : vector<8x64xf32>
    %c29_302 = arith.constant 29 : index
    %1391 = memref.load %arg2[%c29_302] : memref<144xf32, #tpu.memory_space<smem>>
    %1392 = vector.broadcast %1391 : f32 to vector<8x64xf32>
    %1393 = arith.mulf %1392, %1386 : vector<8x64xf32>
    %1394 = arith.addf %1377, %1393 : vector<8x64xf32>
    %c30_303 = arith.constant 30 : index
    %1395 = memref.load %arg2[%c30_303] : memref<144xf32, #tpu.memory_space<smem>>
    %1396 = vector.broadcast %1395 : f32 to vector<8x64xf32>
    %1397 = arith.mulf %1396, %1386 : vector<8x64xf32>
    %1398 = arith.addf %1381, %1397 : vector<8x64xf32>
    %c31_304 = arith.constant 31 : index
    %1399 = memref.load %arg2[%c31_304] : memref<144xf32, #tpu.memory_space<smem>>
    %1400 = vector.broadcast %1399 : f32 to vector<8x64xf32>
    %1401 = arith.mulf %1400, %1386 : vector<8x64xf32>
    %1402 = arith.addf %1385, %1401 : vector<8x64xf32>
    %1403 = vector.extract_strided_slice %1368 {offsets = [0, 2], sizes = [8, 64], strides = [1, 1]} : vector<10x66xf32> to vector<8x64xf32>
    %c44_305 = arith.constant 44 : index
    %1404 = memref.load %arg2[%c44_305] : memref<144xf32, #tpu.memory_space<smem>>
    %1405 = vector.broadcast %1404 : f32 to vector<8x64xf32>
    %1406 = arith.mulf %1405, %1403 : vector<8x64xf32>
    %1407 = arith.addf %1390, %1406 : vector<8x64xf32>
    %c45_306 = arith.constant 45 : index
    %1408 = memref.load %arg2[%c45_306] : memref<144xf32, #tpu.memory_space<smem>>
    %1409 = vector.broadcast %1408 : f32 to vector<8x64xf32>
    %1410 = arith.mulf %1409, %1403 : vector<8x64xf32>
    %1411 = arith.addf %1394, %1410 : vector<8x64xf32>
    %c46_307 = arith.constant 46 : index
    %1412 = memref.load %arg2[%c46_307] : memref<144xf32, #tpu.memory_space<smem>>
    %1413 = vector.broadcast %1412 : f32 to vector<8x64xf32>
    %1414 = arith.mulf %1413, %1403 : vector<8x64xf32>
    %1415 = arith.addf %1398, %1414 : vector<8x64xf32>
    %c47_308 = arith.constant 47 : index
    %1416 = memref.load %arg2[%c47_308] : memref<144xf32, #tpu.memory_space<smem>>
    %1417 = vector.broadcast %1416 : f32 to vector<8x64xf32>
    %1418 = arith.mulf %1417, %1403 : vector<8x64xf32>
    %1419 = arith.addf %1402, %1418 : vector<8x64xf32>
    %1420 = vector.extract_strided_slice %1368 {offsets = [1, 0], sizes = [8, 64], strides = [1, 1]} : vector<10x66xf32> to vector<8x64xf32>
    %c60_309 = arith.constant 60 : index
    %1421 = memref.load %arg2[%c60_309] : memref<144xf32, #tpu.memory_space<smem>>
    %1422 = vector.broadcast %1421 : f32 to vector<8x64xf32>
    %1423 = arith.mulf %1422, %1420 : vector<8x64xf32>
    %1424 = arith.addf %1407, %1423 : vector<8x64xf32>
    %c61_310 = arith.constant 61 : index
    %1425 = memref.load %arg2[%c61_310] : memref<144xf32, #tpu.memory_space<smem>>
    %1426 = vector.broadcast %1425 : f32 to vector<8x64xf32>
    %1427 = arith.mulf %1426, %1420 : vector<8x64xf32>
    %1428 = arith.addf %1411, %1427 : vector<8x64xf32>
    %c62_311 = arith.constant 62 : index
    %1429 = memref.load %arg2[%c62_311] : memref<144xf32, #tpu.memory_space<smem>>
    %1430 = vector.broadcast %1429 : f32 to vector<8x64xf32>
    %1431 = arith.mulf %1430, %1420 : vector<8x64xf32>
    %1432 = arith.addf %1415, %1431 : vector<8x64xf32>
    %c63_312 = arith.constant 63 : index
    %1433 = memref.load %arg2[%c63_312] : memref<144xf32, #tpu.memory_space<smem>>
    %1434 = vector.broadcast %1433 : f32 to vector<8x64xf32>
    %1435 = arith.mulf %1434, %1420 : vector<8x64xf32>
    %1436 = arith.addf %1419, %1435 : vector<8x64xf32>
    %1437 = vector.extract_strided_slice %1368 {offsets = [1, 1], sizes = [8, 64], strides = [1, 1]} : vector<10x66xf32> to vector<8x64xf32>
    %c76_313 = arith.constant 76 : index
    %1438 = memref.load %arg2[%c76_313] : memref<144xf32, #tpu.memory_space<smem>>
    %1439 = vector.broadcast %1438 : f32 to vector<8x64xf32>
    %1440 = arith.mulf %1439, %1437 : vector<8x64xf32>
    %1441 = arith.addf %1424, %1440 : vector<8x64xf32>
    %c77_314 = arith.constant 77 : index
    %1442 = memref.load %arg2[%c77_314] : memref<144xf32, #tpu.memory_space<smem>>
    %1443 = vector.broadcast %1442 : f32 to vector<8x64xf32>
    %1444 = arith.mulf %1443, %1437 : vector<8x64xf32>
    %1445 = arith.addf %1428, %1444 : vector<8x64xf32>
    %c78_315 = arith.constant 78 : index
    %1446 = memref.load %arg2[%c78_315] : memref<144xf32, #tpu.memory_space<smem>>
    %1447 = vector.broadcast %1446 : f32 to vector<8x64xf32>
    %1448 = arith.mulf %1447, %1437 : vector<8x64xf32>
    %1449 = arith.addf %1432, %1448 : vector<8x64xf32>
    %c79_316 = arith.constant 79 : index
    %1450 = memref.load %arg2[%c79_316] : memref<144xf32, #tpu.memory_space<smem>>
    %1451 = vector.broadcast %1450 : f32 to vector<8x64xf32>
    %1452 = arith.mulf %1451, %1437 : vector<8x64xf32>
    %1453 = arith.addf %1436, %1452 : vector<8x64xf32>
    %1454 = vector.extract_strided_slice %1368 {offsets = [1, 2], sizes = [8, 64], strides = [1, 1]} : vector<10x66xf32> to vector<8x64xf32>
    %c92_317 = arith.constant 92 : index
    %1455 = memref.load %arg2[%c92_317] : memref<144xf32, #tpu.memory_space<smem>>
    %1456 = vector.broadcast %1455 : f32 to vector<8x64xf32>
    %1457 = arith.mulf %1456, %1454 : vector<8x64xf32>
    %1458 = arith.addf %1441, %1457 : vector<8x64xf32>
    %c93_318 = arith.constant 93 : index
    %1459 = memref.load %arg2[%c93_318] : memref<144xf32, #tpu.memory_space<smem>>
    %1460 = vector.broadcast %1459 : f32 to vector<8x64xf32>
    %1461 = arith.mulf %1460, %1454 : vector<8x64xf32>
    %1462 = arith.addf %1445, %1461 : vector<8x64xf32>
    %c94_319 = arith.constant 94 : index
    %1463 = memref.load %arg2[%c94_319] : memref<144xf32, #tpu.memory_space<smem>>
    %1464 = vector.broadcast %1463 : f32 to vector<8x64xf32>
    %1465 = arith.mulf %1464, %1454 : vector<8x64xf32>
    %1466 = arith.addf %1449, %1465 : vector<8x64xf32>
    %c95_320 = arith.constant 95 : index
    %1467 = memref.load %arg2[%c95_320] : memref<144xf32, #tpu.memory_space<smem>>
    %1468 = vector.broadcast %1467 : f32 to vector<8x64xf32>
    %1469 = arith.mulf %1468, %1454 : vector<8x64xf32>
    %1470 = arith.addf %1453, %1469 : vector<8x64xf32>
    %1471 = vector.extract_strided_slice %1368 {offsets = [2, 0], sizes = [8, 64], strides = [1, 1]} : vector<10x66xf32> to vector<8x64xf32>
    %c108_321 = arith.constant 108 : index
    %1472 = memref.load %arg2[%c108_321] : memref<144xf32, #tpu.memory_space<smem>>
    %1473 = vector.broadcast %1472 : f32 to vector<8x64xf32>
    %1474 = arith.mulf %1473, %1471 : vector<8x64xf32>
    %1475 = arith.addf %1458, %1474 : vector<8x64xf32>
    %c109_322 = arith.constant 109 : index
    %1476 = memref.load %arg2[%c109_322] : memref<144xf32, #tpu.memory_space<smem>>
    %1477 = vector.broadcast %1476 : f32 to vector<8x64xf32>
    %1478 = arith.mulf %1477, %1471 : vector<8x64xf32>
    %1479 = arith.addf %1462, %1478 : vector<8x64xf32>
    %c110_323 = arith.constant 110 : index
    %1480 = memref.load %arg2[%c110_323] : memref<144xf32, #tpu.memory_space<smem>>
    %1481 = vector.broadcast %1480 : f32 to vector<8x64xf32>
    %1482 = arith.mulf %1481, %1471 : vector<8x64xf32>
    %1483 = arith.addf %1466, %1482 : vector<8x64xf32>
    %c111_324 = arith.constant 111 : index
    %1484 = memref.load %arg2[%c111_324] : memref<144xf32, #tpu.memory_space<smem>>
    %1485 = vector.broadcast %1484 : f32 to vector<8x64xf32>
    %1486 = arith.mulf %1485, %1471 : vector<8x64xf32>
    %1487 = arith.addf %1470, %1486 : vector<8x64xf32>
    %1488 = vector.extract_strided_slice %1368 {offsets = [2, 1], sizes = [8, 64], strides = [1, 1]} : vector<10x66xf32> to vector<8x64xf32>
    %c124_325 = arith.constant 124 : index
    %1489 = memref.load %arg2[%c124_325] : memref<144xf32, #tpu.memory_space<smem>>
    %1490 = vector.broadcast %1489 : f32 to vector<8x64xf32>
    %1491 = arith.mulf %1490, %1488 : vector<8x64xf32>
    %1492 = arith.addf %1475, %1491 : vector<8x64xf32>
    %c125_326 = arith.constant 125 : index
    %1493 = memref.load %arg2[%c125_326] : memref<144xf32, #tpu.memory_space<smem>>
    %1494 = vector.broadcast %1493 : f32 to vector<8x64xf32>
    %1495 = arith.mulf %1494, %1488 : vector<8x64xf32>
    %1496 = arith.addf %1479, %1495 : vector<8x64xf32>
    %c126_327 = arith.constant 126 : index
    %1497 = memref.load %arg2[%c126_327] : memref<144xf32, #tpu.memory_space<smem>>
    %1498 = vector.broadcast %1497 : f32 to vector<8x64xf32>
    %1499 = arith.mulf %1498, %1488 : vector<8x64xf32>
    %1500 = arith.addf %1483, %1499 : vector<8x64xf32>
    %c127_328 = arith.constant 127 : index
    %1501 = memref.load %arg2[%c127_328] : memref<144xf32, #tpu.memory_space<smem>>
    %1502 = vector.broadcast %1501 : f32 to vector<8x64xf32>
    %1503 = arith.mulf %1502, %1488 : vector<8x64xf32>
    %1504 = arith.addf %1487, %1503 : vector<8x64xf32>
    %1505 = vector.extract_strided_slice %1368 {offsets = [2, 2], sizes = [8, 64], strides = [1, 1]} : vector<10x66xf32> to vector<8x64xf32>
    %c140_329 = arith.constant 140 : index
    %1506 = memref.load %arg2[%c140_329] : memref<144xf32, #tpu.memory_space<smem>>
    %1507 = vector.broadcast %1506 : f32 to vector<8x64xf32>
    %1508 = arith.mulf %1507, %1505 : vector<8x64xf32>
    %1509 = arith.addf %1492, %1508 : vector<8x64xf32>
    %c141_330 = arith.constant 141 : index
    %1510 = memref.load %arg2[%c141_330] : memref<144xf32, #tpu.memory_space<smem>>
    %1511 = vector.broadcast %1510 : f32 to vector<8x64xf32>
    %1512 = arith.mulf %1511, %1505 : vector<8x64xf32>
    %1513 = arith.addf %1496, %1512 : vector<8x64xf32>
    %c142_331 = arith.constant 142 : index
    %1514 = memref.load %arg2[%c142_331] : memref<144xf32, #tpu.memory_space<smem>>
    %1515 = vector.broadcast %1514 : f32 to vector<8x64xf32>
    %1516 = arith.mulf %1515, %1505 : vector<8x64xf32>
    %1517 = arith.addf %1500, %1516 : vector<8x64xf32>
    %c143_332 = arith.constant 143 : index
    %1518 = memref.load %arg2[%c143_332] : memref<144xf32, #tpu.memory_space<smem>>
    %1519 = vector.broadcast %1518 : f32 to vector<8x64xf32>
    %1520 = arith.mulf %1519, %1505 : vector<8x64xf32>
    %1521 = arith.addf %1504, %1520 : vector<8x64xf32>
    %cst_333 = arith.constant 0.000000e+00 : f32
    %1522 = vector.broadcast %cst_333 : f32 to vector<8x64xf32>
    %1523 = arith.cmpf ogt, %1509, %1522 : vector<8x64xf32>
    %cst_334 = arith.constant 0.00999999977 : f32
    %1524 = vector.broadcast %cst_334 : f32 to vector<8x64xf32>
    %1525 = arith.mulf %1524, %1509 : vector<8x64xf32>
    %1526 = arith.select %1523, %1509, %1525 : vector<8x64xi1>, vector<8x64xf32>
    %c4_335 = arith.constant 4 : index
    %1527 = memref.load %arg4[%c4_335] : memref<24xf32, #tpu.memory_space<smem>>
    %1528 = vector.broadcast %1527 : f32 to vector<8x64xf32>
    %1529 = arith.mulf %1526, %1528 : vector<8x64xf32>
    %c8_336 = arith.constant 8 : index
    %1530 = memref.load %arg4[%c8_336] : memref<24xf32, #tpu.memory_space<smem>>
    %1531 = vector.broadcast %1530 : f32 to vector<8x64xf32>
    %1532 = arith.addf %1529, %1531 : vector<8x64xf32>
    %cst_337 = arith.constant 0.000000e+00 : f32
    %1533 = vector.broadcast %cst_337 : f32 to vector<8x64xf32>
    %1534 = arith.cmpf ogt, %1513, %1533 : vector<8x64xf32>
    %cst_338 = arith.constant 0.00999999977 : f32
    %1535 = vector.broadcast %cst_338 : f32 to vector<8x64xf32>
    %1536 = arith.mulf %1535, %1513 : vector<8x64xf32>
    %1537 = arith.select %1534, %1513, %1536 : vector<8x64xi1>, vector<8x64xf32>
    %c5_339 = arith.constant 5 : index
    %1538 = memref.load %arg4[%c5_339] : memref<24xf32, #tpu.memory_space<smem>>
    %1539 = vector.broadcast %1538 : f32 to vector<8x64xf32>
    %1540 = arith.mulf %1537, %1539 : vector<8x64xf32>
    %c9_340 = arith.constant 9 : index
    %1541 = memref.load %arg4[%c9_340] : memref<24xf32, #tpu.memory_space<smem>>
    %1542 = vector.broadcast %1541 : f32 to vector<8x64xf32>
    %1543 = arith.addf %1540, %1542 : vector<8x64xf32>
    %cst_341 = arith.constant 0.000000e+00 : f32
    %1544 = vector.broadcast %cst_341 : f32 to vector<8x64xf32>
    %1545 = arith.cmpf ogt, %1517, %1544 : vector<8x64xf32>
    %cst_342 = arith.constant 0.00999999977 : f32
    %1546 = vector.broadcast %cst_342 : f32 to vector<8x64xf32>
    %1547 = arith.mulf %1546, %1517 : vector<8x64xf32>
    %1548 = arith.select %1545, %1517, %1547 : vector<8x64xi1>, vector<8x64xf32>
    %c6_343 = arith.constant 6 : index
    %1549 = memref.load %arg4[%c6_343] : memref<24xf32, #tpu.memory_space<smem>>
    %1550 = vector.broadcast %1549 : f32 to vector<8x64xf32>
    %1551 = arith.mulf %1548, %1550 : vector<8x64xf32>
    %c10_344 = arith.constant 10 : index
    %1552 = memref.load %arg4[%c10_344] : memref<24xf32, #tpu.memory_space<smem>>
    %1553 = vector.broadcast %1552 : f32 to vector<8x64xf32>
    %1554 = arith.addf %1551, %1553 : vector<8x64xf32>
    %cst_345 = arith.constant 0.000000e+00 : f32
    %1555 = vector.broadcast %cst_345 : f32 to vector<8x64xf32>
    %1556 = arith.cmpf ogt, %1521, %1555 : vector<8x64xf32>
    %cst_346 = arith.constant 0.00999999977 : f32
    %1557 = vector.broadcast %cst_346 : f32 to vector<8x64xf32>
    %1558 = arith.mulf %1557, %1521 : vector<8x64xf32>
    %1559 = arith.select %1556, %1521, %1558 : vector<8x64xi1>, vector<8x64xf32>
    %c7_347 = arith.constant 7 : index
    %1560 = memref.load %arg4[%c7_347] : memref<24xf32, #tpu.memory_space<smem>>
    %1561 = vector.broadcast %1560 : f32 to vector<8x64xf32>
    %1562 = arith.mulf %1559, %1561 : vector<8x64xf32>
    %c11_348 = arith.constant 11 : index
    %1563 = memref.load %arg4[%c11_348] : memref<24xf32, #tpu.memory_space<smem>>
    %1564 = vector.broadcast %1563 : f32 to vector<8x64xf32>
    %1565 = arith.addf %1562, %1564 : vector<8x64xf32>
    %cst_349 = arith.constant 0.000000e+00 : f32
    %1566 = vector.broadcast %cst_349 : f32 to vector<8x64xf32>
    %c12_350 = arith.constant 12 : index
    %1567 = memref.load %arg4[%c12_350] : memref<24xf32, #tpu.memory_space<smem>>
    %1568 = vector.broadcast %1567 : f32 to vector<8x64xf32>
    %1569 = arith.addf %1566, %1568 : vector<8x64xf32>
    %c0_351 = arith.constant 0 : index
    %1570 = memref.load %arg3[%c0_351] : memref<16xf32, #tpu.memory_space<smem>>
    %1571 = vector.broadcast %1570 : f32 to vector<8x64xf32>
    %1572 = arith.mulf %1571, %1532 : vector<8x64xf32>
    %1573 = arith.addf %1569, %1572 : vector<8x64xf32>
    %c4_352 = arith.constant 4 : index
    %1574 = memref.load %arg3[%c4_352] : memref<16xf32, #tpu.memory_space<smem>>
    %1575 = vector.broadcast %1574 : f32 to vector<8x64xf32>
    %1576 = arith.mulf %1575, %1543 : vector<8x64xf32>
    %1577 = arith.addf %1573, %1576 : vector<8x64xf32>
    %c8_353 = arith.constant 8 : index
    %1578 = memref.load %arg3[%c8_353] : memref<16xf32, #tpu.memory_space<smem>>
    %1579 = vector.broadcast %1578 : f32 to vector<8x64xf32>
    %1580 = arith.mulf %1579, %1554 : vector<8x64xf32>
    %1581 = arith.addf %1577, %1580 : vector<8x64xf32>
    %c12_354 = arith.constant 12 : index
    %1582 = memref.load %arg3[%c12_354] : memref<16xf32, #tpu.memory_space<smem>>
    %1583 = vector.broadcast %1582 : f32 to vector<8x64xf32>
    %1584 = arith.mulf %1583, %1565 : vector<8x64xf32>
    %1585 = arith.addf %1581, %1584 : vector<8x64xf32>
    %cst_355 = arith.constant 0.000000e+00 : f32
    %1586 = vector.broadcast %cst_355 : f32 to vector<8x64xf32>
    %1587 = arith.cmpf ogt, %1585, %1586 : vector<8x64xf32>
    %cst_356 = arith.constant 0.00999999977 : f32
    %1588 = vector.broadcast %cst_356 : f32 to vector<8x64xf32>
    %1589 = arith.mulf %1588, %1585 : vector<8x64xf32>
    %1590 = arith.select %1587, %1585, %1589 : vector<8x64xi1>, vector<8x64xf32>
    %c16_357 = arith.constant 16 : index
    %1591 = memref.load %arg4[%c16_357] : memref<24xf32, #tpu.memory_space<smem>>
    %1592 = vector.broadcast %1591 : f32 to vector<8x64xf32>
    %1593 = arith.mulf %1590, %1592 : vector<8x64xf32>
    %c20_358 = arith.constant 20 : index
    %1594 = memref.load %arg4[%c20_358] : memref<24xf32, #tpu.memory_space<smem>>
    %1595 = vector.broadcast %1594 : f32 to vector<8x64xf32>
    %1596 = arith.addf %1593, %1595 : vector<8x64xf32>
    %c0_359 = arith.constant 0 : index
    %c0_360 = arith.constant 0 : index
    %c8_361 = arith.constant 8 : index
    %c0_362 = arith.constant 0 : index
    %1597 = vector.load %arg5[%c0_359, %c0_360, %c8_361, %c0_362] : memref<1x4x16x64xf32, #tpu.memory_space<vmem>>, vector<1x1x8x64xf32>
    %1598 = vector.shape_cast %1597 : vector<1x1x8x64xf32> to vector<8x64xf32>
    %1599 = vector.shape_cast %1596 : vector<8x64xf32> to vector<1x1x8x64xf32>
    tpu.vector_store %arg5[%c0_359, %c0_360, %c8_361, %c0_362], %1599 {strides = array<i32>} : memref<1x4x16x64xf32, #tpu.memory_space<vmem>>, vector<1x1x8x64xf32>,
    %cst_363 = arith.constant 0.000000e+00 : f32
    %1600 = vector.broadcast %cst_363 : f32 to vector<8x64xf32>
    %c13_364 = arith.constant 13 : index
    %1601 = memref.load %arg4[%c13_364] : memref<24xf32, #tpu.memory_space<smem>>
    %1602 = vector.broadcast %1601 : f32 to vector<8x64xf32>
    %1603 = arith.addf %1600, %1602 : vector<8x64xf32>
    %c1_365 = arith.constant 1 : index
    %1604 = memref.load %arg3[%c1_365] : memref<16xf32, #tpu.memory_space<smem>>
    %1605 = vector.broadcast %1604 : f32 to vector<8x64xf32>
    %1606 = arith.mulf %1605, %1532 : vector<8x64xf32>
    %1607 = arith.addf %1603, %1606 : vector<8x64xf32>
    %c5_366 = arith.constant 5 : index
    %1608 = memref.load %arg3[%c5_366] : memref<16xf32, #tpu.memory_space<smem>>
    %1609 = vector.broadcast %1608 : f32 to vector<8x64xf32>
    %1610 = arith.mulf %1609, %1543 : vector<8x64xf32>
    %1611 = arith.addf %1607, %1610 : vector<8x64xf32>
    %c9_367 = arith.constant 9 : index
    %1612 = memref.load %arg3[%c9_367] : memref<16xf32, #tpu.memory_space<smem>>
    %1613 = vector.broadcast %1612 : f32 to vector<8x64xf32>
    %1614 = arith.mulf %1613, %1554 : vector<8x64xf32>
    %1615 = arith.addf %1611, %1614 : vector<8x64xf32>
    %c13_368 = arith.constant 13 : index
    %1616 = memref.load %arg3[%c13_368] : memref<16xf32, #tpu.memory_space<smem>>
    %1617 = vector.broadcast %1616 : f32 to vector<8x64xf32>
    %1618 = arith.mulf %1617, %1565 : vector<8x64xf32>
    %1619 = arith.addf %1615, %1618 : vector<8x64xf32>
    %cst_369 = arith.constant 0.000000e+00 : f32
    %1620 = vector.broadcast %cst_369 : f32 to vector<8x64xf32>
    %1621 = arith.cmpf ogt, %1619, %1620 : vector<8x64xf32>
    %cst_370 = arith.constant 0.00999999977 : f32
    %1622 = vector.broadcast %cst_370 : f32 to vector<8x64xf32>
    %1623 = arith.mulf %1622, %1619 : vector<8x64xf32>
    %1624 = arith.select %1621, %1619, %1623 : vector<8x64xi1>, vector<8x64xf32>
    %c17_371 = arith.constant 17 : index
    %1625 = memref.load %arg4[%c17_371] : memref<24xf32, #tpu.memory_space<smem>>
    %1626 = vector.broadcast %1625 : f32 to vector<8x64xf32>
    %1627 = arith.mulf %1624, %1626 : vector<8x64xf32>
    %c21_372 = arith.constant 21 : index
    %1628 = memref.load %arg4[%c21_372] : memref<24xf32, #tpu.memory_space<smem>>
    %1629 = vector.broadcast %1628 : f32 to vector<8x64xf32>
    %1630 = arith.addf %1627, %1629 : vector<8x64xf32>
    %c0_373 = arith.constant 0 : index
    %c1_374 = arith.constant 1 : index
    %c8_375 = arith.constant 8 : index
    %c0_376 = arith.constant 0 : index
    %1631 = vector.load %arg5[%c0_373, %c1_374, %c8_375, %c0_376] : memref<1x4x16x64xf32, #tpu.memory_space<vmem>>, vector<1x1x8x64xf32>
    %1632 = vector.shape_cast %1631 : vector<1x1x8x64xf32> to vector<8x64xf32>
    %1633 = vector.shape_cast %1630 : vector<8x64xf32> to vector<1x1x8x64xf32>
    tpu.vector_store %arg5[%c0_373, %c1_374, %c8_375, %c0_376], %1633 {strides = array<i32>} : memref<1x4x16x64xf32, #tpu.memory_space<vmem>>, vector<1x1x8x64xf32>,
    %cst_377 = arith.constant 0.000000e+00 : f32
    %1634 = vector.broadcast %cst_377 : f32 to vector<8x64xf32>
    %c14_378 = arith.constant 14 : index
    %1635 = memref.load %arg4[%c14_378] : memref<24xf32, #tpu.memory_space<smem>>
    %1636 = vector.broadcast %1635 : f32 to vector<8x64xf32>
    %1637 = arith.addf %1634, %1636 : vector<8x64xf32>
    %c2_379 = arith.constant 2 : index
    %1638 = memref.load %arg3[%c2_379] : memref<16xf32, #tpu.memory_space<smem>>
    %1639 = vector.broadcast %1638 : f32 to vector<8x64xf32>
    %1640 = arith.mulf %1639, %1532 : vector<8x64xf32>
    %1641 = arith.addf %1637, %1640 : vector<8x64xf32>
    %c6_380 = arith.constant 6 : index
    %1642 = memref.load %arg3[%c6_380] : memref<16xf32, #tpu.memory_space<smem>>
    %1643 = vector.broadcast %1642 : f32 to vector<8x64xf32>
    %1644 = arith.mulf %1643, %1543 : vector<8x64xf32>
    %1645 = arith.addf %1641, %1644 : vector<8x64xf32>
    %c10_381 = arith.constant 10 : index
    %1646 = memref.load %arg3[%c10_381] : memref<16xf32, #tpu.memory_space<smem>>
    %1647 = vector.broadcast %1646 : f32 to vector<8x64xf32>
    %1648 = arith.mulf %1647, %1554 : vector<8x64xf32>
    %1649 = arith.addf %1645, %1648 : vector<8x64xf32>
    %c14_382 = arith.constant 14 : index
    %1650 = memref.load %arg3[%c14_382] : memref<16xf32, #tpu.memory_space<smem>>
    %1651 = vector.broadcast %1650 : f32 to vector<8x64xf32>
    %1652 = arith.mulf %1651, %1565 : vector<8x64xf32>
    %1653 = arith.addf %1649, %1652 : vector<8x64xf32>
    %cst_383 = arith.constant 0.000000e+00 : f32
    %1654 = vector.broadcast %cst_383 : f32 to vector<8x64xf32>
    %1655 = arith.cmpf ogt, %1653, %1654 : vector<8x64xf32>
    %cst_384 = arith.constant 0.00999999977 : f32
    %1656 = vector.broadcast %cst_384 : f32 to vector<8x64xf32>
    %1657 = arith.mulf %1656, %1653 : vector<8x64xf32>
    %1658 = arith.select %1655, %1653, %1657 : vector<8x64xi1>, vector<8x64xf32>
    %c18_385 = arith.constant 18 : index
    %1659 = memref.load %arg4[%c18_385] : memref<24xf32, #tpu.memory_space<smem>>
    %1660 = vector.broadcast %1659 : f32 to vector<8x64xf32>
    %1661 = arith.mulf %1658, %1660 : vector<8x64xf32>
    %c22_386 = arith.constant 22 : index
    %1662 = memref.load %arg4[%c22_386] : memref<24xf32, #tpu.memory_space<smem>>
    %1663 = vector.broadcast %1662 : f32 to vector<8x64xf32>
    %1664 = arith.addf %1661, %1663 : vector<8x64xf32>
    %c0_387 = arith.constant 0 : index
    %c2_388 = arith.constant 2 : index
    %c8_389 = arith.constant 8 : index
    %c0_390 = arith.constant 0 : index
    %1665 = vector.load %arg5[%c0_387, %c2_388, %c8_389, %c0_390] : memref<1x4x16x64xf32, #tpu.memory_space<vmem>>, vector<1x1x8x64xf32>
    %1666 = vector.shape_cast %1665 : vector<1x1x8x64xf32> to vector<8x64xf32>
    %1667 = vector.shape_cast %1664 : vector<8x64xf32> to vector<1x1x8x64xf32>
    tpu.vector_store %arg5[%c0_387, %c2_388, %c8_389, %c0_390], %1667 {strides = array<i32>} : memref<1x4x16x64xf32, #tpu.memory_space<vmem>>, vector<1x1x8x64xf32>,
    %cst_391 = arith.constant 0.000000e+00 : f32
    %1668 = vector.broadcast %cst_391 : f32 to vector<8x64xf32>
    %c15_392 = arith.constant 15 : index
    %1669 = memref.load %arg4[%c15_392] : memref<24xf32, #tpu.memory_space<smem>>
    %1670 = vector.broadcast %1669 : f32 to vector<8x64xf32>
    %1671 = arith.addf %1668, %1670 : vector<8x64xf32>
    %c3_393 = arith.constant 3 : index
    %1672 = memref.load %arg3[%c3_393] : memref<16xf32, #tpu.memory_space<smem>>
    %1673 = vector.broadcast %1672 : f32 to vector<8x64xf32>
    %1674 = arith.mulf %1673, %1532 : vector<8x64xf32>
    %1675 = arith.addf %1671, %1674 : vector<8x64xf32>
    %c7_394 = arith.constant 7 : index
    %1676 = memref.load %arg3[%c7_394] : memref<16xf32, #tpu.memory_space<smem>>
    %1677 = vector.broadcast %1676 : f32 to vector<8x64xf32>
    %1678 = arith.mulf %1677, %1543 : vector<8x64xf32>
    %1679 = arith.addf %1675, %1678 : vector<8x64xf32>
    %c11_395 = arith.constant 11 : index
    %1680 = memref.load %arg3[%c11_395] : memref<16xf32, #tpu.memory_space<smem>>
    %1681 = vector.broadcast %1680 : f32 to vector<8x64xf32>
    %1682 = arith.mulf %1681, %1554 : vector<8x64xf32>
    %1683 = arith.addf %1679, %1682 : vector<8x64xf32>
    %c15_396 = arith.constant 15 : index
    %1684 = memref.load %arg3[%c15_396] : memref<16xf32, #tpu.memory_space<smem>>
    %1685 = vector.broadcast %1684 : f32 to vector<8x64xf32>
    %1686 = arith.mulf %1685, %1565 : vector<8x64xf32>
    %1687 = arith.addf %1683, %1686 : vector<8x64xf32>
    %cst_397 = arith.constant 0.000000e+00 : f32
    %1688 = vector.broadcast %cst_397 : f32 to vector<8x64xf32>
    %1689 = arith.cmpf ogt, %1687, %1688 : vector<8x64xf32>
    %cst_398 = arith.constant 0.00999999977 : f32
    %1690 = vector.broadcast %cst_398 : f32 to vector<8x64xf32>
    %1691 = arith.mulf %1690, %1687 : vector<8x64xf32>
    %1692 = arith.select %1689, %1687, %1691 : vector<8x64xi1>, vector<8x64xf32>
    %c19_399 = arith.constant 19 : index
    %1693 = memref.load %arg4[%c19_399] : memref<24xf32, #tpu.memory_space<smem>>
    %1694 = vector.broadcast %1693 : f32 to vector<8x64xf32>
    %1695 = arith.mulf %1692, %1694 : vector<8x64xf32>
    %c23_400 = arith.constant 23 : index
    %1696 = memref.load %arg4[%c23_400] : memref<24xf32, #tpu.memory_space<smem>>
    %1697 = vector.broadcast %1696 : f32 to vector<8x64xf32>
    %1698 = arith.addf %1695, %1697 : vector<8x64xf32>
    %c0_401 = arith.constant 0 : index
    %c3_402 = arith.constant 3 : index
    %c8_403 = arith.constant 8 : index
    %c0_404 = arith.constant 0 : index
    %1699 = vector.load %arg5[%c0_401, %c3_402, %c8_403, %c0_404] : memref<1x4x16x64xf32, #tpu.memory_space<vmem>>, vector<1x1x8x64xf32>
    %1700 = vector.shape_cast %1699 : vector<1x1x8x64xf32> to vector<8x64xf32>
    %1701 = vector.shape_cast %1698 : vector<8x64xf32> to vector<1x1x8x64xf32>
    tpu.vector_store %arg5[%c0_401, %c3_402, %c8_403, %c0_404], %1701 {strides = array<i32>} : memref<1x4x16x64xf32, #tpu.memory_space<vmem>>, vector<1x1x8x64xf32>,
    return
  }
  func.func @transform_0(%arg0: i32) -> (i32, i32, i32, i32) {
    %c0_i32 = arith.constant 0 : i32
    %c0_i32_0 = arith.constant 0 : i32
    %c0_i32_1 = arith.constant 0 : i32
    %c0_i32_2 = arith.constant 0 : i32
    return %arg0, %c0_i32, %c0_i32_0, %c0_i32_1 : i32, i32, i32, i32
  }
  func.func @transform_1(%arg0: i32) -> i32 {
    %c0_i32 = arith.constant 0 : i32
    %c0_i32_0 = arith.constant 0 : i32
    return %c0_i32 : i32
  }
  func.func @transform_2(%arg0: i32) -> i32 {
    %c0_i32 = arith.constant 0 : i32
    %c0_i32_0 = arith.constant 0 : i32
    return %c0_i32 : i32
  }
  func.func @transform_3(%arg0: i32) -> i32 {
    %c0_i32 = arith.constant 0 : i32
    %c0_i32_0 = arith.constant 0 : i32
    return %c0_i32 : i32
  }
  func.func @transform_4(%arg0: i32) -> (i32, i32, i32, i32) {
    %c0_i32 = arith.constant 0 : i32
    %c0_i32_0 = arith.constant 0 : i32
    %c0_i32_1 = arith.constant 0 : i32
    %c0_i32_2 = arith.constant 0 : i32
    return %arg0, %c0_i32, %c0_i32_0, %c0_i32_1 : i32, i32, i32, i32
  }
}

</mosaic_0001>

<bundles_post_ra>
// kernel: upconv_block_forward.2
= control target key start
LH: loop header
LB: loop body
LE: loop exit
PB: predicated region body
PF: predicated region fallthrough
CT: control target
= control target key end

     0   :  { %vm71_vm0 = vcmask 64512   ;;  %v249_v3 = vmov 0   ;;  %s353_s0 = inlined_call_operand.vmem [shape: f32[8,128], index: 0, kind: input, shape index: {}]   ;;  %s354_s1 = inlined_call_operand.vmem [shape: f32[64,8], index: 1, kind: input, shape index: {}]   ;;  %s355_s2 = inlined_call_operand.vmem [shape: f32[64,1], index: 2, kind: input, shape index: {}]   ;;  %s356_s3 = inlined_call_operand.vmem [shape: f32[64,128], index: 3, kind: output, shape index: {}]  }
   0x1   :  { %v22_v0 = vld [vmem:[%s353_s0] sm:$0xff]  ;;  %248 = vset.pattern.permute.xlu1 %v249_v3  ;;  %247 = vset.pattern.permute.xlu0 %v249_v3  ;;  %v15_v4 = vld [vmem:[%s354_s1 + $0x8] sm:$0xff]  ;;  %v16_v6 = vld [vmem:[%s354_s1 + $0x10] sm:$0xff] }
   0x2   :  { %v14_v1 = vld [vmem:[%s354_s1] sm:$0xff]  ;;  %230 = vmatprep.subr.mxu0 %v22_v0  ;;  %244 = vmatprep.subr.mxu1 %v22_v0  ;;  %v19_v5 = vld [vmem:[%s354_s1 + $0x28] sm:$0xff]  ;;  %v20_v7 = vld [vmem:[%s354_s1 + $0x30] sm:$0xff] }
   0x3   :  { %v18_v2 = vld [vmem:[%s354_s1 + $0x20] sm:$0xff]  ;;  %231 = vmatpush3.msra.mxu0 %v22_v0  ;;  %245 = vmatpush3.msra.mxu1 %v22_v0  ;;  %v25_v8 = vld [vmem:[%s355_s2 + $0x10] sm:$0xff]  ;;  %v17_v10 = vld [vmem:[%s354_s1 + $0x18] sm:$0xff] }
   0x4   :  { %232 = vmatprep.mubr.msk.f32.mxu0 %vm71_vm0, %v14_v1  ;;  %238 = vmatprep.mubr.msk.f32.mxu1 %vm71_vm0, %v18_v2  ;;  %v23_v9 = vld [vmem:[%s355_s2] sm:$0xff]  ;;  %v21_v11 = vld [vmem:[%s354_s1 + $0x38] sm:$0xff]  ;;  %v24_v13 = vld [vmem:[%s355_s2 + $0x8] sm:$0xff] }
   0x5   :  { %233 = vmatmul.mubr.msk.f32.vlgmr.msra.gmra.mrb[0].mxu0 %vm71_vm0, %v15_v4  ;;  %239 = vmatmul.mubr.msk.f32.vlgmr.msra.gmra.mrb[0].mxu1 %vm71_vm0, %v19_v5  ;;  %v26_v12 = vld [vmem:[%s355_s2 + $0x18] sm:$0xff]  ;;  %v28_v14 = vld [vmem:[%s355_s2 + $0x28] sm:$0xff]  ;;  %v27_v15 = vld [vmem:[%s355_s2 + $0x20] sm:$0xff] }
   0x6   :  { %235 = vmatprep.mubr.msk.f32.mxu0 %vm71_vm0, %v16_v6  ;;  %241 = vmatprep.mubr.msk.f32.mxu1 %vm71_vm0, %v20_v7  ;;  %v30_v16 = vld [vmem:[%s355_s2 + $0x38] sm:$0xff]  ;;  %v29_v17 = vld [vmem:[%s355_s2 + $0x30] sm:$0xff] }
   0x7   :  { %43 = vperm.xlu1 %248, %v25_v8   ;;  %33 = vperm.xlu0 %247, %v23_v9  }
   0x9   :  { %236 = vmatmul.mubr.msk.f32.gmra.mrb[2].mxu0 %vm71_vm0, %v17_v10  ;;  %242 = vmatmul.mubr.msk.f32.gmra.mrb[2].mxu1 %vm71_vm0, %v21_v11 }
   0xb   :  { %48 = vperm.xlu1 %248, %v26_v12   ;;  %38 = vperm.xlu0 %247, %v24_v13  }
   0xf   :  { %58 = vperm.xlu1 %248, %v28_v14   ;;  %53 = vperm.xlu0 %247, %v27_v15  }
  0x13   :  { %68 = vperm.xlu1 %248, %v30_v16   ;;  %63 = vperm.xlu0 %247, %v29_v17  }
  0x86   :  { %v44_v18 = vpop.permute.xlu1 %43  ;;  %v34_v19 = vpop.permute.xlu0 %33 }
  0x8a   :  { %v49_v20 = vpop.permute.xlu1 %48  ;;  %v39_v21 = vpop.permute.xlu0 %38 }
  0x8e   :  { %v59_v22 = vpop.permute.xlu1 %58  ;;  %v54_v23 = vpop.permute.xlu0 %53 }
  0x92   :  { %v69_v32 = vpop.permute.xlu1 %68  ;;  %v64_v33 = vpop.permute.xlu0 %63 }
  0xd8   :  { %v234_v24 = vpop.f32.mrb[0].mxu0  ;;  %v240_v25 = vpop.f32.mrb[0].mxu1 }
  0xd9   :  { %v168_v26 = vadd.f32 %v234_v24, %v39_v21  ;;  %v188_v27 = vadd.f32 %v240_v25, %v59_v22  ;;  %v162_v28 = vpop.f32.mrb[1].mxu0  ;;  %v182_v29 = vpop.f32.mrb[1].mxu1 }
  0xda   :  { %v163_v30 = vadd.f32 %v162_v28, %v34_v19  ;;  %v183_v31 = vadd.f32 %v182_v29, %v54_v23 }
  0xdb   :  { %202 = vst [vmem:[%s356_s3 + $0x8] sm:$0xff] %v168_v26  ;;  %206 = vst [vmem:[%s356_s3 + $0x28] sm:$0xff] %v188_v27 }
  0xdc   :  { %201 = vst [vmem:[%s356_s3] sm:$0xff] %v163_v30  ;;  %205 = vst [vmem:[%s356_s3 + $0x20] sm:$0xff] %v183_v31  ;;  %v237_v34 = vpop.f32.mrb[2].mxu0  ;;  %v243_v35 = vpop.f32.mrb[2].mxu1 }
  0xdd   :  { %v178_v36 = vadd.f32 %v237_v34, %v49_v20  ;;  %v198_v37 = vadd.f32 %v243_v35, %v69_v32  ;;  %v172_v38 = vpop.f32.mrb[3].mxu0  ;;  %v192_v39 = vpop.f32.mrb[3].mxu1 }
  0xde   :  { %v173_v40 = vadd.f32 %v172_v38, %v44_v18  ;;  %v193_v41 = vadd.f32 %v192_v39, %v64_v33 }
  0xdf   :  { %204 = vst [vmem:[%s356_s3 + $0x18] sm:$0xff] %v178_v36  ;;  %208 = vst [vmem:[%s356_s3 + $0x38] sm:$0xff] %v198_v37 }
  0xe0   :  { %203 = vst [vmem:[%s356_s3 + $0x10] sm:$0xff] %v173_v40  ;;  %207 = vst [vmem:[%s356_s3 + $0x30] sm:$0xff] %v193_v41 }

// kernel: upconv_block_forward.3
= control target key start
LH: loop header
LB: loop body
LE: loop exit
PB: predicated region body
PF: predicated region fallthrough
CT: control target
= control target key end

     0   :  { %s8140_s0 = inlined_call_operand.vmem [shape: f32[2,4,16,64], index: 0, kind: input, shape index: {}]   ;;  %s8141_s1 = inlined_call_operand.vmem [shape: f32[144], index: 1, kind: input, shape index: {}]   ;;  %s8142_s2 = inlined_call_operand.vmem [shape: f32[16], index: 2, kind: input, shape index: {}]   ;;  %s8143_s3 = inlined_call_operand.vmem [shape: f32[24], index: 3, kind: input, shape index: {}]   ;;  %s8144_s4 = inlined_call_operand.hbm [shape: f32[2,4,16,64], index: 4, kind: output, shape index: {}]  }
   0x1   :  { %8298 = sst [smem:[#allocation161_spill]] %s8140_s0 }
   0x2   :  { %8299 = sst [smem:[#allocation162_spill]] %s8141_s1 }
   0x3   :  { %8300 = sst [smem:[#allocation163_spill]] %s8142_s2 }
   0x4   :  { %8301 = sst [smem:[#allocation164_spill]] %s8143_s3 }
   0x5   :  { %8302 = sst [smem:[#allocation165_spill]] %s8144_s4 }
   0x6   :  { %9 = vsyncpa [#allocation5], 0 }
   0x7   :  { %10 = vsyncpa [#allocation7], 0 }
   0x8   :  { %11 = vsyncpa [#allocation4], 0 }
   0x9   :  { %13 = vsyncpa [#allocation4 + $0x1], 0  ;;  %s4429_s15 = smov 0   ;;  %s4431_s16 = smov 0  }
   0xa   :  { %s4433_s17 = smov 0   ;;  %s4435_s18 = smov 0  }
   0xb LB: > { %8303 = sst [smem:[#allocation13_spill]] %s4380_s15  ;;  %s4450_s19 = sadd.s32 4294967295, %s4392_s18   ;;  %s4392_s18 = sphi %s4435_s18, %s8868_s18   ;;  %s4388_s17 = sphi %s4433_s17, %s8871_s17   ;;  %s4384_s16 = sphi %s4431_s16, %s8870_s16   ;;  %s4380_s15 = sphi %s4429_s15, %s8869_s15  }
   0xc   : > { %8304 = sst [smem:[#allocation14_spill]] %s4384_s16  ;;  %s3792_s20 = sadd.s32 4294967294, %s4392_s18  }
   0xd   : > { %8305 = sst [smem:[#allocation15_spill]] %s4388_s17  ;;  %s4454_s21 = sadd.s32 1, %s4392_s18  }
   0xe   : > { %8306 = sst [smem:[#allocation16_spill]] %s4392_s18  ;;  %s115_s22 = sadd.s32 1, %s4388_s17 }
   0xf   : > { %8307 = sst [smem:[#allocation17_spill]] %s4450_s19  ;;  %s112_s23 = ssub.s32 %s4392_s18, %s4454_s21 }
  0x10   : > { %8308 = sst [smem:[#allocation18_spill]] %s4454_s21  ;;  %p125_p0 = scmp.ne.s32.totalorder %s4388_s17, %s4384_s16 }
  0x11   : > { %p113_p1 = scmp.eq.s32.totalorder %s112_s23, 0  ;;  %p126_p2 = scmp.eq.s32.totalorder %s4450_s19, 1 }
  0x12   : > { %p131_p3 = scmp.ne.s32.totalorder %s4384_s16, %s4380_s15  ;;  %p132_p4 = scmp.eq.s32.totalorder %s3792_s20, 1 }
  0x13   : > { %s4465_s24 = scalar_select %p113_p1, %s4388_s17, %s115_s22  }
  0x14   : > { %p4467_p5 = por %p126_p2, %p125_p0  ;;  %p4471_p6 = por %p132_p4, %p131_p3 }
  0x15   : > { %8309 = sst [smem:[#allocation19_spill]] %s4465_s24  ;;  %p3793_p7 = scmp.ge.s32.totalorder %s4392_s18, 1 }
  0x16   : > { %s8310_s25 = scalar_select %p4467_p5, 1, 0 }
  0x17   : > { %s8312_s26 = scalar_select %p4471_p6, 1, 0 }
  0x18   : > { %8311 = sst [smem:[#allocation20_spill]] %s8310_s25  ;;  %p139_p8 = scmp.lt.s32.totalorder %s4392_s18, 3 }
  0x19   : > { %8313 = sst [smem:[#allocation21_spill]] %s8312_s26  ;;  %p8145_p9 = scmp.eq.s32.totalorder %s4450_s19, 0 }
  0x1a   : > { %p4478_p10 = pnand %p3793_p7, %p139_p8  ;;  %s8315_s2 = sld [smem:[#allocation163_spill]] }
  0x1b   : > { %s8316_s1 = sld [smem:[#allocation162_spill]]  ;;  %s8318_s3 = sld [smem:[#allocation164_spill]] }
  0x1c   : > { %s8314_s27 = scalar_select %p4478_p10, 1, 0 }
  0x1d   : > { %p4200_p11 = pneg %p4478_p10 }
  0x1f   : > { %p4492_p12 = pnand %p8145_p9, %p4200_p11 }
  0x20   : > { %s163_s30 = sshll.u32 %s8315_s2, 4  ;;  %s164_s30 = int_to_ptr.vmem [resolvable:$true] %s163_s30 }
  0x21   : > { %s152_s7 = sshll.u32 %s8316_s1, 4  ;;  %s174_s11 = sshll.u32 %s8318_s3, 4  ;;  %s153_s7 = int_to_ptr.vmem [resolvable:$true] %s152_s7  ;;  %s4499_s11 = int_to_ptr.vmem [resolvable:$true] %s174_s11 }
  0x22   : > { %s4277_s12 = scalar_lea.vmem %s164_s30, 16  ;;  %p4279_p0 = pneg %p4492_p12 }
  0x23   : > { %p4278_p13 = scmp.ne.s32.totalorder %s164_s30, %s4277_s12  ;;  %p4285_p3 = scmp.lt.s32.totalorder %s164_s30, %s164_s30 }
  0x24   : > { %p4286_p4 = scmp.lt.s32.totalorder %s4277_s12, %s4277_s12 }
  0x25   : > { %p4280_p1 = pnand %p4279_p0, %p4278_p13 }
  0x26   : > { %p4287_p7 = por %p4286_p4, %p4285_p3 }
  0x27   : > { %p4281_p2 = pneg %p4280_p1 }
  0x29   : > { %p4288_p8 = pnand %p4287_p7, %p4281_p2 }
  0x2b   : > { %4291 = shalt.err (!%p4288_p8)
}
  0x2c   : > { %s4394_s13 = smov [#allocation6]   ;;  %s4292_s14 = scalar_lea.vmem %s153_s7, 32 }
  0x2d   : > { %4206 = dma.vmem_to_smem (!%p4492_p12), %s164_s30, 16, %s4394_s13, [#allocation7]  }
  0x2e   : > { %p4293_p11 = scmp.ne.s32.totalorder %s153_s7, %s4292_s14  ;;  %p4300_p5 = scmp.lt.s32.totalorder %s153_s7, %s153_s7 }
  0x2f   : > { %p4301_p10 = scmp.lt.s32.totalorder %s4292_s14, %s4292_s14 }
  0x30   : > { %p4295_p9 = pnand %p4293_p11, %p4279_p0 }
  0x31   : > { %p4302_p13 = por %p4301_p10, %p4300_p5 }
  0x32   : > { %p4296_p6 = pneg %p4295_p9 }
  0x34   : > { %p4303_p1 = pnand %p4302_p13, %p4296_p6 }
  0x36   : > { %4306 = shalt.err (!%p4303_p1)
}
  0x37   : > { %s4395_s20 = smov [#allocation3]   ;;  %s4307_s22 = scalar_lea.vmem %s4499_s11, 16 }
  0x38   : > { %4203 = dma.vmem_to_smem (!%p4492_p12), %s153_s7, 32, %s4395_s20, [#allocation5]  }
  0x39   : > { %p4308_p2 = scmp.ne.s32.totalorder %s4499_s11, %s4307_s22  ;;  %p4315_p9 = scmp.lt.s32.totalorder %s4499_s11, %s4499_s11 }
  0x3a   : > { %p4316_p7 = scmp.lt.s32.totalorder %s4307_s22, %s4307_s22 }
  0x3b   : > { %p4310_p3 = pnand %p4308_p2, %p4279_p0 }
  0x3c   : > { %p4317_p5 = por %p4316_p7, %p4315_p9 }
  0x3d   : > { %p4311_p4 = pneg %p4310_p3 }
  0x3f   : > { %p4318_p6 = pnand %p4317_p5, %p4311_p4 }
  0x41   : > { %4321 = shalt.err (!%p4318_p6)
}
  0x42   : > { %s4396_s23 = smov [#allocation8]   ;;  %p8319_p10 = scmp.ne.s32.totalorder %s8314_s27, 0 }
  0x43   : > { %4209 = dma.vmem_to_smem (!%p4492_p12), %s4499_s11, 16, %s4396_s23, [#allocation7]  }
  0x44   : > { %195 = sbr.rel (%p8319_p10) target bundleno = 771 (0x303), region = 36 }
  0x4b   : > { %p8320_p8 = scmp.eq.s32.totalorder %s4450_s19, 0 }
  0x4d   : > { %4367 = dma.done.wait (%p8320_p8), [#allocation5], 32   ;;  %p8321_p0 = pmov %p8320_p8 }
  0x4f   : > { %4369 = vsyncadd (%p8321_p0), [#allocation5], 4294967264  ;;  %p8322_p11 = pmov %p8321_p0 }
  0x50   : > { %p8323_p13 = pmov %p8321_p0 }
  0x51   : > { %4371 = dma.done.wait (%p8322_p11), [#allocation7], 32  }
  0x52   : > { %4373 = vsyncadd (%p8323_p13), [#allocation7], 4294967264 }
  0x53   : > { %209 = sfence }
  0x54   : > { %p230_p1 = scmp.lt.s32.totalorder %s4450_s19, 1  ;;  %vm235_vm0 = vcmask 532480   ;;  %vm238_vm1 = vcmask 7168   ;;  %vm243_vm2 = vcmask 540168   ;;  %v4397_v0 = vmov 0.0   ;;  %s8324_s0 = sld [smem:[#allocation161_spill]] }
  0x55   : > { %236 = vst.msk [vmem:[#allocation2] sm:$0x1] %vm235_vm0, %v4397_v0  ;;  %237 = vst.msk [vmem:[#allocation2 + $0x11] sm:$0x1] %vm235_vm0, %v4397_v0  ;;  %vm241_vm3 = vcmask 1024   ;;  %vm246_vm4 = vcmask 534024  }
  0x56   : > { %240 = vst.msk [vmem:[#allocation2 + $0x8] sm:$0xff] %vm238_vm1, %v4397_v0  ;;  %265 = vst.msk [vmem:[#allocation2 + $0x20] sm:$0xff] %vm238_vm1, %v4397_v0  ;;  %s231_s27 = scalar_select %p230_p1, %s4450_s19, 1  ;;  %vm258_vm5 = vcmask 531464   ;;  %vm427_vm6 = vcmask 1046528   ;;  %vm576_vm7 = vcmask 1045504  }
  0x57   : > { %262 = vst.msk [vmem:[#allocation2 + $0x18] sm:$0x1] %vm235_vm0, %v4397_v0  ;;  %263 = vst.msk [vmem:[#allocation2 + $0x29] sm:$0x1] %vm235_vm0, %v4397_v0  ;;  %s4398_s6 = smov 1   ;;  %s4560_s7 = sld [smem:[#allocation3 + $0x11]] }
  0x58   : > { %284 = vst.msk [vmem:[#allocation2 + $0x30] sm:$0x1] %vm235_vm0, %v4397_v0  ;;  %285 = vst.msk [vmem:[#allocation2 + $0x41] sm:$0x1] %vm235_vm0, %v4397_v0  ;;  %s4184_s28 = sshll.u32 %s231_s27, 6  ;;  %s4562_s8 = sld [smem:[#allocation3 + $0x10]] }
  0x59   : > { %287 = vst.msk [vmem:[#allocation2 + $0x38] sm:$0xff] %vm238_vm1, %v4397_v0  ;;  %309 = vst.msk [vmem:[#allocation2 + $0x50] sm:$0xff] %vm238_vm1, %v4397_v0  ;;  %s4564_s9 = sld [smem:[#allocation3 + $0x13]]  ;;  %s4566_s10 = sld [smem:[#allocation3 + $0x12]]  ;;  %vm1917_vm12 = vcmask 523264  }
  0x5a   : > { %306 = vst.msk [vmem:[#allocation2 + $0x48] sm:$0x1] %vm235_vm0, %v4397_v0  ;;  %307 = vst.msk [vmem:[#allocation2 + $0x59] sm:$0x1] %vm235_vm0, %v4397_v0  ;;  %s234_s5 = scalar_lea.vmem %s8324_s0, %s4184_s28  ;;  %s4568_s11 = sld [smem:[#allocation3 + $0x21]] }
  0x5b   : > { %239 = vst.msk [vmem:[#allocation2] sm:$0xff] %vm238_vm1, %v4397_v0  ;;  %264 = vst.msk [vmem:[#allocation2 + $0x18] sm:$0xff] %vm238_vm1, %v4397_v0  ;;  %v248_v1 = vld [vmem:[%s234_s5] sm:$0xff]  ;;  %v3805_v2 = vld [vmem:[%s234_s5 + $0x10] sm:$0xff]  ;;  %s4570_s12 = sld [smem:[#allocation3 + $0x20]]  ;;  %s4572_s13 = sld [smem:[#allocation3 + $0x23]] }
  0x5c   : > { %245 = vst.msk [vmem:[#allocation2 + $0x8] sm:$0xff] %vm243_vm2, %v4397_v0  ;;  %268 = vst.msk [vmem:[#allocation2 + $0x20] sm:$0xff] %vm243_vm2, %v4397_v0  ;;  %252 = vrot.lane.b32.xlu0 %v248_v1, %s4398_s6  ;;  %275 = vrot.lane.b32.xlu1 %v3805_v2, %s4398_s6  ;;  %v249_v3 = vld [vmem:[%s234_s5 + $0x8] sm:$0xff]  ;;  %v3806_v4 = vld [vmem:[%s234_s5 + $0x18] sm:$0xff]  ;;  %s4574_s14 = sld [smem:[#allocation3 + $0x22]]  ;;  %s4576_s20 = sld [smem:[#allocation3 + $0x41]] }
  0x5d   : > { %242 = vst.msk [vmem:[#allocation2 + $0x10] sm:$0x3] %vm241_vm3, %v4397_v0  ;;  %266 = vst.msk [vmem:[#allocation2 + $0x28] sm:$0x3] %vm241_vm3, %v4397_v0  ;;  %v3808_v5 = vld [vmem:[%s234_s5 + $0x28] sm:$0xff]  ;;  %v3807_v6 = vld [vmem:[%s234_s5 + $0x20] sm:$0xff]  ;;  %v366_v11 = vstv %s4560_s7 }
  0x5e   : > { %286 = vst.msk [vmem:[#allocation2 + $0x30] sm:$0xff] %vm238_vm1, %v4397_v0  ;;  %308 = vst.msk [vmem:[#allocation2 + $0x48] sm:$0xff] %vm238_vm1, %v4397_v0  ;;  %v3810_v7 = vld [vmem:[%s234_s5 + $0x38] sm:$0xff]  ;;  %v3809_v8 = vld [vmem:[%s234_s5 + $0x30] sm:$0xff]  ;;  %s4578_s22 = sld [smem:[#allocation3 + $0x40]]  ;;  %s4580_s23 = sld [smem:[#allocation3 + $0x43]]  ;;  %v358_v12 = vstv %s4562_s8 }
  0x5f   : > { %288 = vst.msk [vmem:[#allocation2 + $0x40] sm:$0x3] %vm241_vm3, %v4397_v0  ;;  %310 = vst.msk [vmem:[#allocation2 + $0x58] sm:$0x3] %vm241_vm3, %v4397_v0  ;;  %s4582_s27 = sld [smem:[#allocation3 + $0x42]]  ;;  %s4584_s28 = sld [smem:[#allocation3 + $0x51]]  ;;  %v382_v13 = vstv %s4564_s9  ;;  %v374_v14 = vstv %s4566_s10 }
  0x60   : > { %290 = vst.msk [vmem:[#allocation2 + $0x38] sm:$0xff] %vm243_vm2, %v4397_v0  ;;  %312 = vst.msk [vmem:[#allocation2 + $0x50] sm:$0xff] %vm243_vm2, %v4397_v0  ;;  %254 = vrot.lane.b32.xlu0 %v249_v3, %s4398_s6  ;;  %277 = vrot.lane.b32.xlu1 %v3806_v4, %s4398_s6  ;;  %s4586_s29 = sld [smem:[#allocation3 + $0x15]]  ;;  %s4588_s30 = sld [smem:[#allocation3 + $0x50]]  ;;  %v398_v15 = vstv %s4568_s11 }
  0x61   : > { %244 = vst.msk [vmem:[#allocation2] sm:$0xff] %vm243_vm2, %v4397_v0  ;;  %267 = vst.msk [vmem:[#allocation2 + $0x18] sm:$0xff] %vm243_vm2, %v4397_v0  ;;  %8325 = sst [smem:[#allocation22_spill]] %s4572_s13  ;;  %s4590_s5 = sld [smem:[#allocation3 + $0x14]]  ;;  %v390_v16 = vstv %s4570_s12  ;;  %v414_v17 = vstv %s4572_s13 }
  0x62   : > { %247 = vst.msk [vmem:[#allocation2 + $0x10] sm:$0x3] %vm246_vm4, %v4397_v0  ;;  %269 = vst.msk [vmem:[#allocation2 + $0x28] sm:$0x3] %vm246_vm4, %v4397_v0  ;;  %8326 = sst [smem:[#allocation23_spill]] %s4574_s14  ;;  %s4594_s0 = sld [smem:[#allocation3 + $0x16]]  ;;  %v406_v18 = vstv %s4574_s14  ;;  %v480_v19 = vstv %s4576_s20 }
  0x63   : > { %289 = vst.msk [vmem:[#allocation2 + $0x30] sm:$0xff] %vm243_vm2, %v4397_v0  ;;  %311 = vst.msk [vmem:[#allocation2 + $0x48] sm:$0xff] %vm243_vm2, %v4397_v0  ;;  %8327 = sst [smem:[#allocation24_spill]] %s4576_s20  ;;  %s4596_s1 = sld [smem:[#allocation3 + $0x25]] }
  0x64   : > { %291 = vst.msk [vmem:[#allocation2 + $0x40] sm:$0x3] %vm246_vm4, %v4397_v0  ;;  %313 = vst.msk [vmem:[#allocation2 + $0x58] sm:$0x3] %vm246_vm4, %v4397_v0  ;;  %299 = vrot.lane.b32.xlu1 %v3808_v5, %s4398_s6  ;;  %297 = vrot.lane.b32.xlu0 %v3807_v6, %s4398_s6  ;;  %8328 = sst [smem:[#allocation25_spill]] %s4578_s22  ;;  %s4600_s3 = sld [smem:[#allocation3 + $0x27]]  ;;  %v467_v22 = vstv %s4578_s22  ;;  %v506_v23 = vstv %s4580_s23 }
  0x65   : > { %8329 = sst [smem:[#allocation26_spill]] %s4580_s23  ;;  %s4598_s2 = sld [smem:[#allocation3 + $0x24]]  ;;  %v493_v24 = vstv %s4582_s27  ;;  %v532_v25 = vstv %s4584_s28 }
  0x66   : > { %8330 = sst [smem:[#allocation27_spill]] %s4582_s27  ;;  %s4604_s17 = sld [smem:[#allocation3 + $0x53]]  ;;  %v746_v26 = vstv %s4586_s29  ;;  %v519_v29 = vstv %s4588_s30 }
  0x67   : > { %8331 = sst [smem:[#allocation28_spill]] %s4584_s28  ;;  %s4602_s24 = sld [smem:[#allocation3 + $0x26]]  ;;  %v738_v27 = vstv %s4590_s5 }
  0x68   : > { %321 = vrot.lane.b32.xlu1 %v3810_v7, %s4398_s6  ;;  %319 = vrot.lane.b32.xlu0 %v3809_v8, %s4398_s6  ;;  %8332 = sst [smem:[#allocation29_spill]] %s4586_s29  ;;  %s4592_s6 = sld [smem:[#allocation3 + $0x17]]  ;;  %v754_v30 = vstv %s4594_s0 }
  0x69   : > { %8333 = sst [smem:[#allocation30_spill]] %s4588_s30  ;;  %s4606_s21 = sld [smem:[#allocation3 + $0x52]]  ;;  %v778_v31 = vstv %s4596_s1 }
  0x6a   : > { %8334 = sst [smem:[#allocation31_spill]] %s4590_s5  ;;  %s4608_s26 = sld [smem:[#allocation3 + $0x71]] }
  0x6b   : > { %8336 = sst [smem:[#allocation33_spill]] %s4594_s0  ;;  %s4610_s15 = sld [smem:[#allocation3 + $0x70]]  ;;  %v770_v32 = vstv %s4598_s2 }
  0x6c   : > { %8337 = sst [smem:[#allocation34_spill]] %s4596_s1  ;;  %s4612_s18 = sld [smem:[#allocation3 + $0x73]] }
  0x6d   : > { %8338 = sst [smem:[#allocation35_spill]] %s4598_s2  ;;  %s4614_s4 = sld [smem:[#allocation3 + $0x72]] }
  0x6e   : > { %8335 = sst [smem:[#allocation32_spill]] %s4592_s6  ;;  %s4616_s25 = sld [smem:[#allocation3 + $0x81]]  ;;  %v762_v28 = vstv %s4592_s6 }
  0x6f   : > { %8339 = sst [smem:[#allocation36_spill]] %s4600_s3  ;;  %s4618_s19 = sld [smem:[#allocation3 + $0x80]] }
  0x70   : > { %8340 = sst [smem:[#allocation37_spill]] %s4602_s24  ;;  %s4620_s16 = sld [smem:[#allocation3 + $0x83]] }
  0x71   : > { %8341 = sst [smem:[#allocation38_spill]] %s4604_s17  ;;  %s4622_s3 = sld [smem:[#allocation3 + $0x82]] }
  0x72   : > { %8342 = sst [smem:[#allocation39_spill]] %s4606_s21  ;;  %s4624_s24 = sld [smem:[#allocation3 + $0x1]] }
  0x73   : > { %8343 = sst [smem:[#allocation40_spill]] %s4608_s26  ;;  %s4626_s17 = sld [smem:[#allocation3 + $0x19]] }
  0x74   : > { %8344 = sst [smem:[#allocation41_spill]] %s4610_s15  ;;  %s4628_s21 = sld [smem:[#allocation8 + $0x1]] }
  0x75   : > { %8345 = sst [smem:[#allocation42_spill]] %s4612_s18  ;;  %s4630_s26 = sld [smem:[#allocation3 + $0x18]] }
  0x76   : > { %8346 = sst [smem:[#allocation43_spill]] %s4614_s4  ;;  %s4632_s15 = sld [smem:[#allocation3 + $0x1b]] }
  0x77   : > { %8347 = sst [smem:[#allocation44_spill]] %s4616_s25  ;;  %s4634_s18 = sld [smem:[#allocation3 + $0x1a]] }
  0x78   : > { %8348 = sst [smem:[#allocation45_spill]] %s4618_s19  ;;  %s4636_s4 = sld [smem:[#allocation3 + $0x29]] }
  0x79   : > { %8349 = sst [smem:[#allocation46_spill]] %s4620_s16  ;;  %s4638_s25 = sld [smem:[#allocation3 + $0x28]]  ;;  %v1124_v49 = vstv %s4626_s17 }
  0x7a   : > { %8350 = sst [smem:[#allocation47_spill]] %s4622_s3  ;;  %s4640_s19 = sld [smem:[#allocation3 + $0x2b]] }
  0x7b   : > { %8351 = sst [smem:[#allocation48_spill]] %s4624_s24  ;;  %s4642_s16 = sld [smem:[#allocation3 + $0x2a]] }
  0x7c   : > { %8352 = sst [smem:[#allocation49_spill]] %s4626_s17  ;;  %s4644_s3 = sld [smem:[#allocation3 + $0x45]] }
  0x7d   : > { %8353 = sst [smem:[#allocation50_spill]] %s4628_s21  ;;  %s4646_s24 = sld [smem:[#allocation3 + $0x44]] }
  0x7e   : > { %8354 = sst [smem:[#allocation51_spill]] %s4630_s26  ;;  %s4648_s21 = sld [smem:[#allocation3 + $0x47]] }
  0x7f   : > { %8355 = sst [smem:[#allocation52_spill]] %s4632_s15  ;;  %s4650_s26 = sld [smem:[#allocation3 + $0x46]]  ;;  %v1148_v57 = vstv %s4638_s25 }
  0x80   : > { %8356 = sst [smem:[#allocation53_spill]] %s4634_s18  ;;  %s4652_s15 = sld [smem:[#allocation3 + $0x55]]  ;;  %v1172_v58 = vstv %s4640_s19 }
  0x81   : > { %8357 = sst [smem:[#allocation54_spill]] %s4636_s4  ;;  %s4654_s18 = sld [smem:[#allocation3 + $0x54]] }
  0x82   : > { %8358 = sst [smem:[#allocation55_spill]] %s4638_s25  ;;  %s4656_s4 = sld [smem:[#allocation3 + $0x57]] }
  0x83   : > { %8359 = sst [smem:[#allocation56_spill]] %s4640_s19  ;;  %s4689_s7 = sld [smem:[#allocation8]] }
  0x84   : > { %8360 = sst [smem:[#allocation57_spill]] %s4642_s16  ;;  %s4658_s16 = sld [smem:[#allocation3 + $0x56]] }
  0x85   : > { %8361 = sst [smem:[#allocation58_spill]] %s4644_s3  ;;  %s4691_s8 = sld [smem:[#allocation3 + $0x3]]  ;;  %v872_v3 = vstv %s4650_s26 }
  0x86   : > { %8362 = sst [smem:[#allocation59_spill]] %s4646_s24  ;;  %s4660_s3 = sld [smem:[#allocation3 + $0x75]]  ;;  %v911_v4 = vstv %s4652_s15 }
  0x87   : > { %8363 = sst [smem:[#allocation60_spill]] %s4648_s21  ;;  %s4662_s24 = sld [smem:[#allocation3 + $0x74]] }
  0x88   : > { %8364 = sst [smem:[#allocation61_spill]] %s4650_s26  ;;  %s4664_s21 = sld [smem:[#allocation3 + $0x77]] }
  0x89   : > { %8365 = sst [smem:[#allocation62_spill]] %s4652_s15  ;;  %s4697_s13 = sld [smem:[#allocation8 + $0x3]] }
  0x8a   : > { %8366 = sst [smem:[#allocation63_spill]] %s4654_s18  ;;  %s4666_s18 = sld [smem:[#allocation3 + $0x76]]  ;;  %v924_v7 = vstv %s4658_s16 }
  0x8b   : > { %8367 = sst [smem:[#allocation64_spill]] %s4656_s4  ;;  %s4668_s4 = sld [smem:[#allocation3 + $0x85]] }
  0x8c   : > { %8368 = sst [smem:[#allocation65_spill]] %s4658_s16  ;;  %s8382_s14 = sld [smem:[#allocation37_spill]] }
  0x8d   : > { %8369 = sst [smem:[#allocation66_spill]] %s4660_s3  ;;  %s4673_s3 = sld [smem:[#allocation3 + $0x84]] }
  0x8e   : > { %8370 = sst [smem:[#allocation67_spill]] %s4662_s24  ;;  %s4675_s24 = sld [smem:[#allocation3 + $0x87]] }
  0x8f   : > { %8371 = sst [smem:[#allocation68_spill]] %s4664_s21  ;;  %s8384_s20 = sld [smem:[#allocation38_spill]] }
  0x90   : > { %8372 = sst [smem:[#allocation69_spill]] %s4666_s18  ;;  %s4681_s18 = sld [smem:[#allocation3 + $0x86]] }
  0x91   : > { %8373 = sst [smem:[#allocation70_spill]] %s4668_s4  ;;  %s4683_s4 = sld [smem:[#allocation3]] }
  0x92   : > { %8378 = sst [smem:[#allocation75_spill]] %s4689_s7  ;;  %s8386_s7 = sld [smem:[#allocation40_spill]]  ;;  %v786_v34 = vstv %s8382_s14 }
  0x93   : > { %8374 = sst [smem:[#allocation71_spill]] %s4673_s3  ;;  %s4709_s27 = sld [smem:[#allocation3 + $0x31]] }
  0x94   : > { %8375 = sst [smem:[#allocation72_spill]] %s4675_s24  ;;  %s4707_s23 = sld [smem:[#allocation8 + $0x2]] }
  0x95   : > { %8379 = sst [smem:[#allocation76_spill]] %s4691_s8  ;;  %s8385_s8 = sld [smem:[#allocation39_spill]]  ;;  %v558_v35 = vstv %s8384_s20 }
  0x96   : > { %8376 = sst [smem:[#allocation73_spill]] %s4681_s18  ;;  %s4699_s18 = sld [smem:[#allocation3 + $0x2]] }
  0x97   : > { %8377 = sst [smem:[#allocation74_spill]] %s4683_s4  ;;  %s8380_s4 = sld [smem:[#allocation36_spill]] }
  0x98   : > { %8381 = sst [smem:[#allocation77_spill]] %s4697_s13  ;;  %s8389_s28 = sld [smem:[#allocation41_spill]]  ;;  %v629_v37 = vstv %s8386_s7 }
  0x99   : > { %8388 = sst [smem:[#allocation80_spill]] %s4709_s27  ;;  %s8390_s22 = sld [smem:[#allocation42_spill]] }
  0x9a   : > { %8387 = sst [smem:[#allocation79_spill]] %s4707_s23  ;;  %s8392_s13 = sld [smem:[#allocation44_spill]] }
  0x9b   : > { %s4715_s24 = sld [smem:[#allocation3 + $0x49]]  ;;  %s4717_s3 = sld [smem:[#allocation3 + $0x48]]  ;;  %v545_v36 = vstv %s8385_s8 }
  0x9c   : > { %8383 = sst [smem:[#allocation78_spill]] %s4699_s18  ;;  %s8391_s18 = sld [smem:[#allocation43_spill]] }
  0x9d   : > { %v794_v33 = vstv %s8380_s4  ;;  %s8395_s30 = sld [smem:[#allocation45_spill]]  ;;  %s8397_s5 = sld [smem:[#allocation46_spill]] }
  0x9e   : > { %s4723_s6 = sld [smem:[#allocation3 + $0x30]]  ;;  %s4725_s29 = sld [smem:[#allocation3 + $0x33]]  ;;  %v616_v41 = vstv %s8389_s28 }
  0x9f   : > { %s8399_s4 = sld [smem:[#allocation47_spill]]  ;;  %v655_v42 = vstv %s8390_s22  ;;  %s8401_s1 = sld [smem:[#allocation48_spill]] }
  0xa0   : > { %v681_v44 = vstv %s8392_s13  ;;  %s4733_s8 = sld [smem:[#allocation3 + $0x4b]]  ;;  %s4735_s7 = sld [smem:[#allocation3 + $0x32]] }
  0xa1   : > { %8393 = sst [smem:[#allocation81_spill]] %s4715_s24  ;;  %s8404_s20 = sld [smem:[#allocation51_spill]] }
  0xa2   : > { %8394 = sst [smem:[#allocation82_spill]] %s4717_s3  ;;  %v642_v43 = vstv %s8391_s18  ;;  %s8405_s14 = sld [smem:[#allocation52_spill]] }
  0xa3   : > { %v668_v47 = vstv %s8395_s30  ;;  %v707_v48 = vstv %s8397_s5  ;;  %s8406_s22 = sld [smem:[#allocation53_spill]]  ;;  %s4743_s28 = sld [smem:[#allocation3 + $0x4a]] }
  0xa4   : > { %8396 = sst [smem:[#allocation83_spill]] %s4723_s6  ;;  %s8408_s13 = sld [smem:[#allocation54_spill]] }
  0xa5   : > { %8398 = sst [smem:[#allocation84_spill]] %s4725_s29  ;;  %s4745_s18 = sld [smem:[#allocation3 + $0x61]]  ;;  %v694_v50 = vstv %s8399_s4  ;;  %v346_v52 = vstv %s8401_s1 }
  0xa6   : > { %8402 = sst [smem:[#allocation85_spill]] %s4733_s8  ;;  %s4751_s0 = sld [smem:[#allocation3 + $0x59]] }
  0xa7   : > { %8403 = sst [smem:[#allocation86_spill]] %s4735_s7  ;;  %s4753_s7 = sld [smem:[#allocation3 + $0x58]]  ;;  %v1116_v53 = vstv %s8404_s20 }
  0xa8   : > { %s8220_s29 = smov 127   ;;  %s8412_s5 = sld [smem:[#allocation57_spill]]  ;;  %v1140_v54 = vstv %s8405_s14 }
  0xa9   : > { %8407 = sst [smem:[#allocation87_spill]] %s4743_s28  ;;  %s8413_s30 = sld [smem:[#allocation58_spill]]  ;;  %v1132_v55 = vstv %s8406_s22  ;;  %v1250_v51 = vstv %s4743_s28 }
  0xaa   : > { %s4759_s17 = sld [smem:[#allocation3 + $0x5b]]  ;;  %s4761_s4 = sld [smem:[#allocation3 + $0x5a]]  ;;  %v1156_v56 = vstv %s8408_s13 }
  0xab   : > { %8409 = sst [smem:[#allocation88_spill]] %s4745_s18  ;;  %s8416_s2 = sld [smem:[#allocation59_spill]] }
  0xac   : > { %8410 = sst [smem:[#allocation89_spill]] %s4751_s0  ;;  %s8417_s1 = sld [smem:[#allocation60_spill]] }
  0xad   : > { %8411 = sst [smem:[#allocation90_spill]] %s4753_s7  ;;  %s4767_s7 = sld [smem:[#allocation3 + $0x79]] }
  0xae   : > { %s8419_s14 = sld [smem:[#allocation63_spill]]  ;;  %s8420_s22 = sld [smem:[#allocation64_spill]]  ;;  %v1164_v63 = vstv %s8412_s5 }
  0xaf   : > { %v859_v0 = vstv %s8413_s30  ;;  %s8421_s19 = sld [smem:[#allocation66_spill]]  ;;  %s4781_s25 = sld [smem:[#allocation3 + $0x7b]] }
  0xb0   : > { %8414 = sst [smem:[#allocation91_spill]] %s4759_s17  ;;  %s4783_s20 = sld [smem:[#allocation3 + $0x7a]] }
  0xb1   : > { %8415 = sst [smem:[#allocation92_spill]] %s4761_s4  ;;  %s8423_s13 = sld [smem:[#allocation67_spill]]  ;;  %v846_v1 = vstv %s8416_s2 }
  0xb2   : > { %v885_v2 = vstv %s8417_s1  ;;  %s4789_s9 = sld [smem:[#allocation3 + $0x89]]  ;;  %s8426_s10 = sld [smem:[#allocation69_spill]] }
  0xb3   : > { %s4791_s30 = sld [smem:[#allocation3 + $0x88]]  ;;  %s8428_s5 = smov 127  }
  0xb4   : > { %v898_v5 = vstv %s8419_s14  ;;  %v937_v6 = vstv %s8420_s22  ;;  %s4797_s2 = sld [smem:[#allocation3 + $0x8b]]  ;;  %s8433_s26 = sld [smem:[#allocation73_spill]] }
  0xb5   : > { %8422 = sst [smem:[#allocation94_spill]] %s4781_s25  ;;  %s8430_s25 = sld [smem:[#allocation71_spill]]  ;;  %v1007_v8 = vstv %s8421_s19 }
  0xb6   : > { %8424 = sst [smem:[#allocation95_spill]] %s4783_s20  ;;  %s8431_s20 = sld [smem:[#allocation72_spill]] }
  0xb7   : > { %s4799_s1 = sld [smem:[#allocation3 + $0x8a]]  ;;  %s4819_s19 = sld [smem:[#allocation3 + $0x11]] }
  0xb8   : > { %8425 = sst [smem:[#allocation96_spill]] %s4789_s9  ;;  %s4825_s11 = sld [smem:[#allocation3 + $0x10]] }
  0xb9   : > { %8427 = sst [smem:[#allocation97_spill]] %s4791_s30  ;;  %s4805_s30 = sld [smem:[#allocation3 + $0x60]] }
  0xba   : > { %8432 = sst [smem:[#allocation98_spill]] %s4797_s2  ;;  %s4807_s9 = sld [smem:[#allocation3 + $0x63]] }
  0xbb   : > { %s4827_s12 = sld [smem:[#allocation3 + $0x13]]  ;;  %s4835_s15 = sld [smem:[#allocation3 + $0x21]] }
  0xbc   : > { %s4855_s16 = sld [smem:[#allocation3 + $0x5]]  ;;  %s4857_s27 = sld [smem:[#allocation3 + $0x4]] }
  0xbd   : > { %8434 = sst [smem:[#allocation99_spill]] %s4799_s1  ;;  %s4877_s6 = sld [smem:[#allocation3 + $0x22]] }
  0xbe   : > { %8441 = sst [smem:[#allocation102_spill]] %s4819_s19  ;;  %s4887_s14 = sld [smem:[#allocation3 + $0x43]] }
  0xbf   : > { %8443 = sst [smem:[#allocation103_spill]] %s4825_s11  ;;  %s4893_s18 = sld [smem:[#allocation3 + $0x35]] }
  0xc0   : > { %8436 = sst [smem:[#allocation100_spill]] %s4807_s9  ;;  %s4865_s9 = sld [smem:[#allocation3 + $0x6]] }
  0xc1   : > { %8445 = sst [smem:[#allocation22_spill]] %s4827_s12  ;;  %s4885_s12 = sld [smem:[#allocation3 + $0x40]] }
  0xc2   : > { %s4899_s23 = sld [smem:[#allocation3 + $0x34]]  ;;  %s8467_s22 = smov 127  }
  0xc3   : > { %8460 = sst [smem:[#allocation31_spill]] %s4877_s6  ;;  %s4907_s2 = sld [smem:[#allocation3 + $0x37]] }
  0xc4   : > { %s4909_s1 = sld [smem:[#allocation3 + $0x51]]  ;;  %s8478_s19 = smov 126  }
  0xc5   : > { %s5231_s17 = sld [smem:[#allocation3 + $0x65]]  ;;  %s8522_s4 = sld [smem:[#allocation76_spill]] }
  0xc6   : > { %s8521_s28 = sld [smem:[#allocation74_spill]]  ;;  %s5335_s6 = sld [smem:[#allocation3 + $0x64]] }
  0xc7   : > { %s8533_s11 = sld [smem:[#allocation79_spill]] }
  0xce   : > { %v253_v9 = vpop.permute.xlu0 %252  ;;  %v276_v10 = vpop.permute.xlu1 %275 }
  0xcf   : > { %259 = vst.msk [vmem:[#allocation2 + $0x1] sm:$0xff] %vm258_vm5, %v253_v9  ;;  %281 = vst.msk [vmem:[#allocation2 + $0x19] sm:$0xff] %vm258_vm5, %v276_v10  ;;  %v994_v9 = vstv %s8423_s13  ;;  %v1033_v10 = vstv %s4664_s21  ;;  %s4863_s13 = sld [smem:[#allocation3 + $0x7]]  ;;  %s8454_s21 = smov 126  }
  0xd2   : > { %v255_v20 = vpop.permute.xlu0 %254  ;;  %v278_v21 = vpop.permute.xlu1 %277 }
  0xd3   : > { %260 = vst.msk [vmem:[#allocation2 + $0x9] sm:$0xff] %vm258_vm5, %v255_v20  ;;  %282 = vst.msk [vmem:[#allocation2 + $0x21] sm:$0xff] %vm258_vm5, %v278_v21  ;;  %v1046_v20 = vstv %s8430_s25  ;;  %v1085_v21 = vstv %s8431_s20  ;;  %s4833_s20 = sld [smem:[#allocation3 + $0x12]]  ;;  %s4915_s25 = sld [smem:[#allocation3 + $0x36]] }
  0xd6   : > { %v4727_v38 = vld [vmem:[#allocation2] sm:$0xff]  ;;  %v300_v39 = vpop.permute.xlu1 %299  ;;  %v298_v40 = vpop.permute.xlu0 %297 }
  0xd7   : > { %v367_v45 = vmul.f32 %v366_v11, %v4727_v38  ;;  %v359_v46 = vmul.f32 %v358_v12, %v4727_v38  ;;  %304 = vst.msk [vmem:[#allocation2 + $0x39] sm:$0xff] %vm258_vm5, %v300_v39  ;;  %303 = vst.msk [vmem:[#allocation2 + $0x31] sm:$0xff] %vm258_vm5, %v298_v40  ;;  %v383_v61 = vmul.f32 %v382_v13, %v4727_v38  ;;  %v1020_v13 = vstv %s8426_s10  ;;  %s8240_s10 = smov 126  }
  0xd8   : > { %v375_v62 = vmul.f32 %v374_v14, %v4727_v38  ;;  %v399_v11 = vmul.f32 %v398_v15, %v4727_v38  ;;  %v391_v12 = vmul.f32 %v390_v16, %v4727_v38  ;;  %v1072_v39 = vstv %s8433_s26  ;;  %s4917_s26 = sld [smem:[#allocation3 + $0x50]] }
  0xd9   : > { %369 = vrot.lane.b32.xlu1 %v367_v45, %s8220_s29  ;;  %361 = vrot.lane.b32.xlu0 %v359_v46, %s8220_s29  ;;  %s4769_s29 = sld [smem:[#allocation3 + $0x78]]  ;;  %v4837_v45 = vld [vmem:[#allocation2 + $0x18] sm:$0xff]  ;;  %v1224_v15 = vstv %s4717_s3  ;;  %s8456_s3 = sld [smem:[#allocation94_spill]]  ;;  %v468_v46 = vmul.f32 %v467_v22, %v4727_v38 }
  0xda   : > { %v322_v59 = vpop.permute.xlu1 %321  ;;  %v320_v60 = vpop.permute.xlu0 %319  ;;  %8462 = sst [smem:[#allocation94_spill]] %s4887_s14  ;;  %v779_v16 = vmul.f32 %v778_v31, %v4837_v45  ;;  %v771_v40 = vmul.f32 %v770_v32, %v4837_v45  ;;  %s8531_s14 = sld [smem:[#allocation92_spill]] }
  0xdb   : > { %326 = vst.msk [vmem:[#allocation2 + $0x51] sm:$0xff] %vm258_vm5, %v322_v59  ;;  %325 = vst.msk [vmem:[#allocation2 + $0x49] sm:$0xff] %vm258_vm5, %v320_v60 }
  0xdd   : > { %385 = vrot.lane.b32.xlu1 %v383_v61, %s8428_s5  ;;  %377 = vrot.lane.b32.xlu0 %v375_v62, %s8428_s5  ;;  %s4817_s5 = sld [smem:[#allocation3 + $0x62]]  ;;  %v415_v62 = vmul.f32 %v414_v17, %v4727_v38  ;;  %v1263_v61 = vstv %s4733_s8  ;;  %v747_v17 = vmul.f32 %v746_v26, %v4837_v45  ;;  %s4879_s8 = sld [smem:[#allocation3 + $0x41]] }
  0xde   : > { %8469 = sst [smem:[#allocation32_spill]] %s4917_s26  ;;  %s8527_s26 = sld [smem:[#allocation75_spill]] }
  0xdf   : > { %8418 = sst [smem:[#allocation93_spill]] %s4769_s29  ;;  %s8429_s29 = sld [smem:[#allocation70_spill]] }
  0xe1   : > { %401 = vrot.lane.b32.xlu1 %v399_v11, %s8240_s10  ;;  %393 = vrot.lane.b32.xlu0 %v391_v12, %s8240_s10  ;;  %s4845_s10 = sld [smem:[#allocation3 + $0x23]]  ;;  %v407_v11 = vmul.f32 %v406_v18, %v4727_v38  ;;  %v1237_v12 = vstv %s4715_s24  ;;  %s8457_s24 = sld [smem:[#allocation95_spill]]  ;;  %v739_v18 = vmul.f32 %v738_v27, %v4837_v45  ;;  %v4931_v27 = vld [vmem:[#allocation2 + $0x8] sm:$0x3] }
  0xe2   : > { %v482_v59 = vmul.f32 %v480_v19, %v4931_v27  ;;  %v469_v32 = vmul.f32 %v467_v22, %v4931_v27  ;;  %v507_v22 = vmul.f32 %v506_v23, %v4727_v38  ;;  %v495_v31 = vmul.f32 %v493_v24, %v4931_v27 }
  0xe3   : > { %8439 = sst [smem:[#allocation101_spill]] %s4817_s5  ;;  %v560_v26 = vmul.f32 %v558_v35, %v4931_v27  ;;  %s8523_s5 = sld [smem:[#allocation78_spill]] }
  0xe5   : > { %v1059_v14 = vstv %s8429_s29  ;;  %s4843_s29 = sld [smem:[#allocation3 + $0x20]]  ;;  %417 = vrot.lane.b32.xlu1 %v415_v62, %s8454_s21  ;;  %409 = vrot.lane.b32.xlu0 %v407_v11, %s8454_s21  ;;  %v1289_v62 = vstv %s4751_s0  ;;  %s8461_s21 = sld [smem:[#allocation100_spill]]  ;;  %v472_v11 = vrot.slane %v468_v46, 1  ;;  %v473_v46 = vrot.slane %v469_v32, 1 }
  0xe6   : > { %s4901_s0 = sld [smem:[#allocation3 + $0x42]]  ;;  %8468 = sst [smem:[#allocation100_spill]] %s4909_s1 }
  0xe7   : > { %8451 = sst [smem:[#allocation29_spill]] %s4845_s10  ;;  %s8526_s1 = sld [smem:[#allocation50_spill]] }
  0xe8   : > { %s8530_s10 = sld [smem:[#allocation77_spill]] }
  0xe9   : > { %749 = vrot.lane.b32.xlu1 %v747_v17, %s8467_s22  ;;  %741 = vrot.lane.b32.xlu0 %v739_v18, %s8467_s22  ;;  %v763_v17 = vmul.f32 %v762_v28, %v4837_v45  ;;  %v755_v18 = vmul.f32 %v754_v30, %v4837_v45  ;;  %v4966_v30 = vld [vmem:[#allocation2 + $0x30] sm:$0xff]  ;;  %v795_v28 = vmul.f32 %v794_v33, %v4837_v45 }
  0xea   : > { %v494_v33 = vmul.f32 %v493_v24, %v4727_v38  ;;  %v1141_v24 = vmul.f32 %v1140_v54, %v4966_v30  ;;  %v521_v54 = vmul.f32 %v519_v29, %v4931_v27 }
  0xeb   : > { %8449 = sst [smem:[#allocation23_spill]] %s4843_s29  ;;  %s8528_s29 = sld [smem:[#allocation91_spill]] }
  0xec   : > { %8466 = sst [smem:[#allocation95_spill]] %s4901_s0  ;;  %s8524_s0 = sld [smem:[#allocation90_spill]] }
  0xed   : > { %765 = vrot.lane.b32.xlu1 %v763_v17, %s8467_s22  ;;  %757 = vrot.lane.b32.xlu0 %v755_v18, %s8467_s22  ;;  %v481_v17 = vmul.f32 %v480_v19, %v4727_v38  ;;  %v508_v19 = vmul.f32 %v506_v23, %v4931_v27  ;;  %v1125_v23 = vmul.f32 %v1124_v49, %v4966_v30 }
  0xee   : > { %v1133_v18 = vmul.f32 %v1132_v55, %v4966_v30  ;;  %v520_v49 = vmul.f32 %v519_v29, %v4727_v38  ;;  %v1165_v55 = vmul.f32 %v1164_v63, %v4966_v30  ;;  %v559_v29 = vmul.f32 %v558_v35, %v4727_v38 }
  0xef   : > { %v485_v60 = vrot.slane %v481_v17, 1  ;;  %v534_v17 = vmul.f32 %v532_v25, %v4931_v27  ;;  %v512_v32 = vrot.slane %v508_v19, 1  ;;  %v547_v63 = vmul.f32 %v545_v36, %v4931_v27 }
  0xf0   : > { %v498_v19 = vrot.slane %v494_v33, 1  ;;  %v525_v35 = vrot.slane %v521_v54, 1  ;;  %v630_v33 = vmul.f32 %v629_v37, %v4727_v38 }
  0xf1   : > { %781 = vrot.lane.b32.xlu1 %v779_v16, %s8478_s19  ;;  %773 = vrot.lane.b32.xlu0 %v771_v40, %s8478_s19  ;;  %v787_v16 = vmul.f32 %v786_v34, %v4837_v45  ;;  %v486_v34 = vrot.slane %v482_v59, 1  ;;  %v1117_v59 = vmul.f32 %v1116_v53, %v4966_v30  ;;  %v533_v40 = vmul.f32 %v532_v25, %v4727_v38 }
  0xf2   : > { %v1149_v53 = vmul.f32 %v1148_v57, %v4966_v30  ;;  %v5020_v25 = vmul.f32 %v1172_v58, %v4966_v30  ;;  %v511_v58 = vrot.slane %v507_v22, 1  ;;  %v524_v22 = vrot.slane %v520_v49, 1 }
  0xf3   : > { %v5034_v57 = vsel %vm427_vm6, %v485_v60, %v486_v34  ;;  %v631_v34 = vmul.f32 %v629_v37, %v4931_v27  ;;  %v617_v49 = vmul.f32 %v616_v41, %v4727_v38  ;;  %v644_v37 = vmul.f32 %v642_v43, %v4931_v27 }
  0xf4   : > { %v5049_v60 = vsel %vm427_vm6, %v511_v58, %v512_v32  ;;  %v618_v32 = vmul.f32 %v616_v41, %v4931_v27  ;;  %v670_v41 = vmul.f32 %v668_v47, %v4931_v27 }
  0xf5   : > { %797 = vrot.lane.b32.xlu1 %v795_v28, %s8478_s19  ;;  %789 = vrot.lane.b32.xlu0 %v787_v16, %s8478_s19  ;;  %v1157_v28 = vmul.f32 %v1156_v56, %v4966_v30  ;;  %v499_v56 = vrot.slane %v495_v31, 1  ;;  %v538_v16 = vrot.slane %v534_v17, 1  ;;  %v5043_v31 = vsel %vm427_vm6, %v472_v11, %v473_v46 }
  0xf6   : > { %v537_v17 = vrot.slane %v533_v40, 1  ;;  %v551_v46 = vrot.slane %v547_v63, 1  ;;  %v643_v63 = vmul.f32 %v642_v43, %v4727_v38 }
  0xf7   : > { %v5055_v11 = vsel %vm427_vm6, %v498_v19, %v499_v56  ;;  %v635_v56 = vrot.slane %v631_v34, 2  ;;  %v682_v19 = vmul.f32 %v681_v44, %v4727_v38  ;;  %v648_v34 = vrot.slane %v644_v37, 2 }
  0xf8   : > { %v5058_v40 = vsel %vm427_vm6, %v537_v17, %v538_v16  ;;  %v656_v16 = vmul.f32 %v655_v42, %v4727_v38  ;;  %v621_v17 = vrot.slane %v617_v49, 2  ;;  %v695_v49 = vmul.f32 %v694_v50, %v4727_v38 }
  0xf9   : > { %1127 = vrot.lane.b32.xlu1 %v1125_v23, %s8467_s22  ;;  %1119 = vrot.lane.b32.xlu0 %v1117_v59, %s8467_s22  ;;  %v546_v23 = vmul.f32 %v545_v36, %v4727_v38  ;;  %v564_v36 = vrot.slane %v560_v26, 1  ;;  %v563_v59 = vrot.slane %v559_v29, 1  ;;  %v657_v26 = vmul.f32 %v655_v42, %v4931_v27 }
  0xfa   : > { %v634_v29 = vrot.slane %v630_v33, 2  ;;  %v674_v33 = vrot.slane %v670_v41, 2 }
  0xfb   : > { %v550_v54 = vrot.slane %v546_v23, 1  ;;  %v5090_v58 = vsel %vm427_vm6, %v563_v59, %v564_v36  ;;  %v622_v23 = vrot.slane %v618_v32, 2  ;;  %v661_v43 = vrot.slane %v657_v26, 2 }
  0xfc   : > { %v660_v36 = vrot.slane %v656_v16, 2  ;;  %v709_v59 = vmul.f32 %v707_v48, %v4931_v27  ;;  %v696_v32 = vmul.f32 %v694_v50, %v4931_v27  ;;  %v860_v26 = vmul.f32 %v859_v0, %v4837_v45 }
  0xfd   : > { %1143 = vrot.lane.b32.xlu1 %v1141_v24, %s8467_s22  ;;  %1135 = vrot.lane.b32.xlu0 %v1133_v18, %s8467_s22  ;;  %v683_v18 = vmul.f32 %v681_v44, %v4931_v27  ;;  %v5081_v24 = vsel %vm427_vm6, %v524_v22, %v525_v35  ;;  %v5101_v42 = vsel %vm427_vm6, %v550_v54, %v551_v46  ;;  %v5106_v35 = vld [vmem:[#allocation2 + $0x20] sm:$0x3]  ;;  %v647_v46 = vrot.slane %v643_v63, 2 }
  0xfe   : > { %v669_v22 = vmul.f32 %v668_v47, %v4727_v38  ;;  %v686_v47 = vrot.slane %v682_v19, 2  ;;  %v5127_v54 = vsel %vm576_vm7, %v621_v17, %v622_v23  ;;  %v861_v37 = vmul.f32 %v859_v0, %v5106_v35 }
  0xff   : > { %v687_v44 = vrot.slane %v683_v18, 2  ;;  %v5136_v18 = vsel %vm576_vm7, %v660_v36, %v661_v43  ;;  %v5139_v50 = vsel %vm576_vm7, %v647_v46, %v648_v34  ;;  %v713_v16 = vrot.slane %v709_v59, 2 }
 0x100   : > { %v847_v0 = vmul.f32 %v846_v1, %v4837_v45  ;;  %v848_v41 = vmul.f32 %v846_v1, %v5106_v35  ;;  %v700_v63 = vrot.slane %v696_v32, 2  ;;  %v886_v19 = vmul.f32 %v885_v2, %v4837_v45 }
 0x101   : > { %1159 = vrot.lane.b32.xlu1 %v1157_v28, %s8478_s19  ;;  %1151 = vrot.lane.b32.xlu0 %v1149_v53, %s8478_s19  ;;  %v708_v28 = vmul.f32 %v707_v48, %v4727_v38  ;;  %v5112_v53 = vsel %vm576_vm7, %v634_v29, %v635_v56  ;;  %v673_v48 = vrot.slane %v669_v22, 2  ;;  %v699_v29 = vrot.slane %v695_v49, 2 }
 0x102   : > { %v887_v17 = vmul.f32 %v885_v2, %v5106_v35  ;;  %v864_v23 = vrot.slane %v860_v26, 1  ;;  %v865_v22 = vrot.slane %v861_v37, 1  ;;  %v873_v1 = vmul.f32 %v872_v3, %v4837_v45 }
 0x103   : > { %v5145_v56 = vsel %vm576_vm7, %v673_v48, %v674_v33  ;;  %v874_v43 = vmul.f32 %v872_v3, %v5106_v35  ;;  %v912_v34 = vmul.f32 %v911_v4, %v4837_v45  ;;  %v913_v2 = vmul.f32 %v911_v4, %v5106_v35 }
 0x104   : > { %v938_v36 = vmul.f32 %v937_v6, %v4837_v45  ;;  %v939_v3 = vmul.f32 %v937_v6, %v5106_v35  ;;  %v5191_v4 = vsel %vm576_vm7, %v699_v29, %v700_v63  ;;  %v890_v59 = vrot.slane %v886_v19, 1 }
 0x105   : > { %1175 = vrot.lane.b32.xlu1 %v5020_v25, %s8478_s19  ;;  %1167 = vrot.lane.b32.xlu0 %v1165_v55, %s8478_s19  ;;  %v5142_v25 = vsel %vm576_vm7, %v686_v47, %v687_v44  ;;  %v712_v55 = vrot.slane %v708_v28, 2  ;;  %v851_v44 = vrot.slane %v847_v0, 1  ;;  %v852_v28 = vrot.slane %v848_v41, 1 }
 0x106   : > { %v891_v46 = vrot.slane %v887_v17, 1  ;;  %v878_v6 = vrot.slane %v874_v43, 1  ;;  %v925_v47 = vmul.f32 %v924_v7, %v4837_v45  ;;  %v926_v49 = vmul.f32 %v924_v7, %v5106_v35 }
 0x107   : > { %v5188_v33 = vsel %vm576_vm7, %v712_v55, %v713_v16  ;;  %v916_v32 = vrot.slane %v912_v34, 1  ;;  %v917_v48 = vrot.slane %v913_v2, 1  ;;  %v942_v55 = vrot.slane %v938_v36, 1  ;;  %v5267_v36 = vld [vmem:[#allocation2 + $0x38] sm:$0x3] }
 0x108   : > { %v943_v16 = vrot.slane %v939_v3, 1  ;;  %v1008_v0 = vmul.f32 %v1007_v8, %v4837_v45  ;;  %v1009_v7 = vmul.f32 %v1007_v8, %v5106_v35  ;;  %v995_v41 = vmul.f32 %v994_v9, %v4837_v45 }
 0x109   : > { %488 = vrot.lane.b32.xlu1 %v5034_v57, %s8467_s22  ;;  %475 = vrot.lane.b32.xlu0 %v5043_v31, %s8467_s22  ;;  %v899_v57 = vmul.f32 %v898_v5, %v4837_v45  ;;  %v900_v31 = vmul.f32 %v898_v5, %v5106_v35  ;;  %v877_v5 = vrot.slane %v873_v1, 1  ;;  %v996_v29 = vmul.f32 %v994_v9, %v5106_v35 }
 0x10a   : > { %v929_v63 = vrot.slane %v925_v47, 1  ;;  %v930_v19 = vrot.slane %v926_v49, 1  ;;  %v1034_v17 = vmul.f32 %v1033_v10, %v4837_v45  ;;  %v1035_v8 = vmul.f32 %v1033_v10, %v5106_v35 }
 0x10b   : > { %v903_v26 = vrot.slane %v899_v57, 1  ;;  %v904_v37 = vrot.slane %v900_v31, 1  ;;  %v5237_v9 = vsel %vm427_vm6, %v877_v5, %v878_v6  ;;  %v1022_v10 = vmul.f32 %v1020_v13, %v5106_v35 }
 0x10c   : > { %v1060_v1 = vmul.f32 %v1059_v14, %v4837_v45  ;;  %v1061_v43 = vmul.f32 %v1059_v14, %v5106_v35  ;;  %v1012_v34 = vrot.slane %v1008_v0, 2  ;;  %v1013_v2 = vrot.slane %v1009_v7, 2 }
 0x10d   : > { %514 = vrot.lane.b32.xlu1 %v5049_v60, %s8467_s22  ;;  %501 = vrot.lane.b32.xlu0 %v5055_v11, %s8467_s22  ;;  %v5204_v60 = vsel %vm427_vm6, %v864_v23, %v865_v22  ;;  %v5207_v11 = vsel %vm427_vm6, %v851_v44, %v852_v28  ;;  %v5234_v23 = vsel %vm427_vm6, %v890_v59, %v891_v46  ;;  %v999_v57 = vrot.slane %v995_v41, 2 }
 0x10e   : > { %v1021_v22 = vmul.f32 %v1020_v13, %v4837_v45  ;;  %v1000_v31 = vrot.slane %v996_v29, 2  ;;  %v5262_v13 = vsel %vm427_vm6, %v942_v55, %v943_v16  ;;  %v5265_v44 = vsel %vm427_vm6, %v929_v63, %v930_v19 }
 0x10f   : > { %v1038_v28 = vrot.slane %v1034_v17, 2  ;;  %v1039_v14 = vrot.slane %v1035_v8, 2  ;;  %v1047_v3 = vmul.f32 %v1046_v20, %v4837_v45  ;;  %v1087_v59 = vmul.f32 %v1085_v21, %v5106_v35 }
 0x110   : > { %v1025_v46 = vrot.slane %v1021_v22, 2  ;;  %v1026_v5 = vrot.slane %v1022_v10, 2  ;;  %v1064_v6 = vrot.slane %v1060_v1, 2  ;;  %v1065_v47 = vrot.slane %v1061_v43, 2 }
 0x111   : > { %540 = vrot.lane.b32.xlu1 %v5058_v40, %s8478_s19  ;;  %527 = vrot.lane.b32.xlu0 %v5081_v24, %s8478_s19  ;;  %v5240_v40 = vsel %vm427_vm6, %v916_v32, %v917_v48  ;;  %v5243_v24 = vsel %vm427_vm6, %v903_v26, %v904_v37  ;;  %v5282_v49 = vsel %vm576_vm7, %v1012_v34, %v1013_v2  ;;  %v1051_v55 = vrot.slane %v1047_v3, 2 }
 0x112   : > { %v5285_v32 = vsel %vm576_vm7, %v999_v57, %v1000_v31  ;;  %v1074_v48 = vmul.f32 %v1072_v39, %v5106_v35  ;;  %v1238_v26 = vmul.f32 %v1237_v12, %v4966_v30  ;;  %v1091_v16 = vrot.slane %v1087_v59, 2 }
 0x113   : > { %v5308_v0 = vsel %vm576_vm7, %v1025_v46, %v1026_v5  ;;  %v1225_v7 = vmul.f32 %v1224_v15, %v4966_v30  ;;  %v1264_v63 = vmul.f32 %v1263_v61, %v4966_v30  ;;  %v1265_v19 = vmul.f32 %v1263_v61, %v5267_v36 }
 0x114   : > { %v1078_v29 = vrot.slane %v1074_v48, 2  ;;  %v1242_v17 = vrot.slane %v1238_v26, 1  ;;  %v1252_v22 = vmul.f32 %v1250_v51, %v5267_v36  ;;  %v8525_v34 = vstv %s8521_s28  ;;  %s8540_s28 = sld [smem:[#allocation93_spill]] }
 0x115   : > { %566 = vrot.lane.b32.xlu1 %v5090_v58, %s8478_s19  ;;  %553 = vrot.lane.b32.xlu0 %v5101_v42, %s8478_s19  ;;  %v1048_v58 = vmul.f32 %v1046_v20, %v5106_v35  ;;  %v1086_v42 = vmul.f32 %v1085_v21, %v4837_v45  ;;  %v1073_v20 = vmul.f32 %v1072_v39, %v4837_v45  ;;  %v1229_v1 = vrot.slane %v1225_v7, 1 }
 0x116   : > { %v5298_v21 = vsel %vm576_vm7, %v1038_v28, %v1039_v14  ;;  %v1239_v45 = vmul.f32 %v1237_v12, %v5267_v36  ;;  %v1226_v12 = vmul.f32 %v1224_v15, %v5267_v36  ;;  %v1251_v15 = vmul.f32 %v1250_v51, %v4966_v30 }
 0x117   : > { %v1052_v39 = vrot.slane %v1048_v58, 2  ;;  %v1077_v41 = vrot.slane %v1073_v20, 2  ;;  %v347_v51 = vmul.f32 %v346_v52, %v4727_v38  ;;  %v343_v2 = vmul.f32 %v8525_v34, %v4727_v38 }
 0x118   : > { %v1243_v8 = vrot.slane %v1239_v45, 1  ;;  %v1230_v43 = vrot.slane %v1226_v12, 1  ;;  %v1268_v31 = vrot.slane %v1264_v63, 1  ;;  %v1269_v28 = vrot.slane %v1265_v19, 1 }
 0x119   : > { %637 = vrot.lane.b32.xlu1 %v5112_v53, %s8467_s22  ;;  %624 = vrot.lane.b32.xlu0 %v5127_v54, %s8467_s22  ;;  %v1090_v53 = vrot.slane %v1086_v42, 2  ;;  %v5311_v54 = vsel %vm576_vm7, %v1064_v6, %v1065_v47  ;;  %v5338_v10 = vsel %vm576_vm7, %v1051_v55, %v1052_v39  ;;  %v5356_v57 = vsel %vm576_vm7, %v1077_v41, %v1078_v29 }
 0x11a   : > { %v5366_v52 = vsel %vm427_vm6, %v1242_v17, %v1243_v8  ;;  %v1255_v3 = vrot.slane %v1251_v15, 1  ;;  %v1256_v58 = vrot.slane %v1252_v22, 1  ;;  %v8532_v42 = vstv %s8523_s5  ;;  %s8550_s5 = sld [smem:[#allocation97_spill]] }
 0x11b   : > { %v5341_v61 = vsel %vm576_vm7, %v1090_v53, %v1091_v16  ;;  %v351_v59 = vmul.f32 %v8532_v42, %v4727_v38  ;;  %v8534_v6 = vstv %s8524_s0  ;;  %v5378_v20 = vsel %vm427_vm6, %v1229_v1, %v1230_v43  ;;  %s5440_s0 = sld [smem:[#allocation3 + $0x1d]] }
 0x11c   : > { %v8535_v47 = vmov %v8534_v6  ;;  %v8536_v48 = vstv %s8526_s1  ;;  %v8537_v45 = vstv %s8527_s26  ;;  %v8538_v39 = vstv %s8528_s29  ;;  %s8553_s1 = sld [smem:[#allocation98_spill]]  ;;  %s5459_s26 = sld [smem:[#allocation3 + $0x1f]] }
 0x11d   : > { %663 = vrot.lane.b32.xlu1 %v5136_v18, %s8467_s22  ;;  %650 = vrot.lane.b32.xlu0 %v5139_v50, %s8467_s22  ;;  %v1290_v18 = vmul.f32 %v1289_v62, %v4966_v30  ;;  %v1291_v50 = vmul.f32 %v1289_v62, %v5267_v36  ;;  %v8529_v62 = vstv %s8522_s4  ;;  %v5382_v26 = vadd.f32 %v347_v51, %v8536_v48  ;;  %s8546_s4 = sld [smem:[#allocation96_spill]]  ;;  %s5475_s29 = sld [smem:[#allocation3 + $0x1e]] }
 0x11e   : > { %v355_v14 = vmul.f32 %v8529_v62, %v4727_v38  ;;  %v5386_v55 = vadd.f32 %v343_v2, %v8537_v45  ;;  %v1316_v53 = vmul.f32 %v8538_v39, %v4966_v30  ;;  %v5392_v16 = vsel %vm427_vm6, %v1268_v31, %v1269_v28 }
 0x11f   : > { %v1294_v46 = vrot.slane %v1290_v18, 1  ;;  %v1295_v5 = vrot.slane %v1291_v50, 1  ;;  %v8539_v7 = vstv %s8530_s10  ;;  %v8541_v41 = vmov %v8538_v39  ;;  %s8561_s10 = sld [smem:[#allocation99_spill]] }
 0x120   : > { %v5396_v12 = vadd.f32 %v355_v14, %v8539_v7  ;;  %v1317_v29 = vmul.f32 %v8541_v41, %v5267_v36  ;;  %v8542_v63 = vstv %s8531_s14  ;;  %v5409_v17 = vsel %vm427_vm6, %v1255_v3, %v1256_v58  ;;  %s5486_s14 = sld [smem:[#allocation3 + $0x2d]] }
 0x121   : > { %689 = vrot.lane.b32.xlu1 %v5142_v25, %s8478_s19  ;;  %676 = vrot.lane.b32.xlu0 %v5145_v56, %s8478_s19  ;;  %v1277_v25 = vmul.f32 %v8534_v6, %v4966_v30  ;;  %v1278_v56 = vmul.f32 %v8535_v47, %v5267_v36  ;;  %v1303_v19 = vmul.f32 %v8542_v63, %v4966_v30  ;;  %v8543_v8 = vstv %s8533_s11  ;;  %s5492_s11 = sld [smem:[#allocation3 + $0x2c]] }
 0x122   : > { %v5413_v15 = vadd.f32 %v351_v59, %v8543_v8  ;;  %v8544_v22 = vmov %v8542_v63  ;;  %v5420_v1 = vsel %vm427_vm6, %v1294_v46, %v1295_v5  ;;  %v8545_v51 = vstv %s4767_s7  ;;  %s5442_s7 = sld [smem:[#allocation3 + $0x4d]] }
 0x123   : > { %v1304_v18 = vmul.f32 %v8544_v22, %v5267_v36  ;;  %v1281_v43 = vrot.slane %v1277_v25, 1  ;;  %v1320_v34 = vrot.slane %v1316_v53, 1  ;;  %v8547_v2 = vmov %v8545_v51 }
 0x124   : > { %v1387_v31 = vmul.f32 %v8547_v2, %v5267_v36  ;;  %v8548_v28 = vstv %s8540_s28  ;;  %v1321_v58 = vrot.slane %v1317_v29, 1  ;;  %v1307_v42 = vrot.slane %v1303_v19, 1  ;;  %s5497_s28 = sld [smem:[#allocation3 + $0x2f]] }
 0x125   : > { %715 = vrot.lane.b32.xlu1 %v5188_v33, %s8478_s19  ;;  %702 = vrot.lane.b32.xlu0 %v5191_v4, %s8478_s19  ;;  %v1282_v33 = vrot.slane %v1278_v56, 1  ;;  %v1386_v4 = vmul.f32 %v8545_v51, %v4966_v30  ;;  %v1373_v62 = vmul.f32 %v8548_v28, %v4966_v30  ;;  %v8549_v14 = vmov %v8548_v28 }
 0x126   : > { %v1374_v3 = vmul.f32 %v8549_v14, %v5267_v36  ;;  %v8551_v59 = vstv %s8456_s3  ;;  %v1308_v25 = vrot.slane %v1304_v18, 1  ;;  %v8554_v47 = vstv %s8457_s24  ;;  %s5457_s3 = sld [smem:[#allocation3 + $0x1c]] }
 0x127   : > { %v1412_v46 = vmul.f32 %v8551_v59, %v4966_v30  ;;  %v8552_v5 = vmov %v8551_v59  ;;  %v1399_v56 = vmul.f32 %v8554_v47, %v4966_v30  ;;  %v8555_v48 = vmov %v8554_v47  ;;  %s5470_s24 = sld [smem:[#allocation3 + $0x4c]] }
 0x128   : > { %v1413_v6 = vmul.f32 %v8552_v5, %v5267_v36  ;;  %v1400_v45 = vmul.f32 %v8555_v48, %v5267_v36  ;;  %v8556_v39 = vstv %s8546_s4  ;;  %v1391_v8 = vrot.slane %v1387_v31, 2  ;;  %s5508_s4 = sld [smem:[#allocation3 + $0x4f]]  ;;  %v5510_v48 = vld [vmem:[#allocation2 + $0x48] sm:$0xff] }
 0x129   : > { %867 = vrot.lane.b32.xlu1 %v5204_v60, %s8467_s22  ;;  %854 = vrot.lane.b32.xlu0 %v5207_v11, %s8467_s22  ;;  %v1438_v53 = vmul.f32 %v8556_v39, %v4966_v30  ;;  %v1390_v60 = vrot.slane %v1386_v4, 2  ;;  %v8557_v7 = vmov %v8556_v39  ;;  %v8558_v11 = vstv %s8550_s5  ;;  %s5518_s5 = sld [smem:[#allocation3 + $0x2e]] }
 0x12a   : > { %v1439_v41 = vmul.f32 %v8557_v7, %v5267_v36  ;;  %v1425_v29 = vmul.f32 %v8558_v11, %v4966_v30  ;;  %v8559_v63 = vmov %v8558_v11  ;;  %v1377_v22 = vrot.slane %v1373_v62, 2 }
 0x12b   : > { %v1426_v19 = vmul.f32 %v8559_v63, %v5267_v36  ;;  %v1378_v18 = vrot.slane %v1374_v3, 2  ;;  %v8560_v51 = vstv %s8553_s1  ;;  %v5478_v4 = vsel %vm427_vm6, %v1281_v43, %v1282_v33  ;;  %s5533_s1 = sld [smem:[#allocation3 + $0x4e]] }
 0x12c   : > { %v1464_v2 = vmul.f32 %v8560_v51, %v4966_v30  ;;  %v5481_v28 = vsel %vm427_vm6, %v1320_v34, %v1321_v58  ;;  %v1416_v14 = vrot.slane %v1412_v46, 2  ;;  %v8562_v59 = vmov %v8560_v51 }
 0x12d   : > { %v1465_v5 = vmul.f32 %v8562_v59, %v5267_v36  ;;  %893 = vrot.lane.b32.xlu1 %v5234_v23, %s8467_s22  ;;  %880 = vrot.lane.b32.xlu0 %v5237_v9, %s8467_s22  ;;  %v1417_v31 = vrot.slane %v1413_v6, 2  ;;  %v1403_v62 = vrot.slane %v1399_v56, 2  ;;  %v1404_v3 = vrot.slane %v1400_v45, 2  ;;  %v5512_v45 = vld [vmem:[#allocation2 + $0x50] sm:$0x3] }
 0x12e   : > { %v1442_v43 = vrot.slane %v1438_v53, 2  ;;  %v1443_v33 = vrot.slane %v1439_v41, 2  ;;  %v1429_v34 = vrot.slane %v1425_v29, 2  ;;  %v1430_v58 = vrot.slane %v1426_v19, 2 }
 0x12f   : > { %v8563_v46 = vstv %s8561_s10  ;;  %v5500_v23 = vsel %vm427_vm6, %v1307_v42, %v1308_v25  ;;  %v5503_v9 = vsel %vm576_vm7, %v1390_v60, %v1391_v8  ;;  %v5506_v6 = vsel %vm576_vm7, %v1377_v22, %v1378_v18  ;;  %s8571_s10 = sld [smem:[#allocation84_spill]] }
 0x130   : > { %v1451_v47 = vmul.f32 %v8563_v46, %v4966_v30  ;;  %v1468_v56 = vrot.slane %v1464_v2, 2  ;;  %v1469_v30 = vrot.slane %v1465_v5, 2  ;;  %v8564_v42 = vmov %v8563_v46 }
 0x131   : > { %v1452_v25 = vmul.f32 %v8564_v42, %v5267_v36  ;;  %v1502_v39 = vstv %s5440_s0  ;;  %v1615_v53 = vstv %s5442_s7  ;;  %919 = vrot.lane.b32.xlu1 %v5240_v40, %s8478_s19  ;;  %906 = vrot.lane.b32.xlu0 %v5243_v24, %s8478_s19  ;;  %v5526_v60 = vsel %vm576_vm7, %v1416_v14, %v1417_v31  ;;  %s8565_s0 = sld [smem:[#allocation80_spill]]  ;;  %s8566_s7 = sld [smem:[#allocation83_spill]] }
 0x132   : > { %v5529_v7 = vsel %vm576_vm7, %v1403_v62, %v1404_v3  ;;  %v1494_v41 = vstv %s5457_s3  ;;  %v1518_v11 = vstv %s5459_s26  ;;  %v5536_v29 = vsel %vm576_vm7, %v1442_v43, %v1443_v33  ;;  %s5557_s3 = sld [smem:[#allocation3 + $0x5d]]  ;;  %s5577_s26 = sld [smem:[#allocation3 + $0x5c]] }
 0x133   : > { %v5539_v63 = vsel %vm576_vm7, %v1429_v34, %v1430_v58  ;;  %v1455_v40 = vrot.slane %v1451_v47, 2  ;;  %v1602_v24 = vstv %s5470_s24  ;;  %v5543_v19 = vmul.f32 %v1502_v39, %v5510_v48  ;;  %s5583_s24 = sld [smem:[#allocation3 + $0x5f]] }
 0x134   : > { %v1510_v8 = vstv %s5475_s29  ;;  %v1616_v22 = vmul.f32 %v1615_v53, %v5510_v48  ;;  %v1617_v18 = vmul.f32 %v1615_v53, %v5512_v45  ;;  %v5549_v51 = vsel %vm576_vm7, %v1468_v56, %v1469_v30  ;;  %s5595_s29 = sld [smem:[#allocation3 + $0x5e]] }
 0x135   : > { %v1456_v2 = vrot.slane %v1452_v25, 2  ;;  %v5552_v14 = vmul.f32 %v1494_v41, %v5510_v48  ;;  %v5555_v59 = vmul.f32 %v1518_v11, %v5510_v48  ;;  %945 = vrot.lane.b32.xlu1 %v5262_v13, %s8478_s19  ;;  %932 = vrot.lane.b32.xlu0 %v5265_v44, %s8478_s19  ;;  %v1534_v5 = vstv %s5486_s14  ;;  %s5602_s14 = sld [smem:[#allocation3 + $0x7d]] }
 0x136   : > { %v1603_v31 = vmul.f32 %v1602_v24, %v5510_v48  ;;  %v1604_v62 = vmul.f32 %v1602_v24, %v5512_v45  ;;  %v5570_v33 = vmul.f32 %v1510_v8, %v5510_v48  ;;  %v1526_v34 = vstv %s5492_s11  ;;  %s8573_s11 = sld [smem:[#allocation86_spill]] }
 0x137   : > { %v8567_v3 = vstv %s8565_s0  ;;  %v1550_v58 = vstv %s5497_s28  ;;  %v1620_v44 = vrot.slane %v1616_v22, 1  ;;  %v1621_v47 = vrot.slane %v1617_v18, 1  ;;  %s5643_s28 = sld [smem:[#allocation3 + $0x7c]]  ;;  %s5685_s0 = sld [smem:[#allocation3 + $0x8d]] }
 0x138   : > { %v436_v43 = vmul.f32 %v8567_v3, %v4931_v27  ;;  %v8568_v13 = vmov %v8567_v3  ;;  %v8569_v56 = vstv %s8566_s7  ;;  %v1641_v42 = vstv %s5508_s4  ;;  %s5651_s4 = sld [smem:[#allocation3 + $0x7f]]  ;;  %s5691_s7 = sld [smem:[#allocation3 + $0x8c]] }
 0x139   : > { %v435_v46 = vmul.f32 %v8568_v13, %v4727_v38  ;;  %v424_v30 = vmul.f32 %v8569_v56, %v4931_v27  ;;  %v5586_v25 = vsel %vm576_vm7, %v1455_v40, %v1456_v2  ;;  %v5589_v39 = vmul.f32 %v1534_v5, %v5510_v48  ;;  %1015 = vrot.lane.b32.xlu1 %v5282_v49, %s8467_s22 }
 0x13a   : > { %v1542_v53 = vstv %s5518_s5  ;;  %v8570_v41 = vmov %v8569_v56  ;;  %1002 = vrot.lane.b32.xlu0 %v5285_v32, %s8467_s22  ;;  %v1607_v24 = vrot.slane %v1603_v31, 1  ;;  %v1608_v40 = vrot.slane %v1604_v62, 1  ;;  %v5634_v56 = vld [vmem:[#allocation2] sm:$0xff]  ;;  %s5664_s5 = sld [smem:[#allocation3 + $0x7e]] }
 0x13b   : > { %v423_v11 = vmul.f32 %v8570_v41, %v4727_v38  ;;  %v440_v8 = vrot.slane %v436_v43, 1  ;;  %v1628_v22 = vstv %s5533_s1  ;;  %v5605_v18 = vmul.f32 %v1526_v34, %v5510_v48  ;;  %s8579_s1 = sld [smem:[#allocation88_spill]] }
 0x13c   : > { %v5608_v38 = vmul.f32 %v1550_v58, %v5510_v48  ;;  %v1642_v2 = vmul.f32 %v1641_v42, %v5510_v48  ;;  %v1643_v49 = vmul.f32 %v1641_v42, %v5512_v45  ;;  %v5613_v32 = vmul.f32 %v1542_v53, %v5510_v48 }
 0x13d   : > { %v5616_v5 = vsel %vm427_vm6, %v1620_v44, %v1621_v47  ;;  %v439_v31 = vrot.slane %v435_v46, 1  ;;  %v429_v62 = vrot.slane %v424_v30, 1  ;;  %v1629_v3 = vmul.f32 %v1628_v22, %v5510_v48  ;;  %1041 = vrot.lane.b32.xlu1 %v5298_v21, %s8467_s22 }
 0x13e   : > { %8572 = vst [vmem:[#allocation104_spill] sm:$0xff] %v5616_v5  ;;  %v1630_v43 = vmul.f32 %v1628_v22, %v5512_v45  ;;  %v8574_v34 = vstv %s8571_s10  ;;  %v1667_v13 = vstv %s5557_s3  ;;  %1028 = vrot.lane.b32.xlu0 %v5308_v0, %s8467_s22  ;;  %v5629_v46 = vsel %vm427_vm6, %v1607_v24, %v1608_v40  ;;  %s5713_s3 = sld [smem:[#allocation3 + $0x8f]]  ;;  %s6053_s10 = sld [smem:[#allocation3 + $0x8]] }
 0x13f   : > { %v458_v58 = vmul.f32 %v8574_v34, %v4931_v27  ;;  %8575 = vst [vmem:[#allocation105_spill] sm:$0xff] %v5629_v46  ;;  %v5632_v44 = vsel %vm427_vm6, %v439_v31, %v440_v8  ;;  %v428_v47 = vrot.slane %v423_v11, 1  ;;  %v8576_v30 = vmov %v8574_v34 }
 0x140   : > { %v457_v42 = vmul.f32 %v5634_v56, %v8576_v30  ;;  %v1646_v53 = vrot.slane %v1642_v2, 1  ;;  %v1647_v41 = vrot.slane %v1643_v49, 1  ;;  %v8577_v22 = vstv %s8573_s11  ;;  %s6063_s11 = sld [smem:[#allocation3 + $0x39]] }
 0x141   : > { %v447_v21 = vmul.f32 %v8577_v22, %v4931_v27  ;;  %v1654_v34 = vstv %s5577_s26  ;;  %v8578_v0 = vmov %v8577_v22  ;;  %v1668_v11 = vmul.f32 %v1667_v13, %v5510_v48  ;;  %1067 = vrot.lane.b32.xlu1 %v5311_v54, %s8478_s19  ;;  %s5733_s26 = sld [smem:[#allocation3 + $0x8e]] }
 0x142   : > { %v446_v24 = vmul.f32 %v5634_v56, %v8578_v0  ;;  %v1669_v40 = vmul.f32 %v1667_v13, %v5512_v45  ;;  %v1693_v8 = vstv %s5583_s24  ;;  %v5654_v2 = vsel %vm427_vm6, %v428_v47, %v429_v62  ;;  %1054 = vrot.lane.b32.xlu0 %v5338_v10, %s8478_s19  ;;  %s8592_s24 = sld [smem:[#allocation101_spill]] }
 0x143   : > { %v1633_v49 = vrot.slane %v1629_v3, 1  ;;  %v1634_v31 = vrot.slane %v1630_v43, 1  ;;  %v462_v30 = vrot.slane %v458_v58, 1  ;;  %v1655_v22 = vmul.f32 %v1654_v34, %v5510_v48 }
 0x144   : > { %v1656_v0 = vmul.f32 %v1654_v34, %v5512_v45  ;;  %v1680_v13 = vstv %s5595_s29  ;;  %v1763_v50 = vstv %s5602_s14  ;;  %v461_v37 = vrot.slane %v457_v42, 1  ;;  %s8602_s29 = sld [smem:[#allocation102_spill]]  ;;  %s6061_s14 = sld [smem:[#allocation3 + $0xb]] }
 0x145   : > { %v451_v62 = vrot.slane %v447_v21, 1  ;;  %v1694_v3 = vmul.f32 %v1693_v8, %v5510_v48  ;;  %v1695_v43 = vmul.f32 %v1693_v8, %v5512_v45  ;;  %v5669_v58 = vsel %vm427_vm6, %v1646_v53, %v1647_v41  ;;  %1093 = vrot.lane.b32.xlu1 %v5341_v61, %s8478_s19 }
 0x146   : > { %v450_v54 = vrot.slane %v446_v24, 1  ;;  %v1672_v47 = vrot.slane %v1668_v11, 1  ;;  %v1673_v10 = vrot.slane %v1669_v40, 1  ;;  %v1681_v46 = vmul.f32 %v1680_v13, %v5510_v48  ;;  %1080 = vrot.lane.b32.xlu0 %v5356_v57, %s8478_s19 }
 0x147   : > { %v1682_v34 = vmul.f32 %v1680_v13, %v5512_v45  ;;  %v1764_v5 = vmul.f32 %v1763_v50, %v5510_v48  ;;  %v1765_v42 = vmul.f32 %v1763_v50, %v5512_v45  ;;  %v5680_v53 = vsel %vm427_vm6, %v1633_v49, %v1634_v31 }
 0x148   : > { %8580 = vst [vmem:[#allocation106_spill] sm:$0xff] %v5680_v53  ;;  %v5683_v41 = vsel %vm427_vm6, %v461_v37, %v462_v30  ;;  %v1659_v21 = vrot.slane %v1655_v22, 1  ;;  %v1660_v24 = vrot.slane %v1656_v0, 1  ;;  %v5688_v11 = vsel %vm427_vm6, %v450_v54, %v451_v62 }
 0x149   : > { %v1698_v50 = vrot.slane %v1694_v3, 1  ;;  %v1699_v40 = vrot.slane %v1695_v43, 1  ;;  %v1750_v61 = vstv %s5643_s28  ;;  %v5694_v57 = vsel %vm427_vm6, %v1672_v47, %v1673_v10  ;;  %1245 = vrot.lane.b32.xlu1 %v5366_v52, %s8467_s22  ;;  %s6069_s28 = sld [smem:[#allocation3 + $0x38]] }
 0x14a   : > { %8581 = vst [vmem:[#allocation107_spill] sm:$0xff] %v5694_v57  ;;  %v8582_v8 = vstv %s8579_s1  ;;  %v1789_v30 = vstv %s5651_s4  ;;  %v1685_v22 = vrot.slane %v1681_v46, 1  ;;  %v1686_v0 = vrot.slane %v1682_v34, 1  ;;  %1232 = vrot.lane.b32.xlu0 %v5378_v20, %s8467_s22  ;;  %s6078_s4 = sld [smem:[#allocation3 + $0xa]] }
 0x14b   : > { %v584_v37 = vmul.f32 %v5634_v56, %v8582_v8  ;;  %v8583_v49 = vmov %v8582_v8  ;;  %v1768_v13 = vrot.slane %v1764_v5, 2  ;;  %v1769_v62 = vrot.slane %v1765_v42, 2  ;;  %v5723_v34 = vpop.permute.xlu1 %369  ;;  %v5725_v42 = vpop.permute.xlu0 %361  ;;  %s6110_s1 = sld [smem:[#allocation3 + $0x72]] }
 0x14c   : > { %v585_v31 = vmul.f32 %v8583_v49, %v4931_v27  ;;  %v5708_v3 = vsel %vm427_vm6, %v1659_v21, %v1660_v24  ;;  %v1751_v43 = vmul.f32 %v1750_v61, %v5510_v48  ;;  %v1752_v54 = vmul.f32 %v1750_v61, %v5512_v45 }
 0x14d   : > { %8584 = vst [vmem:[#allocation108_spill] sm:$0xff] %v5708_v3  ;;  %v1776_v47 = vstv %s5664_s5  ;;  %v5716_v5 = vsel %vm427_vm6, %v1698_v50, %v1699_v40  ;;  %v8586_v52 = vstv %s4805_s30  ;;  %v1790_v10 = vmul.f32 %v1789_v30, %v5510_v48  ;;  %1271 = vrot.lane.b32.xlu1 %v5392_v16, %s8467_s22  ;;  %s5809_s30 = sld [smem:[#allocation3 + $0x67]]  ;;  %s6087_s5 = sld [smem:[#allocation3 + $0x73]] }
 0x14e   : > { %8585 = vst [vmem:[#allocation109_spill] sm:$0xff] %v5716_v5  ;;  %v573_v46 = vmul.f32 %v8586_v52, %v4931_v27  ;;  %v1791_v20 = vmul.f32 %v1789_v30, %v5512_v45  ;;  %v588_v21 = vrot.slane %v584_v37, 2  ;;  %v589_v24 = vrot.slane %v585_v31, 2  ;;  %1258 = vrot.lane.b32.xlu0 %v5409_v17, %s8467_s22 }
 0x14f   : > { %v8587_v61 = vmov %v8586_v52  ;;  %v8588_v50 = vstv %s8461_s21  ;;  %v5736_v49 = vsel %vm427_vm6, %v1685_v22, %v1686_v0  ;;  %v5739_v30 = vsel %vm576_vm7, %v1768_v13, %v1769_v62  ;;  %s5771_s21 = sld [smem:[#allocation3 + $0x53]] }
 0x150   : > { %v572_v8 = vmul.f32 %v5634_v56, %v8587_v61  ;;  %v607_v40 = vmul.f32 %v8588_v50, %v4931_v27  ;;  %8589 = vst [vmem:[#allocation110_spill] sm:$0xff] %v5736_v49  ;;  %8590 = vst [vmem:[#allocation111_spill] sm:$0xff] %v5739_v30  ;;  %v1777_v52 = vmul.f32 %v1776_v47, %v5510_v48  ;;  %v8591_v5 = vmov %v8588_v50  ;;  %v5752_v49 = vpop.permute.xlu1 %385 }
 0x151   : > { %v606_v37 = vmul.f32 %v5634_v56, %v8591_v5  ;;  %v1755_v31 = vrot.slane %v1751_v43, 2  ;;  %v1756_v61 = vrot.slane %v1752_v54, 2  ;;  %v1778_v22 = vmul.f32 %v1776_v47, %v5512_v45  ;;  %v5754_v5 = vpop.permute.xlu0 %377  ;;  %1297 = vrot.lane.b32.xlu1 %v5420_v1, %s8478_s19 }
 0x152   : > { %v1815_v0 = vstv %s5685_s0  ;;  %v578_v13 = vrot.slane %v573_v46, 2  ;;  %v1794_v62 = vrot.slane %v1790_v10, 2  ;;  %v1795_v50 = vrot.slane %v1791_v20, 2  ;;  %1284 = vrot.lane.b32.xlu0 %v5478_v4, %s8478_s19  ;;  %s6120_s0 = sld [smem:[#allocation3 + $0x3b]] }
 0x153   : > { %v1802_v30 = vstv %s5691_s7  ;;  %v577_v3 = vrot.slane %v572_v8, 2  ;;  %v611_v57 = vrot.slane %v607_v40, 2  ;;  %v8593_v16 = vstv %s8592_s24  ;;  %s6136_s7 = sld [smem:[#allocation3 + $0x3a]]  ;;  %s6162_s24 = sld [smem:[#allocation3 + $0x83]] }
 0x154   : > { %v595_v53 = vmul.f32 %v5634_v56, %v8593_v16  ;;  %v8594_v17 = vmov %v8593_v16  ;;  %v1781_v54 = vrot.slane %v1777_v52, 2  ;;  %v610_v47 = vrot.slane %v606_v37, 2  ;;  %v5785_v4 = vpop.permute.xlu1 %401 }
 0x155   : > { %v596_v43 = vmul.f32 %v8594_v17, %v4931_v27  ;;  %v1816_v46 = vmul.f32 %v1815_v0, %v5510_v48  ;;  %v1817_v10 = vmul.f32 %v1815_v0, %v5512_v45  ;;  %v1782_v20 = vrot.slane %v1778_v22, 2  ;;  %v5787_v22 = vpop.permute.xlu0 %393  ;;  %1323 = vrot.lane.b32.xlu1 %v5481_v28, %s8478_s19  ;;  %v5811_v28 = vld [vmem:[#allocation2 + $0x8] sm:$0xff] }
 0x156   : > { %v1803_v8 = vmul.f32 %v1802_v30, %v5510_v48  ;;  %v1804_v56 = vmul.f32 %v1802_v30, %v5512_v45  ;;  %v1841_v40 = vstv %s5713_s3  ;;  %v5774_v27 = vsel %vm576_vm7, %v1755_v31, %v1756_v61  ;;  %1310 = vrot.lane.b32.xlu0 %v5500_v23, %s8478_s19  ;;  %s6139_s3 = sld [smem:[#allocation3 + $0x81]] }
 0x157   : > { %v5777_v52 = vsel %vm576_vm7, %v588_v21, %v589_v24  ;;  %v5780_v1 = vsel %vm576_vm7, %v577_v3, %v578_v13  ;;  %v5783_v37 = vsel %vm576_vm7, %v1794_v62, %v1795_v50  ;;  %v5790_v30 = vsel %vm576_vm7, %v610_v47, %v611_v57  ;;  %v5802_v50 = vld [vmem:[#allocation2 + $0x18] sm:$0xff] }
 0x158   : > { %8595 = vst [vmem:[#allocation112_spill] sm:$0xff] %v5777_v52  ;;  %8596 = vst [vmem:[#allocation113_spill] sm:$0xff] %v5780_v1  ;;  %v599_v0 = vrot.slane %v595_v53, 2  ;;  %v600_v31 = vrot.slane %v596_v43, 2  ;;  %v1828_v61 = vstv %s5733_s26  ;;  %v1820_v21 = vrot.slane %v1816_v46, 2  ;;  %s6148_s26 = sld [smem:[#allocation3 + $0x80]] }
 0x159   : > { %8597 = vst [vmem:[#allocation114_spill] sm:$0xff] %v5790_v30  ;;  %v1821_v24 = vrot.slane %v1817_v10, 2  ;;  %v1842_v3 = vmul.f32 %v1841_v40, %v5510_v48  ;;  %v1843_v13 = vmul.f32 %v1841_v40, %v5512_v45  ;;  %v5800_v53 = vsel %vm576_vm7, %v1781_v54, %v1782_v20  ;;  %v5821_v20 = vpop.permute.xlu1 %417  ;;  %1393 = vrot.lane.b32.xlu1 %v5503_v9, %s8467_s22  ;;  %v5865_v9 = vld [vmem:[#allocation2 + $0x10] sm:$0x3] }
 0x15a   : > { %v1807_v57 = vrot.slane %v1803_v8, 2  ;;  %v1808_v62 = vrot.slane %v1804_v56, 2  ;;  %v8598_v16 = vstv %s4855_s16  ;;  %v1829_v23 = vmul.f32 %v1828_v61, %v5510_v48  ;;  %v5823_v8 = vpop.permute.xlu0 %409  ;;  %1380 = vrot.lane.b32.xlu0 %v5506_v6, %s8467_s22  ;;  %s8611_s16 = sld [smem:[#allocation103_spill]] }
 0x15b   : > { %v5807_v17 = vmul.f32 %v5802_v50, %v8598_v16  ;;  %v1830_v43 = vmul.f32 %v1828_v61, %v5512_v45  ;;  %v8600_v54 = vstv %s4893_s18  ;;  %v5826_v56 = vsel %vm576_vm7, %v599_v0, %v600_v31  ;;  %s8615_s18 = sld [smem:[#allocation22_spill]] }
 0x15c   : > { %v814_v47 = vmul.f32 %v5802_v50, %v8600_v54  ;;  %v8601_v46 = vmov %v8600_v54  ;;  %8603 = vst [vmem:[#allocation116_spill] sm:$0xff] %v5826_v56  ;;  %v8604_v40 = vstv %s4857_s27  ;;  %v8606_v45 = vstv %s4899_s23  ;;  %s8630_s23 = sld [smem:[#allocation29_spill]]  ;;  %s8642_s27 = sld [smem:[#allocation95_spill]] }
 0x15d   : > { %8599 = vst [vmem:[#allocation115_spill] sm:$0xff] %v5807_v17  ;;  %v815_v10 = vmul.f32 %v8601_v46, %v5106_v35  ;;  %v5831_v48 = vmul.f32 %v5802_v50, %v8604_v40  ;;  %v803_v61 = vmul.f32 %v5802_v50, %v8606_v45  ;;  %v8607_v16 = vmov %v8606_v45  ;;  %v5867_v40 = vpop.permute.xlu1 %749 }
 0x15e   : > { %v804_v54 = vmul.f32 %v8607_v16, %v5106_v35  ;;  %v5840_v46 = vsel %vm576_vm7, %v1820_v21, %v1821_v24  ;;  %v1846_v17 = vrot.slane %v1842_v3, 2  ;;  %v1847_v30 = vrot.slane %v1843_v13, 2  ;;  %8616 = vst [vmem:[#allocation121_spill] sm:$0xff] %v5867_v40  ;;  %v5869_v45 = vpop.permute.xlu0 %741  ;;  %1419 = vrot.lane.b32.xlu1 %v5526_v60, %s8467_s22  ;;  %1406 = vrot.lane.b32.xlu0 %v5529_v7, %s8467_s22 }
 0x15f   : > { %8605 = vst [vmem:[#allocation117_spill] sm:$0xff] %v5831_v48  ;;  %v8608_v1 = vstv %s4863_s13  ;;  %v5852_v0 = vsel %vm576_vm7, %v1807_v57, %v1808_v62  ;;  %v8610_v31 = vstv %s4865_s9  ;;  %v8613_v24 = vstv %s8602_s29  ;;  %8617 = vst [vmem:[#allocation122_spill] sm:$0xff] %v5869_v45  ;;  %s6008_s13 = sld [smem:[#allocation3 + $0x9]]  ;;  %s8657_s9 = sld [smem:[#allocation100_spill]] }
 0x160   : > { %v5845_v52 = vmul.f32 %v5802_v50, %v8608_v1  ;;  %v5857_v21 = vmul.f32 %v5802_v50, %v8610_v31  ;;  %v5862_v1 = vmul.f32 %v8613_v24, %v5811_v28  ;;  %v1833_v13 = vrot.slane %v1829_v23, 2  ;;  %s6202_s29 = sld [smem:[#allocation3 + $0x68]] }
 0x161   : > { %v1834_v6 = vrot.slane %v1830_v43, 2  ;;  %v818_v57 = vrot.slane %v814_v47, 1  ;;  %v819_v62 = vrot.slane %v815_v10, 1  ;;  %v807_v16 = vrot.slane %v803_v61, 1 }
 0x162   : > { %8609 = vst [vmem:[#allocation118_spill] sm:$0xff] %v5845_v52  ;;  %8612 = vst [vmem:[#allocation119_spill] sm:$0xff] %v5857_v21  ;;  %v808_v31 = vrot.slane %v804_v54, 1  ;;  %v8618_v24 = vstv %s4907_s2  ;;  %v5878_v47 = vsel %vm576_vm7, %v1846_v17, %v1847_v30  ;;  %v8620_v10 = vstv %s8611_s16  ;;  %s8628_s2 = sld [smem:[#allocation23_spill]]  ;;  %1445 = vrot.lane.b32.xlu1 %v5536_v29, %s8478_s19  ;;  %1432 = vrot.lane.b32.xlu0 %v5539_v63, %s8478_s19  ;;  %s6224_s16 = sld [smem:[#allocation3 + $0x6b]] }
 0x163   : > { %8614 = vst [vmem:[#allocation120_spill] sm:$0xff] %v5862_v1  ;;  %v836_v3 = vmul.f32 %v5802_v50, %v8618_v24  ;;  %v8619_v23 = vmov %v8618_v24  ;;  %v5883_v21 = vmul.f32 %v8620_v10, %v5811_v28  ;;  %v8622_v52 = vstv %s4915_s25  ;;  %s5907_s25 = sld [smem:[#allocation3 + $0x66]] }
 0x164   : > { %v837_v43 = vmul.f32 %v8619_v23, %v5106_v35  ;;  %v825_v61 = vmul.f32 %v5802_v50, %v8622_v52  ;;  %v8623_v54 = vmov %v8622_v52  ;;  %v8624_v24 = vstv %s8615_s18  ;;  %s6234_s18 = sld [smem:[#allocation3 + $0x15]] }
 0x165   : > { %8621 = vst [vmem:[#allocation123_spill] sm:$0xff] %v5883_v21  ;;  %v826_v45 = vmul.f32 %v8623_v54, %v5106_v35  ;;  %v5898_v30 = vmul.f32 %v8624_v24, %v5811_v28  ;;  %v8626_v17 = vstv %s4879_s8  ;;  %v983_v40 = vstv %s5809_s30  ;;  %s5955_s8 = sld [smem:[#allocation3 + $0x52]]  ;;  %s6198_s30 = sld [smem:[#allocation3 + $0x69]] }
 0x166   : > { %v2162_v23 = vmul.f32 %v8626_v17, %v5811_v28  ;;  %v8627_v10 = vmov %v8626_v17  ;;  %v5910_v60 = vsel %vm576_vm7, %v1833_v13, %v1834_v6  ;;  %v8629_v7 = vstv %s4833_s20  ;;  %s8640_s20 = sld [smem:[#allocation94_spill]]  ;;  %1471 = vrot.lane.b32.xlu1 %v5549_v51, %s8478_s19  ;;  %1458 = vrot.lane.b32.xlu0 %v5586_v25, %s8478_s19 }
 0x167   : > { %8625 = vst [vmem:[#allocation124_spill] sm:$0xff] %v5898_v30  ;;  %v2163_v52 = vmul.f32 %v8627_v10, %v5865_v9  ;;  %v5915_v54 = vmul.f32 %v8629_v7, %v5811_v28  ;;  %v8632_v24 = vstv %s4885_s12  ;;  %v5923_v10 = vpop.permute.xlu1 %765  ;;  %v5925_v30 = vpop.permute.xlu0 %757  ;;  %v5928_v21 = vsel %vm427_vm6, %v818_v57, %v819_v62  ;;  %s8658_s12 = sld [smem:[#allocation32_spill]] }
 0x168   : > { %v2149_v48 = vmul.f32 %v8632_v24, %v5811_v28  ;;  %v8633_v17 = vmov %v8632_v24  ;;  %8634 = vst [vmem:[#allocation126_spill] sm:$0xff] %v5923_v10  ;;  %8635 = vst [vmem:[#allocation127_spill] sm:$0xff] %v5925_v30  ;;  %v5931_v13 = vsel %vm427_vm6, %v807_v16, %v808_v31  ;;  %v840_v6 = vrot.slane %v836_v3, 1 }
 0x169   : > { %8631 = vst [vmem:[#allocation125_spill] sm:$0xff] %v5915_v54  ;;  %v2150_v56 = vmul.f32 %v8633_v17, %v5865_v9  ;;  %8636 = vst [vmem:[#allocation128_spill] sm:$0xff] %v5928_v21  ;;  %v841_v7 = vrot.slane %v837_v43, 1  ;;  %v829_v54 = vrot.slane %v825_v61, 1  ;;  %v830_v24 = vrot.slane %v826_v45, 1 }
 0x16a   : > { %8637 = vst [vmem:[#allocation129_spill] sm:$0xff] %v5931_v13  ;;  %v8638_v1 = vstv %s4835_s15  ;;  %v8639_v10 = vstv %s8628_s2  ;;  %v8643_v3 = vstv %s8630_s23  ;;  %v2166_v62 = vrot.slane %v2162_v23, 1  ;;  %s8645_s15 = sld [smem:[#allocation31_spill]]  ;;  %1505 = vrot.lane.b32.xlu1 %v5543_v19, %s8467_s22  ;;  %s6236_s2 = sld [smem:[#allocation3 + $0x14]] }
 0x16b   : > { %v5936_v17 = vmul.f32 %v8638_v1, %v5811_v28  ;;  %v5941_v30 = vmul.f32 %v8639_v10, %v5811_v28  ;;  %v5950_v57 = vmul.f32 %v8643_v3, %v5811_v28  ;;  %v2167_v1 = vrot.slane %v2163_v52, 1  ;;  %v5963_v3 = vpop.permute.xlu1 %781  ;;  %v5965_v23 = vpop.permute.xlu0 %773  ;;  %1497 = vrot.lane.b32.xlu0 %v5552_v14, %s8467_s22  ;;  %s6246_s23 = sld [smem:[#allocation3 + $0x17]] }
 0x16c   : > { %v8646_v45 = vstv %s5231_s17  ;;  %v2153_v31 = vrot.slane %v2149_v48, 1  ;;  %v2154_v43 = vrot.slane %v2150_v56, 1  ;;  %v8648_v10 = vstv %s5335_s6  ;;  %8649 = vst [vmem:[#allocation132_spill] sm:$0xff] %v5963_v3  ;;  %8650 = vst [vmem:[#allocation133_spill] sm:$0xff] %v5965_v23  ;;  %s6014_s17 = sld [smem:[#allocation3 + $0x71]]  ;;  %s6037_s6 = sld [smem:[#allocation3 + $0x70]] }
 0x16d   : > { %8641 = vst [vmem:[#allocation130_spill] sm:$0xff] %v5941_v30  ;;  %8644 = vst [vmem:[#allocation131_spill] sm:$0xff] %v5950_v57  ;;  %v962_v16 = vmul.f32 %v5802_v50, %v8646_v45  ;;  %v8647_v29 = vmov %v8646_v45  ;;  %v951_v63 = vmul.f32 %v5802_v50, %v8648_v10  ;;  %v8651_v52 = vmov %v8648_v10 }
 0x16e   : > { %v963_v61 = vmul.f32 %v8647_v29, %v5106_v35  ;;  %v952_v13 = vmul.f32 %v8651_v52, %v5106_v35  ;;  %v8652_v45 = vstv %s8640_s20  ;;  %v8654_v57 = vstv %s8642_s27  ;;  %1521 = vrot.lane.b32.xlu1 %v5555_v59, %s8467_s22  ;;  %s6256_s20 = sld [smem:[#allocation3 + $0x16]]  ;;  %s6269_s27 = sld [smem:[#allocation3 + $0x25]] }
 0x16f   : > { %v2188_v21 = vmul.f32 %v8652_v45, %v5811_v28  ;;  %v8653_v48 = vmov %v8652_v45  ;;  %v2175_v29 = vmul.f32 %v8654_v57, %v5811_v28  ;;  %v5980_v30 = vsel %vm427_vm6, %v840_v6, %v841_v7  ;;  %1513 = vrot.lane.b32.xlu0 %v5570_v33, %s8467_s22 }
 0x170   : > { %v2189_v56 = vmul.f32 %v8653_v48, %v5865_v9  ;;  %v5983_v10 = vsel %vm427_vm6, %v829_v54, %v830_v24  ;;  %v8655_v23 = vstv %s8645_s15  ;;  %v8656_v35 = vmov %v8654_v57  ;;  %s6278_s15 = sld [smem:[#allocation3 + $0x45]] }
 0x171   : > { %v5988_v3 = vmul.f32 %v8655_v23, %v5811_v28  ;;  %v2176_v52 = vmul.f32 %v8656_v35, %v5865_v9  ;;  %v372_v45 = vadd.f32 %v5723_v34, %v5382_v26  ;;  %v364_v48 = vadd.f32 %v5725_v42, %v5386_v55  ;;  %v6010_v26 = vpop.permute.xlu1 %797  ;;  %v6012_v55 = vpop.permute.xlu0 %789 }
 0x172   : > { %v6002_v54 = vsel %vm427_vm6, %v2166_v62, %v2167_v1  ;;  %v972_v6 = vstv %s5907_s25  ;;  %v6006_v7 = vsel %vm427_vm6, %v2153_v31, %v2154_v43  ;;  %v966_v24 = vrot.slane %v962_v16, 2  ;;  %v4264_v16 = vld [vmem:[#allocation2 + $0x20] sm:$0x3]  ;;  %1537 = vrot.lane.b32.xlu1 %v5589_v39, %s8478_s19  ;;  %s6242_s25 = sld [smem:[#allocation3 + $0x6a]] }
 0x173   : > { %v967_v57 = vrot.slane %v963_v61, 2  ;;  %v955_v23 = vrot.slane %v951_v63, 2  ;;  %v956_v51 = vrot.slane %v952_v13, 2  ;;  %v2192_v25 = vrot.slane %v2188_v21, 1  ;;  %1529 = vrot.lane.b32.xlu0 %v5605_v18, %s8478_s19 }
 0x174   : > { %v2193_v34 = vrot.slane %v2189_v56, 1  ;;  %v2179_v42 = vrot.slane %v2175_v29, 1  ;;  %v2180_v62 = vrot.slane %v2176_v52, 1  ;;  %v984_v1 = vmul.f32 %v5802_v50, %v983_v40 }
 0x175   : > { %v985_v31 = vmul.f32 %v4264_v16, %v983_v40  ;;  %v973_v43 = vmul.f32 %v5802_v50, %v972_v6  ;;  %v974_v21 = vmul.f32 %v4264_v16, %v972_v6  ;;  %v8659_v13 = vstv %s8657_s9  ;;  %v6043_v16 = vpop.permute.xlu1 %1127  ;;  %s6299_s9 = sld [smem:[#allocation3 + $0x44]] }
 0x176   : > { %v2214_v61 = vmul.f32 %v8659_v13, %v5811_v28  ;;  %v8660_v63 = vmov %v8659_v13  ;;  %v2226_v29 = vstv %s5955_s8  ;;  %v404_v35 = vadd.f32 %v5785_v4, %v372_v45  ;;  %8662 = vst [vmem:[#allocation134_spill] sm:$0xff] %v6043_v16  ;;  %v6045_v13 = vpop.permute.xlu0 %1119  ;;  %1553 = vrot.lane.b32.xlu1 %v5608_v38, %s8478_s19  ;;  %s6288_s8 = sld [smem:[#allocation3 + $0x24]] }
 0x177   : > { %v2215_v56 = vmul.f32 %v8660_v63, %v5865_v9  ;;  %v396_v40 = vadd.f32 %v5787_v22, %v364_v48  ;;  %v6032_v50 = vsel %vm576_vm7, %v966_v24, %v967_v57  ;;  %v8661_v19 = vstv %s8658_s12  ;;  %8663 = vst [vmem:[#allocation135_spill] sm:$0xff] %v6045_v13  ;;  %1545 = vrot.lane.b32.xlu0 %v5613_v32, %s8478_s19  ;;  %s6301_s12 = sld [smem:[#allocation3 + $0x46]] }
 0x178   : > { %v2201_v52 = vmul.f32 %v8661_v19, %v5811_v28  ;;  %v388_v14 = vadd.f32 %v5752_v49, %v5396_v12  ;;  %v380_v6 = vadd.f32 %v5754_v5, %v5413_v15  ;;  %v6048_v4 = vsel %vm576_vm7, %v955_v23, %v956_v51 }
 0x179   : > { %8664 = vst [vmem:[#allocation136_spill] sm:$0xff] %v6048_v4  ;;  %v8665_v22 = vmov %v8661_v19  ;;  %v6056_v48 = vsel %vm427_vm6, %v2192_v25, %v2193_v34  ;;  %v6059_v12 = vsel %vm427_vm6, %v2179_v42, %v2180_v62  ;;  %v988_v15 = vrot.slane %v984_v1, 2  ;;  %v6082_v62 = vpop.permute.xlu1 %1143 }
 0x17a   : > { %v2202_v45 = vmul.f32 %v8665_v22, %v5865_v9  ;;  %v989_v49 = vrot.slane %v985_v31, 2  ;;  %v977_v5 = vrot.slane %v973_v43, 2  ;;  %v978_v24 = vrot.slane %v974_v21, 2  ;;  %8666 = vst [vmem:[#allocation137_spill] sm:$0xff] %v6082_v62  ;;  %v6084_v1 = vpop.permute.xlu0 %1135 }
 0x17b   : > { %v2218_v57 = vrot.slane %v2214_v61, 1  ;;  %v2219_v23 = vrot.slane %v2215_v56, 1  ;;  %v6072_v51 = vadd.f32 %v5632_v44, %v404_v35  ;;  %v6075_v25 = vadd.f32 %v5654_v2, %v396_v40  ;;  %8667 = vst [vmem:[#allocation138_spill] sm:$0xff] %v6084_v1  ;;  %v6112_v40 = vld [vmem:[#allocation2 + $0x30] sm:$0xff] }
 0x17c   : > { %v2205_v34 = vrot.slane %v2201_v52, 1  ;;  %v1104_v59 = vstv %s6008_s13  ;;  %v420_v33 = vadd.f32 %v5821_v20, %v388_v14  ;;  %v412_v42 = vadd.f32 %v5823_v8, %v380_v6  ;;  %v8682_v1 = vld [vmem:[#allocation106_spill] sm:$0xff]  ;;  %s6290_s13 = sld [smem:[#allocation3 + $0x27]] }
 0x17d   : > { %v2206_v31 = vrot.slane %v2202_v45, 1  ;;  %v2309_v43 = vstv %s6014_s17  ;;  %v6090_v44 = vsel %vm576_vm7, %v988_v15, %v989_v49  ;;  %v8669_v2 = vstv %s5771_s21  ;;  %v6122_v14 = vpop.permute.xlu1 %1159  ;;  %s6190_s21 = sld [smem:[#allocation3 + $0x82]]  ;;  %s6311_s17 = sld [smem:[#allocation3 + $0x54]] }
 0x17e   : > { %8668 = vst [vmem:[#allocation139_spill] sm:$0xff] %v6090_v44  ;;  %v2240_v21 = vmul.f32 %v8669_v2, %v5811_v28  ;;  %v8670_v61 = vmov %v8669_v2  ;;  %v2227_v8 = vmul.f32 %v2226_v29, %v5811_v28  ;;  %v6104_v63 = vsel %vm576_vm7, %v977_v5, %v978_v24  ;;  %8673 = vst [vmem:[#allocation142_spill] sm:$0xff] %v6122_v14  ;;  %v6124_v6 = vpop.permute.xlu0 %1151  ;;  %v8688_v44 = vld [vmem:[#allocation110_spill] sm:$0xff] }
 0x17f   : > { %v2241_v20 = vmul.f32 %v8670_v61, %v5865_v9  ;;  %8671 = vst [vmem:[#allocation140_spill] sm:$0xff] %v6104_v63  ;;  %v6107_v56 = vsel %vm427_vm6, %v2218_v57, %v2219_v23  ;;  %v2228_v35 = vmul.f32 %v2226_v29, %v5865_v9  ;;  %v6115_v19 = vmul.f32 %v6112_v40, %v1104_v59  ;;  %v8687_v63 = vld [vmem:[#allocation109_spill] sm:$0xff] }
 0x180   : > { %v2310_v39 = vmul.f32 %v2309_v43, %v5811_v28  ;;  %v2311_v18 = vmul.f32 %v2309_v43, %v5865_v9  ;;  %v2296_v52 = vstv %s6037_s6  ;;  %8674 = vst [vmem:[#allocation143_spill] sm:$0xff] %v6124_v6  ;;  %v6127_v29 = vadd.f32 %v5683_v41, %v420_v33  ;;  %s6316_s6 = sld [smem:[#allocation3 + $0x26]] }
 0x181   : > { %8672 = vst [vmem:[#allocation141_spill] sm:$0xff] %v6115_v19  ;;  %v6130_v22 = vadd.f32 %v5688_v11, %v412_v42  ;;  %v6133_v45 = vsel %vm427_vm6, %v2205_v34, %v2206_v31  ;;  %v1100_v15 = vstv %s6053_s10  ;;  %v2244_v49 = vrot.slane %v2240_v21, 1  ;;  %v6152_v43 = vpop.permute.xlu1 %1175  ;;  %s6323_s10 = sld [smem:[#allocation3 + $0xd]] }
 0x182   : > { %v2245_v5 = vrot.slane %v2241_v20, 1  ;;  %v2231_v24 = vrot.slane %v2227_v8, 1  ;;  %v1191_v57 = vstv %s6063_s11  ;;  %v2232_v41 = vrot.slane %v2228_v35, 1  ;;  %8675 = vst [vmem:[#allocation144_spill] sm:$0xff] %v6152_v43  ;;  %v6154_v2 = vpop.permute.xlu0 %1167  ;;  %s6355_s11 = sld [smem:[#allocation3 + $0xc]] }
 0x183   : > { %v1112_v11 = vstv %s6061_s14  ;;  %v2297_v23 = vmul.f32 %v2296_v52, %v5811_v28  ;;  %v1180_v34 = vstv %s6069_s28  ;;  %v1108_v59 = vstv %s6078_s4  ;;  %8676 = vst [vmem:[#allocation145_spill] sm:$0xff] %v6154_v2  ;;  %s6335_s14 = sld [smem:[#allocation3 + $0x47]]  ;;  %s6393_s4 = sld [smem:[#allocation3 + $0xe]] }
 0x184   : > { %v2314_v33 = vrot.slane %v2310_v39, 2  ;;  %v2315_v42 = vrot.slane %v2311_v18, 2  ;;  %v2298_v31 = vmul.f32 %v2296_v52, %v5865_v9  ;;  %v6157_v38 = vmul.f32 %v6112_v40, %v1100_v15  ;;  %v6171_v39 = vld [vmem:[#allocation2 + $0x38] sm:$0x3]  ;;  %v8679_v52 = vld [vmem:[#allocation104_spill] sm:$0xff]  ;;  %s6381_s28 = sld [smem:[#allocation3 + $0xf]] }
 0x185   : > { %v1192_v32 = vmul.f32 %v6112_v40, %v1191_v57  ;;  %v1193_v21 = vmul.f32 %v1191_v57, %v5267_v36  ;;  %v2335_v61 = vstv %s6087_s5  ;;  %v6165_v20 = vsel %vm427_vm6, %v2244_v49, %v2245_v5  ;;  %1623 = vrot.lane.b32.xlu1 %v8679_v52, %s8467_s22  ;;  %v8680_v36 = vld [vmem:[#allocation105_spill] sm:$0xff]  ;;  %v6192_v43 = vpop.permute.xlu1 %488  ;;  %s6395_s5 = sld [smem:[#allocation3 + $0x55]] }
 0x186   : > { %8677 = vst [vmem:[#allocation146_spill] sm:$0xff] %v6157_v38  ;;  %v6168_v8 = vmul.f32 %v6112_v40, %v1112_v11  ;;  %v1181_v35 = vmul.f32 %v6112_v40, %v1180_v34  ;;  %v1182_v18 = vmul.f32 %v6171_v39, %v1180_v34  ;;  %1610 = vrot.lane.b32.xlu0 %v8680_v36, %s8467_s22  ;;  %v2301_v5 = vrot.slane %v2297_v23, 2  ;;  %v6194_v36 = vpop.permute.xlu0 %475 }
 0x187   : > { %v6179_v15 = vsel %vm427_vm6, %v2231_v24, %v2232_v41  ;;  %v6182_v49 = vmul.f32 %v6112_v40, %v1108_v59  ;;  %v2322_v57 = vstv %s6110_s1  ;;  %v6186_v11 = vsel %vm576_vm7, %v2314_v33, %v2315_v42  ;;  %s6405_s1 = sld [smem:[#allocation3 + $0x74]] }
 0x188   : > { %8678 = vst [vmem:[#allocation147_spill] sm:$0xff] %v6168_v8  ;;  %v2302_v34 = vrot.slane %v2298_v31, 2  ;;  %v2336_v2 = vmul.f32 %v2335_v61, %v5811_v28  ;;  %v1213_v52 = vstv %s6120_s0  ;;  %v1196_v24 = vrot.slane %v1192_v32, 1  ;;  %s6421_s0 = sld [smem:[#allocation3 + $0x56]] }
 0x189   : > { %8681 = vst [vmem:[#allocation104_spill] sm:$0xff] %v6182_v49  ;;  %v1197_v41 = vrot.slane %v1193_v21, 1  ;;  %v2337_v23 = vmul.f32 %v2335_v61, %v5865_v9  ;;  %v1202_v59 = vstv %s6136_s7  ;;  %v1185_v33 = vrot.slane %v1181_v35, 1  ;;  %1649 = vrot.lane.b32.xlu1 %v5669_v58, %s8467_s22  ;;  %v6217_v13 = vpop.permute.xlu1 %514  ;;  %s6423_s7 = sld [smem:[#allocation3 + $0x75]] }
 0x18a   : > { %v1186_v42 = vrot.slane %v1182_v18, 1  ;;  %v2323_v31 = vmul.f32 %v2322_v57, %v5811_v28  ;;  %v2361_v6 = vstv %s6139_s3  ;;  %1636 = vrot.lane.b32.xlu0 %v8682_v1, %s8467_s22  ;;  %v2324_v32 = vmul.f32 %v2322_v57, %v5865_v9  ;;  %v6219_v58 = vpop.permute.xlu0 %501  ;;  %s6435_s3 = sld [smem:[#allocation3 + $0x57]] }
 0x18b   : > { %v1214_v21 = vmul.f32 %v6112_v40, %v1213_v52  ;;  %v1215_v61 = vmul.f32 %v6171_v39, %v1213_v52  ;;  %v2348_v35 = vstv %s6148_s26  ;;  %v6213_v18 = vsel %vm576_vm7, %v2301_v5, %v2302_v34  ;;  %s6467_s26 = sld [smem:[#allocation3 + $0x3d]] }
 0x18c   : > { %v2340_v14 = vrot.slane %v2336_v2, 2  ;;  %v1203_v62 = vmul.f32 %v6112_v40, %v1202_v59  ;;  %v1204_v49 = vmul.f32 %v6171_v39, %v1202_v59  ;;  %v2341_v1 = vrot.slane %v2337_v23, 2  ;;  %v8686_v23 = vld [vmem:[#allocation108_spill] sm:$0xff] }
 0x18d   : > { %v2362_v57 = vmul.f32 %v2361_v6, %v5811_v28  ;;  %v2363_v8 = vmul.f32 %v2361_v6, %v5865_v9  ;;  %v2387_v16 = vstv %s6162_s24  ;;  %v6227_v5 = vsel %vm427_vm6, %v1196_v24, %v1197_v41  ;;  %v8685_v6 = vld [vmem:[#allocation107_spill] sm:$0xff]  ;;  %v6248_v38 = vpop.permute.xlu1 %540  ;;  %s6497_s24 = sld [smem:[#allocation3 + $0x3c]] }
 0x18e   : > { %8683 = vst [vmem:[#allocation105_spill] sm:$0xff] %v6227_v5  ;;  %v6230_v2 = vsel %vm427_vm6, %v1185_v33, %v1186_v42  ;;  %v2349_v34 = vmul.f32 %v2348_v35, %v5811_v28  ;;  %v2350_v52 = vmul.f32 %v2348_v35, %v5865_v9  ;;  %1675 = vrot.lane.b32.xlu1 %v8685_v6, %s8478_s19  ;;  %v2327_v24 = vrot.slane %v2323_v31, 2  ;;  %v6250_v6 = vpop.permute.xlu0 %527 }
 0x18f   : > { %8684 = vst [vmem:[#allocation106_spill] sm:$0xff] %v6230_v2  ;;  %1662 = vrot.lane.b32.xlu0 %v8686_v23, %s8478_s19  ;;  %v2328_v41 = vrot.slane %v2324_v32, 2  ;;  %v1218_v59 = vrot.slane %v1214_v21, 1  ;;  %v1219_v33 = vrot.slane %v1215_v61, 1  ;;  %v1207_v42 = vrot.slane %v1203_v62, 1 }
 0x190   : > { %v1208_v35 = vrot.slane %v1204_v49, 1  ;;  %v2388_v2 = vmul.f32 %v2387_v16, %v5811_v28  ;;  %v2374_v5 = vstv %s6190_s21  ;;  %v6253_v23 = vsel %vm576_vm7, %v2340_v14, %v2341_v1  ;;  %s6509_s21 = sld [smem:[#allocation3 + $0x76]] }
 0x191   : > { %v2366_v31 = vrot.slane %v2362_v57, 2  ;;  %v2367_v32 = vrot.slane %v2363_v8, 2  ;;  %v1339_v21 = vstv %s6198_s30  ;;  %v2353_v61 = vrot.slane %v2349_v34, 2  ;;  %s6525_s30 = sld [smem:[#allocation3 + $0x84]] }
 0x192   : > { %v2354_v62 = vrot.slane %v2350_v52, 2  ;;  %v2389_v49 = vmul.f32 %v2387_v16, %v5865_v9  ;;  %v1328_v19 = vstv %s6202_s29  ;;  %1701 = vrot.lane.b32.xlu1 %v8687_v63, %s8478_s19  ;;  %v6265_v14 = vsel %vm576_vm7, %v2327_v24, %v2328_v41  ;;  %v6282_v52 = vpop.permute.xlu0 %553  ;;  %s6528_s29 = sld [smem:[#allocation3 + $0x3f]] }
 0x193   : > { %1688 = vrot.lane.b32.xlu0 %v8688_v44, %s8478_s19  ;;  %v2375_v8 = vmul.f32 %v2374_v5, %v5811_v28  ;;  %v2376_v1 = vmul.f32 %v2374_v5, %v5865_v9  ;;  %v6272_v57 = vsel %vm427_vm6, %v1218_v59, %v1219_v33  ;;  %v6275_v16 = vsel %vm427_vm6, %v1207_v42, %v1208_v35  ;;  %v6280_v44 = vpop.permute.xlu1 %566  ;;  %v8693_v42 = vld [vmem:[#allocation111_spill] sm:$0xff] }
 0x194   : > { %8689 = vst [vmem:[#allocation107_spill] sm:$0xff] %v6272_v57  ;;  %8690 = vst [vmem:[#allocation108_spill] sm:$0xff] %v6275_v16  ;;  %v2392_v63 = vrot.slane %v2388_v2, 2  ;;  %v1340_v34 = vmul.f32 %v6112_v40, %v1339_v21  ;;  %v1341_v28 = vmul.f32 %v6171_v39, %v1339_v21  ;;  %v1329_v9 = vmul.f32 %v6112_v40, %v1328_v19 }
 0x195   : > { %v1330_v5 = vmul.f32 %v6171_v39, %v1328_v19  ;;  %v1361_v24 = vstv %s6224_s16  ;;  %v6293_v2 = vsel %vm576_vm7, %v2366_v31, %v2367_v32  ;;  %v6296_v41 = vsel %vm576_vm7, %v2353_v61, %v2354_v62  ;;  %v6303_v19 = vld [vmem:[#allocation2 + $0x20] sm:$0xff]  ;;  %s6559_s16 = sld [smem:[#allocation3 + $0x3e]] }
 0x196   : > { %8691 = vst [vmem:[#allocation109_spill] sm:$0xff] %v6293_v2  ;;  %8692 = vst [vmem:[#allocation110_spill] sm:$0xff] %v6296_v41  ;;  %v2393_v59 = vrot.slane %v2389_v49, 2  ;;  %v2426_v33 = vstv %s6234_s18  ;;  %1771 = vrot.lane.b32.xlu1 %v8693_v42, %s8467_s22  ;;  %v2379_v35 = vrot.slane %v2375_v8, 2  ;;  %v2380_v31 = vrot.slane %v2376_v1, 2  ;;  %v6320_v42 = vpop.permute.xlu0 %624  ;;  %s6561_s18 = sld [smem:[#allocation3 + $0x77]] }
 0x197   : > { %1758 = vrot.lane.b32.xlu0 %v5774_v27, %s8467_s22  ;;  %v2418_v32 = vstv %s6236_s2  ;;  %v1350_v21 = vstv %s6242_s25  ;;  %v1344_v61 = vrot.slane %v1340_v34, 2  ;;  %v2442_v62 = vstv %s6246_s23  ;;  %v6318_v57 = vpop.permute.xlu1 %637  ;;  %s6581_s2 = sld [smem:[#allocation3 + $0x85]]  ;;  %s6597_s25 = sld [smem:[#allocation3 + $0x86]] }
 0x198   : > { %v1362_v49 = vmul.f32 %v6112_v40, %v1361_v24  ;;  %v1363_v16 = vmul.f32 %v6171_v39, %v1361_v24  ;;  %v1345_v27 = vrot.slane %v1341_v28, 2  ;;  %v1333_v8 = vrot.slane %v1329_v9, 2  ;;  %s6623_s23 = sld [smem:[#allocation3 + $0x18]] }
 0x199   : > { %v1334_v1 = vrot.slane %v1330_v5, 2  ;;  %v2434_v41 = vstv %s6256_s20  ;;  %v6326_v34 = vsel %vm576_vm7, %v2392_v63, %v2393_v59  ;;  %v6329_v2 = vmul.f32 %v2426_v33, %v6303_v19  ;;  %v6349_v5 = vld [vmem:[#allocation2 + $0x28] sm:$0x3]  ;;  %s6625_s20 = sld [smem:[#allocation3 + $0x87]] }
 0x19a   : > { %v6332_v24 = vmul.f32 %v2418_v32, %v6303_v19  ;;  %v1351_v4 = vmul.f32 %v6112_v40, %v1350_v21  ;;  %1797 = vrot.lane.b32.xlu1 %v5783_v37, %s8467_s22  ;;  %v6342_v63 = vsel %vm576_vm7, %v2379_v35, %v2380_v31  ;;  %v6345_v28 = vmul.f32 %v2442_v62, %v6303_v19  ;;  %v6359_v31 = vpop.permute.xlu0 %650 }
 0x19b   : > { %1784 = vrot.lane.b32.xlu0 %v5800_v53, %s8467_s22  ;;  %v1352_v9 = vmul.f32 %v6171_v39, %v1350_v21  ;;  %v2458_v40 = vstv %s6269_s27  ;;  %v6352_v37 = vmul.f32 %v2434_v41, %v6303_v19  ;;  %v1366_v59 = vrot.slane %v1362_v49, 2  ;;  %v6357_v35 = vpop.permute.xlu1 %663  ;;  %s6632_s27 = sld [smem:[#allocation3 + $0x19]] }
 0x19c   : > { %8694 = vst [vmem:[#allocation111_spill] sm:$0xff] %v6332_v24  ;;  %8695 = vst [vmem:[#allocation148_spill] sm:$0xff] %v6345_v28  ;;  %v1367_v33 = vrot.slane %v1363_v16, 2  ;;  %v2539_v53 = vstv %s6278_s15  ;;  %v6362_v39 = vsel %vm576_vm7, %v1344_v61, %v1345_v27  ;;  %v6365_v32 = vsel %vm576_vm7, %v1333_v8, %v1334_v1  ;;  %v6429_v28 = vld [vmem:[#allocation2 + $0x48] sm:$0xff]  ;;  %s6640_s15 = sld [smem:[#allocation3 + $0x6d]] }
 0x19d   : > { %8696 = vst [vmem:[#allocation149_spill] sm:$0xff] %v6352_v37  ;;  %8697 = vst [vmem:[#allocation150_spill] sm:$0xff] %v6362_v39  ;;  %v2450_v21 = vstv %s6288_s8  ;;  %v2474_v41 = vstv %s6290_s13  ;;  %v1355_v62 = vrot.slane %v1351_v4, 2  ;;  %v6370_v16 = vmul.f32 %v2458_v40, %v6303_v19  ;;  %s6667_s8 = sld [smem:[#allocation3 + $0x6c]]  ;;  %s6677_s13 = sld [smem:[#allocation3 + $0x6f]] }
 0x19e   : > { %8698 = vst [vmem:[#allocation151_spill] sm:$0xff] %v6365_v32  ;;  %v2526_v49 = vstv %s6299_s9  ;;  %v2552_v37 = vstv %s6301_s12  ;;  %1823 = vrot.lane.b32.xlu1 %v5840_v46, %s8478_s19  ;;  %v1356_v61 = vrot.slane %v1352_v9, 2  ;;  %v2540_v27 = vmul.f32 %v2539_v53, %v6303_v19  ;;  %s6682_s9 = sld [smem:[#allocation3 + $0x6e]]  ;;  %s6719_s12 = sld [smem:[#allocation3 + $0x1a]] }
 0x19f   : > { %8699 = vst [vmem:[#allocation152_spill] sm:$0xff] %v6370_v16  ;;  %1810 = vrot.lane.b32.xlu0 %v5852_v0, %s8478_s19  ;;  %v2541_v8 = vmul.f32 %v2539_v53, %v6349_v5  ;;  %v2578_v1 = vstv %s6311_s17  ;;  %v6384_v4 = vsel %vm576_vm7, %v1366_v59, %v1367_v33  ;;  %v6387_v40 = vmul.f32 %v2450_v21, %v6303_v19  ;;  %v6397_v9 = vpop.permute.xlu1 %689  ;;  %v6399_v53 = vpop.permute.xlu0 %676  ;;  %s6731_s17 = sld [smem:[#allocation3 + $0x28]] }
 0x1a0   : > { %8700 = vst [vmem:[#allocation153_spill] sm:$0xff] %v6384_v4  ;;  %v6390_v46 = vmul.f32 %v2474_v41, %v6303_v19  ;;  %v2466_v0 = vstv %s6316_s6  ;;  %v2527_v32 = vmul.f32 %v2526_v49, %v6303_v19  ;;  %v2528_v59 = vmul.f32 %v2526_v49, %v6349_v5  ;;  %s6733_s6 = sld [smem:[#allocation3 + $0x1b]] }
 0x1a1   : > { %8701 = vst [vmem:[#allocation154_spill] sm:$0xff] %v6387_v40  ;;  %v1482_v33 = vstv %s6323_s10  ;;  %v2553_v21 = vmul.f32 %v2552_v37, %v6303_v19  ;;  %v2554_v41 = vmul.f32 %v2552_v37, %v6349_v5  ;;  %v2579_v4 = vmul.f32 %v2578_v1, %v6303_v19  ;;  %s6743_s10 = sld [smem:[#allocation3 + $0x29]] }
 0x1a2   : > { %8702 = vst [vmem:[#allocation155_spill] sm:$0xff] %v6390_v46  ;;  %v2580_v39 = vmul.f32 %v2578_v1, %v6349_v5  ;;  %v2565_v46 = vstv %s6335_s14  ;;  %1849 = vrot.lane.b32.xlu1 %v5878_v47, %s8478_s19  ;;  %v6416_v49 = vsel %vm576_vm7, %v1355_v62, %v1356_v61  ;;  %v6419_v40 = vmul.f32 %v2466_v0, %v6303_v19  ;;  %s6745_s14 = sld [smem:[#allocation3 + $0x48]] }
 0x1a3   : > { %1836 = vrot.lane.b32.xlu0 %v5910_v60, %s8478_s19  ;;  %8703 = vst [vmem:[#allocation156_spill] sm:$0xff] %v6416_v49  ;;  %v2544_v16 = vrot.slane %v2540_v27, 1  ;;  %v2545_v37 = vrot.slane %v2541_v8, 1  ;;  %v491_v1 = vadd.f32 %v6192_v43, %v6072_v51  ;;  %v478_v47 = vadd.f32 %v6194_v36, %v6075_v25  ;;  %v6437_v61 = vpop.permute.xlu1 %715  ;;  %v6439_v27 = vpop.permute.xlu0 %702 }
 0x1a4   : > { %8704 = vst [vmem:[#allocation157_spill] sm:$0xff] %v6419_v40  ;;  %v6432_v60 = vmul.f32 %v6429_v28, %v1482_v33  ;;  %v1478_v62 = vstv %s6355_s11  ;;  %v2531_v8 = vrot.slane %v2527_v32, 1  ;;  %v2532_v0 = vrot.slane %v2528_v59, 1  ;;  %v8706_v40 = vld [vmem:[#allocation120_spill] sm:$0xff]  ;;  %v8707_v32 = vld [vmem:[#allocation123_spill] sm:$0xff]  ;;  %s6755_s11 = sld [smem:[#allocation3 + $0x2a]] }
 0x1a5   : > { %v2566_v51 = vmul.f32 %v2565_v46, %v6303_v19  ;;  %v2567_v25 = vmul.f32 %v2565_v46, %v6349_v5  ;;  %v2557_v43 = vrot.slane %v2553_v21, 1  ;;  %v2558_v36 = vrot.slane %v2554_v41, 1 }
 0x1a6   : > { %8705 = vst [vmem:[#allocation158_spill] sm:$0xff] %v6432_v60  ;;  %v2583_v33 = vrot.slane %v2579_v4, 1  ;;  %v2584_v60 = vrot.slane %v2580_v39, 1  ;;  %v517_v49 = vadd.f32 %v6217_v13, %v6127_v29  ;;  %2051 = vrot.lane.b32.xlu1 %v8706_v40, %s8467_s22  ;;  %v6450_v59 = vsel %vm427_vm6, %v2544_v16, %v2545_v37 }
 0x1a7   : > { %2043 = vrot.lane.b32.xlu0 %v8707_v32, %s8467_s22  ;;  %v6453_v24 = vmul.f32 %v6429_v28, %v1478_v62  ;;  %v1490_v46 = vstv %s6381_s28  ;;  %v504_v39 = vadd.f32 %v6219_v58, %v6130_v22  ;;  %v543_v4 = vadd.f32 %v6248_v38, %v491_v1  ;;  %v6462_v40 = vpop.permute.xlu1 %867  ;;  %v6464_v41 = vpop.permute.xlu0 %854  ;;  %v8712_v1 = vld [vmem:[#allocation124_spill] sm:$0xff]  ;;  %s6757_s28 = sld [smem:[#allocation3 + $0x49]] }
 0x1a8   : > { %v1486_v21 = vstv %s6393_s4  ;;  %v2591_v13 = vstv %s6395_s5  ;;  %v530_v29 = vadd.f32 %v6250_v6, %v478_v47  ;;  %v2570_v16 = vrot.slane %v2566_v51, 1  ;;  %v8713_v47 = vld [vmem:[#allocation125_spill] sm:$0xff]  ;;  %s6763_s4 = sld [smem:[#allocation8 + $0x5]]  ;;  %s6765_s5 = sld [smem:[#allocation3 + $0x1]] }
 0x1a9   : > { %8708 = vst [vmem:[#allocation120_spill] sm:$0xff] %v6453_v24  ;;  %v2571_v37 = vrot.slane %v2567_v25, 1  ;;  %v2674_v62 = vstv %s6405_s1  ;;  %v6470_v22 = vsel %vm427_vm6, %v2531_v8, %v2532_v0  ;;  %v6473_v38 = vsel %vm427_vm6, %v2557_v43, %v2558_v36  ;;  %s6775_s1 = sld [smem:[#allocation8 + $0x9]] }
 0x1aa   : > { %8709 = vst [vmem:[#allocation123_spill] sm:$0xff] %v6473_v38  ;;  %v6476_v58 = vsel %vm427_vm6, %v2583_v33, %v2584_v60  ;;  %v6479_v6 = vmul.f32 %v6429_v28, %v1490_v46  ;;  %2067 = vrot.lane.b32.xlu1 %v8712_v1, %s8467_s22  ;;  %v6486_v51 = vmul.f32 %v6429_v28, %v1486_v21  ;;  %v2604_v0 = vstv %s6421_s0  ;;  %v8715_v46 = vld [vmem:[#allocation112_spill] sm:$0xff]  ;;  %v8716_v21 = vld [vmem:[#allocation113_spill] sm:$0xff]  ;;  %s6777_s0 = sld [smem:[#allocation6 + $0x4]] }
 0x1ab   : > { %8710 = vst [vmem:[#allocation159_spill] sm:$0xff] %v6476_v58  ;;  %2059 = vrot.lane.b32.xlu0 %v8713_v47, %s8467_s22  ;;  %v6489_v8 = vmul.f32 %v2591_v13, %v6303_v19  ;;  %v2687_v25 = vstv %s6423_s7  ;;  %v2593_v60 = vmul.f32 %v2591_v13, %v6349_v5  ;;  %v2675_v43 = vmul.f32 %v2674_v62, %v6303_v19  ;;  %s6783_s7 = sld [smem:[#allocation6 + $0x5]] }
 0x1ac   : > { %8711 = vst [vmem:[#allocation160_spill] sm:$0xff] %v6479_v6  ;;  %8714 = vst [vmem:[#allocation124_spill] sm:$0xff] %v6486_v51  ;;  %v2676_v36 = vmul.f32 %v2674_v62, %v6349_v5  ;;  %v2617_v33 = vstv %s6435_s3  ;;  %v569_v32 = vadd.f32 %v6280_v44, %v517_v49  ;;  %v592_v1 = vadd.f32 %v8715_v46, %v543_v4  ;;  %v6502_v51 = vpop.permute.xlu1 %893  ;;  %v6504_v6 = vpop.permute.xlu0 %880  ;;  %v8718_v4 = vld [vmem:[#allocation130_spill] sm:$0xff]  ;;  %s6785_s3 = sld [smem:[#allocation6 + $0x6]] }
 0x1ad   : > { %v581_v47 = vadd.f32 %v8716_v21, %v530_v29  ;;  %v6507_v24 = vsel %vm427_vm6, %v2570_v16, %v2571_v37  ;;  %v556_v13 = vadd.f32 %v6282_v52, %v504_v39  ;;  %v2605_v62 = vmul.f32 %v2604_v0, %v6303_v19 }
 0x1ae   : > { %8717 = vst [vmem:[#allocation125_spill] sm:$0xff] %v6507_v24  ;;  %v2606_v58 = vmul.f32 %v2604_v0, %v6349_v5  ;;  %v6515_v44 = vmul.f32 %v2687_v25, %v6303_v19  ;;  %v640_v49 = vadd.f32 %v6318_v57, %v592_v1  ;;  %2083 = vrot.lane.b32.xlu1 %v5936_v17, %s8478_s19  ;;  %v2596_v29 = vrot.slane %v6489_v8, 1  ;;  %v8719_v17 = vld [vmem:[#allocation114_spill] sm:$0xff]  ;;  %v8720_v24 = vld [vmem:[#allocation116_spill] sm:$0xff] }
 0x1af   : > { %2075 = vrot.lane.b32.xlu0 %v8718_v4, %s8478_s19  ;;  %v2689_v52 = vmul.f32 %v2687_v25, %v6349_v5  ;;  %v2618_v39 = vmul.f32 %v2617_v33, %v6303_v19  ;;  %v627_v16 = vadd.f32 %v6320_v42, %v581_v47  ;;  %v2597_v37 = vrot.slane %v2593_v60, 1 }
 0x1b0   : > { %v2679_v0 = vrot.slane %v2675_v43, 2  ;;  %v2680_v57 = vrot.slane %v2676_v36, 2  ;;  %v614_v46 = vadd.f32 %v8719_v17, %v569_v32  ;;  %v692_v1 = vadd.f32 %v6397_v9, %v640_v49  ;;  %v6532_v21 = vpop.permute.xlu1 %919  ;;  %v6534_v8 = vpop.permute.xlu0 %906  ;;  %v8721_v32 = vld [vmem:[#allocation131_spill] sm:$0xff] }
 0x1b1   : > { %v2619_v25 = vmul.f32 %v2617_v33, %v6349_v5  ;;  %v1569_v4 = vstv %s6467_s26  ;;  %v603_v38 = vadd.f32 %v8720_v24, %v556_v13  ;;  %v679_v42 = vadd.f32 %v6399_v53, %v627_v16  ;;  %v6548_v53 = vld [vmem:[#allocation2 + $0x50] sm:$0x3]  ;;  %v8722_v13 = vld [vmem:[#allocation115_spill] sm:$0xff]  ;;  %8742 = sst [smem:[#allocation33_spill]] %s6783_s7  ;;  %s6794_s26 = sld [smem:[#allocation6 + $0x7]] }
 0x1b2   : > { %v2609_v60 = vrot.slane %v2605_v62, 1  ;;  %v2610_v43 = vrot.slane %v2606_v58, 1  ;;  %v666_v36 = vadd.f32 %v6357_v35, %v614_v46  ;;  %2099 = vrot.lane.b32.xlu1 %v8721_v32, %s8478_s19  ;;  %v2692_v9 = vrot.slane %v6515_v44, 2  ;;  %8743 = sst [smem:[#allocation34_spill]] %s6785_s3  ;;  %s6916_s3 = sld [smem:[#allocation6 + $0x9]] }
 0x1b3   : > { %2091 = vrot.lane.b32.xlu0 %v5988_v3, %s8478_s19  ;;  %v2693_v33 = vrot.slane %v2689_v52, 2  ;;  %v2622_v47 = vrot.slane %v2618_v39, 1  ;;  %v653_v49 = vadd.f32 %v6359_v31, %v603_v38  ;;  %v1570_v24 = vmul.f32 %v6429_v28, %v1569_v4  ;;  %v8723_v31 = vld [vmem:[#allocation117_spill] sm:$0xff]  ;;  %s6918_s7 = sld [smem:[#allocation8 + $0x11]] }
 0x1b4   : > { %v1571_v58 = vmul.f32 %v6548_v53, %v1569_v4  ;;  %v1558_v35 = vstv %s6497_s24  ;;  %v728_v62 = vadd.f32 %v8722_v13, %v692_v1  ;;  %v718_v16 = vadd.f32 %v6437_v61, %v666_v36  ;;  %v6554_v17 = vpop.permute.xlu1 %945  ;;  %v6556_v3 = vpop.permute.xlu0 %932  ;;  %v8726_v36 = vld [vmem:[#allocation118_spill] sm:$0xff]  ;;  %s6796_s24 = sld [smem:[#allocation8 + $0x4]] }
 0x1b5   : > { %v2623_v44 = vrot.slane %v2619_v25, 1  ;;  %v2700_v52 = vstv %s6509_s21  ;;  %v724_v38 = vadd.f32 %v8723_v31, %v679_v42  ;;  %v705_v39 = vadd.f32 %v6439_v27, %v653_v49  ;;  %v8725_v42 = vld [vmem:[#allocation121_spill] sm:$0xff]  ;;  %s6800_s21 = sld [smem:[#allocation8 + $0x8]] }
 0x1b6   : > { %v6566_v46 = vsel %vm427_vm6, %v2596_v29, %v2597_v37  ;;  %v6569_v61 = vsel %vm576_vm7, %v2679_v0, %v2680_v57  ;;  %2169 = vrot.lane.b32.xlu1 %v6002_v54, %s8467_s22  ;;  %v6576_v1 = vsel %vm427_vm6, %v2609_v60, %v2610_v43  ;;  %v1559_v25 = vmul.f32 %v6429_v28, %v1558_v35 }
 0x1b7   : > { %2156 = vrot.lane.b32.xlu0 %v6006_v7, %s8467_s22  ;;  %8724 = vst [vmem:[#allocation112_spill] sm:$0xff] %v6576_v1  ;;  %v1560_v4 = vmul.f32 %v6548_v53, %v1558_v35  ;;  %v2726_v27 = vstv %s6525_s30  ;;  %v1574_v29 = vrot.slane %v1570_v24, 1  ;;  %v1575_v37 = vrot.slane %v1571_v58, 1  ;;  %v8729_v24 = vld [vmem:[#allocation122_spill] sm:$0xff]  ;;  %v8730_v35 = vld [vmem:[#allocation119_spill] sm:$0xff]  ;;  %8744 = sst [smem:[#allocation35_spill]] %s6794_s26 }
 0x1b8   : > { %v2701_v0 = vmul.f32 %v2700_v52, %v6303_v19  ;;  %v1591_v57 = vstv %s6528_s29  ;;  %v752_v54 = vadd.f32 %v8725_v42, %v728_v62  ;;  %v736_v32 = vadd.f32 %v8726_v36, %v718_v16  ;;  %v6587_v7 = vpop.permute.xlu1 %1015  ;;  %v6589_v60 = vpop.permute.xlu0 %1002  ;;  %v8732_v36 = vld [vmem:[#allocation132_spill] sm:$0xff]  ;;  %s6802_s30 = sld [smem:[#allocation8 + $0xc]]  ;;  %s6812_s29 = sld [smem:[#allocation6]] }
 0x1b9   : > { %v6592_v43 = vsel %vm576_vm7, %v2692_v9, %v2693_v33  ;;  %v6595_v49 = vsel %vm427_vm6, %v2622_v47, %v2623_v44  ;;  %v744_v58 = vadd.f32 %v8729_v24, %v724_v38  ;;  %v732_v13 = vadd.f32 %v8730_v35, %v705_v39  ;;  %v8731_v39 = vld [vmem:[#allocation126_spill] sm:$0xff]  ;;  %s6908_s26 = sld [smem:[#allocation8 + $0x10]] }
 0x1ba   : > { %8727 = vst [vmem:[#allocation113_spill] sm:$0xff] %v6592_v43  ;;  %8728 = vst [vmem:[#allocation130_spill] sm:$0xff] %v6595_v49  ;;  %v2702_v62 = vmul.f32 %v2700_v52, %v6349_v5  ;;  %v2727_v16 = vmul.f32 %v2726_v27, %v6303_v19  ;;  %2195 = vrot.lane.b32.xlu1 %v6056_v48, %s8467_s22  ;;  %v2728_v9 = vmul.f32 %v2726_v27, %v6349_v5  ;;  %v8733_v49 = vld [vmem:[#allocation127_spill] sm:$0xff] }
 0x1bb   : > { %2182 = vrot.lane.b32.xlu0 %v6059_v12, %s8467_s22  ;;  %v1592_v33 = vmul.f32 %v6429_v28, %v1591_v57  ;;  %v1593_v47 = vmul.f32 %v6548_v53, %v1591_v57  ;;  %v6611_v44 = vsel %vm427_vm6, %v1574_v29, %v1575_v37  ;;  %v1563_v31 = vrot.slane %v1559_v25, 1  ;;  %v8734_v57 = vld [vmem:[#allocation133_spill] sm:$0xff] }
 0x1bc   : > { %v1564_v52 = vrot.slane %v1560_v4, 1  ;;  %v2705_v38 = vrot.slane %v2701_v0, 2  ;;  %v768_v42 = vadd.f32 %v8731_v39, %v736_v32  ;;  %v784_v24 = vadd.f32 %v8732_v36, %v752_v54  ;;  %v6615_v48 = vpop.permute.xlu1 %1041  ;;  %v6617_v12 = vpop.permute.xlu0 %1028 }
 0x1bd   : > { %v1580_v27 = vstv %s6559_s16  ;;  %v2713_v35 = vstv %s6561_s18  ;;  %v760_v43 = vadd.f32 %v8733_v49, %v732_v13  ;;  %v776_v1 = vadd.f32 %v8734_v57, %v744_v58  ;;  %s6814_s16 = sld [smem:[#allocation8 + $0xd]]  ;;  %s6818_s18 = sld [smem:[#allocation6 + $0x1]] }
 0x1be   : > { %v2706_v29 = vrot.slane %v2702_v62, 2  ;;  %v2731_v37 = vrot.slane %v2727_v16, 2  ;;  %2221 = vrot.lane.b32.xlu1 %v6107_v56, %s8478_s19  ;;  %v2732_v25 = vrot.slane %v2728_v9, 2  ;;  %v1596_v4 = vrot.slane %v1592_v33, 1  ;;  %v8735_v56 = vld [vmem:[#allocation128_spill] sm:$0xff]  ;;  %8745 = sst [smem:[#allocation24_spill]] %s6802_s30 }
 0x1bf   : > { %2208 = vrot.lane.b32.xlu0 %v6133_v45, %s8478_s19  ;;  %v1597_v0 = vrot.slane %v1593_v47, 1  ;;  %v2739_v54 = vstv %s6581_s2  ;;  %v6635_v32 = vsel %vm427_vm6, %v1563_v31, %v1564_v52  ;;  %v1581_v49 = vmul.f32 %v6429_v28, %v1580_v27  ;;  %v8736_v31 = vld [vmem:[#allocation129_spill] sm:$0xff]  ;;  %8747 = sst [smem:[#allocation25_spill]] %s6812_s29  ;;  %s6820_s2 = sld [smem:[#allocation8 + $0xe]] }
 0x1c0   : > { %v1582_v58 = vmul.f32 %v6548_v53, %v1580_v27  ;;  %v2714_v13 = vmul.f32 %v2713_v35, %v6303_v19  ;;  %v822_v45 = vadd.f32 %v8735_v56, %v784_v24  ;;  %v800_v62 = vadd.f32 %v6010_v26, %v768_v42  ;;  %v6644_v16 = vpop.permute.xlu1 %1067  ;;  %v6646_v9 = vpop.permute.xlu0 %1054  ;;  %8765 = sst [smem:[#allocation52_spill]] %s6908_s26  ;;  %s6932_s30 = sld [smem:[#allocation8 + $0x15]] }
 0x1c1   : > { %v2715_v33 = vmul.f32 %v2713_v35, %v6349_v5  ;;  %v2752_v47 = vstv %s6597_s25  ;;  %v811_v52 = vadd.f32 %v8736_v31, %v776_v1  ;;  %v792_v39 = vadd.f32 %v6012_v55, %v760_v43  ;;  %s6832_s25 = sld [smem:[#allocation6 + $0x2]]  ;;  %s7004_s26 = sld [smem:[#allocation3 + $0x3]] }
 0x1c2   : > { %v6653_v36 = vsel %vm576_vm7, %v2705_v38, %v2706_v29  ;;  %v2740_v27 = vmul.f32 %v2739_v54, %v6303_v19  ;;  %2247 = vrot.lane.b32.xlu1 %v6165_v20, %s8478_s19  ;;  %v6661_v26 = vsel %vm576_vm7, %v2731_v37, %v2732_v25  ;;  %v6664_v42 = vsel %vm427_vm6, %v1596_v4, %v1597_v0  ;;  %s6940_s29 = sld [smem:[#allocation8 + $0x12]] }
 0x1c3   : > { %2234 = vrot.lane.b32.xlu0 %v6179_v15, %s8478_s19  ;;  %v2741_v1 = vmul.f32 %v2739_v54, %v6349_v5  ;;  %v1585_v55 = vrot.slane %v1581_v49, 1  ;;  %v1586_v43 = vrot.slane %v1582_v58, 1  ;;  %v2753_v38 = vmul.f32 %v2752_v47, %v6303_v19  ;;  %8748 = sst [smem:[#allocation36_spill]] %s6814_s16  ;;  %s6942_s16 = sld [smem:[#allocation8 + $0x16]] }
 0x1c4   : > { %v2754_v20 = vmul.f32 %v2752_v47, %v6349_v5  ;;  %v870_v24 = vadd.f32 %v6462_v40, %v822_v45  ;;  %v844_v15 = vadd.f32 %v5980_v30, %v800_v62  ;;  %v6673_v35 = vpop.permute.xlu1 %1093  ;;  %v6675_v57 = vpop.permute.xlu0 %1080  ;;  %v2718_v29 = vrot.slane %v2714_v13, 2  ;;  %v6684_v30 = vld [vmem:[#allocation2 + $0x38] sm:$0xff] }
 0x1c5   : > { %v2719_v37 = vrot.slane %v2715_v33, 2  ;;  %v857_v25 = vadd.f32 %v6464_v41, %v811_v52  ;;  %v833_v4 = vadd.f32 %v5983_v10, %v792_v39  ;;  %v2744_v0 = vrot.slane %v2740_v27, 2  ;;  %8750 = sst [smem:[#allocation37_spill]] %s6820_s2 }
 0x1c6   : > { %v2765_v54 = vstv %s6625_s20  ;;  %v922_v40 = vadd.f32 %v6532_v21, %v870_v24  ;;  %2317 = vrot.lane.b32.xlu1 %v6186_v11, %s8467_s22  ;;  %v2745_v49 = vrot.slane %v2741_v1, 2  ;;  %v2796_v58 = vstv %s6623_s23  ;;  %s6834_s23 = sld [smem:[#allocation8 + $0xf]]  ;;  %s6846_s20 = sld [smem:[#allocation6 + $0x3]] }
 0x1c7   : > { %2304 = vrot.lane.b32.xlu0 %v6213_v18, %s8467_s22  ;;  %v2804_v13 = vstv %s6632_s27  ;;  %v909_v41 = vadd.f32 %v6534_v8, %v857_v25  ;;  %v2757_v10 = vrot.slane %v2753_v38, 2  ;;  %v2758_v56 = vrot.slane %v2754_v20, 2  ;;  %s6848_s27 = sld [smem:[#allocation8 + $0x7]]  ;;  %8769 = sst [smem:[#allocation54_spill]] %s6932_s30 }
 0x1c8   : > { %v1717_v45 = vstv %s6640_s15  ;;  %v896_v62 = vadd.f32 %v6502_v51, %v844_v15  ;;  %v6696_v33 = vpop.permute.xlu1 %1245  ;;  %v6698_v21 = vpop.permute.xlu0 %1232  ;;  %v6701_v11 = vsel %vm427_vm6, %v1585_v55, %v1586_v43  ;;  %v6704_v18 = vsel %vm576_vm7, %v2718_v29, %v2719_v37  ;;  %v8738_v37 = vld [vmem:[#allocation139_spill] sm:$0xff]  ;;  %s6860_s15 = sld [smem:[#allocation8 + $0xb]]  ;;  %s6956_s2 = sld [smem:[#allocation3]] }
 0x1c9   : > { %v6707_v47 = vmul.f32 %v2765_v54, %v6303_v19  ;;  %v883_v8 = vadd.f32 %v6504_v6, %v833_v4  ;;  %v6711_v31 = vmul.f32 %v2796_v58, %v6684_v30  ;;  %v6714_v51 = vmul.f32 %v2804_v13, %v6684_v30  ;;  %s7022_s30 = sld [smem:[#allocation3 + $0x2]] }
 0x1ca   : > { %v6717_v52 = vmul.f32 %v2765_v54, %v6349_v5  ;;  %v948_v39 = vadd.f32 %v6554_v17, %v896_v62  ;;  %v970_v27 = vadd.f32 %v6032_v50, %v922_v40  ;;  %2343 = vrot.lane.b32.xlu1 %v6253_v23, %s8467_s22  ;;  %v6728_v19 = vmul.f32 %v6429_v28, %v1717_v45  ;;  %v8737_v17 = vld [vmem:[#allocation136_spill] sm:$0xff]  ;;  %v8740_v54 = vld [vmem:[#allocation110_spill] sm:$0xff] }
 0x1cb   : > { %2330 = vrot.lane.b32.xlu0 %v6265_v14, %s8467_s22  ;;  %v1706_v6 = vstv %s6667_s8  ;;  %v935_v5 = vadd.f32 %v6556_v3, %v883_v8  ;;  %v959_v1 = vadd.f32 %v8737_v17, %v909_v41  ;;  %v6738_v50 = vsel %vm576_vm7, %v2744_v0, %v2745_v49  ;;  %v8739_v0 = vld [vmem:[#allocation109_spill] sm:$0xff]  ;;  %v8741_v49 = vld [vmem:[#allocation140_spill] sm:$0xff]  ;;  %s6862_s8 = sld [smem:[#allocation6 + $0xc]] }
 0x1cc   : > { %v6741_v23 = vsel %vm576_vm7, %v2757_v10, %v2758_v56  ;;  %v1018_v14 = vadd.f32 %v6587_v7, %v970_v27  ;;  %v6748_v55 = vpop.permute.xlu1 %1271  ;;  %v6750_v43 = vpop.permute.xlu0 %1258  ;;  %v2770_v3 = vrot.slane %v6707_v47, 2  ;;  %v1719_v38 = vmul.f32 %v6548_v53, %v1717_v45  ;;  %v8746_v27 = vld [vmem:[#allocation141_spill] sm:$0xff]  ;;  %8751 = sst [smem:[#allocation26_spill]] %s6834_s23  ;;  %s6954_s23 = sld [smem:[#allocation3 + $0x2b]] }
 0x1cd   : > { %v1739_v20 = vstv %s6677_s13  ;;  %v1005_v24 = vadd.f32 %v6589_v60, %v959_v1  ;;  %v1707_v15 = vmul.f32 %v6429_v28, %v1706_v6  ;;  %v1708_v29 = vmul.f32 %v6548_v53, %v1706_v6  ;;  %8752 = sst [smem:[#allocation27_spill]] %s6846_s20  ;;  %s6870_s13 = sld [smem:[#allocation6 + $0xd]] }
 0x1ce   : > { %v1728_v7 = vstv %s6682_s9  ;;  %v992_v25 = vadd.f32 %v8738_v37, %v948_v39  ;;  %v1070_v4 = vadd.f32 %v6644_v16, %v1018_v14  ;;  %2369 = vrot.lane.b32.xlu1 %v8739_v0, %s8478_s19  ;;  %v2771_v60 = vrot.slane %v6717_v52, 2  ;;  %8753 = sst [smem:[#allocation28_spill]] %s6848_s27  ;;  %v8756_v0 = vld [vmem:[#allocation111_spill] sm:$0xff]  ;;  %s6872_s9 = sld [smem:[#allocation6 + $0xe]] }
 0x1cf   : > { %2356 = vrot.lane.b32.xlu0 %v8740_v54, %s8478_s19  ;;  %v1722_v40 = vrot.slane %v6728_v19, 2  ;;  %v981_v58 = vadd.f32 %v8741_v49, %v935_v5  ;;  %v1057_v13 = vadd.f32 %v6646_v9, %v1005_v24  ;;  %v1740_v16 = vmul.f32 %v6429_v28, %v1739_v20  ;;  %s6962_s20 = sld [smem:[#allocation3 + $0x4a]]  ;;  %s6972_s27 = sld [smem:[#allocation3 + $0x58]] }
 0x1d0   : > { %v1741_v41 = vmul.f32 %v6548_v53, %v1739_v20  ;;  %v1044_v10 = vadd.f32 %v6615_v48, %v992_v25  ;;  %v6788_v56 = vpop.permute.xlu1 %1297  ;;  %v6790_v45 = vpop.permute.xlu0 %1284  ;;  %v1723_v62 = vrot.slane %v1719_v38, 2  ;;  %v1729_v9 = vmul.f32 %v6429_v28, %v1728_v7  ;;  %v8755_v25 = vld [vmem:[#allocation147_spill] sm:$0xff] }
 0x1d1   : > { %v1730_v47 = vmul.f32 %v6548_v53, %v1728_v7  ;;  %v1031_v8 = vadd.f32 %v6617_v12, %v981_v58  ;;  %v1711_v52 = vrot.slane %v1707_v15, 2  ;;  %v1712_v39 = vrot.slane %v1708_v29, 2  ;;  %v8749_v12 = vld [vmem:[#allocation146_spill] sm:$0xff]  ;;  %8757 = sst [smem:[#allocation49_spill]] %s6862_s8  ;;  %v8759_v58 = vld [vmem:[#allocation104_spill] sm:$0xff]  ;;  %s6978_s8 = sld [smem:[#allocation8 + $0x1]] }
 0x1d2   : > { %v2812_v48 = vstv %s6719_s12  ;;  %v1106_v19 = vadd.f32 %v8746_v27, %v1070_v4  ;;  %v1096_v6 = vadd.f32 %v6673_v35, %v1044_v10  ;;  %2395 = vrot.lane.b32.xlu1 %v6326_v34, %s8478_s19  ;;  %v2828_v28 = vstv %s6731_s17  ;;  %v8754_v7 = vld [vmem:[#allocation134_spill] sm:$0xff]  ;;  %s6886_s12 = sld [smem:[#allocation6 + $0xf]]  ;;  %s6888_s17 = sld [smem:[#allocation8 + $0x6]] }
 0x1d3   : > { %2382 = vrot.lane.b32.xlu0 %v6342_v63, %s8478_s19  ;;  %v2820_v53 = vstv %s6733_s6  ;;  %v1102_v5 = vadd.f32 %v8749_v12, %v1057_v13  ;;  %v1083_v17 = vadd.f32 %v6675_v57, %v1031_v8  ;;  %v1744_v1 = vrot.slane %v1740_v16, 2  ;;  %s6896_s6 = sld [smem:[#allocation8 + $0xa]]  ;;  %v8786_v8 = vld [vmem:[#allocation151_spill] sm:$0xff] }
 0x1d4   : > { %v1745_v14 = vrot.slane %v1741_v41, 2  ;;  %v6822_v34 = vpop.permute.xlu1 %1323  ;;  %v6824_v63 = vpop.permute.xlu0 %1310  ;;  %v6827_v35 = vsel %vm576_vm7, %v2770_v3, %v2771_v60  ;;  %v6830_v38 = vsel %vm576_vm7, %v1722_v40, %v1723_v62  ;;  %v1733_v20 = vrot.slane %v1729_v9, 2  ;;  %v8758_v40 = vld [vmem:[#allocation135_spill] sm:$0xff] }
 0x1d5   : > { %v1734_v57 = vrot.slane %v1730_v47, 2  ;;  %v6837_v24 = vsel %vm576_vm7, %v1711_v52, %v1712_v39  ;;  %v6840_v15 = vmul.f32 %v2812_v48, %v6684_v30  ;;  %v6843_v3 = vmul.f32 %v2828_v28, %v6684_v30  ;;  %v6890_v52 = vld [vmem:[#allocation2 + $0x40] sm:$0x3]  ;;  %v8773_v48 = vld [vmem:[#allocation154_spill] sm:$0xff] }
 0x1d6   : > { %v2836_v29 = vstv %s6743_s10  ;;  %v1130_v37 = vadd.f32 %v8754_v7, %v1106_v19  ;;  %v1114_v4 = vadd.f32 %v8755_v25, %v1096_v6  ;;  %2429 = vrot.lane.b32.xlu1 %v6329_v2, %s8467_s22  ;;  %v6857_v54 = vmul.f32 %v2820_v53, %v6684_v30  ;;  %s6898_s10 = sld [smem:[#allocation6 + $0x8]]  ;;  %v8761_v6 = vld [vmem:[#allocation137_spill] sm:$0xff]  ;;  %v8762_v53 = vld [vmem:[#allocation142_spill] sm:$0xff] }
 0x1d7   : > { %2421 = vrot.lane.b32.xlu0 %v8756_v0, %s8467_s22  ;;  %v1122_v49 = vadd.f32 %v8758_v40, %v1102_v5  ;;  %v1110_v13 = vadd.f32 %v8759_v58, %v1083_v17  ;;  %v6867_v2 = vsel %vm576_vm7, %v1744_v1, %v1745_v14  ;;  %v6879_v62 = vsel %vm576_vm7, %v1733_v20, %v1734_v57  ;;  %v8763_v5 = vld [vmem:[#allocation148_spill] sm:$0xff]  ;;  %v8764_v17 = vld [vmem:[#allocation149_spill] sm:$0xff]  ;;  %v8767_v20 = vld [vmem:[#allocation138_spill] sm:$0xff] }
 0x1d8   : > { %v6874_v41 = vpop.permute.xlu1 %1393  ;;  %v6876_v10 = vpop.permute.xlu0 %1380  ;;  %v6882_v9 = vmul.f32 %v2836_v29, %v6684_v30  ;;  %8760 = sst [smem:[#allocation51_spill]] %s6886_s12  ;;  %v2904_v19 = vstv %s6745_s14  ;;  %v1146_v28 = vadd.f32 %v8761_v6, %v1114_v4  ;;  %v1162_v12 = vadd.f32 %v8762_v53, %v1130_v37  ;;  %s6910_s14 = sld [smem:[#allocation8 + $0x14]]  ;;  %v8768_v29 = vld [vmem:[#allocation143_spill] sm:$0xff]  ;;  %v8771_v40 = vld [vmem:[#allocation144_spill] sm:$0xff]  ;;  %v8779_v58 = vld [vmem:[#allocation157_spill] sm:$0xff] }
 0x1d9   : > { %v1138_v57 = vadd.f32 %v8767_v20, %v1110_v13  ;;  %v1154_v7 = vadd.f32 %v8768_v29, %v1122_v49  ;;  %v2844_v25 = vstv %s6755_s11  ;;  %v6927_v6 = vmul.f32 %v2904_v19, %v6684_v30  ;;  %s6934_s11 = sld [smem:[#allocation6 + $0xa]]  ;;  %v8770_v20 = vld [vmem:[#allocation105_spill] sm:$0xff]  ;;  %s6990_s12 = sld [smem:[#allocation3 + $0x4b]] }
 0x1da   : > { %2445 = vrot.lane.b32.xlu1 %v8763_v5, %s8467_s22  ;;  %v6930_v13 = vmul.f32 %v2904_v19, %v6890_v52  ;;  %v1200_v29 = vadd.f32 %v8770_v20, %v1162_v12  ;;  %v1178_v14 = vadd.f32 %v8771_v40, %v1146_v28  ;;  %v8772_v19 = vld [vmem:[#allocation152_spill] sm:$0xff]  ;;  %v6951_v49 = vmul.f32 %v2844_v25, %v6684_v30  ;;  %v8775_v28 = vld [vmem:[#allocation106_spill] sm:$0xff]  ;;  %v8776_v40 = vld [vmem:[#allocation145_spill] sm:$0xff] }
 0x1db   : > { %2437 = vrot.lane.b32.xlu0 %v8764_v17, %s8467_s22  ;;  %v1189_v12 = vadd.f32 %v8775_v28, %v1154_v7  ;;  %v1170_v20 = vadd.f32 %v8776_v40, %v1138_v57  ;;  %v2909_v5 = vrot.slane %v6927_v6, 1  ;;  %v2917_v40 = vstv %s6757_s28  ;;  %s6988_s28 = sld [smem:[#allocation8]] }
 0x1dc   : > { %v6920_v4 = vpop.permute.xlu1 %1419  ;;  %v6922_v0 = vpop.permute.xlu0 %1406  ;;  %8774 = vst [vmem:[#allocation114_spill] sm:$0xff] %v6951_v49  ;;  %v2910_v17 = vrot.slane %v6930_v13, 1  ;;  %v1248_v39 = vadd.f32 %v6696_v33, %v1200_v29  ;;  %v8778_v13 = vld [vmem:[#allocation155_spill] sm:$0xff]  ;;  %v8780_v29 = vld [vmem:[#allocation108_spill] sm:$0xff]  ;;  %v2918_v7 = vmul.f32 %v2917_v40, %v6684_v30  ;;  %v2919_v37 = vmul.f32 %v2917_v40, %v6890_v52 }
 0x1dd   : > { %v1235_v33 = vadd.f32 %v6698_v21, %v1189_v12  ;;  %v2852_v53 = vstv %s6954_s23  ;;  %v2024_v57 = vstv %s6956_s2  ;;  %v7034_v21 = vld [vmem:[#allocation2 + $0x8] sm:$0xff]  ;;  %s7038_s2 = sld [smem:[#allocation8 + $0x2]]  ;;  %s7046_s23 = sld [smem:[#allocation3 + $0x78]] }
 0x1de   : > { %8766 = sst [smem:[#allocation53_spill]] %s6910_s14  ;;  %2461 = vrot.lane.b32.xlu1 %v8772_v19, %s8478_s19  ;;  %v8777_v19 = vld [vmem:[#allocation107_spill] sm:$0xff]  ;;  %s7010_s14 = sld [smem:[#allocation8 + $0x3]]  ;;  %v7018_v40 = vsel %vm427_vm6, %v2909_v5, %v2910_v17  ;;  %v1300_v12 = vadd.f32 %v6788_v56, %v1248_v39  ;;  %v2922_v5 = vrot.slane %v2918_v7, 1  ;;  %v2923_v17 = vrot.slane %v2919_v37, 1 }
 0x1df   : > { %2453 = vrot.lane.b32.xlu0 %v8773_v48, %s8478_s19  ;;  %v1222_v6 = vadd.f32 %v8777_v19, %v1178_v14  ;;  %v1211_v14 = vadd.f32 %v8780_v29, %v1170_v20  ;;  %v2028_v29 = vstv %s6765_s5  ;;  %8781 = vst [vmem:[#allocation116_spill] sm:$0xff] %v7018_v40  ;;  %s7028_s5 = sld [smem:[#allocation3 + $0x59]]  ;;  %v2013_v39 = vstv %s6978_s8  ;;  %v8783_v37 = vld [vmem:[#allocation123_spill] sm:$0xff]  ;;  %s7075_s8 = sld [smem:[#allocation3 + $0x5b]] }
 0x1e0   : > { %v6964_v48 = vpop.permute.xlu1 %1445  ;;  %v6966_v25 = vpop.permute.xlu0 %1432  ;;  %v2029_v28 = vmul.f32 %v7034_v21, %v2028_v29  ;;  %v8784_v7 = vld [vmem:[#allocation159_spill] sm:$0xff] }
 0x1e1   : > { %v1274_v19 = vadd.f32 %v6748_v55, %v1222_v6  ;;  %v1261_v20 = vadd.f32 %v6750_v43, %v1211_v14  ;;  %v1287_v55 = vadd.f32 %v6790_v45, %v1235_v33  ;;  %v2930_v6 = vstv %s6962_s20  ;;  %s7048_s20 = sld [smem:[#allocation3 + $0x5a]] }
 0x1e2   : > { %2477 = vrot.lane.b32.xlu1 %v8778_v13, %s8478_s19  ;;  %v2956_v43 = vstv %s6972_s27  ;;  %v7042_v45 = vmul.f32 %v2852_v53, %v6684_v30  ;;  %v2025_v33 = vmul.f32 %v7034_v21, %v2024_v57  ;;  %v2010_v14 = vstv %s6988_s28  ;;  %s7058_s27 = sld [smem:[#allocation3 + $0x79]]  ;;  %v8785_v57 = vld [vmem:[#allocation150_spill] sm:$0xff]  ;;  %s7146_s28 = sld [smem:[#allocation3 + $0x88]] }
 0x1e3   : > { %2469 = vrot.lane.b32.xlu0 %v8779_v58, %s8478_s19  ;;  %v1326_v56 = vadd.f32 %v6822_v34, %v1274_v19  ;;  %v2931_v34 = vmul.f32 %v2930_v6, %v6684_v30  ;;  %v2932_v53 = vmul.f32 %v2930_v6, %v6890_v52  ;;  %v2943_v19 = vstv %s6990_s12  ;;  %s7109_s12 = sld [smem:[#allocation6 + $0xb]] }
 0x1e4   : > { %v6996_v13 = vpop.permute.xlu1 %1471  ;;  %v6998_v58 = vpop.permute.xlu0 %1458  ;;  %8782 = vst [vmem:[#allocation131_spill] sm:$0xff] %v7042_v45  ;;  %v1348_v29 = vadd.f32 %v8785_v57, %v1300_v12  ;;  %v1337_v47 = vadd.f32 %v8786_v8, %v1287_v55  ;;  %v2957_v1 = vmul.f32 %v2956_v43, %v6684_v30  ;;  %v7070_v6 = vsel %vm427_vm6, %v2922_v5, %v2923_v17  ;;  %v8789_v8 = vld [vmem:[#allocation153_spill] sm:$0xff] }
 0x1e5   : > { %8787 = vst [vmem:[#allocation115_spill] sm:$0xff] %v7070_v6  ;;  %v7072_v60 = vadd.f32 %v2029_v28, %v2013_v39  ;;  %v2036_v12 = vstv %s7004_s26  ;;  %v1370_v55 = vadd.f32 %v8789_v8, %v1326_v56  ;;  %v7078_v57 = vadd.f32 %v2025_v33, %v2010_v14  ;;  %s7090_s26 = sld [smem:[#allocation3 + $0x31]] }
 0x1e6   : > { %2547 = vrot.lane.b32.xlu1 %v6450_v59, %s8467_s22  ;;  %v2935_v28 = vrot.slane %v2931_v34, 1  ;;  %v2936_v5 = vrot.slane %v2932_v53, 1  ;;  %v2032_v17 = vstv %s7022_s30  ;;  %v2945_v39 = vmul.f32 %v2943_v19, %v6890_v52  ;;  %s7103_s30 = sld [smem:[#allocation3 + $0x30]] }
 0x1e7   : > { %2534 = vrot.lane.b32.xlu0 %v6470_v22, %s8467_s22  ;;  %8788 = vst [vmem:[#allocation117_spill] sm:$0xff] %v7072_v60  ;;  %8790 = vst [vmem:[#allocation121_spill] sm:$0xff] %v7078_v57  ;;  %v2961_v56 = vrot.slane %v2957_v1, 1  ;;  %v2037_v14 = vmul.f32 %v7034_v21, %v2036_v12  ;;  %v2969_v8 = vstv %s7028_s5  ;;  %v1383_v57 = vadd.f32 %v6876_v10, %v1337_v47  ;;  %v8792_v60 = vld [vmem:[#allocation156_spill] sm:$0xff]  ;;  %s7157_s5 = sld [smem:[#allocation3 + $0x33]] }
 0x1e8   : > { %v7030_v59 = vpop.permute.xlu1 %1505  ;;  %v7032_v22 = vpop.permute.xlu0 %1497  ;;  %v2016_v45 = vstv %s7038_s2  ;;  %v2033_v1 = vmul.f32 %v7034_v21, %v2032_v17  ;;  %v2982_v12 = vstv %s7048_s20  ;;  %v2970_v10 = vmul.f32 %v2969_v8, %v6684_v30  ;;  %s7167_s2 = sld [smem:[#allocation8 + $0x13]] }
 0x1e9   : > { %v2971_v47 = vmul.f32 %v2969_v8, %v6890_v52  ;;  %v2983_v8 = vmul.f32 %v2982_v12, %v6684_v30  ;;  %v2995_v40 = vstv %s7075_s8  ;;  %s7203_s20 = sld [smem:[#allocation3 + $0x7b]]  ;;  %s7228_s8 = sld [smem:[#allocation3 + $0x1c]] }
 0x1ea   : > { %2560 = vrot.lane.b32.xlu1 %v8783_v37, %s8467_s22  ;;  %v2958_v37 = vmul.f32 %v2956_v43, %v6890_v52  ;;  %v2019_v43 = vstv %s7010_s14  ;;  %s7131_s14 = sld [smem:[#allocation3 + $0x7a]] }
 0x1eb   : > { %2586 = vrot.lane.b32.xlu0 %v8784_v7, %s8478_s19  ;;  %v1313_v7 = vadd.f32 %v6824_v63, %v1261_v20  ;;  %v2944_v63 = vmul.f32 %v2943_v19, %v6684_v30  ;;  %v8791_v20 = vld [vmem:[#allocation125_spill] sm:$0xff] }
 0x1ec   : > { %v7065_v16 = vpop.permute.xlu1 %1521  ;;  %v7067_v27 = vpop.permute.xlu0 %1513  ;;  %v2962_v33 = vrot.slane %v2958_v37, 1  ;;  %v3052_v37 = vstv %s7046_s23  ;;  %s7175_s23 = sld [smem:[#allocation3 + $0x32]] }
 0x1ed   : > { %v2948_v19 = vrot.slane %v2944_v63, 1  ;;  %v7116_v63 = vsel %vm427_vm6, %v2935_v28, %v2936_v5  ;;  %v3054_v49 = vmul.f32 %v3052_v37, %v6890_v52  ;;  %v8795_v5 = vld [vmem:[#allocation113_spill] sm:$0xff] }
 0x1ee   : > { %2573 = vrot.lane.b32.xlu1 %v8791_v20, %s8467_s22  ;;  %v1396_v20 = vadd.f32 %v6874_v41, %v1348_v29  ;;  %v8793_v41 = vld [vmem:[#allocation112_spill] sm:$0xff]  ;;  %v3065_v29 = vstv %s7058_s27  ;;  %v7119_v17 = vsel %vm427_vm6, %v2961_v56, %v2962_v33  ;;  %v8796_v56 = vld [vmem:[#allocation130_spill] sm:$0xff]  ;;  %v7141_v33 = vadd.f32 %v2033_v1, %v2016_v45  ;;  %s7213_s27 = sld [smem:[#allocation3 + $0x89]] }
 0x1ef   : > { %2599 = vrot.lane.b32.xlu0 %v6566_v46, %s8478_s19  ;;  %v1359_v46 = vadd.f32 %v8792_v60, %v1313_v7  ;;  %v2949_v60 = vrot.slane %v2945_v39, 1  ;;  %v1422_v7 = vadd.f32 %v6920_v4, %v1370_v55  ;;  %v3053_v39 = vmul.f32 %v3052_v37, %v6684_v30 }
 0x1f0   : > { %v7095_v34 = vpop.permute.xlu1 %1537  ;;  %v7097_v53 = vpop.permute.xlu0 %1529  ;;  %v2984_v55 = vmul.f32 %v2982_v12, %v6890_v52  ;;  %v3067_v28 = vmul.f32 %v3065_v29, %v6890_v52  ;;  %8797 = vst [vmem:[#allocation122_spill] sm:$0xff] %v7141_v33  ;;  %v2974_v37 = vrot.slane %v2970_v10, 1  ;;  %v2996_v12 = vmul.f32 %v2995_v40, %v6684_v30 }
 0x1f1   : > { %v1409_v4 = vadd.f32 %v6922_v0, %v1359_v46  ;;  %v1448_v0 = vadd.f32 %v6964_v48, %v1396_v20  ;;  %v1435_v46 = vadd.f32 %v6966_v25, %v1383_v57  ;;  %v3057_v1 = vrot.slane %v3053_v39, 2  ;;  %v8798_v39 = vld [vmem:[#allocation158_spill] sm:$0xff] }
 0x1f2   : > { %2682 = vrot.lane.b32.xlu1 %v6569_v61, %s8467_s22  ;;  %v7121_v61 = vadd.f32 %v2037_v14, %v2019_v43  ;;  %v3066_v43 = vmul.f32 %v3065_v29, %v6684_v30  ;;  %v7144_v14 = vsel %vm427_vm6, %v2948_v19, %v2949_v60  ;;  %v2115_v29 = vstv %s7090_s26  ;;  %s7230_s26 = sld [smem:[#allocation3 + $0x8a]] }
 0x1f3   : > { %2612 = vrot.lane.b32.xlu0 %v8793_v41, %s8478_s19  ;;  %v3058_v19 = vrot.slane %v3054_v49, 2  ;;  %v2987_v60 = vrot.slane %v2983_v8, 1  ;;  %v2997_v10 = vmul.f32 %v2995_v40, %v6890_v52  ;;  %v3071_v48 = vrot.slane %v3067_v28, 2  ;;  %v8801_v49 = vld [vmem:[#allocation124_spill] sm:$0xff] }
 0x1f4   : > { %8794 = vst [vmem:[#allocation118_spill] sm:$0xff] %v7121_v61  ;;  %v7123_v6 = vpop.permute.xlu1 %1553  ;;  %v7125_v41 = vpop.permute.xlu0 %1545  ;;  %v2975_v61 = vrot.slane %v2971_v47, 1  ;;  %v2988_v47 = vrot.slane %v2984_v55, 1  ;;  %v2104_v20 = vstv %s7103_s30  ;;  %v1474_v25 = vadd.f32 %v6996_v13, %v1422_v7  ;;  %v8799_v55 = vld [vmem:[#allocation120_spill] sm:$0xff]  ;;  %s7247_s30 = sld [smem:[#allocation8 + $0x17]] }
 0x1f5   : > { %v1461_v57 = vadd.f32 %v6998_v58, %v1409_v4  ;;  %v2116_v40 = vmul.f32 %v7034_v21, %v2115_v29  ;;  %v1484_v8 = vadd.f32 %v8798_v39, %v1448_v0  ;;  %v3000_v58 = vrot.slane %v2996_v12, 1  ;;  %v7181_v4 = vld [vmem:[#allocation2 + $0x10] sm:$0x3] }
 0x1f6   : > { %2695 = vrot.lane.b32.xlu1 %v8795_v5, %s8467_s22  ;;  %v7173_v13 = vsel %vm427_vm6, %v2974_v37, %v2975_v61  ;;  %v2117_v28 = vmul.f32 %v7181_v4, %v2115_v29  ;;  %v2105_v0 = vmul.f32 %v7034_v21, %v2104_v20  ;;  %v3078_v39 = vstv %s7131_s14  ;;  %s7257_s14 = sld [smem:[#allocation3 + $0x1d]] }
 0x1f7   : > { %2625 = vrot.lane.b32.xlu0 %v8796_v56, %s8478_s19  ;;  %v3070_v56 = vrot.slane %v3066_v43, 2  ;;  %v1480_v43 = vadd.f32 %v8799_v55, %v1435_v46  ;;  %v7187_v46 = vsel %vm576_vm7, %v3057_v1, %v3058_v19  ;;  %v7190_v61 = vsel %vm427_vm6, %v2987_v60, %v2988_v47  ;;  %v8800_v55 = vld [vmem:[#allocation160_spill] sm:$0xff] }
 0x1f8   : > { %v7152_v5 = vpop.permute.xlu1 %1623  ;;  %v7154_v45 = vpop.permute.xlu0 %1610  ;;  %v2106_v12 = vmul.f32 %v7181_v4, %v2104_v20  ;;  %v1488_v33 = vadd.f32 %v8801_v49, %v1461_v57  ;;  %v2120_v29 = vrot.slane %v2116_v40, 1  ;;  %v3104_v1 = vstv %s7146_s28  ;;  %s7264_s28 = sld [smem:[#allocation3 + $0x8b]] }
 0x1f9   : > { %v7193_v37 = vsel %vm576_vm7, %v3070_v56, %v3071_v48  ;;  %v1508_v19 = vadd.f32 %v7030_v59, %v1484_v8  ;;  %v1500_v60 = vadd.f32 %v7032_v22, %v1480_v43  ;;  %v3079_v47 = vmul.f32 %v3078_v39, %v6684_v30 }
 0x1fa   : > { %2708 = vrot.lane.b32.xlu1 %v6653_v36, %s8467_s22  ;;  %v3080_v56 = vmul.f32 %v3078_v39, %v6890_v52  ;;  %v2137_v57 = vstv %s7157_s5  ;;  %v2110_v49 = vrot.slane %v2106_v12, 1  ;;  %v3105_v40 = vmul.f32 %v3104_v1, %v6684_v30  ;;  %s7284_s5 = sld [smem:[#allocation3 + $0x61]] }
 0x1fb   : > { %2734 = vrot.lane.b32.xlu0 %v6661_v26, %s8478_s19  ;;  %v3001_v26 = vrot.slane %v2997_v10, 1  ;;  %v1492_v10 = vadd.f32 %v8800_v55, %v1474_v25  ;;  %v2121_v25 = vrot.slane %v2117_v28, 1  ;;  %v1540_v59 = vadd.f32 %v7095_v34, %v1508_v19 }
 0x1fc   : > { %v7177_v36 = vpop.permute.xlu1 %1649  ;;  %v7179_v7 = vpop.permute.xlu0 %1636  ;;  %v1532_v22 = vadd.f32 %v7097_v53, %v1500_v60  ;;  %v1516_v43 = vadd.f32 %v7067_v27, %v1488_v33  ;;  %v3083_v28 = vrot.slane %v3079_v47, 2  ;;  %v3084_v34 = vrot.slane %v3080_v56, 2 }
 0x1fd   : > { %v1524_v8 = vadd.f32 %v7065_v16, %v1492_v10  ;;  %v2138_v53 = vmul.f32 %v7034_v21, %v2137_v57  ;;  %v2139_v39 = vmul.f32 %v7181_v4, %v2137_v57  ;;  %v1578_v12 = vadd.f32 %v6611_v44, %v1540_v59 }
 0x1fe   : > { %2721 = vrot.lane.b32.xlu1 %v6704_v18, %s8467_s22  ;;  %v7210_v18 = vsel %vm427_vm6, %v3000_v58, %v3001_v26  ;;  %v2002_v58 = vstv %s7167_s2  ;;  %v3106_v26 = vmul.f32 %v3104_v1, %v6890_v52  ;;  %v1567_v55 = vadd.f32 %v6635_v32, %v1532_v22 }
 0x1ff   : > { %2747 = vrot.lane.b32.xlu0 %v6738_v50, %s8478_s19  ;;  %v2109_v50 = vrot.slane %v2105_v0, 1  ;;  %v2126_v0 = vstv %s7175_s23  ;;  %v1556_v16 = vadd.f32 %v7123_v6, %v1524_v8  ;;  %v3109_v1 = vrot.slane %v3105_v40, 2  ;;  %s7300_s23 = sld [smem:[#allocation3 + $0x60]] }
 0x200   : > { %v1676_v48 = vpop.permute.xlu1 %1675  ;;  %v3110_v6 = vrot.slane %v3106_v26, 2  ;;  %v2128_v44 = vmul.f32 %v7181_v4, %v2126_v0  ;;  %v1626_v32 = vadd.f32 %v7152_v5, %v1578_v12  ;;  %v1613_v19 = vadd.f32 %v7154_v45, %v1567_v55 }
 0x201   : > { %v1663_v20 = vpop.permute.xlu0 %1662  ;;  %v7241_v10 = vsel %vm427_vm6, %v2109_v50, %v2110_v49  ;;  %v7255_v60 = vsel %vm576_vm7, %v3083_v28, %v3084_v34  ;;  %v2143_v50 = vrot.slane %v2139_v39, 1  ;;  %v3117_v57 = vstv %s7213_s27  ;;  %s8813_s27 = sld [smem:[#allocation34_spill]] }
 0x202   : > { %2799 = vrot.lane.b32.xlu1 %v6711_v31, %s8467_s22  ;;  %v1548_v31 = vadd.f32 %v7125_v41, %v1516_v43  ;;  %v2127_v41 = vmul.f32 %v7034_v21, %v2126_v0  ;;  %v1678_v59 = vadd.f32 %v1676_v48, %v1626_v32  ;;  %v1665_v5 = vadd.f32 %v1663_v20, %v1613_v19  ;;  %v7272_v48 = vld [vmem:[#allocation2 + $0x50] sm:$0xff] }
 0x203   : > { %2760 = vrot.lane.b32.xlu0 %v6741_v23, %s8478_s19  ;;  %v7235_v23 = vsel %vm427_vm6, %v2120_v29, %v2121_v25  ;;  %v3091_v29 = vstv %s7203_s20  ;;  %v2132_v40 = vrot.slane %v2128_v44, 1  ;;  %v7275_v20 = vsel %vm576_vm7, %v3109_v1, %v3110_v6  ;;  %s8808_s20 = sld [smem:[#allocation33_spill]] }
 0x204   : > { %v1702_v27 = vpop.permute.xlu1 %1701  ;;  %v1589_v47 = vadd.f32 %v6701_v11, %v1548_v31  ;;  %v3092_v45 = vmul.f32 %v3091_v29, %v6684_v30  ;;  %v3093_v22 = vmul.f32 %v3091_v29, %v6890_v52  ;;  %v2131_v11 = vrot.slane %v2127_v41, 1 }
 0x205   : > { %v1689_v33 = vpop.permute.xlu0 %1688  ;;  %v3118_v8 = vmul.f32 %v3117_v57, %v6684_v30  ;;  %v3174_v43 = vstv %s7228_s8  ;;  %v1715_v0 = vadd.f32 %v6837_v24, %v1665_v5  ;;  %v3182_v1 = vstv %s7257_s14  ;;  %s8814_s8 = sld [smem:[#allocation35_spill]]  ;;  %s8821_s14 = sld [smem:[#allocation37_spill]] }
 0x206   : > { %2807 = vrot.lane.b32.xlu1 %v6714_v51, %s8467_s22  ;;  %v2142_v51 = vrot.slane %v2138_v53, 1  ;;  %v1726_v53 = vadd.f32 %v6830_v38, %v1678_v59  ;;  %v3097_v31 = vrot.slane %v3093_v22, 2  ;;  %v7297_v39 = vmul.f32 %v3174_v43, %v7272_v48 }
 0x207   : > { %2773 = vrot.lane.b32.xlu0 %v6827_v35, %s8478_s19  ;;  %v1600_v35 = vadd.f32 %v6664_v42, %v1556_v16  ;;  %v1639_v42 = vadd.f32 %v7179_v7, %v1589_v47  ;;  %v3096_v16 = vrot.slane %v3092_v45, 2  ;;  %v3122_v55 = vrot.slane %v3118_v8, 2 }
 0x208   : > { %v1772_v56 = vpop.permute.xlu1 %1771 }
 0x209   : > { %v1759_v25 = vpop.permute.xlu0 %1758  ;;  %v1652_v49 = vadd.f32 %v7177_v36, %v1600_v35  ;;  %v3130_v36 = vstv %s7230_s26  ;;  %v1691_v7 = vadd.f32 %v1689_v33, %v1639_v42  ;;  %v7294_v33 = vsel %vm427_vm6, %v2131_v11, %v2132_v40  ;;  %s8815_s26 = sld [smem:[#allocation28_spill]] }
 0x20a   : > { %2815 = vrot.lane.b32.xlu1 %v6840_v15, %s8467_s22  ;;  %v7281_v15 = vsel %vm427_vm6, %v2142_v51, %v2143_v50  ;;  %v3131_v38 = vmul.f32 %v3130_v36, %v6684_v30  ;;  %v1774_v24 = vadd.f32 %v1772_v56, %v1726_v53  ;;  %v1761_v12 = vadd.f32 %v1759_v25, %v1715_v0  ;;  %v8802_v25 = vld [vmem:[#allocation116_spill] sm:$0xff]  ;;  %v8807_v53 = vld [vmem:[#allocation131_spill] sm:$0xff] }
 0x20b   : > { %2831 = vrot.lane.b32.xlu0 %v6843_v3, %s8478_s19  ;;  %v1704_v26 = vadd.f32 %v1702_v27, %v1652_v49  ;;  %v3119_v3 = vmul.f32 %v3117_v57, %v6890_v52  ;;  %v2005_v27 = vstv %s7247_s30  ;;  %v3132_v29 = vmul.f32 %v3130_v36, %v6890_v52  ;;  %s7510_s30 = sld [smem:[#allocation3 + $0x5c]] }
 0x20c   : > { %v1798_v28 = vpop.permute.xlu1 %1797  ;;  %v7307_v51 = vsel %vm576_vm7, %v3096_v16, %v3097_v31  ;;  %v3143_v35 = vstv %s7264_s28  ;;  %v7315_v50 = vmul.f32 %v3182_v1, %v7272_v48  ;;  %v2263_v11 = vstv %s7284_s5  ;;  %s8823_s28 = sld [smem:[#allocation26_spill]]  ;;  %s8853_s5 = sld [smem:[#allocation54_spill]] }
 0x20d   : > { %v1785_v34 = vpop.permute.xlu0 %1784  ;;  %v3123_v44 = vrot.slane %v3119_v3, 2  ;;  %v3136_v49 = vrot.slane %v3132_v29, 2  ;;  %v7321_v42 = vmul.f32 %v3143_v35, %v6684_v30  ;;  %v8806_v3 = vld [vmem:[#allocation115_spill] sm:$0xff]  ;;  %v7333_v30 = vmul.f32 %v3143_v35, %v6890_v52 }
 0x20e   : > { %2823 = vrot.lane.b32.xlu1 %v6857_v54, %s8467_s22  ;;  %v1748_v54 = vadd.f32 %v6867_v2, %v1704_v26  ;;  %v8803_v2 = vld [vmem:[#allocation114_spill] sm:$0xff]  ;;  %v8804_v26 = vstv %s6763_s4  ;;  %v2252_v0 = vstv %s7300_s23  ;;  %s8810_s4 = sld [smem:[#allocation25_spill]]  ;;  %v7348_v29 = vmul.f32 %v7181_v4, %v2263_v11  ;;  %s7445_s23 = sld [smem:[#allocation3 + $0x1f]] }
 0x20f   : > { %2839 = vrot.lane.b32.xlu0 %v6882_v9, %s8478_s19  ;;  %v1737_v9 = vadd.f32 %v6879_v62, %v1691_v7  ;;  %v3135_v62 = vrot.slane %v3131_v38, 2  ;;  %v7318_v22 = vsel %vm576_vm7, %v3122_v55, %v3123_v44  ;;  %v8809_v38 = vstv %s6775_s1  ;;  %s8818_s1 = sld [smem:[#allocation24_spill]] }
 0x210   : > { %v1824_v6 = vpop.permute.xlu1 %1823  ;;  %v1800_v47 = vadd.f32 %v1798_v28, %v1748_v54  ;;  %v8805_v28 = vstv %s6796_s24  ;;  %s8812_s24 = sld [smem:[#allocation27_spill]]  ;;  %v3148_v44 = vrot.slane %v7321_v42, 2  ;;  %v8817_v35 = vstv %s8808_s20  ;;  %s7447_s20 = sld [smem:[#allocation3 + $0x2d]] }
 0x211   : > { %v1811_v41 = vpop.permute.xlu0 %1810  ;;  %v1826_v32 = vadd.f32 %v1824_v6, %v1774_v24  ;;  %v1787_v56 = vadd.f32 %v1785_v34, %v1737_v9  ;;  %v7341_v52 = vsel %vm576_vm7, %v3135_v62, %v3136_v49  ;;  %v7344_v9 = vmul.f32 %v7034_v21, %v2263_v11 }
 0x212   : > { %v1813_v19 = vadd.f32 %v1811_v41, %v1761_v12  ;;  %2912 = vrot.lane.b32.xlu1 %v8802_v25, %s8467_s22  ;;  %v8811_v12 = vstv %s6800_s21  ;;  %s8819_s21 = sld [smem:[#allocation36_spill]]  ;;  %v7358_v25 = vmul.f32 %v7034_v21, %v2252_v0 }
 0x213   : > { %2847 = vrot.lane.b32.xlu0 %v8803_v2, %s8478_s19  ;;  %vm1862_vm8 = vcmp.gt.f32.partialorder %v1826_v32, 0.0  ;;  %v1863_v57 = vmul.f32 0.01, %v1826_v32 }
 0x214   : > { %vm1853_vm9 = vcmp.gt.f32.partialorder %v1813_v19, 0.0  ;;  %v1854_v59 = vmul.f32 0.01, %v1813_v19  ;;  %v1850_v5 = vpop.permute.xlu1 %1849  ;;  %v8820_v2 = vstv %s8810_s4  ;;  %s7465_s4 = sld [smem:[#allocation3 + $0x4d]] }
 0x215   : > { %v1837_v45 = vpop.permute.xlu0 %1836  ;;  %v1864_v40 = vsel %vm1862_vm8, %v1826_v32, %v1863_v57  ;;  %v1852_v43 = vadd.f32 %v1850_v5, %v1800_v47  ;;  %v8816_v32 = vstv %s6777_s0  ;;  %v8822_v57 = vstv %s6818_s18  ;;  %s7378_s0 = sld [smem:[#allocation3 + $0x63]]  ;;  %s8830_s18 = sld [smem:[#allocation49_spill]] }
 0x216   : > { %v1855_v8 = vsel %vm1853_vm9, %v1813_v19, %v1854_v59  ;;  %v1839_v36 = vadd.f32 %v1837_v45, %v1787_v56  ;;  %v1867_v7 = vmul.f32 %v8804_v26, %v1864_v40  ;;  %2925 = vrot.lane.b32.xlu1 %v8806_v3, %s8467_s22  ;;  %v3149_v56 = vrot.slane %v7333_v30, 2 }
 0x217   : > { %v1858_v34 = vmul.f32 %v8805_v28, %v1855_v8  ;;  %2855 = vrot.lane.b32.xlu0 %v8807_v53, %s8478_s19  ;;  %vm1880_vm10 = vcmp.gt.f32.partialorder %v1852_v43, 0.0  ;;  %v1881_v16 = vmul.f32 0.01, %v1852_v43  ;;  %v8824_v5 = vstv %s6832_s25  ;;  %s7380_s25 = sld [smem:[#allocation3 + $0x62]] }
 0x218   : > { %vm1871_vm11 = vcmp.gt.f32.partialorder %v1839_v36, 0.0  ;;  %v1872_v31 = vmul.f32 0.01, %v1839_v36  ;;  %v1870_v24 = vadd.f32 %v8809_v38, %v1867_v7  ;;  %v2052_v1 = vpop.permute.xlu1 %2051  ;;  %v8825_v49 = vstv %s8812_s24  ;;  %s7518_s24 = sld [smem:[#allocation3 + $0x4f]] }
 0x219   : > { %v1861_v55 = vadd.f32 %v8811_v12, %v1858_v34  ;;  %v2044_v54 = vpop.permute.xlu0 %2043  ;;  %v1882_v6 = vsel %vm1880_vm10, %v1852_v43, %v1881_v16  ;;  %v8827_v8 = vstv %s8814_s8  ;;  %v8829_v7 = vstv %s6888_s17  ;;  %s8837_s17 = sld [smem:[#allocation51_spill]]  ;;  %s7524_s8 = sld [smem:[#allocation3 + $0x5d]] }
 0x21a   : > { %v1873_v41 = vsel %vm1871_vm11, %v1839_v36, %v1872_v31  ;;  %v1898_v19 = vmul.f32 %v8816_v32, %v1870_v24  ;;  %v1928_v47 = vmul.f32 %v8817_v35, %v1870_v24  ;;  %2938 = vrot.lane.b32.xlu1 %v7116_v63, %s8467_s22  ;;  %v8826_v63 = vstv %s8813_s27  ;;  %s7522_s27 = sld [smem:[#allocation3 + $0x5]] }
 0x21b   : > { %v1894_v62 = vmul.f32 %v8820_v2, %v1861_v55  ;;  %v1924_v59 = vmul.f32 %v8822_v57, %v1861_v55  ;;  %v1954_v45 = vmul.f32 %v8824_v5, %v1861_v55  ;;  %v1984_v11 = vmul.f32 %v8825_v49, %v1861_v55  ;;  %2964 = vrot.lane.b32.xlu0 %v7119_v17, %s8478_s19 }
 0x21c   : > { %v1958_v40 = vmul.f32 %v8826_v63, %v1870_v24  ;;  %v1988_v43 = vmul.f32 %v8827_v8, %v1870_v24  ;;  %v8828_v36 = vstv %s8815_s26  ;;  %v1876_v28 = vmul.f32 %v8829_v7, %v1873_v41  ;;  %v2068_v34 = vpop.permute.xlu1 %2067  ;;  %v8841_v8 = vld [vmem:[#allocation117_spill] sm:$0xff]  ;;  %s7528_s26 = sld [smem:[#allocation3 + $0x4]] }
 0x21d   : > { %v1885_v26 = vmul.f32 %v8828_v36, %v1882_v6  ;;  %v2060_v3 = vpop.permute.xlu0 %2059  ;;  %v8831_v53 = vstv %s8818_s1  ;;  %v8832_v31 = vstv %s8819_s21  ;;  %v8833_v38 = vstv %s8821_s14  ;;  %s7540_s1 = sld [smem:[#allocation3 + $0x7c]]  ;;  %s7552_s21 = sld [smem:[#allocation3 + $0x7]] }
 0x21e   : > { %v1895_v16 = vadd.f32 %v1894_v62, %v8831_v53  ;;  %v1925_v17 = vadd.f32 %v1924_v59, %v8832_v31  ;;  %v1955_v12 = vadd.f32 %v1954_v45, %v8833_v38  ;;  %v8834_v55 = vstv %s8823_s28  ;;  %2951 = vrot.lane.b32.xlu1 %v7144_v14, %s8467_s22  ;;  %s7554_s14 = sld [smem:[#allocation3 + $0x6]] }
 0x21f   : > { %v1985_v24 = vadd.f32 %v1984_v11, %v8834_v55  ;;  %v8835_v32 = vstv %s6860_s15  ;;  %v8836_v35 = vstv %s6896_s6  ;;  %v2268_v2 = vrot.slane %v7344_v9, 2  ;;  %s8838_s15 = sld [smem:[#allocation14_spill]]  ;;  %2977 = vrot.lane.b32.xlu0 %v7173_v13, %s8478_s19  ;;  %s7439_s6 = sld [smem:[#allocation3 + $0x1e]] }
 0x220   : > { %v1888_v6 = vadd.f32 %v8835_v32, %v1885_v26  ;;  %v1879_v41 = vadd.f32 %v8836_v35, %v1876_v28  ;;  %v7398_v62 = vmul.f32 %v7181_v4, %v2252_v0  ;;  %v1899_v57 = vadd.f32 %v1898_v19, %v1895_v16  ;;  %v8842_v26 = vld [vmem:[#allocation121_spill] sm:$0xff]  ;;  %v2084_v0 = vpop.permute.xlu1 %2083  ;;  %s7559_s28 = sld [smem:[#allocation3 + $0x5e]] }
 0x221   : > { %v1929_v59 = vadd.f32 %v1928_v47, %v1925_v17  ;;  %v1959_v5 = vadd.f32 %v1958_v40, %v1955_v12  ;;  %v1989_v45 = vadd.f32 %v1988_v43, %v1985_v24  ;;  %v8839_v49 = vstv %s8830_s18  ;;  %v2076_v28 = vpop.permute.xlu0 %2075  ;;  %s7584_s18 = sld [smem:[#allocation3 + $0x5f]] }
 0x222   : > { %v1906_v11 = vmul.f32 %v8839_v49, %v1888_v6  ;;  %v8840_v14 = vstv %s6870_s13  ;;  %v2054_v36 = vadd.f32 %v2052_v1, %v8841_v8  ;;  %v2046_v7 = vadd.f32 %v2044_v54, %v8842_v26  ;;  %3060 = vrot.lane.b32.xlu1 %v7187_v46, %s8467_s22  ;;  %v8850_v8 = vld [vmem:[#allocation122_spill] sm:$0xff] }
 0x223   : > { %v1936_v63 = vmul.f32 %v8840_v14, %v1888_v6  ;;  %v8843_v53 = vstv %s6898_s10  ;;  %v8844_v16 = vstv %s6916_s3  ;;  %v8845_v31 = vstv %s6934_s11  ;;  %2990 = vrot.lane.b32.xlu0 %v7190_v61, %s8478_s19  ;;  %s7429_s3 = sld [smem:[#allocation3 + $0x4c]]  ;;  %s8851_s11 = sld [smem:[#allocation52_spill]] }
 0x224   : > { %v1902_v19 = vmul.f32 %v8843_v53, %v1879_v41  ;;  %v1932_v47 = vmul.f32 %v8844_v16, %v1879_v41  ;;  %v1962_v40 = vmul.f32 %v8845_v31, %v1879_v41  ;;  %v8846_v43 = vstv %s7109_s12  ;;  %v2100_v26 = vpop.permute.xlu1 %2099  ;;  %s7441_s10 = sld [smem:[#allocation3 + $0x2c]]  ;;  %s8852_s12 = sld [smem:[#allocation53_spill]] }
 0x225   : > { %v1992_v17 = vmul.f32 %v8846_v43, %v1879_v41  ;;  %v8847_v38 = vstv %s6872_s9  ;;  %v8848_v12 = vstv %s8837_s17  ;;  %s227_s13 = sand.u32 1, %s8838_s15   ;;  %v2086_v1 = vadd.f32 %v2084_v0, %v2054_v36  ;;  %v8849_v41 = vld [vmem:[#allocation118_spill] sm:$0xff]  ;;  %v2092_v53 = vpop.permute.xlu0 %2091  ;;  %s7591_s17 = sld [smem:[#allocation3 + $0x34]] }
 0x226   : > { %v1966_v13 = vmul.f32 %v8847_v38, %v1888_v6  ;;  %v1996_v55 = vmul.f32 %v8848_v12, %v1888_v6  ;;  %v2078_v54 = vadd.f32 %v2076_v28, %v2046_v7  ;;  %v1903_v24 = vadd.f32 %v1902_v19, %v1899_v57  ;;  %s7433_s9 = sshll.u32 %s227_s13, 6  ;;  %3073 = vrot.lane.b32.xlu1 %v7193_v37, %s8467_s22 }
 0x227   : > { %v1933_v32 = vadd.f32 %v1932_v47, %v1929_v59  ;;  %v1963_v35 = vadd.f32 %v1962_v40, %v1959_v5  ;;  %v1993_v49 = vadd.f32 %v1992_v17, %v1989_v45  ;;  %v2070_v14 = vadd.f32 %v2068_v34, %v8849_v41  ;;  %3003 = vrot.lane.b32.xlu0 %v7210_v18, %s8478_s19  ;;  %s7482_s2 = scalar_lea.vmem [#allocation9], %s7433_s9  ;;  %s7600_s9 = sld [smem:[#allocation3 + $0x8c]] }
 0x228   : > { %v2062_v6 = vadd.f32 %v2060_v3, %v8850_v8  ;;  %v2285_v36 = vstv %s7378_s0  ;;  %v2274_v0 = vstv %s7380_s25  ;;  %v1907_v46 = vadd.f32 %v1906_v11, %v1903_v24  ;;  %v7473_v8 = vld [vmem:[#allocation2 + $0x58] sm:$0x3]  ;;  %s7577_s0 = sld [smem:[#allocation3 + $0x7d]] }
 0x229   : > { %v1937_v57 = vadd.f32 %v1936_v63, %v1933_v32  ;;  %v1967_v59 = vadd.f32 %v1966_v13, %v1963_v35  ;;  %v1997_v5 = vadd.f32 %v1996_v55, %v1993_v49  ;;  %v2102_v45 = vadd.f32 %v2100_v26, %v2070_v14  ;;  %s7589_s25 = sld [smem:[#allocation3 + $0x35]] }
 0x22a   : > { %v2094_v7 = vadd.f32 %v2092_v53, %v2062_v6  ;;  %v2124_v61 = vadd.f32 %v7235_v23, %v2086_v1  ;;  %v2113_v34 = vadd.f32 %v7241_v10, %v2078_v54  ;;  %vm1908_vm13 = vcmp.gt.f32.partialorder %v1907_v46, 0.0  ;;  %v2170_v23 = vpop.permute.xlu1 %2169  ;;  %v2157_v10 = vpop.permute.xlu0 %2156  ;;  %3086 = vrot.lane.b32.xlu1 %v7255_v60, %s8467_s22 }
 0x22b   : > { %v1909_v3 = vmul.f32 0.01, %v1907_v46  ;;  %vm1938_vm14 = vcmp.gt.f32.partialorder %v1937_v57, 0.0  ;;  %v1939_v11 = vmul.f32 0.01, %v1937_v57  ;;  %vm1968_vm15 = vcmp.gt.f32.partialorder %v1967_v59, 0.0  ;;  %3112 = vrot.lane.b32.xlu0 %v7275_v20, %s8478_s19 }
 0x22c   : > { %v1969_v63 = vmul.f32 0.01, %v1967_v59  ;;  %vm1998_vm0 = vcmp.gt.f32.partialorder %v1997_v5, 0.0  ;;  %v1999_v37 = vmul.f32 0.01, %v1997_v5  ;;  %v2172_v16 = vadd.f32 %v2170_v23, %v2124_v61 }
 0x22d   : > { %v1910_v28 = vsel %vm1908_vm13, %v1907_v46, %v1909_v3  ;;  %v1940_v19 = vsel %vm1938_vm14, %v1937_v57, %v1939_v11  ;;  %v2159_v47 = vadd.f32 %v2157_v10, %v2113_v34  ;;  %v8854_v31 = vstv %s8851_s11  ;;  %s7650_s11 = sld [smem:[#allocation3 + $0x8d]] }
 0x22e   : > { %v1913_v18 = vmul.f32 %v8854_v31, %v1910_v28  ;;  %v8855_v40 = vstv %s6918_s7  ;;  %v1970_v17 = vsel %vm1968_vm15, %v1967_v59, %v1969_v63  ;;  %v2000_v38 = vsel %vm1998_vm0, %v1997_v5, %v1999_v37  ;;  %s7463_s7 = sld [smem:[#allocation3 + $0x2e]]  ;;  %v2196_v49 = vpop.permute.xlu1 %2195  ;;  %v2183_v41 = vpop.permute.xlu0 %2182  ;;  %3099 = vrot.lane.b32.xlu1 %v7307_v51, %s8467_s22 }
 0x22f   : > { %v1943_v43 = vmul.f32 %v8855_v40, %v1940_v19  ;;  %v8856_v13 = vstv %s6940_s29  ;;  %v2003_v55 = vmul.f32 %v2002_v58, %v2000_v38  ;;  %v2146_v1 = vadd.f32 %v7281_v15, %v2102_v45  ;;  %s7479_s29 = sld [smem:[#allocation3 + $0x2f]]  ;;  %3125 = vrot.lane.b32.xlu0 %v7318_v22, %s8478_s19 }
 0x230   : > { %v1973_v12 = vmul.f32 %v8856_v13, %v1970_v17  ;;  %v2135_v54 = vadd.f32 %v7294_v33, %v2094_v7  ;;  %v8857_v24 = vstv %s8852_s12  ;;  %v8858_v60 = vstv %s8853_s5  ;;  %s7662_s12 = sld [smem:[#allocation3 + $0x37]] }
 0x231   : > { %v1916_v32 = vadd.f32 %v8857_v24, %v1913_v18  ;;  %v1946_v35 = vadd.f32 %v8858_v60, %v1943_v43  ;;  %v2269_v58 = vrot.slane %v7348_v29, 2  ;;  %v3282_v14 = vstv %s7429_s3  ;;  %s7595_s3 = sld [smem:[#allocation3 + $0x7e]]  ;;  %s7668_s5 = sld [smem:[#allocation3 + $0x8f]] }
 0x232   : > { %v8859_v20 = vstv %s6942_s16  ;;  %v2006_v6 = vadd.f32 %v2005_v27, %v2003_v55  ;;  %v2198_v33 = vadd.f32 %v2196_v49, %v2146_v1  ;;  %v2185_v26 = vadd.f32 %v2183_v41, %v2135_v54  ;;  %s7508_s16 = sld [smem:[#allocation3 + $0x4e]]  ;;  %3177 = vrot.lane.b32.xlu1 %v7297_v39, %s8467_s22 }
 0x233   : > { %v1976_v15 = vadd.f32 %v8859_v20, %v1973_v12  ;;  %1918 = vst.msk [vmem:[%s7482_s2] sm:$0xff] %vm1917_vm12, %v1916_v32  ;;  %3978 = vst.msk [vmem:[%s7482_s2 + $0x10] sm:$0xff] %vm1917_vm12, %v1946_v35  ;;  %v2286_v27 = vmul.f32 %v7034_v21, %v2285_v36  ;;  %v2287_v29 = vmul.f32 %v7181_v4, %v2285_v36  ;;  %v2257_v36 = vrot.slane %v7358_v25, 2 }
 0x234   : > { %v2275_v53 = vmul.f32 %v7034_v21, %v2274_v0  ;;  %v2276_v46 = vmul.f32 %v7181_v4, %v2274_v0  ;;  %3994 = vst.msk [vmem:[%s7482_s2 + $0x30] sm:$0xff] %vm1917_vm12, %v2006_v6  ;;  %v3150_v51 = vsel %vm576_vm7, %v3148_v44, %v3149_v56  ;;  %v3190_v21 = vstv %s7439_s6  ;;  %v2222_v4 = vpop.permute.xlu1 %2221  ;;  %v2209_v0 = vpop.permute.xlu0 %2208  ;;  %3138 = vrot.lane.b32.xlu0 %v7341_v52, %s8478_s19  ;;  %s7608_s6 = sld [smem:[#allocation3 + $0x36]] }
 0x235   : > { %3986 = vst.msk [vmem:[%s7482_s2 + $0x20] sm:$0xff] %vm1917_vm12, %v1976_v15  ;;  %v3206_v57 = vstv %s7441_s10  ;;  %v2270_v22 = vsel %vm576_vm7, %v2268_v2, %v2269_v58  ;;  %v2258_v42 = vrot.slane %v7398_v62, 2  ;;  %v3283_v30 = vmul.f32 %v3282_v14, %v7272_v48  ;;  %s7646_s10 = sld [smem:[#allocation3 + $0x7f]] }
 0x236   : > { %v3284_v44 = vmul.f32 %v3282_v14, %v7473_v8  ;;  %v2224_v56 = vadd.f32 %v2222_v4, %v2172_v16  ;;  %v2211_v25 = vadd.f32 %v2209_v0, %v2159_v47  ;;  %v3198_v59 = vstv %s7445_s23  ;;  %3185 = vrot.lane.b32.xlu1 %v7315_v50, %s8467_s22  ;;  %s7670_s23 = sld [smem:[#allocation3 + $0x8e]] }
 0x237   : > { %v3214_v5 = vstv %s7447_s20  ;;  %v2290_v9 = vrot.slane %v2286_v27, 2  ;;  %v2291_v2 = vrot.slane %v2287_v29, 2  ;;  %v2279_v62 = vrot.slane %v2275_v53, 2  ;;  %s7673_s20 = sld [smem:[#allocation3 + $0x64]] }
 0x238   : > { %v2280_v45 = vrot.slane %v2276_v46, 2  ;;  %v3191_v7 = vmul.f32 %v3190_v21, %v7272_v48  ;;  %v3207_v61 = vmul.f32 %v3206_v57, %v7272_v48  ;;  %v3222_v34 = vstv %s7463_s7  ;;  %v2248_v11 = vpop.permute.xlu1 %2247  ;;  %v2235_v63 = vpop.permute.xlu0 %2234  ;;  %3151 = vrot.lane.b32.xlu0 %v3150_v51, %s8478_s19  ;;  %s7697_s7 = sld [smem:[#allocation3 + $0x65]] }
 0x239   : > { %v3295_v3 = vstv %s7465_s4  ;;  %v2259_v39 = vsel %vm576_vm7, %v2257_v36, %v2258_v42  ;;  %v3199_v37 = vmul.f32 %v3198_v59, %v7272_v48  ;;  %v3287_v23 = vrot.slane %v3283_v30, 1  ;;  %s7711_s4 = sld [smem:[#allocation3 + $0x66]] }
 0x23a   : > { %v3288_v10 = vrot.slane %v3284_v44, 1  ;;  %v2250_v28 = vadd.f32 %v2248_v11, %v2198_v33  ;;  %v2237_v19 = vadd.f32 %v2235_v63, %v2185_v26  ;;  %v3215_v52 = vmul.f32 %v3214_v5, %v7272_v48  ;;  %3193 = vrot.lane.b32.xlu1 %v3191_v7, %s8467_s22  ;;  %v7602_v11 = vld [vmem:[#allocation2 + $0x20] sm:$0xff] }
 0x23b   : > { %v3230_v16 = vstv %s7479_s29  ;;  %v2292_v47 = vsel %vm576_vm7, %v2290_v9, %v2291_v2  ;;  %v2281_v31 = vsel %vm576_vm7, %v2279_v62, %v2280_v45  ;;  %v7547_v18 = vmul.f32 %v3222_v34, %v7272_v48  ;;  %s4069_s29 = sld [smem:[#allocation3 + $0x8]] }
 0x23c   : > { %v7550_v40 = vmul.f32 %v3295_v3, %v7272_v48  ;;  %v2272_v50 = vadd.f32 %v2270_v22, %v2224_v56  ;;  %v2261_v43 = vadd.f32 %v2259_v39, %v2211_v25  ;;  %v3308_v17 = vstv %s7508_s16  ;;  %v2318_v13 = vpop.permute.xlu1 %2317  ;;  %v2305_v12 = vpop.permute.xlu0 %2304  ;;  %3209 = vrot.lane.b32.xlu0 %v3207_v61, %s8478_s19  ;;  %s4082_s16 = sld [smem:[#allocation3 + $0x39]] }
 0x23d   : > { %v3334_v38 = vstv %s7510_s30  ;;  %v3289_v55 = vsel %vm427_vm6, %v3287_v23, %v3288_v10  ;;  %v3297_v1 = vmul.f32 %v3295_v3, %v7473_v8  ;;  %v7564_v54 = vmul.f32 %v3230_v16, %v7272_v48  ;;  %s4070_s30 = sld [smem:[#allocation3 + $0x9]] }
 0x23e   : > { %v3321_v24 = vstv %s7518_s24  ;;  %v2320_v32 = vadd.f32 %v2318_v13, %v2272_v50  ;;  %v2307_v60 = vadd.f32 %v2305_v12, %v2261_v43  ;;  %v2406_v35 = vstv %s7522_s27  ;;  %3201 = vrot.lane.b32.xlu1 %v3199_v37, %s8467_s22  ;;  %s7783_s24 = sld [smem:[#allocation3 + $0xa]] }
 0x23f   : > { %v3347_v49 = vstv %s7524_s8  ;;  %v2402_v41 = vstv %s7528_s26  ;;  %v3309_v58 = vmul.f32 %v3308_v17, %v7272_v48  ;;  %v3310_v14 = vmul.f32 %v3308_v17, %v7473_v8  ;;  %s7785_s27 = sld [smem:[#allocation3 + $0x3a]]  ;;  %s7787_s8 = sld [smem:[#allocation3 + $0xb]] }
 0x240   : > { %v3335_v20 = vmul.f32 %v3334_v38, %v7272_v48  ;;  %v2294_v15 = vadd.f32 %v2292_v47, %v2250_v28  ;;  %v2283_v6 = vadd.f32 %v2281_v31, %v2237_v19  ;;  %v3336_v33 = vmul.f32 %v3334_v38, %v7473_v8  ;;  %v2344_v27 = vpop.permute.xlu1 %2343  ;;  %v2331_v29 = vpop.permute.xlu0 %2330  ;;  %3217 = vrot.lane.b32.xlu0 %v3215_v52, %s8478_s19  ;;  %s7789_s26 = sld [smem:[#allocation3 + $0x3b]] }
 0x241   : > { %v3322_v26 = vmul.f32 %v3321_v24, %v7272_v48  ;;  %v3300_v53 = vrot.slane %v7550_v40, 1  ;;  %v3323_v46 = vmul.f32 %v3321_v24, %v7473_v8  ;;  %v3348_v51 = vmul.f32 %v3347_v49, %v7272_v48 }
 0x242   : > { %v3349_v36 = vmul.f32 %v3347_v49, %v7473_v8  ;;  %v2346_v21 = vadd.f32 %v2344_v27, %v2294_v15  ;;  %v2333_v57 = vadd.f32 %v2331_v29, %v2283_v6  ;;  %v3301_v4 = vrot.slane %v3297_v1, 1  ;;  %3290 = vrot.lane.b32.xlu1 %v3289_v55, %s8467_s22 }
 0x243   : > { %v3430_v0 = vstv %s7540_s1  ;;  %v3313_v22 = vrot.slane %v3309_v58, 1  ;;  %v3314_v42 = vrot.slane %v3310_v14, 1  ;;  %v2414_v30 = vstv %s7552_s21  ;;  %s7791_s1 = sld [smem:[#allocation3 + $0x68]]  ;;  %s7815_s21 = sld [smem:[#allocation3 + $0x69]] }
 0x244   : > { %v2410_v44 = vstv %s7554_s14  ;;  %v3339_v56 = vrot.slane %v3335_v20, 1  ;;  %v3340_v25 = vrot.slane %v3336_v33, 1  ;;  %v3326_v59 = vrot.slane %v3322_v26, 1  ;;  %v2370_v9 = vpop.permute.xlu1 %2369  ;;  %v2357_v2 = vpop.permute.xlu0 %2356  ;;  %3225 = vrot.lane.b32.xlu0 %v7547_v18, %s8478_s19  ;;  %s7820_s14 = sld [smem:[#allocation3 + $0x6a]] }
 0x245   : > { %v3360_v5 = vstv %s7559_s28  ;;  %v3327_v62 = vrot.slane %v3323_v46, 1  ;;  %v3352_v45 = vrot.slane %v3348_v51, 1  ;;  %v3353_v7 = vrot.slane %v3349_v36, 1  ;;  %v7653_v46 = vld [vmem:[#allocation2 + $0x28] sm:$0x3]  ;;  %s7827_s28 = sld [smem:[#allocation3 + $0x6b]] }
 0x246   : > { %v7598_v61 = vmul.f32 %v3430_v0, %v7272_v48  ;;  %v2372_v34 = vadd.f32 %v2370_v9, %v2320_v32  ;;  %v2359_v3 = vadd.f32 %v2357_v2, %v2307_v60  ;;  %v2407_v63 = vmul.f32 %v7602_v11, %v2406_v35 }
 0x247   : > { %v7606_v39 = vmul.f32 %v3430_v0, %v7473_v8  ;;  %v3302_v37 = vsel %vm427_vm6, %v3300_v53, %v3301_v4  ;;  %v2403_v23 = vmul.f32 %v7602_v11, %v2402_v41  ;;  %v7614_v10 = vmul.f32 %v3360_v5, %v7272_v48 }
 0x248   : > { %v7617_v28 = vmul.f32 %v3360_v5, %v7473_v8  ;;  %v3315_v19 = vsel %vm427_vm6, %v3313_v22, %v3314_v42  ;;  %v2415_v52 = vmul.f32 %v7602_v11, %v2414_v30  ;;  %v2411_v16 = vmul.f32 %v7602_v11, %v2410_v44  ;;  %v2396_v31 = vpop.permute.xlu1 %2395  ;;  %v2383_v40 = vpop.permute.xlu0 %2382  ;;  %3303 = vrot.lane.b32.xlu1 %v3302_v37, %s8467_s22 }
 0x249   : > { %v3443_v47 = vstv %s7577_s0  ;;  %v3341_v50 = vsel %vm427_vm6, %v3339_v56, %v3340_v25  ;;  %v3328_v43 = vsel %vm427_vm6, %v3326_v59, %v3327_v62  ;;  %v3354_v17 = vsel %vm427_vm6, %v3352_v45, %v3353_v7  ;;  %3233 = vrot.lane.b32.xlu0 %v7564_v54, %s8478_s19  ;;  %s7850_s0 = sld [smem:[#allocation3 + $0xc]] }
 0x24a   : > { %v3435_v18 = vrot.slane %v7598_v61, 2  ;;  %v2398_v38 = vadd.f32 %v2396_v31, %v2346_v21  ;;  %v2385_v13 = vadd.f32 %v2383_v40, %v2333_v57  ;;  %v3436_v12 = vrot.slane %v7606_v39, 2 }
 0x24b   : > { %v3373_v55 = vstv %s7584_s18  ;;  %v3365_v1 = vrot.slane %v7614_v10, 1  ;;  %v3366_v24 = vrot.slane %v7617_v28, 1  ;;  %v7635_v32 = vmul.f32 %v3443_v47, %v7272_v48  ;;  %s7861_s18 = sld [smem:[#allocation3 + $0xd]] }
 0x24c   : > { %v2493_v60 = vstv %s7589_s25  ;;  %v2408_v35 = vadd.f32 %v2407_v63, %v2372_v34  ;;  %v2404_v49 = vadd.f32 %v2403_v23, %v2359_v3  ;;  %v2482_v41 = vstv %s7591_s17  ;;  %v2430_v14 = vpop.permute.xlu1 %2429  ;;  %v2422_v20 = vpop.permute.xlu0 %2421  ;;  %3316 = vrot.lane.b32.xlu1 %v3315_v19, %s8467_s22  ;;  %s7865_s25 = sld [smem:[#allocation3 + $0x3c]]  ;;  %s7869_s17 = sld [smem:[#allocation3 + $0x3d]] }
 0x24d   : > { %v3456_v58 = vstv %s7595_s3  ;;  %v3445_v15 = vmul.f32 %v3443_v47, %v7473_v8  ;;  %v3374_v6 = vmul.f32 %v3373_v55, %v7272_v48  ;;  %v3375_v33 = vmul.f32 %v3373_v55, %v7473_v8  ;;  %3342 = vrot.lane.b32.xlu0 %v3341_v50, %s8478_s19  ;;  %s7874_s3 = sld [smem:[#allocation3 + $0xe]] }
 0x24e   : > { %v3482_v26 = vstv %s7600_s9  ;;  %v2432_v27 = vadd.f32 %v2430_v14, %v2408_v35  ;;  %v2424_v29 = vadd.f32 %v2422_v20, %v2404_v49  ;;  %v2494_v53 = vmul.f32 %v7602_v11, %v2493_v60  ;;  %s7883_s9 = sld [smem:[#allocation3 + $0xf]] }
 0x24f   : > { %v2504_v54 = vstv %s7608_s6  ;;  %v2495_v51 = vmul.f32 %v7653_v46, %v2493_v60  ;;  %v2483_v36 = vmul.f32 %v7602_v11, %v2482_v41  ;;  %v2484_v21 = vmul.f32 %v7653_v46, %v2482_v41  ;;  %s7888_s6 = sld [smem:[#allocation3 + $0x3e]] }
 0x250   : > { %v3457_v57 = vmul.f32 %v3456_v58, %v7272_v48  ;;  %v2416_v4 = vadd.f32 %v2415_v52, %v2398_v38  ;;  %v2412_v0 = vadd.f32 %v2411_v16, %v2385_v13  ;;  %v3458_v22 = vmul.f32 %v3456_v58, %v7473_v8  ;;  %v2446_v30 = vpop.permute.xlu1 %2445  ;;  %v2438_v44 = vpop.permute.xlu0 %2437  ;;  %3329 = vrot.lane.b32.xlu1 %v3328_v43, %s8467_s22 }
 0x251   : > { %v3483_v42 = vmul.f32 %v3482_v26, %v7272_v48  ;;  %v3448_v56 = vrot.slane %v7635_v32, 2  ;;  %v3484_v25 = vmul.f32 %v3482_v26, %v7473_v8  ;;  %v2505_v59 = vmul.f32 %v7602_v11, %v2504_v54  ;;  %3355 = vrot.lane.b32.xlu0 %v3354_v17, %s8478_s19 }
 0x252   : > { %v2506_v5 = vmul.f32 %v7653_v46, %v2504_v54  ;;  %v2448_v9 = vadd.f32 %v2446_v30, %v2416_v4  ;;  %v2440_v2 = vadd.f32 %v2438_v44, %v2412_v0  ;;  %v3449_v62 = vrot.slane %v3445_v15, 2 }
 0x253   : > { %v3378_v45 = vrot.slane %v3374_v6, 1  ;;  %v3379_v7 = vrot.slane %v3375_v33, 1  ;;  %v2498_v34 = vrot.slane %v2494_v53, 1  ;;  %v2499_v3 = vrot.slane %v2495_v51, 1 }
 0x254   : > { %v2487_v63 = vrot.slane %v2483_v36, 1  ;;  %v2488_v37 = vrot.slane %v2484_v21, 1  ;;  %v3461_v23 = vrot.slane %v3457_v57, 2  ;;  %v3462_v19 = vrot.slane %v3458_v22, 2  ;;  %v2462_v16 = vpop.permute.xlu1 %2461  ;;  %v2454_v47 = vpop.permute.xlu0 %2453 }
 0x255   : > { %v3487_v52 = vrot.slane %v3483_v42, 2  ;;  %v3488_v31 = vrot.slane %v3484_v25, 2  ;;  %v2509_v40 = vrot.slane %v2505_v59, 1  ;;  %v2510_v50 = vrot.slane %v2506_v5, 1 }
 0x256   : > { %v3469_v43 = vstv %s7646_s10  ;;  %v2464_v38 = vadd.f32 %v2462_v16, %v2432_v27  ;;  %v2456_v13 = vadd.f32 %v2454_v47, %v2424_v29  ;;  %v3437_v55 = vsel %vm576_vm7, %v3435_v18, %v3436_v12  ;;  %s7892_s10 = sld [smem:[#allocation3 + $0x3f]] }
 0x257   : > { %v3495_v17 = vstv %s7650_s11  ;;  %3438 = vrot.lane.b32.xlu1 %v3437_v55, %s8467_s22  ;;  %v3367_v32 = vsel %vm427_vm6, %v3365_v1, %v3366_v24  ;;  %v3450_v60 = vsel %vm576_vm7, %v3448_v56, %v3449_v62  ;;  %v3380_v35 = vsel %vm427_vm6, %v3378_v45, %v3379_v7  ;;  %s7894_s11 = sld [smem:[#allocation3 + $0x6c]] }
 0x258   : > { %v2500_v39 = vsel %vm427_vm6, %v2498_v34, %v2499_v3  ;;  %3368 = vrot.lane.b32.xlu0 %v3367_v32, %s8478_s19  ;;  %v2489_v61 = vsel %vm427_vm6, %v2487_v63, %v2488_v37  ;;  %v3470_v18 = vmul.f32 %v3469_v43, %v7272_v48  ;;  %v3471_v28 = vmul.f32 %v3469_v43, %v7473_v8  ;;  %v2478_v10 = vpop.permute.xlu1 %2477  ;;  %v2470_v1 = vpop.permute.xlu0 %2469 }
 0x259   : > { %v2515_v12 = vstv %s7662_s12  ;;  %v3463_v24 = vsel %vm576_vm7, %v3461_v23, %v3462_v19  ;;  %v3489_v49 = vsel %vm576_vm7, %v3487_v52, %v3488_v31  ;;  %v2511_v41 = vsel %vm427_vm6, %v2509_v40, %v2510_v50  ;;  %s7923_s12 = sld [smem:[#allocation3 + $0x6d]] }
 0x25a   : > { %v3496_v58 = vmul.f32 %v3495_v17, %v7272_v48  ;;  %v2480_v14 = vadd.f32 %v2478_v10, %v2448_v9  ;;  %v2472_v20 = vadd.f32 %v2470_v1, %v2440_v2  ;;  %v3521_v15 = vstv %s7668_s5  ;;  %s7939_s5 = sld [smem:[#allocation3 + $0x6f]] }
 0x25b   : > { %v3508_v6 = vstv %s7670_s23  ;;  %3451 = vrot.lane.b32.xlu1 %v3450_v60, %s8467_s22  ;;  %v3497_v33 = vmul.f32 %v3495_v17, %v7473_v8  ;;  %v2516_v26 = vmul.f32 %v7602_v11, %v2515_v12  ;;  %v2517_v27 = vmul.f32 %v7653_v46, %v2515_v12  ;;  %s7944_s23 = sld [smem:[#allocation3 + $0x6e]] }
 0x25c   : > { %v2630_v29 = vstv %s7673_s20  ;;  %3381 = vrot.lane.b32.xlu0 %v3380_v35, %s8478_s19  ;;  %v2502_v53 = vadd.f32 %v2500_v39, %v2464_v38  ;;  %v2491_v54 = vadd.f32 %v2489_v61, %v2456_v13  ;;  %v3474_v51 = vrot.slane %v3470_v18, 2  ;;  %v2548_v21 = vpop.permute.xlu1 %2547  ;;  %v2535_v57 = vpop.permute.xlu0 %2534  ;;  %s7965_s20 = sld [smem:[#allocation8 + $0x4]] }
 0x25d   : > { %v3475_v36 = vrot.slane %v3471_v28, 2  ;;  %v3522_v4 = vmul.f32 %v3521_v15, %v7272_v48  ;;  %v3523_v0 = vmul.f32 %v3521_v15, %v7473_v8  ;;  %v3509_v22 = vmul.f32 %v3508_v6, %v7272_v48 }
 0x25e   : > { %v3510_v42 = vmul.f32 %v3508_v6, %v7473_v8  ;;  %v2550_v30 = vadd.f32 %v2548_v21, %v2502_v53  ;;  %v2537_v44 = vadd.f32 %v2535_v57, %v2491_v54  ;;  %v2631_v56 = vmul.f32 %v7602_v11, %v2630_v29 }
 0x25f   : > { %v2632_v25 = vmul.f32 %v7653_v46, %v2630_v29  ;;  %3464 = vrot.lane.b32.xlu1 %v3463_v24, %s8467_s22  ;;  %v3500_v59 = vrot.slane %v3496_v58, 2  ;;  %v3501_v5 = vrot.slane %v3497_v33, 2  ;;  %v2520_v9 = vrot.slane %v2516_v26, 1 }
 0x260   : > { %v2521_v2 = vrot.slane %v2517_v27, 1  ;;  %3490 = vrot.lane.b32.xlu0 %v3489_v49, %s8478_s19  ;;  %v2513_v62 = vadd.f32 %v2511_v41, %v2472_v20  ;;  %v3476_v45 = vsel %vm576_vm7, %v3474_v51, %v3475_v36  ;;  %v2641_v48 = vstv %s7697_s7  ;;  %v2561_v7 = vpop.permute.xlu1 %2560  ;;  %v2587_v34 = vpop.permute.xlu0 %2586  ;;  %s7967_s7 = sld [smem:[#allocation8 + $0x8]] }
 0x261   : > { %v3526_v3 = vrot.slane %v3522_v4, 2  ;;  %v3527_v63 = vrot.slane %v3523_v0, 2  ;;  %v3513_v37 = vrot.slane %v3509_v22, 2  ;;  %v3514_v23 = vrot.slane %v3510_v42, 2 }
 0x262   : > { %v2563_v19 = vadd.f32 %v2561_v7, %v2513_v62  ;;  %v2589_v52 = vadd.f32 %v2587_v34, %v2537_v44  ;;  %v2635_v16 = vrot.slane %v2631_v56, 2  ;;  %v2636_v47 = vrot.slane %v2632_v25, 2 }
 0x263   : > { %3477 = vrot.lane.b32.xlu1 %v3476_v45, %s8467_s22  ;;  %v3502_v31 = vsel %vm576_vm7, %v3500_v59, %v3501_v5  ;;  %v2522_v40 = vsel %vm427_vm6, %v2520_v9, %v2521_v2  ;;  %v2642_v50 = vmul.f32 %v7602_v11, %v2641_v48  ;;  %v2643_v43 = vmul.f32 %v7653_v46, %v2641_v48  ;;  %s4060_s22 = sld [smem:[#allocation3 + $0x67]] }
 0x264   : > { %3503 = vrot.lane.b32.xlu0 %v3502_v31, %s8478_s19  ;;  %v2524_v38 = vadd.f32 %v2522_v40, %v2480_v14  ;;  %v2652_v13 = vstv %s7711_s4  ;;  %v2574_v55 = vpop.permute.xlu1 %2573  ;;  %v2600_v17 = vpop.permute.xlu0 %2599  ;;  %v3528_v32 = vsel %vm576_vm7, %v3526_v3, %v3527_v63  ;;  %v3515_v39 = vsel %vm576_vm7, %v3513_v37, %v3514_v23  ;;  %s7972_s4 = sld [smem:[#allocation8 + $0xc]] }
 0x265   : > { %v2602_v35 = vadd.f32 %v2600_v17, %v2550_v30  ;;  %v2637_v61 = vsel %vm576_vm7, %v2635_v16, %v2636_v47  ;;  %v2646_v18 = vrot.slane %v2642_v50, 2  ;;  %v2647_v28 = vrot.slane %v2643_v43, 2 }
 0x266   : > { %v2576_v60 = vadd.f32 %v2574_v55, %v2524_v38  ;;  %v2653_v12 = vmul.f32 %v7602_v11, %v2652_v13  ;;  %v2654_v10 = vmul.f32 %v7653_v46, %v2652_v13  ;;  %v2639_v1 = vadd.f32 %v2637_v61, %v2589_v52  ;;  %v7797_v55 = vld [vmem:[#allocation2 + $0x38] sm:$0xff] }
 0x267   : > { %3529 = vrot.lane.b32.xlu1 %v3528_v32, %s8478_s19  ;;  %v2648_v14 = vsel %vm576_vm7, %v2646_v18, %v2647_v28  ;;  %v2871_v43 = vstv %s4082_s16  ;;  %v2784_v13 = vstv %s4070_s30  ;;  %v7800_v32 = vld [vmem:[#allocation2 + $0x40] sm:$0x3]  ;;  %s7980_s16 = sld [smem:[#allocation6 + $0x2]]  ;;  %s7983_s30 = sld [smem:[#allocation6 + $0x3]] }
 0x268   : > { %3516 = vrot.lane.b32.xlu0 %v3515_v39, %s8478_s19  ;;  %v2683_v24 = vpop.permute.xlu1 %2682  ;;  %v2613_v49 = vpop.permute.xlu0 %2612  ;;  %v2657_v20 = vrot.slane %v2653_v12, 2  ;;  %v2658_v15 = vrot.slane %v2654_v10, 2  ;;  %v2650_v6 = vadd.f32 %v2648_v14, %v2602_v35  ;;  %s4081_s19 = sld [smem:[#allocation3 + $0x38]]  ;;  %v2872_v61 = vmul.f32 %v7797_v55, %v2871_v43 }
 0x269   : > { %v2685_v41 = vadd.f32 %v2683_v24, %v2639_v1  ;;  %v2615_v58 = vadd.f32 %v2613_v49, %v2563_v19  ;;  %v2663_v37 = vstv %s4060_s22  ;;  %v2785_v12 = vmul.f32 %v7797_v55, %v2784_v13  ;;  %s7974_s22 = sld [smem:[#allocation6]] }
 0x26a   : > { %v2659_v53 = vsel %vm576_vm7, %v2657_v20, %v2658_v15  ;;  %v2664_v19 = vmul.f32 %v7602_v11, %v2663_v37  ;;  %v2665_v52 = vmul.f32 %v7653_v46, %v2663_v37  ;;  %v2780_v46 = vstv %s4069_s29  ;;  %s7978_s29 = sld [smem:[#allocation6 + $0x1]] }
 0x26b   : > { %v2661_v54 = vadd.f32 %v2659_v53, %v2615_v58  ;;  %v2781_v39 = vmul.f32 %v7797_v55, %v2780_v46  ;;  %v2873_v10 = vmul.f32 %v7800_v32, %v2871_v43  ;;  %v2882_v58 = vstv %s7785_s27  ;;  %s7988_s27 = sld [smem:[#allocation8 + $0x5]] }
 0x26c   : > { %v2696_v33 = vpop.permute.xlu1 %2695  ;;  %v2626_v26 = vpop.permute.xlu0 %2625  ;;  %v2668_v31 = vrot.slane %v2664_v19, 2  ;;  %v2669_v40 = vrot.slane %v2665_v52, 2  ;;  %v2792_v20 = vstv %s7787_s8  ;;  %v3008_v53 = vstv %s7791_s1  ;;  %s7990_s8 = sld [smem:[#allocation8 + $0xf]]  ;;  %s7996_s1 = sld [smem:[#allocation6 + $0x4]] }
 0x26d   : > { %v7738_v27 = vadd.f32 %v2696_v33, %v2650_v6  ;;  %v2628_v29 = vadd.f32 %v2626_v26, %v2576_v60  ;;  %v2876_v26 = vrot.slane %v2872_v61, 1  ;;  %v2793_v19 = vmul.f32 %v7797_v55, %v2792_v20 }
 0x26e   : > { %v2860_v50 = vstv %s4081_s19  ;;  %v2670_v35 = vsel %vm576_vm7, %v2668_v31, %v2669_v40  ;;  %v3009_v31 = vmul.f32 %v7797_v55, %v3008_v53  ;;  %v3019_v61 = vstv %s7815_s21  ;;  %s7976_s19 = sld [smem:[#allocation8 + $0xd]] }
 0x26f   : > { %v2861_v17 = vmul.f32 %v7797_v55, %v2860_v50  ;;  %v2862_v60 = vmul.f32 %v7800_v32, %v2860_v50  ;;  %v2672_v28 = vadd.f32 %v2670_v35, %v2628_v29  ;;  %v2893_v29 = vstv %s7789_s26  ;;  %s7992_s26 = sld [smem:[#allocation8 + $0x9]]  ;;  %s7998_s21 = sld [smem:[#allocation6 + $0x5]] }
 0x270   : > { %v2709_v51 = vpop.permute.xlu1 %2708  ;;  %v2735_v36 = vpop.permute.xlu0 %2734  ;;  %v2894_v52 = vmul.f32 %v7797_v55, %v2893_v29 }
 0x271   : > { %v7741_v21 = vadd.f32 %v2709_v51, %v2661_v54  ;;  %v2737_v57 = vadd.f32 %v2735_v36, %v2685_v41  ;;  %v2788_v41 = vstv %s7783_s24  ;;  %v2865_v15 = vrot.slane %v2861_v17, 1  ;;  %s7986_s24 = sld [smem:[#allocation8 + $0xe]] }
 0x272   : > { %v2866_v6 = vrot.slane %v2862_v60, 1  ;;  %v2883_v36 = vmul.f32 %v7797_v55, %v2882_v58  ;;  %v2789_v50 = vmul.f32 %v7797_v55, %v2788_v41 }
 0x273   : > { %v2782_v49 = vadd.f32 %v2781_v39, %v2737_v57  ;;  %v2884_v57 = vmul.f32 %v7800_v32, %v2882_v58 }
 0x274   : > { %v2722_v4 = vpop.permute.xlu1 %2721  ;;  %v2748_v0 = vpop.permute.xlu0 %2747  ;;  %v2867_v46 = vsel %vm427_vm6, %v2865_v15, %v2866_v6  ;;  %v2887_v13 = vrot.slane %v2883_v36, 1  ;;  %v3020_v15 = vmul.f32 %v7797_v55, %v3019_v61  ;;  %v3021_v6 = vmul.f32 %v7800_v32, %v3019_v61 }
 0x275   : > { %v2750_v24 = vadd.f32 %v2748_v0, %v7738_v27  ;;  %v2724_v14 = vadd.f32 %v2722_v4, %v2672_v28  ;;  %v2877_v27 = vrot.slane %v2873_v10, 1  ;;  %v2888_v17 = vrot.slane %v2884_v57, 1 }
 0x277   : > { %v2878_v43 = vsel %vm427_vm6, %v2876_v26, %v2877_v27 }
 0x278   : > { %v2800_v22 = vpop.permute.xlu1 %2799  ;;  %v7743_v42 = vpop.permute.xlu0 %2760 }
 0x279   : > { %v2802_v33 = vadd.f32 %v2800_v22, %v2782_v49  ;;  %v2763_v0 = vadd.f32 %v7743_v42, %v7741_v21  ;;  %v2786_v22 = vadd.f32 %v2785_v12, %v2750_v24  ;;  %v3010_v21 = vmul.f32 %v7800_v32, %v3008_v53 }
 0x27a   : > { %v2898_v12 = vrot.slane %v2894_v52, 1  ;;  %v3013_v24 = vrot.slane %v3009_v31, 2 }
 0x27b   : > { %v2790_v35 = vadd.f32 %v2789_v50, %v2763_v0  ;;  %v3014_v58 = vrot.slane %v3010_v21, 2 }
 0x27c   : > { %v7745_v30 = vpop.permute.xlu1 %2807  ;;  %v7747_v44 = vpop.permute.xlu0 %2773 }
 0x27d   : > { %v2776_v51 = vadd.f32 %v7747_v44, %v2724_v14  ;;  %v2895_v44 = vmul.f32 %v7800_v32, %v2893_v29  ;;  %v2810_v40 = vadd.f32 %v7745_v30, %v2786_v22  ;;  %v3030_v14 = vstv %s7820_s14  ;;  %s8001_s14 = sld [smem:[#allocation6 + $0x6]] }
 0x27e   : > { %v3031_v29 = vmul.f32 %v7797_v55, %v3030_v14  ;;  %v3032_v53 = vmul.f32 %v7800_v32, %v3030_v14  ;;  %v3015_v0 = vsel %vm576_vm7, %v3013_v24, %v3014_v58  ;;  %v3024_v22 = vrot.slane %v3020_v15, 2 }
 0x27f   : > { %v2899_v10 = vrot.slane %v2895_v44, 1  ;;  %v3170_v14 = vstv %s7883_s9  ;;  %s8026_s9 = sld [smem:[#allocation6 + $0xe]] }
 0x280   : > { %v7749_v56 = vpop.permute.xlu1 %2815  ;;  %v7751_v25 = vpop.permute.xlu0 %2831  ;;  %v3036_v31 = vrot.slane %v3032_v53, 2 }
 0x281   : > { %v2834_v37 = vadd.f32 %v7751_v25, %v2802_v33  ;;  %v2794_v25 = vadd.f32 %v2793_v19, %v2776_v51  ;;  %v2818_v49 = vadd.f32 %v7749_v56, %v2790_v35  ;;  %v2900_v27 = vsel %vm427_vm6, %v2898_v12, %v2899_v10 }
 0x282   : > { %v3166_v10 = vstv %s7874_s3  ;;  %s8024_s3 = sld [smem:[#allocation6 + $0xd]] }
 0x283   : > { %v2869_v30 = vadd.f32 %v2867_v46, %v2834_v37  ;;  %v3025_v37 = vrot.slane %v3021_v6, 2 }
 0x284   : > { %v7753_v59 = vpop.permute.xlu1 %2823  ;;  %v7755_v5 = vpop.permute.xlu0 %2839 }
 0x285   : > { %v2842_v39 = vadd.f32 %v7755_v5, %v2810_v40  ;;  %v2826_v28 = vadd.f32 %v7753_v59, %v2794_v25  ;;  %v3041_v59 = vstv %s7827_s28  ;;  %v3158_v40 = vstv %s7850_s0  ;;  %s8006_s28 = sld [smem:[#allocation6 + $0x7]] }
 0x286   : > { %v3042_v36 = vmul.f32 %v7797_v55, %v3041_v59  ;;  %s8008_s0 = sld [smem:[#allocation8 + $0x7]] }
 0x288   : > { %v7757_v9 = vpop.permute.xlu1 %2912  ;;  %v7759_v2 = vpop.permute.xlu0 %2847 }
 0x289   : > { %v2915_v41 = vadd.f32 %v7757_v9, %v2869_v30  ;;  %v2850_v56 = vadd.f32 %v7759_v2, %v2818_v49  ;;  %v2880_v9 = vadd.f32 %v2878_v43, %v2842_v39  ;;  %v3043_v2 = vmul.f32 %v7800_v32, %v3041_v59 }
 0x28a   : > { %v3035_v32 = vrot.slane %v3031_v29, 2  ;;  %v3026_v43 = vsel %vm576_vm7, %v3024_v22, %v3025_v37  ;;  %v3386_v29 = vstv %s7894_s11  ;;  %s8033_s11 = sld [smem:[#allocation6 + $0x9]] }
 0x28b   : > { %v3047_v21 = vrot.slane %v3043_v2, 2 }
 0x28c   : > { %v7761_v62 = vpop.permute.xlu1 %2925  ;;  %v7763_v45 = vpop.permute.xlu0 %2855  ;;  %v3037_v61 = vsel %vm576_vm7, %v3035_v32, %v3036_v31 }
 0x28d   : > { %v2858_v5 = vadd.f32 %v7763_v45, %v2826_v28  ;;  %v2889_v45 = vsel %vm427_vm6, %v2887_v13, %v2888_v17  ;;  %v2928_v51 = vadd.f32 %v7761_v62, %v2880_v9  ;;  %v3162_v13 = vstv %s7861_s18  ;;  %v7910_v28 = vld [vmem:[#allocation2 + $0x50] sm:$0xff]  ;;  %s8014_s18 = sld [smem:[#allocation8 + $0xb]] }
 0x28e   : > { %v2891_v52 = vadd.f32 %v2889_v45, %v2850_v56  ;;  %v3238_v17 = vstv %s7865_s25  ;;  %v3159_v12 = vmul.f32 %v7910_v28, %v3158_v40  ;;  %v3163_v58 = vmul.f32 %v7910_v28, %v3162_v13  ;;  %s8018_s25 = sld [smem:[#allocation6 + $0xc]] }
 0x28f   : > { %v2902_v57 = vadd.f32 %v2900_v27, %v2858_v5  ;;  %v3239_v49 = vmul.f32 %v7910_v28, %v3238_v17  ;;  %v3260_v56 = vstv %s7888_s6  ;;  %v3271_v45 = vstv %s7892_s10  ;;  %s8028_s6 = sld [smem:[#allocation8 + $0xa]]  ;;  %s8030_s10 = sld [smem:[#allocation6 + $0x8]] }
 0x290   : > { %v7765_v48 = vpop.permute.xlu1 %2938  ;;  %v7767_v7 = vpop.permute.xlu0 %2964 }
 0x291   : > { %v2967_v26 = vadd.f32 %v7767_v7, %v2915_v41  ;;  %v2941_v50 = vadd.f32 %v7765_v48, %v2891_v52  ;;  %v3243_v27 = vrot.slane %v3239_v49, 1  ;;  %v3272_v52 = vmul.f32 %v7910_v28, %v3271_v45  ;;  %v4276_v49 = vld [vmem:[#allocation2 + $0x58] sm:$0x3] }
 0x293   : > { %v3017_v44 = vadd.f32 %v3015_v0, %v2967_v26  ;;  %v3261_v0 = vmul.f32 %v7910_v28, %v3260_v56 }
 0x294   : > { %v7769_v34 = vpop.permute.xlu1 %2951  ;;  %v7771_v3 = vpop.permute.xlu0 %2977 }
 0x295   : > { %v2980_v62 = vadd.f32 %v7771_v3, %v2928_v51  ;;  %v2954_v55 = vadd.f32 %v7769_v34, %v2902_v57  ;;  %v3046_v3 = vrot.slane %v3042_v36, 2 }
 0x297   : > { %v3028_v30 = vadd.f32 %v3026_v43, %v2980_v62  ;;  %v3048_v24 = vsel %vm576_vm7, %v3046_v3, %v3047_v21  ;;  %v3273_v62 = vmul.f32 %v3271_v45, %v7473_v8  ;;  %v3397_v43 = vstv %s7923_s12  ;;  %s8039_s12 = sld [smem:[#allocation6 + $0xa]] }
 0x298   : > { %v7773_v63 = vpop.permute.xlu1 %3060  ;;  %v7775_v23 = vpop.permute.xlu0 %2990 }
 0x299   : > { %v3063_v46 = vadd.f32 %v7773_v63, %v3017_v44  ;;  %v2993_v39 = vadd.f32 %v7775_v23, %v2941_v50  ;;  %v3249_v63 = vstv %s7869_s17  ;;  %v3240_v23 = vmul.f32 %v3238_v17, %v7473_v8  ;;  %s8020_s17 = sld [smem:[#allocation8 + $0x6]] }
 0x29a   : > { %v3250_v5 = vmul.f32 %v7910_v28, %v3249_v63  ;;  %v3251_v26 = vmul.f32 %v3249_v63, %v7473_v8  ;;  %v3387_v44 = vmul.f32 %v7910_v28, %v3386_v29 }
 0x29b   : > { %v3244_v36 = vrot.slane %v3240_v23, 1  ;;  %v3399_v23 = vmul.f32 %v4276_v49, %v3397_v43 }
 0x29c   : > { %v7779_v16 = vpop.permute.xlu1 %3073  ;;  %v7781_v47 = vpop.permute.xlu0 %3003  ;;  %v3254_v31 = vrot.slane %v3250_v5, 1  ;;  %v3255_v40 = vrot.slane %v3251_v26, 1  ;;  %v3408_v5 = vstv %s7944_s23  ;;  %s8043_s23 = sld [smem:[#allocation6 + $0xf]] }
 0x29d   : > { %v3006_v34 = vadd.f32 %v7781_v47, %v2954_v55  ;;  %v3076_v47 = vadd.f32 %v7779_v16, %v3028_v30  ;;  %v3039_v16 = vadd.f32 %v3037_v61, %v2993_v39  ;;  %v3388_v55 = vmul.f32 %v3386_v29, %v7473_v8 }
 0x29e   : > { %v3276_v39 = vrot.slane %v3272_v52, 1  ;;  %v3277_v30 = vrot.slane %v3273_v62, 1  ;;  %v3403_v26 = vrot.slane %v3399_v23, 2  ;;  %v3409_v29 = vmul.f32 %v7910_v28, %v3408_v5 }
 0x29f   : > { %v3050_v41 = vadd.f32 %v3048_v24, %v3006_v34  ;;  %v3657_v23 = vstv %s7990_s8  ;;  %s3699_s8 = sshll.u32 %s7482_s2, 4  ;;  %s8087_s8 = int_to_ptr.vmem [resolvable:$true] %s3699_s8 }
 0x2a0   : > { %v7793_v11 = vpop.permute.xlu1 %3086  ;;  %v7795_v38 = vpop.permute.xlu0 %3112 }
 0x2a1   : > { %v3115_v48 = vadd.f32 %v7795_v38, %v3063_v46  ;;  %v3089_v53 = vadd.f32 %v7793_v11, %v3039_v16  ;;  %v3265_v46 = vrot.slane %v3261_v0, 1 }
 0x2a3   : > { %v3160_v59 = vadd.f32 %v3159_v12, %v3115_v48  ;;  %v3392_v48 = vrot.slane %v3388_v55, 2  ;;  %v3540_v55 = vstv %s7967_s7  ;;  %s8050_s7 = sld [smem:[#allocation8 + $0x14]] }
 0x2a4   : > { %v7806_v18 = vpop.permute.xlu1 %3099  ;;  %v7810_v1 = vpop.permute.xlu0 %3125 }
 0x2a5   : > { %v3128_v6 = vadd.f32 %v7810_v1, %v3076_v47  ;;  %v3102_v9 = vadd.f32 %v7806_v18, %v3050_v41  ;;  %v3167_v1 = vmul.f32 %v7910_v28, %v3166_v10  ;;  %v3262_v18 = vmul.f32 %v3260_v56, %v7473_v8 }
 0x2a6   : > { %v3398_v10 = vmul.f32 %v7910_v28, %v3397_v43  ;;  %v3256_v47 = vsel %vm427_vm6, %v3254_v31, %v3255_v40  ;;  %v3419_v41 = vstv %s7939_s5  ;;  %s8041_s5 = sld [smem:[#allocation6 + $0xb]] }
 0x2a7   : > { %v3164_v11 = vadd.f32 %v3163_v58, %v3128_v6  ;;  %v3266_v3 = vrot.slane %v3262_v18, 1  ;;  %v3420_v56 = vmul.f32 %v7910_v28, %v3419_v41 }
 0x2a8   : > { %v7822_v54 = vpop.permute.xlu1 %3177  ;;  %v7829_v4 = vpop.permute.xlu0 %3138  ;;  %v3402_v6 = vrot.slane %v3398_v10, 2  ;;  %v3628_v10 = vstv %s7986_s24  ;;  %s8860_s24 = sld [smem:[#allocation17_spill]] }
 0x2a9   : > { %v3180_v51 = vadd.f32 %v7822_v54, %v3160_v59  ;;  %v3141_v37 = vadd.f32 %v7829_v4, %v3089_v53  ;;  %v3245_v4 = vsel %vm427_vm6, %v3243_v27, %v3244_v36  ;;  %v3267_v16 = vsel %vm427_vm6, %v3265_v46, %v3266_v3 }
 0x2aa   : > { %v3410_v53 = vmul.f32 %v4276_v49, %v3408_v5  ;;  %v3573_v46 = vstv %s7974_s22  ;;  %s8056_s22 = sld [smem:[#allocation8 + $0x15]] }
 0x2ab   : > { %v3168_v34 = vadd.f32 %v3167_v1, %v3141_v37 }
 0x2ac   : > { %v7842_v42 = vpop.permute.xlu1 %3185  ;;  %v7845_v60 = vpop.permute.xlu0 %3151 }
 0x2ad   : > { %v3154_v57 = vadd.f32 %v7845_v60, %v3102_v9  ;;  %v3171_v60 = vmul.f32 %v7910_v28, %v3170_v14  ;;  %v3188_v32 = vadd.f32 %v7842_v42, %v3164_v11  ;;  %v3391_v42 = vrot.slane %v3387_v44, 2 }
 0x2ae   : > { %v3424_v28 = vrot.slane %v3420_v56, 2  ;;  %v3413_v11 = vrot.slane %v3409_v29, 2  ;;  %v3537_v44 = vstv %s7965_s20  ;;  %v3635_v56 = vstv %s8001_s14  ;;  %s8048_s20 = sld [smem:[#allocation8 + $0x10]]  ;;  %s8862_s14 = sld [smem:[#allocation165_spill]] }
 0x2af   : > { %v3172_v50 = vadd.f32 %v3171_v60, %v3154_v57 }
 0x2b0   : > { %v7855_v20 = vpop.permute.xlu1 %3193  ;;  %v7863_v33 = vpop.permute.xlu0 %3209 }
 0x2b1   : > { %v3212_v54 = vadd.f32 %v7863_v33, %v3180_v51  ;;  %v3196_v63 = vadd.f32 %v7855_v20, %v3168_v34  ;;  %v3278_v20 = vsel %vm427_vm6, %v3276_v39, %v3277_v30  ;;  %v3599_v34 = vstv %s7976_s19  ;;  %s8060_s19 = sld [smem:[#allocation8 + $0x12]] }
 0x2b2   : > { %v3602_v39 = vstv %s7978_s29  ;;  %s8063_s29 = sld [smem:[#allocation8 + $0x13]] }
 0x2b3   : > { %v3247_v17 = vadd.f32 %v3245_v4, %v3212_v54  ;;  %v3414_v54 = vrot.slane %v3410_v53, 2 }
 0x2b4   : > { %v7880_v7 = vpop.permute.xlu1 %3201  ;;  %v7885_v19 = vpop.permute.xlu0 %3217 }
 0x2b5   : > { %v3220_v13 = vadd.f32 %v7885_v19, %v3188_v32  ;;  %v3204_v8 = vadd.f32 %v7880_v7, %v3172_v50  ;;  %v3570_v50 = vstv %s7972_s4  ;;  %s8054_s4 = sld [smem:[#allocation8 + $0x11]] }
 0x2b7   : > { %v3258_v58 = vadd.f32 %v3256_v47, %v3220_v13 }
 0x2b8   : > { %v7898_v25 = vpop.permute.xlu1 %3290  ;;  %v7904_v35 = vpop.permute.xlu0 %3225 }
 0x2b9   : > { %v3293_v61 = vadd.f32 %v7898_v25, %v3247_v17  ;;  %v3228_v7 = vadd.f32 %v7904_v35, %v3196_v63  ;;  %v3393_v25 = vsel %vm576_vm7, %v3391_v42, %v3392_v48  ;;  %v3421_v35 = vmul.f32 %v4276_v49, %v3419_v41 }
 0x2ba   : > { %v3660_v63 = vstv %s7983_s30  ;;  %v3549_v41 = vstv %s7992_s26  ;;  %s8070_s30 = sld [smem:[#allocation8 + $0x17]] }
 0x2bb   : > { %v3269_v51 = vadd.f32 %v3267_v16, %v3228_v7  ;;  %v3425_v18 = vrot.slane %v3421_v35, 2  ;;  %v3664_v35 = vstv %s8006_s28  ;;  %s8861_s26 = sld [smem:[#allocation20_spill]] }
 0x2bc   : > { %v7918_v38 = vpop.permute.xlu1 %3303  ;;  %v3234_v15 = vpop.permute.xlu0 %3233 }
 0x2bd   : > { %v3236_v24 = vadd.f32 %v3234_v15, %v3204_v8  ;;  %v3306_v15 = vadd.f32 %v7918_v38, %v3258_v58  ;;  %v3426_v31 = vsel %vm576_vm7, %v3424_v28, %v3425_v18  ;;  %v3631_v8 = vstv %s7980_s16  ;;  %s8068_s16 = sld [smem:[#allocation8 + $0x16]] }
 0x2be   : > { %v3567_v28 = vstv %s8014_s18  ;;  %s4322_s18 = scalar_lea.vmem %s8087_s8, 1024 }
 0x2bf   : > { %v3280_v9 = vadd.f32 %v3278_v20, %v3236_v24  ;;  %v3546_v24 = vstv %s7988_s27  ;;  %s4185_s27 = sshll.u32 %s8860_s24, 10  ;;  %p4323_p12 = scmp.ne.s32.totalorder %s8087_s8, %s4322_s18 }
 0x2c0   : > { %v7933_v2 = vpop.permute.xlu1 %3316  ;;  %v3343_v22 = vpop.permute.xlu0 %3342  ;;  %s8085_s28 = scalar_lea.hbm %s8862_s14, %s4185_s27 }
 0x2c1   : > { %v3345_v14 = vadd.f32 %v3343_v22, %v3293_v61  ;;  %v3319_v57 = vadd.f32 %v7933_v2, %v3269_v51  ;;  %v3404_v22 = vsel %vm576_vm7, %v3402_v6, %v3403_v26  ;;  %p8863_p2 = scmp.ne.s32.totalorder %s8861_s26, 0 }
 0x2c3   : > { %v3395_v36 = vadd.f32 %v3393_v25, %v3345_v14  ;;  %v3577_v25 = vstv %s7996_s1  ;;  %p4324_p3 = pnand %p4323_p12, %p8863_p2 }
 0x2c4   : > { %v3330_v33 = vpop.permute.xlu1 %3329  ;;  %v3356_v21 = vpop.permute.xlu0 %3355 }
 0x2c5   : > { %v3358_v27 = vadd.f32 %v3356_v21, %v3306_v15  ;;  %v3332_v38 = vadd.f32 %v3330_v33, %v3280_v9  ;;  %v3415_v33 = vsel %vm576_vm7, %v3413_v11, %v3414_v54  ;;  %v3564_v9 = vstv %s8008_s0  ;;  %s8099_s0 = scalar_lea.sflag [#allocation4], %s227_s13  ;;  %p4325_p4 = pneg %p4324_p3 }
 0x2c7   : > { %v3406_v2 = vadd.f32 %v3404_v22, %v3358_v27  ;;  %v3555_v22 = vstv %s8020_s17 }
 0x2c9   : > { %v3439_v12 = vpop.permute.xlu1 %3438 }
 0x2ca   : > { %v3369_v19 = vpop.permute.xlu0 %3368  ;;  %v3441_v1 = vadd.f32 %v3439_v12, %v3395_v36 }
 0x2cb   : > { %v3371_v60 = vadd.f32 %v3369_v19, %v3319_v57 }
 0x2cd   : > { %v3452_v59 = vpop.permute.xlu1 %3451  ;;  %v3417_v43 = vadd.f32 %v3415_v33, %v3371_v60  ;;  %v3614_v33 = vstv %s8024_s3 }
 0x2ce   : > { %v3382_v45 = vpop.permute.xlu0 %3381  ;;  %v3454_v32 = vadd.f32 %v3452_v59, %v3406_v2  ;;  %v3606_v59 = vstv %s7998_s21  ;;  %v3558_v2 = vstv %s8028_s6 }
 0x2cf   : > { %v3384_v37 = vadd.f32 %v3382_v45, %v3332_v38 }
 0x2d1   : > { %v3465_v0 = vpop.permute.xlu1 %3464  ;;  %v3428_v3 = vadd.f32 %v3426_v31, %v3384_v37  ;;  %v3639_v31 = vstv %s8039_s12 }
 0x2d2   : > { %v3491_v52 = vpop.permute.xlu0 %3490  ;;  %v3467_v48 = vadd.f32 %v3465_v0, %v3417_v43 }
 0x2d3   : > { %v3493_v62 = vadd.f32 %v3491_v52, %v3441_v1 }
 0x2d5   : > { %vm3533_vm1 = vcmp.gt.f32.partialorder %v3493_v62, 0.0  ;;  %v3534_v4 = vmul.f32 0.01, %v3493_v62  ;;  %v3478_v40 = vpop.permute.xlu1 %3477 }
 0x2d6   : > { %v3504_v21 = vpop.permute.xlu0 %3503  ;;  %v3480_v42 = vadd.f32 %v3478_v40, %v3428_v3  ;;  %v3668_v40 = vstv %s8041_s5 }
 0x2d7   : > { %v3535_v13 = vsel %vm3533_vm1, %v3493_v62, %v3534_v4  ;;  %v3506_v17 = vadd.f32 %v3504_v21, %v3454_v32  ;;  %v3585_v62 = vstv %s8018_s25  ;;  %v3610_v4 = vstv %s8033_s11  ;;  %s4401_s25 = smov [#allocation9]  }
 0x2d8   : > { %v3538_v30 = vmul.f32 %v3537_v44, %v3535_v13  ;;  %v3581_v44 = vstv %s8030_s10  ;;  %s4326_s17 = sshll.u32 %s4401_s25, 4  ;;  %s4327_s17 = int_to_ptr.vmem [resolvable:$false] %s4326_s17 }
 0x2d9   : > { %vm3542_vm2 = vcmp.gt.f32.partialorder %v3506_v17, 0.0  ;;  %v3543_v61 = vmul.f32 0.01, %v3506_v17  ;;  %v3530_v12 = vpop.permute.xlu1 %3529  ;;  %s4328_s3 = scalar_lea.vmem %s4327_s17, 2048  ;;  %p4329_p9 = scmp.lt.s32.totalorder %s8087_s8, %s4327_s17 }
 0x2da   : > { %v3541_v47 = vadd.f32 %v3540_v55, %v3538_v30  ;;  %v3532_v19 = vadd.f32 %v3530_v12, %v3480_v42  ;;  %v3517_v49 = vpop.permute.xlu0 %3516  ;;  %v3592_v12 = vstv %s8048_s20  ;;  %p4330_p7 = scmp.lt.s32.totalorder %s4328_s3, %s4322_s18 }
 0x2db   : > { %v3544_v7 = vsel %vm3542_vm2, %v3506_v17, %v3543_v61  ;;  %v3519_v58 = vadd.f32 %v3517_v49, %v3467_v48 }
 0x2dc   : > { %v3574_v14 = vmul.f32 %v3573_v46, %v3541_v47  ;;  %v3603_v5 = vmul.f32 %v3602_v39, %v3541_v47  ;;  %v3632_v16 = vmul.f32 %v3631_v8, %v3541_v47  ;;  %v3661_v20 = vmul.f32 %v3660_v63, %v3541_v47  ;;  %p4331_p5 = por %p4330_p7, %p4329_p9 }
 0x2dd   : > { %v3547_v15 = vmul.f32 %v3546_v24, %v3544_v7  ;;  %vm3560_vm3 = vcmp.gt.f32.partialorder %v3532_v19, 0.0  ;;  %v3561_v6 = vmul.f32 0.01, %v3532_v19  ;;  %vm3551_vm4 = vcmp.gt.f32.partialorder %v3519_v58, 0.0 }
 0x2de   : > { %v3552_v29 = vmul.f32 0.01, %v3519_v58  ;;  %v3575_v53 = vadd.f32 %v3574_v14, %v3570_v50  ;;  %v3604_v51 = vadd.f32 %v3603_v5, %v3599_v34  ;;  %v3633_v27 = vadd.f32 %v3632_v16, %v3628_v10  ;;  %p4332_p6 = pnand %p4331_p5, %p4325_p4 }
 0x2df   : > { %v3550_v26 = vadd.f32 %v3549_v41, %v3547_v15  ;;  %v3562_v45 = vsel %vm3560_vm3, %v3532_v19, %v3561_v6  ;;  %v3662_v36 = vadd.f32 %v3661_v20, %v3657_v23  ;;  %v3643_v50 = vstv %s8026_s9 }
 0x2e0   : > { %v3565_v18 = vmul.f32 %v3564_v9, %v3562_v45  ;;  %v3553_v37 = vsel %vm3551_vm4, %v3519_v58, %v3552_v29  ;;  %v3672_v46 = vstv %s8043_s23  ;;  %v3595_v10 = vstv %s8050_s7 }
 0x2e1   : > { %v3578_v38 = vmul.f32 %v3577_v25, %v3550_v26  ;;  %v3607_v57 = vmul.f32 %v3606_v59, %v3550_v26  ;;  %v3636_v1 = vmul.f32 %v3635_v56, %v3550_v26  ;;  %v3665_v0 = vmul.f32 %v3664_v35, %v3550_v26 }
 0x2e2   : > { %v3556_v55 = vmul.f32 %v3555_v22, %v3553_v37  ;;  %v3568_v32 = vadd.f32 %v3567_v28, %v3565_v18  ;;  %v3621_v23 = vstv %s8054_s4  ;;  %v3624_v41 = vstv %s8056_s22 }
 0x2e3   : > { %v3579_v11 = vadd.f32 %v3578_v38, %v3575_v53  ;;  %v3608_v54 = vadd.f32 %v3607_v57, %v3604_v51  ;;  %v3637_v52 = vadd.f32 %v3636_v1, %v3633_v27  ;;  %v3666_v60 = vadd.f32 %v3665_v0, %v3662_v36 }
 0x2e4   : > { %v3559_v3 = vadd.f32 %v3558_v2, %v3556_v55  ;;  %v3586_v17 = vmul.f32 %v3585_v62, %v3568_v32  ;;  %v3615_v39 = vmul.f32 %v3614_v33, %v3568_v32  ;;  %v3644_v8 = vmul.f32 %v3643_v50, %v3568_v32 }
 0x2e5   : > { %v3673_v30 = vmul.f32 %v3672_v46, %v3568_v32  ;;  %v3650_v7 = vstv %s8060_s19  ;;  %v3679_v58 = vstv %s8063_s29  ;;  %v3653_v25 = vstv %s8068_s16 }
 0x2e6   : > { %v3582_v21 = vmul.f32 %v3581_v44, %v3559_v3  ;;  %v3611_v43 = vmul.f32 %v3610_v4, %v3559_v3  ;;  %v3640_v34 = vmul.f32 %v3639_v31, %v3559_v3  ;;  %v3669_v13 = vmul.f32 %v3668_v40, %v3559_v3 }
 0x2e7   : > { %v3682_v15 = vstv %s8070_s30 }
 0x2e8   : > { %v3583_v42 = vadd.f32 %v3582_v21, %v3579_v11  ;;  %v3612_v48 = vadd.f32 %v3611_v43, %v3608_v54  ;;  %v3641_v63 = vadd.f32 %v3640_v34, %v3637_v52  ;;  %v3670_v61 = vadd.f32 %v3669_v13, %v3666_v60 }
 0x2ea   : > { %v3587_v47 = vadd.f32 %v3586_v17, %v3583_v42  ;;  %v3616_v24 = vadd.f32 %v3615_v39, %v3612_v48  ;;  %v3645_v19 = vadd.f32 %v3644_v8, %v3641_v63  ;;  %v3674_v49 = vadd.f32 %v3673_v30, %v3670_v61 }
 0x2ec   : > { %vm3588_vm5 = vcmp.gt.f32.partialorder %v3587_v47, 0.0  ;;  %v3589_v14 = vmul.f32 0.01, %v3587_v47  ;;  %vm3617_vm6 = vcmp.gt.f32.partialorder %v3616_v24, 0.0  ;;  %v3618_v5 = vmul.f32 0.01, %v3616_v24 }
 0x2ed   : > { %vm3646_vm7 = vcmp.gt.f32.partialorder %v3645_v19, 0.0  ;;  %v3647_v16 = vmul.f32 0.01, %v3645_v19  ;;  %vm3675_vm8 = vcmp.gt.f32.partialorder %v3674_v49, 0.0  ;;  %v3676_v20 = vmul.f32 0.01, %v3674_v49 }
 0x2ee   : > { %v3590_v6 = vsel %vm3588_vm5, %v3587_v47, %v3589_v14  ;;  %v3619_v59 = vsel %vm3617_vm6, %v3616_v24, %v3618_v5 }
 0x2ef   : > { %v3593_v56 = vmul.f32 %v3592_v12, %v3590_v6  ;;  %v3622_v35 = vmul.f32 %v3621_v23, %v3619_v59  ;;  %v3648_v9 = vsel %vm3646_vm7, %v3645_v19, %v3647_v16  ;;  %v3677_v26 = vsel %vm3675_vm8, %v3674_v49, %v3676_v20 }
 0x2f0   : > { %v3651_v45 = vmul.f32 %v3650_v7, %v3648_v9  ;;  %v3680_v29 = vmul.f32 %v3679_v58, %v3677_v26 }
 0x2f1   : > { %v3596_v53 = vadd.f32 %v3595_v10, %v3593_v56  ;;  %v3625_v51 = vadd.f32 %v3624_v41, %v3622_v35 }
 0x2f2   : > { %v3654_v27 = vadd.f32 %v3653_v25, %v3651_v45  ;;  %v3683_v36 = vadd.f32 %v3682_v15, %v3680_v29 }
 0x2f3   : > { %3597 = vst.msk [vmem:[%s7482_s2 + $0x8] sm:$0xff] %vm1917_vm12, %v3596_v53  ;;  %4162 = vst.msk [vmem:[%s7482_s2 + $0x18] sm:$0xff] %vm1917_vm12, %v3625_v51 }
 0x2f4   : > { %4170 = vst.msk [vmem:[%s7482_s2 + $0x28] sm:$0xff] %vm1917_vm12, %v3654_v27  ;;  %4178 = vst.msk [vmem:[%s7482_s2 + $0x38] sm:$0xff] %vm1917_vm12, %v3683_v36 }
 0x2f5   : > { %4335 = shalt.err (!%p4332_p6)
}
 0x2f6   : > { %s4336_s15 = scalar_lea.hbm %s8085_s28, 1024  ;;  %s4340_s9 = scalar_lea.hbm %s8862_s14, 2048 }
 0x2f7   : > { %p4337_p10 = scmp.ne.s32.totalorder %s8085_s28, %s4336_s15  ;;  %p4341_p11 = scmp.lt.u32.totalorder %s8085_s28, %s8862_s14 }
 0x2f8   : > { %p4342_p13 = scmp.lt.u32.totalorder %s4340_s9, %s4336_s15  ;;  %p4344_p12 = scmp.lt.u32.totalorder %s4336_s15, %s8085_s28 }
 0x2f9   : > { %p4338_p8 = pnand %p4337_p10, %p8863_p2 }
 0x2fa   : > { %p4343_p1 = por %p4342_p13, %p4341_p11 }
 0x2fb   : > { %p4339_p0 = pneg %p4338_p8 }
 0x2fc   : > { %p4345_p3 = por %p4344_p12, %p4343_p1 }
 0x2fe   : > { %p4346_p4 = pnand %p4345_p3, %p4339_p0 }
 0x300   : > { %4349 = shalt.err (!%p4346_p4)
}
 0x301   : > { %s4402_s11 = smov 128   ;;  %s4403_s12 = smov 8  }
 0x302   : > { %4198 = dma.vmem_to_hbm [thread:$0]  (%p8863_p2), %s8087_s8, 1024, %s8085_s28, %s8099_s0, %s4402_s11, %s4402_s11, %s4403_s12  }
 0x303 PF: > { %s8864_s5 = sld [smem:[#allocation16_spill]]  ;;  %s8865_s23 = sld [smem:[#allocation13_spill]] }
 0x304   : > { %s8866_s20 = sld [smem:[#allocation21_spill]] }
 0x309   : > { %p4220_p9 = scmp.ge.s32.totalorder %s8864_s5, 2  ;;  %s3714_s7 = sand.u32 1, %s8865_s23  }
 0x30a   : > { %p8867_p7 = scmp.ne.s32.totalorder %s8866_s20, 0  ;;  %s3715_s4 = scalar_lea.sflag [#allocation4], %s3714_s7 }
 0x30c   : > { %p4211_p5 = pnand %p4220_p9, %p8867_p7 }
 0x30e   : > { %4375 = dma.done.wait (!%p4211_p5), %s3715_s4, 1024  }
 0x30f   : > { %4377 = vsyncadd (!%p4211_p5), %s3715_s4, 4294966272  ;;  %s8868_s18 = sld [smem:[#allocation18_spill]]  ;;  %s8869_s15 = sld [smem:[#allocation14_spill]] }
 0x310   : > { %s8870_s16 = sld [smem:[#allocation15_spill]]  ;;  %s8871_s17 = sld [smem:[#allocation19_spill]] }
 0x315   : > { %p16_p6 = scmp.ge.s32.totalorder %s8868_s18, 4  }
 0x317   :  { %18 = sbr.rel (!%p16_p6) target bundleno = 11 (0xb), region = 93 }
 0x31e   :  { %3720 = vsyncpa [#allocation4], 1 }
 0x31f   :  { %3722 = vsyncpa [#allocation4 + $0x1], 1 }
 0x320   :  { %3723 = vsyncpa [#allocation5], 1 }
 0x321   :  { %3725 = vsyncpa [#allocation5 + $0x1], 1 }
 0x322   :  { %3726 = vsyncpa [#allocation7], 1 }

</bundles_post_ra>
